<compile_context>
chip_gen: v5e
topology: v5e:2x2
jax: 0.10.0
libtpu: 0.0.40
codegen_flags: <defaults>
</compile_context>

<pallas_src>
import functools

import jax
import jax.numpy as jnp
from jax import lax
from jax.experimental import pallas as pl
from jax.experimental.pallas import tpu as pltpu


# ------------------------------------------------------------------
# Helpers
# ------------------------------------------------------------------
def _cparams(dims, vmem_mb=48):
    return pltpu.CompilerParams(
        dimension_semantics=dims,
        vmem_limit_bytes=vmem_mb * 1024 * 1024)


def _vmem_guard(nbytes, what):
    if nbytes > 48 * 1024 * 1024:
        raise ValueError(
            f"{what}: estimated per-step VMEM footprint {nbytes / 2**20:.1f} MiB exceeds "
            "the 48 MiB budget; implement the TODO(synk) spatially-chunked variant.")


def _pick_channel_tile(cout):
    if cout <= 256:
        return cout
    for ct in (256, 128, 64, 32, 16, 8):
        if cout % ct == 0:
            return ct
    raise ValueError(f"Cout={cout} has no channel tile that is a multiple of 8.")


def _pick_spatial_tile(s, max_tile=2048, full_limit=1 << 15):
    # Largest lane-dense (multiple of 128) divisor of s; full s as a bounded fallback.
    top = min(max_tile, (s // 128) * 128)
    for t in range(top, 0, -128):
        if s % t == 0:
            return t
    if s <= full_limit:
        return s
    raise ValueError(
        f"S={s} is large and not divisible by any multiple-of-128 tile; pad H*W to a "
        "multiple of 128 before calling the kernel.")


def _pick_head_group(num_heads, ch, max_fold):
    # Largest head group whose folded channel width is a multiple of 8 and <= max_fold
    # (MXU tile: 128 on v5e, 256 on v6e/v7x). Fall back to folding all heads.
    cands = [hg for hg in range(1, num_heads + 1)
             if num_heads % hg == 0 and (hg * ch) % 8 == 0 and hg * ch <= max_fold]
    return max(cands) if cands else num_heads


# ------------------------------------------------------------------
# Kernel 1: fused (1x1 conv -> 3x3 depthwise conv), channels-first, lane-dense
# ------------------------------------------------------------------
def _fused_proj_kernel(x_ref, rc_ref, w1_ref, dw_ref, o_ref, *, H, W, mxu_dtype):
    # x_ref: (1, Cin, S); rc_ref: (2, S) int32 [row; col]; w1_ref: (ct, Cin);
    # dw_ref: (ct, 9); o_ref: (1, ct, S).
    x = x_ref[0]
    w1 = w1_ref[...]
    if mxu_dtype is not None:                      # bf16 MXU operands, f32 accumulate
        x = x.astype(mxu_dtype)
        w1 = w1.astype(mxu_dtype)
    t = jnp.dot(w1, x, preferred_element_type=jnp.float32)     # (ct, S) in VMEM/f32

    row = rc_ref[0:1, :]                           # (1, S) int32
    col = rc_ref[1:2, :]
    dw = dw_ref[...].astype(jnp.float32)           # (ct, 9)
    S = H * W

    acc = jnp.zeros_like(t)
    for ky in range(3):
        dy = ky - 1
        for kx in range(3):
            dx = kx - 1
            off = dy * W + dx                      # src flat offset for this tap
            src = t if off == 0 else pltpu.roll(t, shift=(-off) % S, axis=1)
            conds = []
            if dy < 0:
                conds.append(row >= -dy)
            if dy > 0:
                conds.append(row <= H - 1 - dy)
            if dx < 0:
                conds.append(col >= -dx)
            if dx > 0:
                conds.append(col <= W - 1 - dx)
            if conds:
                m = conds[0]
                for c_ in conds[1:]:
                    m = m & c_
                src = jnp.where(m, src, 0.0)       # zero-pad boundary (pad=1 conv)
            k_idx = ky * 3 + kx
            tap = dw[:, k_idx:k_idx + 1]           # (ct, 1) per-channel scalar
            acc = acc + src * tap                  # VPU FMA in f32
    o_ref[0] = acc.astype(o_ref.dtype)


def fused_proj(x_bcs, w1_oihw, dw_c1kk, H, W, *, mxu_dtype=None):
    """1x1 conv followed by depthwise 3x3 (stride 1, pad 1), both bias-free, fused.

    x_bcs: (B, Cin, S) channels-first with S = H*W.
    w1_oihw: (Cout, Cin, 1, 1).  dw_c1kk: (Cout, 1, 3, 3).
    Returns (B, Cout, S).
    """
    b, cin, s = x_bcs.shape
    assert s == H * W
    cout = w1_oihw.shape[0]
    w1 = w1_oihw.reshape(cout, cin)
    dw = dw_c1kk.reshape(cout, 9)
    ct = _pick_channel_tile(cout)

    # TODO(synk): for very large H*W, row-tile S with a W-sized halo (2 image rows)
    # instead of holding the whole spatial extent per step (needed on v7x 64 MiB VMEM).
    _vmem_guard(4 * (2 * cin * s + 2 * ct * s + 2 * ct * s), "fused_proj")

    pos = jnp.arange(s, dtype=jnp.int32)
    rowcol = jnp.stack([pos // W, pos % W], axis=0)            # (2, S), tiny

    kern = functools.partial(_fused_proj_kernel, H=H, W=W, mxu_dtype=mxu_dtype)
    return pl.pallas_call(
        kern,
        out_shape=jax.ShapeDtypeStruct((b, cout, s), x_bcs.dtype),
        grid_spec=pltpu.PrefetchScalarGridSpec(
            num_scalar_prefetch=0,
            grid=(b, cout // ct),
            in_specs=[
                pl.BlockSpec((1, cin, s), lambda bi, ci: (bi, 0, 0)),
                pl.BlockSpec((2, s), lambda bi, ci: (0, 0)),
                pl.BlockSpec((ct, cin), lambda bi, ci: (ci, 0)),
                pl.BlockSpec((ct, 9), lambda bi, ci: (ci, 0)),
            ],
            out_specs=pl.BlockSpec((1, ct, s), lambda bi, ci: (bi, ci, 0)),
        ),
        compiler_params=_cparams(("parallel", "parallel")),
    )(x_bcs, rowcol, w1, dw)


# ------------------------------------------------------------------
# Kernel 2: attention core over (batch, head-group) grid
# ------------------------------------------------------------------
def _attention_kernel(q_ref, k_ref, v_ref, t_ref, o_ref, *, ch, mxu_dtype, approx_recip):
    q = q_ref[0].astype(jnp.float32)               # (Cg, S)
    k = k_ref[0].astype(jnp.float32)
    v = v_ref[0]
    temp = t_ref[...]                              # (Cg, 1) per-row (== per-head) temp

    # torch.nn.functional.normalize: x / max(||x||, 1e-12)  (rsqrt form, no divides)
    eps2 = 1e-24
    q_inv = lax.rsqrt(jnp.maximum(jnp.sum(q * q, axis=-1, keepdims=True), eps2))
    k_inv = lax.rsqrt(jnp.maximum(jnp.sum(k * k, axis=-1, keepdims=True), eps2))
    qn = q * (q_inv * temp)                        # temperature folded into q rows
    kn = k * k_inv

    if mxu_dtype is not None:
        qn = qn.astype(mxu_dtype)
        kn = kn.astype(mxu_dtype)
    # (Cg, Cg) logits for the whole head group in one MXU pass; contraction over the
    # spatial axis of both operands (no explicit transpose).
    logits = lax.dot_general(qn, kn, (((1,), (1,)), ((), ())),
                             preferred_element_type=jnp.float32)

    # Block-diagonal head mask generated in-kernel (no (C, C) HBM bias array).
    cg = logits.shape[0]
    inv_ch = 1.0 / float(ch)
    rh = jnp.floor((lax.broadcasted_iota(jnp.int32, (cg, cg), 0).astype(jnp.float32)
                    + 0.5) * inv_ch)
    chd = jnp.floor((lax.broadcasted_iota(jnp.int32, (cg, cg), 1).astype(jnp.float32)
                     + 0.5) * inv_ch)
    logits = jnp.where(rh == chd, logits, -1e30)   # masked entries -> exp underflows to 0

    logits = logits - jnp.max(logits, axis=-1, keepdims=True)
    e = jnp.exp(logits)
    inv_den = pl.reciprocal(jnp.sum(e, axis=-1, keepdims=True), approx=approx_recip)
    p = e * inv_den                                # column reciprocal + broadcast multiply

    pv = p if mxu_dtype is None else p.astype(mxu_dtype)
    vv = v.astype(jnp.float32) if mxu_dtype is None else v.astype(mxu_dtype)
    out = jnp.dot(pv, vv, preferred_element_type=jnp.float32)
    o_ref[0] = out.astype(o_ref.dtype)


def attention_core(q, kv, temperature, num_heads, *, mxu_dtype=None, max_fold=256):
    """q: (B, C, S); kv: (B, 2C, S) (k = channels [0,C), v = channels [C,2C)).

    temperature: (num_heads, 1, 1).  Returns (B, C, S).
    """
    b, c, s = q.shape
    assert kv.shape == (b, 2 * c, s)
    assert c % num_heads == 0
    ch = c // num_heads
    hg = _pick_head_group(num_heads, ch, max_fold)
    cg = hg * ch
    n_groups = c // cg

    # TODO(synk): for very large H*W on v7x (64 MiB VMEM) add an 'arbitrary' grid axis
    # over S chunks (accumulate q.k^T and row sum-of-squares, then a second chunked
    # pass for P @ V) instead of whole-(Cg, S) blocks.
    _vmem_guard(4 * (2 * 4 * cg * s + 2 * cg * cg), "attention_core")

    temp_rows = jnp.repeat(temperature.reshape(num_heads), ch).reshape(c, 1)
    temp_rows = temp_rows.astype(jnp.float32)

    qspec = pl.BlockSpec((1, cg, s), lambda bi, gi: (bi, gi, 0))
    if cg % 8 == 0:
        # k and v are read straight out of the fused kv tensor (no XLA slice copies).
        kspec = pl.BlockSpec((1, cg, s), lambda bi, gi: (bi, gi, 0))
        vspec = pl.BlockSpec((1, cg, s), lambda bi, gi: (bi, n_groups + gi, 0))
        k_in, v_in = kv, kv
    else:
        # Rare fallback (Cg not sublane-aligned inside the 2C tensor): slice once in XLA.
        k_in, v_in = kv[:, :c, :], kv[:, c:, :]
        kspec = pl.BlockSpec((1, cg, s), lambda bi, gi: (bi, gi, 0))
        vspec = pl.BlockSpec((1, cg, s), lambda bi, gi: (bi, gi, 0))

    kern = functools.partial(_attention_kernel, ch=ch, mxu_dtype=mxu_dtype,
                             approx_recip=(mxu_dtype is not None))
    return pl.pallas_call(
        kern,
        out_shape=jax.ShapeDtypeStruct((b, c, s), q.dtype),
        grid_spec=pltpu.PrefetchScalarGridSpec(
            num_scalar_prefetch=0,
            grid=(b, n_groups),
            in_specs=[
                qspec, kspec, vspec,
                pl.BlockSpec((cg, 1), lambda bi, gi: (gi, 0)),
            ],
            out_specs=pl.BlockSpec((1, cg, s), lambda bi, gi: (bi, gi, 0)),
        ),
        compiler_params=_cparams(("parallel", "parallel")),
    )(q, k_in, v_in, temp_rows)


# ------------------------------------------------------------------
# Kernel 3: 1x1 conv (project_out) == channel matmul, lane-dense spatial tiles
# ------------------------------------------------------------------
def _pointwise_kernel(x_ref, w_ref, o_ref, *, mxu_dtype):
    x = x_ref[0]                                   # (Cin, ts)
    w = w_ref[...]                                 # (Cout, Cin)
    if mxu_dtype is not None:
        x = x.astype(mxu_dtype)
        w = w.astype(mxu_dtype)
    o_ref[0] = jnp.dot(w, x, preferred_element_type=jnp.float32).astype(o_ref.dtype)


def pointwise_conv(x_bcs, w_oihw, *, mxu_dtype=None):
    b, cin, s = x_bcs.shape
    cout = w_oihw.shape[0]
    w2d = w_oihw.reshape(cout, cin)
    ts = _pick_spatial_tile(s)
    kern = functools.partial(_pointwise_kernel, mxu_dtype=mxu_dtype)
    return pl.pallas_call(
        kern,
        out_shape=jax.ShapeDtypeStruct((b, cout, s), x_bcs.dtype),
        grid_spec=pltpu.PrefetchScalarGridSpec(
            num_scalar_prefetch=0,
            grid=(b, s // ts),
            in_specs=[
                pl.BlockSpec((1, cin, ts), lambda bi, si: (bi, 0, si)),
                pl.BlockSpec((cout, cin), lambda bi, si: (0, 0)),
            ],
            out_specs=pl.BlockSpec((1, cout, ts), lambda bi, si: (bi, 0, si)),
        ),
        compiler_params=_cparams(("parallel", "parallel")),
    )(x_bcs, w2d)


# ------------------------------------------------------------------
# Module forward — channels-first everywhere (reshapes only, no transposes)
# ------------------------------------------------------------------
def attention_forward(params, x, y, num_heads, *, mxu_dtype=None, max_fold=256):
    b, c, h, w = x.shape
    if y.shape[2:] != (h, w):
        # F.interpolate(mode='bilinear', align_corners=False) equivalent (XLA glue).
        y = jax.image.resize(y, (y.shape[0], y.shape[1], h, w),
                             method="bilinear", antialias=False)
    assert x.shape[1:] == y.shape[1:]

    s = h * w
    x_f = x.reshape(b, c, s)                       # contiguous reshape, no data movement
    y_f = y.reshape(b, c, s)

    kv = fused_proj(y_f, params["kv_w"], params["kv_dw_w"], h, w, mxu_dtype=mxu_dtype)
    q = fused_proj(x_f, params["q_w"], params["q_dw_w"], h, w, mxu_dtype=mxu_dtype)

    out = attention_core(q, kv, params["temperature"], num_heads,
                         mxu_dtype=mxu_dtype, max_fold=max_fold)
    out = pointwise_conv(out, params["proj_w"], mxu_dtype=mxu_dtype)
    return out.reshape(b, c, h, w)


# ------------------------------------------------------------------
# Pure-JAX reference (for correctness check)
# ------------------------------------------------------------------
def ref_forward(params, x, y, num_heads):
    b, c, h, w = x.shape

    def pw(t, wgt):
        return jnp.einsum("bchw,oc->bohw", t, wgt[:, :, 0, 0])

    def dw(t, wgt):
        return jax.lax.conv_general_dilated(
            t, wgt, window_strides=(1, 1), padding="SAME",
            feature_group_count=t.shape[1],
            dimension_numbers=("NCHW", "OIHW", "NCHW"))

    kv = dw(pw(y, params["kv_w"]), params["kv_dw_w"])
    k, v = jnp.split(kv, 2, axis=1)
    q = dw(pw(x, params["q_w"]), params["q_dw_w"])

    ch = c // num_heads
    qh = q.reshape(b, num_heads, ch, h * w)
    kh = k.reshape(b, num_heads, ch, h * w)
    vh = v.reshape(b, num_heads, ch, h * w)

    def l2n(t):
        return t / jnp.maximum(
            jnp.sqrt(jnp.sum(t * t, axis=-1, keepdims=True)), 1e-12)

    qh, kh = l2n(qh), l2n(kh)
    attn = jnp.einsum("bhcd,bhed->bhce", qh, kh) * params["temperature"].reshape(
        1, num_heads, 1, 1)
    attn = jax.nn.softmax(attn, axis=-1)
    out = jnp.einsum("bhce,bhed->bhcd", attn, vh)
    return pw(out.reshape(b, c, h, w), params["proj_w"])


# ------------------------------------------------------------------
def make_params(key, dim, num_heads):
    ks = jax.random.split(key, 5)
    s = 0.05
    return {
        "kv_w": s * jax.random.normal(ks[0], (2 * dim, dim, 1, 1), jnp.float32),
        "kv_dw_w": s * jax.random.normal(ks[1], (2 * dim, 1, 3, 3), jnp.float32),
        "q_w": s * jax.random.normal(ks[2], (dim, dim, 1, 1), jnp.float32),
        "q_dw_w": s * jax.random.normal(ks[3], (dim, 1, 3, 3), jnp.float32),
        "proj_w": s * jax.random.normal(ks[4], (dim, dim, 1, 1), jnp.float32),
        "temperature": jnp.ones((num_heads, 1, 1), jnp.float32),
    }


if __name__ == "__main__":
    jax.config.update("jax_default_matmul_precision", "highest")

    dim, num_heads = 64, 8
    B, H, W = 2, 16, 16            # S = 256 (lane-dense), 2 head-groups with max_fold=32

    key = jax.random.PRNGKey(0)
    kp, kx, ky = jax.random.split(key, 3)
    params = make_params(kp, dim, num_heads)
    x = jax.random.normal(kx, (B, dim, H, W), jnp.float32)
    y = jax.random.normal(ky, (B, dim, H, W), jnp.float32)

    @jax.jit
    def fwd_f32(p, xx, yy):
        return attention_forward(p, xx, yy, num_heads, max_fold=32)

    @jax.jit
    def fwd_bf16(p, xx, yy):
        return attention_forward(p, xx, yy, num_heads, mxu_dtype=jnp.bfloat16,
                                 max_fold=32)

    out = jax.block_until_ready(fwd_f32(params, x, y))
    ref = jax.block_until_ready(ref_forward(params, x, y, num_heads))
    assert out.shape == (B, dim, H, W)
    assert jnp.allclose(out, ref, rtol=1e-3, atol=1e-3), (
        float(jnp.max(jnp.abs(out - ref))))

    # bf16-MXU path (normalization / softmax / accumulation stay f32): loose tolerance.
    out_bf16 = jax.block_until_ready(fwd_bf16(params, x, y))
    assert bool(jnp.all(jnp.isfinite(out_bf16)))
    assert jnp.allclose(out_bf16, ref, rtol=5e-2, atol=5e-2), (
        float(jnp.max(jnp.abs(out_bf16 - ref))))

    print("KERNEL_OK")
</pallas_src>

<mosaic_0001>
module attributes {stable_mosaic.version = 11 : i64} {
  func.func @_fused_proj_kernel(%arg0: i32, %arg1: i32, %arg2: memref<1x64x256xf32, #tpu.memory_space<vmem>>, %arg3: memref<2x256xi32, #tpu.memory_space<vmem>>, %arg4: memref<128x64xf32, #tpu.memory_space<vmem>>, %arg5: memref<128x9xf32, #tpu.memory_space<vmem>>, %arg6: memref<1x128x256xf32, #tpu.memory_space<vmem>>) attributes {dimension_semantics = [#tpu.dimension_semantics<parallel>, #tpu.dimension_semantics<parallel>], iteration_bounds = array<i64: 2, 1>, scalar_prefetch = 0 : i64, scratch_operands = 0 : i64, tpu.core_type = #tpu.core_type<tc>, window_params = [{transform_indices = @transform_0, window_bounds = array<i64: 1, 64, 256>}, {pipeline_mode = #tpu.pipeline_mode<synchronous>, transform_indices = @transform_1, window_bounds = array<i64: 2, 256>}, {transform_indices = @transform_2, window_bounds = array<i64: 128, 64>}, {transform_indices = @transform_3, window_bounds = array<i64: 128, 9>}, {transform_indices = @transform_4, window_bounds = array<i64: 1, 128, 256>}]} {
    %c0 = arith.constant 0 : index
    %c0_0 = arith.constant 0 : index
    %c0_1 = arith.constant 0 : index
    %0 = vector.load %arg2[%c0, %c0_0, %c0_1] : memref<1x64x256xf32, #tpu.memory_space<vmem>>, vector<1x64x256xf32>
    %1 = vector.shape_cast %0 : vector<1x64x256xf32> to vector<64x256xf32>
    %c0_2 = arith.constant 0 : index
    %c0_3 = arith.constant 0 : index
    %2 = vector.load %arg4[%c0_2, %c0_3] : memref<128x64xf32, #tpu.memory_space<vmem>>, vector<128x64xf32>
    %cst = arith.constant dense<0.000000e+00> : vector<128x256xf32>
    %3 = tpu.matmul %2, %1, %cst {dimension_numbers = #tpu.dot_dimension_numbers<[1], [0], [0], [1], [0, 0, 1, 1], [], []>, precision = #tpu.contract_precision<fp32>} : vector<128x64xf32>, vector<64x256xf32>, vector<128x256xf32> -> vector<128x256xf32>
    %c0_4 = arith.constant 0 : index
    %c0_5 = arith.constant 0 : index
    %4 = vector.load %arg3[%c0_4, %c0_5] : memref<2x256xi32, #tpu.memory_space<vmem>>, vector<1x256xi32>
    %c1 = arith.constant 1 : index
    %c0_6 = arith.constant 0 : index
    %5 = vector.load %arg3[%c1, %c0_6] : memref<2x256xi32, #tpu.memory_space<vmem>>, vector<1x256xi32>
    %c0_7 = arith.constant 0 : index
    %c0_8 = arith.constant 0 : index
    %6 = vector.load %arg5[%c0_7, %c0_8] : memref<128x9xf32, #tpu.memory_space<vmem>>, vector<128x9xf32>
    %cst_9 = arith.constant 0.000000e+00 : f32
    %7 = vector.broadcast %cst_9 : f32 to vector<128x256xf32>
    %c17_i32 = arith.constant 17 : i32
    %8 = tpu.dynamic_rotate %3 by %c17_i32 dim 1 : vector<128x256xf32>, i32 -> vector<128x256xf32>
    %c1_i32 = arith.constant 1 : i32
    %9 = vector.broadcast %c1_i32 : i32 to vector<1x256xi32>
    %10 = arith.cmpi sge, %4, %9 : vector<1x256xi32>
    %c1_i32_10 = arith.constant 1 : i32
    %11 = vector.broadcast %c1_i32_10 : i32 to vector<1x256xi32>
    %12 = arith.cmpi sge, %5, %11 : vector<1x256xi32>
    %13 = arith.andi %10, %12 : vector<1x256xi1>
    %cst_11 = arith.constant 0.000000e+00 : f32
    %14 = vector.shape_cast %13 : vector<1x256xi1> to vector<1x256xi1>
    %15 = vector.broadcast %14 : vector<1x256xi1> to vector<128x256xi1>
    %16 = vector.broadcast %cst_11 : f32 to vector<128x256xf32>
    %17 = arith.select %15, %8, %16 : vector<128x256xi1>, vector<128x256xf32>
    %18 = vector.extract_strided_slice %6 {offsets = [0, 0], sizes = [128, 1], strides = [1, 1]} : vector<128x9xf32> to vector<128x1xf32>
    %19 = vector.broadcast %18 : vector<128x1xf32> to vector<128x256xf32>
    %20 = arith.mulf %17, %19 : vector<128x256xf32>
    %21 = arith.addf %7, %20 : vector<128x256xf32>
    %c16_i32 = arith.constant 16 : i32
    %22 = tpu.dynamic_rotate %3 by %c16_i32 dim 1 : vector<128x256xf32>, i32 -> vector<128x256xf32>
    %c1_i32_12 = arith.constant 1 : i32
    %23 = vector.broadcast %c1_i32_12 : i32 to vector<1x256xi32>
    %24 = arith.cmpi sge, %4, %23 : vector<1x256xi32>
    %cst_13 = arith.constant 0.000000e+00 : f32
    %25 = vector.shape_cast %24 : vector<1x256xi1> to vector<1x256xi1>
    %26 = vector.broadcast %25 : vector<1x256xi1> to vector<128x256xi1>
    %27 = vector.broadcast %cst_13 : f32 to vector<128x256xf32>
    %28 = arith.select %26, %22, %27 : vector<128x256xi1>, vector<128x256xf32>
    %29 = vector.extract_strided_slice %6 {offsets = [0, 1], sizes = [128, 1], strides = [1, 1]} : vector<128x9xf32> to vector<128x1xf32>
    %30 = vector.broadcast %29 : vector<128x1xf32> to vector<128x256xf32>
    %31 = arith.mulf %28, %30 : vector<128x256xf32>
    %32 = arith.addf %21, %31 : vector<128x256xf32>
    %c15_i32 = arith.constant 15 : i32
    %33 = tpu.dynamic_rotate %3 by %c15_i32 dim 1 : vector<128x256xf32>, i32 -> vector<128x256xf32>
    %c1_i32_14 = arith.constant 1 : i32
    %34 = vector.broadcast %c1_i32_14 : i32 to vector<1x256xi32>
    %35 = arith.cmpi sge, %4, %34 : vector<1x256xi32>
    %c14_i32 = arith.constant 14 : i32
    %36 = vector.broadcast %c14_i32 : i32 to vector<1x256xi32>
    %37 = arith.cmpi sle, %5, %36 : vector<1x256xi32>
    %38 = arith.andi %35, %37 : vector<1x256xi1>
    %cst_15 = arith.constant 0.000000e+00 : f32
    %39 = vector.shape_cast %38 : vector<1x256xi1> to vector<1x256xi1>
    %40 = vector.broadcast %39 : vector<1x256xi1> to vector<128x256xi1>
    %41 = vector.broadcast %cst_15 : f32 to vector<128x256xf32>
    %42 = arith.select %40, %33, %41 : vector<128x256xi1>, vector<128x256xf32>
    %43 = vector.extract_strided_slice %6 {offsets = [0, 2], sizes = [128, 1], strides = [1, 1]} : vector<128x9xf32> to vector<128x1xf32>
    %44 = vector.broadcast %43 : vector<128x1xf32> to vector<128x256xf32>
    %45 = arith.mulf %42, %44 : vector<128x256xf32>
    %46 = arith.addf %32, %45 : vector<128x256xf32>
    %c1_i32_16 = arith.constant 1 : i32
    %47 = tpu.dynamic_rotate %3 by %c1_i32_16 dim 1 : vector<128x256xf32>, i32 -> vector<128x256xf32>
    %c1_i32_17 = arith.constant 1 : i32
    %48 = vector.broadcast %c1_i32_17 : i32 to vector<1x256xi32>
    %49 = arith.cmpi sge, %5, %48 : vector<1x256xi32>
    %cst_18 = arith.constant 0.000000e+00 : f32
    %50 = vector.shape_cast %49 : vector<1x256xi1> to vector<1x256xi1>
    %51 = vector.broadcast %50 : vector<1x256xi1> to vector<128x256xi1>
    %52 = vector.broadcast %cst_18 : f32 to vector<128x256xf32>
    %53 = arith.select %51, %47, %52 : vector<128x256xi1>, vector<128x256xf32>
    %54 = vector.extract_strided_slice %6 {offsets = [0, 3], sizes = [128, 1], strides = [1, 1]} : vector<128x9xf32> to vector<128x1xf32>
    %55 = vector.broadcast %54 : vector<128x1xf32> to vector<128x256xf32>
    %56 = arith.mulf %53, %55 : vector<128x256xf32>
    %57 = arith.addf %46, %56 : vector<128x256xf32>
    %58 = vector.extract_strided_slice %6 {offsets = [0, 4], sizes = [128, 1], strides = [1, 1]} : vector<128x9xf32> to vector<128x1xf32>
    %59 = vector.broadcast %58 : vector<128x1xf32> to vector<128x256xf32>
    %60 = arith.mulf %3, %59 : vector<128x256xf32>
    %61 = arith.addf %57, %60 : vector<128x256xf32>
    %c255_i32 = arith.constant 255 : i32
    %62 = tpu.dynamic_rotate %3 by %c255_i32 dim 1 : vector<128x256xf32>, i32 -> vector<128x256xf32>
    %c14_i32_19 = arith.constant 14 : i32
    %63 = vector.broadcast %c14_i32_19 : i32 to vector<1x256xi32>
    %64 = arith.cmpi sle, %5, %63 : vector<1x256xi32>
    %cst_20 = arith.constant 0.000000e+00 : f32
    %65 = vector.shape_cast %64 : vector<1x256xi1> to vector<1x256xi1>
    %66 = vector.broadcast %65 : vector<1x256xi1> to vector<128x256xi1>
    %67 = vector.broadcast %cst_20 : f32 to vector<128x256xf32>
    %68 = arith.select %66, %62, %67 : vector<128x256xi1>, vector<128x256xf32>
    %69 = vector.extract_strided_slice %6 {offsets = [0, 5], sizes = [128, 1], strides = [1, 1]} : vector<128x9xf32> to vector<128x1xf32>
    %70 = vector.broadcast %69 : vector<128x1xf32> to vector<128x256xf32>
    %71 = arith.mulf %68, %70 : vector<128x256xf32>
    %72 = arith.addf %61, %71 : vector<128x256xf32>
    %c241_i32 = arith.constant 241 : i32
    %73 = tpu.dynamic_rotate %3 by %c241_i32 dim 1 : vector<128x256xf32>, i32 -> vector<128x256xf32>
    %c14_i32_21 = arith.constant 14 : i32
    %74 = vector.broadcast %c14_i32_21 : i32 to vector<1x256xi32>
    %75 = arith.cmpi sle, %4, %74 : vector<1x256xi32>
    %c1_i32_22 = arith.constant 1 : i32
    %76 = vector.broadcast %c1_i32_22 : i32 to vector<1x256xi32>
    %77 = arith.cmpi sge, %5, %76 : vector<1x256xi32>
    %78 = arith.andi %75, %77 : vector<1x256xi1>
    %cst_23 = arith.constant 0.000000e+00 : f32
    %79 = vector.shape_cast %78 : vector<1x256xi1> to vector<1x256xi1>
    %80 = vector.broadcast %79 : vector<1x256xi1> to vector<128x256xi1>
    %81 = vector.broadcast %cst_23 : f32 to vector<128x256xf32>
    %82 = arith.select %80, %73, %81 : vector<128x256xi1>, vector<128x256xf32>
    %83 = vector.extract_strided_slice %6 {offsets = [0, 6], sizes = [128, 1], strides = [1, 1]} : vector<128x9xf32> to vector<128x1xf32>
    %84 = vector.broadcast %83 : vector<128x1xf32> to vector<128x256xf32>
    %85 = arith.mulf %82, %84 : vector<128x256xf32>
    %86 = arith.addf %72, %85 : vector<128x256xf32>
    %c240_i32 = arith.constant 240 : i32
    %87 = tpu.dynamic_rotate %3 by %c240_i32 dim 1 : vector<128x256xf32>, i32 -> vector<128x256xf32>
    %c14_i32_24 = arith.constant 14 : i32
    %88 = vector.broadcast %c14_i32_24 : i32 to vector<1x256xi32>
    %89 = arith.cmpi sle, %4, %88 : vector<1x256xi32>
    %cst_25 = arith.constant 0.000000e+00 : f32
    %90 = vector.shape_cast %89 : vector<1x256xi1> to vector<1x256xi1>
    %91 = vector.broadcast %90 : vector<1x256xi1> to vector<128x256xi1>
    %92 = vector.broadcast %cst_25 : f32 to vector<128x256xf32>
    %93 = arith.select %91, %87, %92 : vector<128x256xi1>, vector<128x256xf32>
    %94 = vector.extract_strided_slice %6 {offsets = [0, 7], sizes = [128, 1], strides = [1, 1]} : vector<128x9xf32> to vector<128x1xf32>
    %95 = vector.broadcast %94 : vector<128x1xf32> to vector<128x256xf32>
    %96 = arith.mulf %93, %95 : vector<128x256xf32>
    %97 = arith.addf %86, %96 : vector<128x256xf32>
    %c239_i32 = arith.constant 239 : i32
    %98 = tpu.dynamic_rotate %3 by %c239_i32 dim 1 : vector<128x256xf32>, i32 -> vector<128x256xf32>
    %c14_i32_26 = arith.constant 14 : i32
    %99 = vector.broadcast %c14_i32_26 : i32 to vector<1x256xi32>
    %100 = arith.cmpi sle, %4, %99 : vector<1x256xi32>
    %c14_i32_27 = arith.constant 14 : i32
    %101 = vector.broadcast %c14_i32_27 : i32 to vector<1x256xi32>
    %102 = arith.cmpi sle, %5, %101 : vector<1x256xi32>
    %103 = arith.andi %100, %102 : vector<1x256xi1>
    %cst_28 = arith.constant 0.000000e+00 : f32
    %104 = vector.shape_cast %103 : vector<1x256xi1> to vector<1x256xi1>
    %105 = vector.broadcast %104 : vector<1x256xi1> to vector<128x256xi1>
    %106 = vector.broadcast %cst_28 : f32 to vector<128x256xf32>
    %107 = arith.select %105, %98, %106 : vector<128x256xi1>, vector<128x256xf32>
    %108 = vector.extract_strided_slice %6 {offsets = [0, 8], sizes = [128, 1], strides = [1, 1]} : vector<128x9xf32> to vector<128x1xf32>
    %109 = vector.broadcast %108 : vector<128x1xf32> to vector<128x256xf32>
    %110 = arith.mulf %107, %109 : vector<128x256xf32>
    %111 = arith.addf %97, %110 : vector<128x256xf32>
    %c0_29 = arith.constant 0 : index
    %c0_30 = arith.constant 0 : index
    %c0_31 = arith.constant 0 : index
    %112 = vector.load %arg6[%c0_29, %c0_30, %c0_31] : memref<1x128x256xf32, #tpu.memory_space<vmem>>, vector<1x128x256xf32>
    %113 = vector.shape_cast %112 : vector<1x128x256xf32> to vector<128x256xf32>
    %114 = vector.shape_cast %111 : vector<128x256xf32> to vector<1x128x256xf32>
    tpu.vector_store %arg6[%c0_29, %c0_30, %c0_31], %114 {strides = array<i32>} : memref<1x128x256xf32, #tpu.memory_space<vmem>>, vector<1x128x256xf32>,
    return
  }
  func.func @transform_0(%arg0: i32, %arg1: i32) -> (i32, i32, i32) {
    %c0_i32 = arith.constant 0 : i32
    %c0_i32_0 = arith.constant 0 : i32
    %c0_i32_1 = arith.constant 0 : i32
    return %arg0, %c0_i32, %c0_i32_0 : i32, i32, i32
  }
  func.func @transform_1(%arg0: i32, %arg1: i32) -> (i32, i32) {
    %c0_i32 = arith.constant 0 : i32
    %c0_i32_0 = arith.constant 0 : i32
    %c0_i32_1 = arith.constant 0 : i32
    return %c0_i32, %c0_i32_0 : i32, i32
  }
  func.func @transform_2(%arg0: i32, %arg1: i32) -> (i32, i32) {
    %c0_i32 = arith.constant 0 : i32
    %c0_i32_0 = arith.constant 0 : i32
    return %arg1, %c0_i32 : i32, i32
  }
  func.func @transform_3(%arg0: i32, %arg1: i32) -> (i32, i32) {
    %c0_i32 = arith.constant 0 : i32
    %c0_i32_0 = arith.constant 0 : i32
    return %arg1, %c0_i32 : i32, i32
  }
  func.func @transform_4(%arg0: i32, %arg1: i32) -> (i32, i32, i32) {
    %c0_i32 = arith.constant 0 : i32
    %c0_i32_0 = arith.constant 0 : i32
    return %arg0, %arg1, %c0_i32 : i32, i32, i32
  }
}

module attributes {stable_mosaic.version = 11 : i64} {
  func.func @_pointwise_kernel(%arg0: i32, %arg1: i32, %arg2: memref<1x64x256xf32, #tpu.memory_space<vmem>>, %arg3: memref<64x64xf32, #tpu.memory_space<vmem>>, %arg4: memref<1x64x256xf32, #tpu.memory_space<vmem>>) attributes {dimension_semantics = [#tpu.dimension_semantics<parallel>, #tpu.dimension_semantics<parallel>], iteration_bounds = array<i64: 2, 1>, scalar_prefetch = 0 : i64, scratch_operands = 0 : i64, tpu.core_type = #tpu.core_type<tc>, window_params = [{transform_indices = @transform_0, window_bounds = array<i64: 1, 64, 256>}, {pipeline_mode = #tpu.pipeline_mode<synchronous>, transform_indices = @transform_1, window_bounds = array<i64: 64, 64>}, {transform_indices = @transform_2, window_bounds = array<i64: 1, 64, 256>}]} {
    %c0 = arith.constant 0 : index
    %c0_0 = arith.constant 0 : index
    %c0_1 = arith.constant 0 : index
    %0 = vector.load %arg2[%c0, %c0_0, %c0_1] : memref<1x64x256xf32, #tpu.memory_space<vmem>>, vector<1x64x256xf32>
    %1 = vector.shape_cast %0 : vector<1x64x256xf32> to vector<64x256xf32>
    %c0_2 = arith.constant 0 : index
    %c0_3 = arith.constant 0 : index
    %2 = vector.load %arg3[%c0_2, %c0_3] : memref<64x64xf32, #tpu.memory_space<vmem>>, vector<64x64xf32>
    %cst = arith.constant dense<0.000000e+00> : vector<64x256xf32>
    %3 = tpu.matmul %2, %1, %cst {dimension_numbers = #tpu.dot_dimension_numbers<[1], [0], [0], [1], [0, 0, 1, 1], [], []>, precision = #tpu.contract_precision<fp32>} : vector<64x64xf32>, vector<64x256xf32>, vector<64x256xf32> -> vector<64x256xf32>
    %c0_4 = arith.constant 0 : index
    %c0_5 = arith.constant 0 : index
    %c0_6 = arith.constant 0 : index
    %4 = vector.load %arg4[%c0_4, %c0_5, %c0_6] : memref<1x64x256xf32, #tpu.memory_space<vmem>>, vector<1x64x256xf32>
    %5 = vector.shape_cast %4 : vector<1x64x256xf32> to vector<64x256xf32>
    %6 = vector.shape_cast %3 : vector<64x256xf32> to vector<1x64x256xf32>
    tpu.vector_store %arg4[%c0_4, %c0_5, %c0_6], %6 {strides = array<i32>} : memref<1x64x256xf32, #tpu.memory_space<vmem>>, vector<1x64x256xf32>,
    return
  }
  func.func @transform_0(%arg0: i32, %arg1: i32) -> (i32, i32, i32) {
    %c0_i32 = arith.constant 0 : i32
    %c0_i32_0 = arith.constant 0 : i32
    return %arg0, %c0_i32, %arg1 : i32, i32, i32
  }
  func.func @transform_1(%arg0: i32, %arg1: i32) -> (i32, i32) {
    %c0_i32 = arith.constant 0 : i32
    %c0_i32_0 = arith.constant 0 : i32
    %c0_i32_1 = arith.constant 0 : i32
    return %c0_i32, %c0_i32_0 : i32, i32
  }
  func.func @transform_2(%arg0: i32, %arg1: i32) -> (i32, i32, i32) {
    %c0_i32 = arith.constant 0 : i32
    %c0_i32_0 = arith.constant 0 : i32
    return %arg0, %c0_i32, %arg1 : i32, i32, i32
  }
}

module attributes {stable_mosaic.version = 11 : i64} {
  func.func @_fused_proj_kernel(%arg0: i32, %arg1: i32, %arg2: memref<1x64x256xf32, #tpu.memory_space<vmem>>, %arg3: memref<2x256xi32, #tpu.memory_space<vmem>>, %arg4: memref<64x64xf32, #tpu.memory_space<vmem>>, %arg5: memref<64x9xf32, #tpu.memory_space<vmem>>, %arg6: memref<1x64x256xf32, #tpu.memory_space<vmem>>) attributes {dimension_semantics = [#tpu.dimension_semantics<parallel>, #tpu.dimension_semantics<parallel>], iteration_bounds = array<i64: 2, 1>, scalar_prefetch = 0 : i64, scratch_operands = 0 : i64, tpu.core_type = #tpu.core_type<tc>, window_params = [{transform_indices = @transform_0, window_bounds = array<i64: 1, 64, 256>}, {pipeline_mode = #tpu.pipeline_mode<synchronous>, transform_indices = @transform_1, window_bounds = array<i64: 2, 256>}, {transform_indices = @transform_2, window_bounds = array<i64: 64, 64>}, {transform_indices = @transform_3, window_bounds = array<i64: 64, 9>}, {transform_indices = @transform_4, window_bounds = array<i64: 1, 64, 256>}]} {
    %c0 = arith.constant 0 : index
    %c0_0 = arith.constant 0 : index
    %c0_1 = arith.constant 0 : index
    %0 = vector.load %arg2[%c0, %c0_0, %c0_1] : memref<1x64x256xf32, #tpu.memory_space<vmem>>, vector<1x64x256xf32>
    %1 = vector.shape_cast %0 : vector<1x64x256xf32> to vector<64x256xf32>
    %c0_2 = arith.constant 0 : index
    %c0_3 = arith.constant 0 : index
    %2 = vector.load %arg4[%c0_2, %c0_3] : memref<64x64xf32, #tpu.memory_space<vmem>>, vector<64x64xf32>
    %cst = arith.constant dense<0.000000e+00> : vector<64x256xf32>
    %3 = tpu.matmul %2, %1, %cst {dimension_numbers = #tpu.dot_dimension_numbers<[1], [0], [0], [1], [0, 0, 1, 1], [], []>, precision = #tpu.contract_precision<fp32>} : vector<64x64xf32>, vector<64x256xf32>, vector<64x256xf32> -> vector<64x256xf32>
    %c0_4 = arith.constant 0 : index
    %c0_5 = arith.constant 0 : index
    %4 = vector.load %arg3[%c0_4, %c0_5] : memref<2x256xi32, #tpu.memory_space<vmem>>, vector<1x256xi32>
    %c1 = arith.constant 1 : index
    %c0_6 = arith.constant 0 : index
    %5 = vector.load %arg3[%c1, %c0_6] : memref<2x256xi32, #tpu.memory_space<vmem>>, vector<1x256xi32>
    %c0_7 = arith.constant 0 : index
    %c0_8 = arith.constant 0 : index
    %6 = vector.load %arg5[%c0_7, %c0_8] : memref<64x9xf32, #tpu.memory_space<vmem>>, vector<64x9xf32>
    %cst_9 = arith.constant 0.000000e+00 : f32
    %7 = vector.broadcast %cst_9 : f32 to vector<64x256xf32>
    %c17_i32 = arith.constant 17 : i32
    %8 = tpu.dynamic_rotate %3 by %c17_i32 dim 1 : vector<64x256xf32>, i32 -> vector<64x256xf32>
    %c1_i32 = arith.constant 1 : i32
    %9 = vector.broadcast %c1_i32 : i32 to vector<1x256xi32>
    %10 = arith.cmpi sge, %4, %9 : vector<1x256xi32>
    %c1_i32_10 = arith.constant 1 : i32
    %11 = vector.broadcast %c1_i32_10 : i32 to vector<1x256xi32>
    %12 = arith.cmpi sge, %5, %11 : vector<1x256xi32>
    %13 = arith.andi %10, %12 : vector<1x256xi1>
    %cst_11 = arith.constant 0.000000e+00 : f32
    %14 = vector.shape_cast %13 : vector<1x256xi1> to vector<1x256xi1>
    %15 = vector.broadcast %14 : vector<1x256xi1> to vector<64x256xi1>
    %16 = vector.broadcast %cst_11 : f32 to vector<64x256xf32>
    %17 = arith.select %15, %8, %16 : vector<64x256xi1>, vector<64x256xf32>
    %18 = vector.extract_strided_slice %6 {offsets = [0, 0], sizes = [64, 1], strides = [1, 1]} : vector<64x9xf32> to vector<64x1xf32>
    %19 = vector.broadcast %18 : vector<64x1xf32> to vector<64x256xf32>
    %20 = arith.mulf %17, %19 : vector<64x256xf32>
    %21 = arith.addf %7, %20 : vector<64x256xf32>
    %c16_i32 = arith.constant 16 : i32
    %22 = tpu.dynamic_rotate %3 by %c16_i32 dim 1 : vector<64x256xf32>, i32 -> vector<64x256xf32>
    %c1_i32_12 = arith.constant 1 : i32
    %23 = vector.broadcast %c1_i32_12 : i32 to vector<1x256xi32>
    %24 = arith.cmpi sge, %4, %23 : vector<1x256xi32>
    %cst_13 = arith.constant 0.000000e+00 : f32
    %25 = vector.shape_cast %24 : vector<1x256xi1> to vector<1x256xi1>
    %26 = vector.broadcast %25 : vector<1x256xi1> to vector<64x256xi1>
    %27 = vector.broadcast %cst_13 : f32 to vector<64x256xf32>
    %28 = arith.select %26, %22, %27 : vector<64x256xi1>, vector<64x256xf32>
    %29 = vector.extract_strided_slice %6 {offsets = [0, 1], sizes = [64, 1], strides = [1, 1]} : vector<64x9xf32> to vector<64x1xf32>
    %30 = vector.broadcast %29 : vector<64x1xf32> to vector<64x256xf32>
    %31 = arith.mulf %28, %30 : vector<64x256xf32>
    %32 = arith.addf %21, %31 : vector<64x256xf32>
    %c15_i32 = arith.constant 15 : i32
    %33 = tpu.dynamic_rotate %3 by %c15_i32 dim 1 : vector<64x256xf32>, i32 -> vector<64x256xf32>
    %c1_i32_14 = arith.constant 1 : i32
    %34 = vector.broadcast %c1_i32_14 : i32 to vector<1x256xi32>
    %35 = arith.cmpi sge, %4, %34 : vector<1x256xi32>
    %c14_i32 = arith.constant 14 : i32
    %36 = vector.broadcast %c14_i32 : i32 to vector<1x256xi32>
    %37 = arith.cmpi sle, %5, %36 : vector<1x256xi32>
    %38 = arith.andi %35, %37 : vector<1x256xi1>
    %cst_15 = arith.constant 0.000000e+00 : f32
    %39 = vector.shape_cast %38 : vector<1x256xi1> to vector<1x256xi1>
    %40 = vector.broadcast %39 : vector<1x256xi1> to vector<64x256xi1>
    %41 = vector.broadcast %cst_15 : f32 to vector<64x256xf32>
    %42 = arith.select %40, %33, %41 : vector<64x256xi1>, vector<64x256xf32>
    %43 = vector.extract_strided_slice %6 {offsets = [0, 2], sizes = [64, 1], strides = [1, 1]} : vector<64x9xf32> to vector<64x1xf32>
    %44 = vector.broadcast %43 : vector<64x1xf32> to vector<64x256xf32>
    %45 = arith.mulf %42, %44 : vector<64x256xf32>
    %46 = arith.addf %32, %45 : vector<64x256xf32>
    %c1_i32_16 = arith.constant 1 : i32
    %47 = tpu.dynamic_rotate %3 by %c1_i32_16 dim 1 : vector<64x256xf32>, i32 -> vector<64x256xf32>
    %c1_i32_17 = arith.constant 1 : i32
    %48 = vector.broadcast %c1_i32_17 : i32 to vector<1x256xi32>
    %49 = arith.cmpi sge, %5, %48 : vector<1x256xi32>
    %cst_18 = arith.constant 0.000000e+00 : f32
    %50 = vector.shape_cast %49 : vector<1x256xi1> to vector<1x256xi1>
    %51 = vector.broadcast %50 : vector<1x256xi1> to vector<64x256xi1>
    %52 = vector.broadcast %cst_18 : f32 to vector<64x256xf32>
    %53 = arith.select %51, %47, %52 : vector<64x256xi1>, vector<64x256xf32>
    %54 = vector.extract_strided_slice %6 {offsets = [0, 3], sizes = [64, 1], strides = [1, 1]} : vector<64x9xf32> to vector<64x1xf32>
    %55 = vector.broadcast %54 : vector<64x1xf32> to vector<64x256xf32>
    %56 = arith.mulf %53, %55 : vector<64x256xf32>
    %57 = arith.addf %46, %56 : vector<64x256xf32>
    %58 = vector.extract_strided_slice %6 {offsets = [0, 4], sizes = [64, 1], strides = [1, 1]} : vector<64x9xf32> to vector<64x1xf32>
    %59 = vector.broadcast %58 : vector<64x1xf32> to vector<64x256xf32>
    %60 = arith.mulf %3, %59 : vector<64x256xf32>
    %61 = arith.addf %57, %60 : vector<64x256xf32>
    %c255_i32 = arith.constant 255 : i32
    %62 = tpu.dynamic_rotate %3 by %c255_i32 dim 1 : vector<64x256xf32>, i32 -> vector<64x256xf32>
    %c14_i32_19 = arith.constant 14 : i32
    %63 = vector.broadcast %c14_i32_19 : i32 to vector<1x256xi32>
    %64 = arith.cmpi sle, %5, %63 : vector<1x256xi32>
    %cst_20 = arith.constant 0.000000e+00 : f32
    %65 = vector.shape_cast %64 : vector<1x256xi1> to vector<1x256xi1>
    %66 = vector.broadcast %65 : vector<1x256xi1> to vector<64x256xi1>
    %67 = vector.broadcast %cst_20 : f32 to vector<64x256xf32>
    %68 = arith.select %66, %62, %67 : vector<64x256xi1>, vector<64x256xf32>
    %69 = vector.extract_strided_slice %6 {offsets = [0, 5], sizes = [64, 1], strides = [1, 1]} : vector<64x9xf32> to vector<64x1xf32>
    %70 = vector.broadcast %69 : vector<64x1xf32> to vector<64x256xf32>
    %71 = arith.mulf %68, %70 : vector<64x256xf32>
    %72 = arith.addf %61, %71 : vector<64x256xf32>
    %c241_i32 = arith.constant 241 : i32
    %73 = tpu.dynamic_rotate %3 by %c241_i32 dim 1 : vector<64x256xf32>, i32 -> vector<64x256xf32>
    %c14_i32_21 = arith.constant 14 : i32
    %74 = vector.broadcast %c14_i32_21 : i32 to vector<1x256xi32>
    %75 = arith.cmpi sle, %4, %74 : vector<1x256xi32>
    %c1_i32_22 = arith.constant 1 : i32
    %76 = vector.broadcast %c1_i32_22 : i32 to vector<1x256xi32>
    %77 = arith.cmpi sge, %5, %76 : vector<1x256xi32>
    %78 = arith.andi %75, %77 : vector<1x256xi1>
    %cst_23 = arith.constant 0.000000e+00 : f32
    %79 = vector.shape_cast %78 : vector<1x256xi1> to vector<1x256xi1>
    %80 = vector.broadcast %79 : vector<1x256xi1> to vector<64x256xi1>
    %81 = vector.broadcast %cst_23 : f32 to vector<64x256xf32>
    %82 = arith.select %80, %73, %81 : vector<64x256xi1>, vector<64x256xf32>
    %83 = vector.extract_strided_slice %6 {offsets = [0, 6], sizes = [64, 1], strides = [1, 1]} : vector<64x9xf32> to vector<64x1xf32>
    %84 = vector.broadcast %83 : vector<64x1xf32> to vector<64x256xf32>
    %85 = arith.mulf %82, %84 : vector<64x256xf32>
    %86 = arith.addf %72, %85 : vector<64x256xf32>
    %c240_i32 = arith.constant 240 : i32
    %87 = tpu.dynamic_rotate %3 by %c240_i32 dim 1 : vector<64x256xf32>, i32 -> vector<64x256xf32>
    %c14_i32_24 = arith.constant 14 : i32
    %88 = vector.broadcast %c14_i32_24 : i32 to vector<1x256xi32>
    %89 = arith.cmpi sle, %4, %88 : vector<1x256xi32>
    %cst_25 = arith.constant 0.000000e+00 : f32
    %90 = vector.shape_cast %89 : vector<1x256xi1> to vector<1x256xi1>
    %91 = vector.broadcast %90 : vector<1x256xi1> to vector<64x256xi1>
    %92 = vector.broadcast %cst_25 : f32 to vector<64x256xf32>
    %93 = arith.select %91, %87, %92 : vector<64x256xi1>, vector<64x256xf32>
    %94 = vector.extract_strided_slice %6 {offsets = [0, 7], sizes = [64, 1], strides = [1, 1]} : vector<64x9xf32> to vector<64x1xf32>
    %95 = vector.broadcast %94 : vector<64x1xf32> to vector<64x256xf32>
    %96 = arith.mulf %93, %95 : vector<64x256xf32>
    %97 = arith.addf %86, %96 : vector<64x256xf32>
    %c239_i32 = arith.constant 239 : i32
    %98 = tpu.dynamic_rotate %3 by %c239_i32 dim 1 : vector<64x256xf32>, i32 -> vector<64x256xf32>
    %c14_i32_26 = arith.constant 14 : i32
    %99 = vector.broadcast %c14_i32_26 : i32 to vector<1x256xi32>
    %100 = arith.cmpi sle, %4, %99 : vector<1x256xi32>
    %c14_i32_27 = arith.constant 14 : i32
    %101 = vector.broadcast %c14_i32_27 : i32 to vector<1x256xi32>
    %102 = arith.cmpi sle, %5, %101 : vector<1x256xi32>
    %103 = arith.andi %100, %102 : vector<1x256xi1>
    %cst_28 = arith.constant 0.000000e+00 : f32
    %104 = vector.shape_cast %103 : vector<1x256xi1> to vector<1x256xi1>
    %105 = vector.broadcast %104 : vector<1x256xi1> to vector<64x256xi1>
    %106 = vector.broadcast %cst_28 : f32 to vector<64x256xf32>
    %107 = arith.select %105, %98, %106 : vector<64x256xi1>, vector<64x256xf32>
    %108 = vector.extract_strided_slice %6 {offsets = [0, 8], sizes = [64, 1], strides = [1, 1]} : vector<64x9xf32> to vector<64x1xf32>
    %109 = vector.broadcast %108 : vector<64x1xf32> to vector<64x256xf32>
    %110 = arith.mulf %107, %109 : vector<64x256xf32>
    %111 = arith.addf %97, %110 : vector<64x256xf32>
    %c0_29 = arith.constant 0 : index
    %c0_30 = arith.constant 0 : index
    %c0_31 = arith.constant 0 : index
    %112 = vector.load %arg6[%c0_29, %c0_30, %c0_31] : memref<1x64x256xf32, #tpu.memory_space<vmem>>, vector<1x64x256xf32>
    %113 = vector.shape_cast %112 : vector<1x64x256xf32> to vector<64x256xf32>
    %114 = vector.shape_cast %111 : vector<64x256xf32> to vector<1x64x256xf32>
    tpu.vector_store %arg6[%c0_29, %c0_30, %c0_31], %114 {strides = array<i32>} : memref<1x64x256xf32, #tpu.memory_space<vmem>>, vector<1x64x256xf32>,
    return
  }
  func.func @transform_0(%arg0: i32, %arg1: i32) -> (i32, i32, i32) {
    %c0_i32 = arith.constant 0 : i32
    %c0_i32_0 = arith.constant 0 : i32
    %c0_i32_1 = arith.constant 0 : i32
    return %arg0, %c0_i32, %c0_i32_0 : i32, i32, i32
  }
  func.func @transform_1(%arg0: i32, %arg1: i32) -> (i32, i32) {
    %c0_i32 = arith.constant 0 : i32
    %c0_i32_0 = arith.constant 0 : i32
    %c0_i32_1 = arith.constant 0 : i32
    return %c0_i32, %c0_i32_0 : i32, i32
  }
  func.func @transform_2(%arg0: i32, %arg1: i32) -> (i32, i32) {
    %c0_i32 = arith.constant 0 : i32
    %c0_i32_0 = arith.constant 0 : i32
    return %arg1, %c0_i32 : i32, i32
  }
  func.func @transform_3(%arg0: i32, %arg1: i32) -> (i32, i32) {
    %c0_i32 = arith.constant 0 : i32
    %c0_i32_0 = arith.constant 0 : i32
    return %arg1, %c0_i32 : i32, i32
  }
  func.func @transform_4(%arg0: i32, %arg1: i32) -> (i32, i32, i32) {
    %c0_i32 = arith.constant 0 : i32
    %c0_i32_0 = arith.constant 0 : i32
    return %arg0, %arg1, %c0_i32 : i32, i32, i32
  }
}

module attributes {stable_mosaic.version = 11 : i64} {
  func.func @_attention_kernel(%arg0: i32, %arg1: i32, %arg2: memref<1x32x256xf32, #tpu.memory_space<vmem>>, %arg3: memref<1x32x256xf32, #tpu.memory_space<vmem>>, %arg4: memref<1x32x256xf32, #tpu.memory_space<vmem>>, %arg5: memref<32x1xf32, #tpu.memory_space<vmem>>, %arg6: memref<1x32x256xf32, #tpu.memory_space<vmem>>) attributes {dimension_semantics = [#tpu.dimension_semantics<parallel>, #tpu.dimension_semantics<parallel>], iteration_bounds = array<i64: 2, 2>, scalar_prefetch = 0 : i64, scratch_operands = 0 : i64, tpu.core_type = #tpu.core_type<tc>, window_params = [{transform_indices = @transform_0, window_bounds = array<i64: 1, 32, 256>}, {transform_indices = @transform_1, window_bounds = array<i64: 1, 32, 256>}, {transform_indices = @transform_2, window_bounds = array<i64: 1, 32, 256>}, {transform_indices = @transform_3, window_bounds = array<i64: 32, 1>}, {transform_indices = @transform_4, window_bounds = array<i64: 1, 32, 256>}]} {
    %c0 = arith.constant 0 : index
    %c0_0 = arith.constant 0 : index
    %c0_1 = arith.constant 0 : index
    %0 = vector.load %arg2[%c0, %c0_0, %c0_1] : memref<1x32x256xf32, #tpu.memory_space<vmem>>, vector<1x32x256xf32>
    %1 = vector.shape_cast %0 : vector<1x32x256xf32> to vector<32x256xf32>
    %c0_2 = arith.constant 0 : index
    %c0_3 = arith.constant 0 : index
    %c0_4 = arith.constant 0 : index
    %2 = vector.load %arg3[%c0_2, %c0_3, %c0_4] : memref<1x32x256xf32, #tpu.memory_space<vmem>>, vector<1x32x256xf32>
    %3 = vector.shape_cast %2 : vector<1x32x256xf32> to vector<32x256xf32>
    %c0_5 = arith.constant 0 : index
    %c0_6 = arith.constant 0 : index
    %c0_7 = arith.constant 0 : index
    %4 = vector.load %arg4[%c0_5, %c0_6, %c0_7] : memref<1x32x256xf32, #tpu.memory_space<vmem>>, vector<1x32x256xf32>
    %5 = vector.shape_cast %4 : vector<1x32x256xf32> to vector<32x256xf32>
    %c0_8 = arith.constant 0 : index
    %c0_9 = arith.constant 0 : index
    %6 = vector.load %arg5[%c0_8, %c0_9] : memref<32x1xf32, #tpu.memory_space<vmem>>, vector<32x1xf32>
    %7 = arith.mulf %1, %1 : vector<32x256xf32>
    %cst = arith.constant dense<0.000000e+00> : vector<32xf32>
    %8 = vector.multi_reduction <add>, %7, %cst [1] : vector<32x256xf32> to vector<32xf32>
    %9 = vector.shape_cast %8 : vector<32xf32> to vector<32x1xf32>
    %cst_10 = arith.constant 1.000000e-24 : f32
    %10 = vector.broadcast %cst_10 : f32 to vector<32x1xf32>
    %11 = arith.maximumf %9, %10 : vector<32x1xf32>
    %12 = math.rsqrt %11 : vector<32x1xf32>
    %13 = arith.mulf %3, %3 : vector<32x256xf32>
    %cst_11 = arith.constant dense<0.000000e+00> : vector<32xf32>
    %14 = vector.multi_reduction <add>, %13, %cst_11 [1] : vector<32x256xf32> to vector<32xf32>
    %15 = vector.shape_cast %14 : vector<32xf32> to vector<32x1xf32>
    %cst_12 = arith.constant 1.000000e-24 : f32
    %16 = vector.broadcast %cst_12 : f32 to vector<32x1xf32>
    %17 = arith.maximumf %15, %16 : vector<32x1xf32>
    %18 = math.rsqrt %17 : vector<32x1xf32>
    %19 = arith.mulf %12, %6 : vector<32x1xf32>
    %20 = vector.broadcast %19 : vector<32x1xf32> to vector<32x256xf32>
    %21 = arith.mulf %1, %20 : vector<32x256xf32>
    %22 = vector.broadcast %18 : vector<32x1xf32> to vector<32x256xf32>
    %23 = arith.mulf %3, %22 : vector<32x256xf32>
    %cst_13 = arith.constant dense<0.000000e+00> : vector<32x32xf32>
    %24 = tpu.matmul %21, %23, %cst_13 {dimension_numbers = #tpu.dot_dimension_numbers<[1], [1], [0], [0], [0, 0, 1, 0], [], []>, precision = #tpu.contract_precision<fp32>} : vector<32x256xf32>, vector<32x256xf32>, vector<32x32xf32> -> vector<32x32xf32>
    %25 = tpu.iota {dimensions = array<i32: 0>} : vector<32x32xi32>
    %26 = arith.sitofp %25 : vector<32x32xi32> to vector<32x32xf32>
    %cst_14 = arith.constant 5.000000e-01 : f32
    %27 = vector.broadcast %cst_14 : f32 to vector<32x32xf32>
    %28 = arith.addf %26, %27 : vector<32x32xf32>
    %cst_15 = arith.constant 1.250000e-01 : f32
    %29 = vector.broadcast %cst_15 : f32 to vector<32x32xf32>
    %30 = arith.mulf %28, %29 : vector<32x32xf32>
    %31 = math.floor %30 : vector<32x32xf32>
    %32 = tpu.iota {dimensions = array<i32: 1>} : vector<32x32xi32>
    %33 = arith.sitofp %32 : vector<32x32xi32> to vector<32x32xf32>
    %cst_16 = arith.constant 5.000000e-01 : f32
    %34 = vector.broadcast %cst_16 : f32 to vector<32x32xf32>
    %35 = arith.addf %33, %34 : vector<32x32xf32>
    %cst_17 = arith.constant 1.250000e-01 : f32
    %36 = vector.broadcast %cst_17 : f32 to vector<32x32xf32>
    %37 = arith.mulf %35, %36 : vector<32x32xf32>
    %38 = math.floor %37 : vector<32x32xf32>
    %39 = arith.cmpf oeq, %31, %38 : vector<32x32xf32>
    %cst_18 = arith.constant -1.000000e+30 : f32
    %40 = vector.broadcast %cst_18 : f32 to vector<32x32xf32>
    %41 = arith.select %39, %24, %40 : vector<32x32xi1>, vector<32x32xf32>
    %cst_19 = arith.constant dense<0xFF800000> : vector<32xf32>
    %42 = vector.multi_reduction <maximumf>, %41, %cst_19 [1] : vector<32x32xf32> to vector<32xf32>
    %43 = vector.shape_cast %42 : vector<32xf32> to vector<32x1xf32>
    %44 = vector.broadcast %43 : vector<32x1xf32> to vector<32x32xf32>
    %45 = arith.subf %41, %44 : vector<32x32xf32>
    %46 = math.exp %45 : vector<32x32xf32>
    %cst_20 = arith.constant dense<0.000000e+00> : vector<32xf32>
    %47 = vector.multi_reduction <add>, %46, %cst_20 [1] : vector<32x32xf32> to vector<32xf32>
    %48 = vector.shape_cast %47 : vector<32xf32> to vector<32x1xf32>
    %49 = tpu.reciprocal %48 : vector<32x1xf32> -> vector<32x1xf32>
    %50 = vector.broadcast %49 : vector<32x1xf32> to vector<32x32xf32>
    %51 = arith.mulf %46, %50 : vector<32x32xf32>
    %cst_21 = arith.constant dense<0.000000e+00> : vector<32x256xf32>
    %52 = tpu.matmul %51, %5, %cst_21 {dimension_numbers = #tpu.dot_dimension_numbers<[1], [0], [0], [1], [0, 0, 1, 1], [], []>, precision = #tpu.contract_precision<fp32>} : vector<32x32xf32>, vector<32x256xf32>, vector<32x256xf32> -> vector<32x256xf32>
    %c0_22 = arith.constant 0 : index
    %c0_23 = arith.constant 0 : index
    %c0_24 = arith.constant 0 : index
    %53 = vector.load %arg6[%c0_22, %c0_23, %c0_24] : memref<1x32x256xf32, #tpu.memory_space<vmem>>, vector<1x32x256xf32>
    %54 = vector.shape_cast %53 : vector<1x32x256xf32> to vector<32x256xf32>
    %55 = vector.shape_cast %52 : vector<32x256xf32> to vector<1x32x256xf32>
    tpu.vector_store %arg6[%c0_22, %c0_23, %c0_24], %55 {strides = array<i32>} : memref<1x32x256xf32, #tpu.memory_space<vmem>>, vector<1x32x256xf32>,
    return
  }
  func.func @transform_0(%arg0: i32, %arg1: i32) -> (i32, i32, i32) {
    %c0_i32 = arith.constant 0 : i32
    %c0_i32_0 = arith.constant 0 : i32
    return %arg0, %arg1, %c0_i32 : i32, i32, i32
  }
  func.func @transform_1(%arg0: i32, %arg1: i32) -> (i32, i32, i32) {
    %c0_i32 = arith.constant 0 : i32
    %c0_i32_0 = arith.constant 0 : i32
    return %arg0, %arg1, %c0_i32 : i32, i32, i32
  }
  func.func @transform_2(%arg0: i32, %arg1: i32) -> (i32, i32, i32) {
    %c2_i32 = arith.constant 2 : i32
    %0 = arith.addi %c2_i32, %arg1 : i32
    %c0_i32 = arith.constant 0 : i32
    %c0_i32_0 = arith.constant 0 : i32
    return %arg0, %0, %c0_i32 : i32, i32, i32
  }
  func.func @transform_3(%arg0: i32, %arg1: i32) -> (i32, i32) {
    %c0_i32 = arith.constant 0 : i32
    %c0_i32_0 = arith.constant 0 : i32
    return %arg1, %c0_i32 : i32, i32
  }
  func.func @transform_4(%arg0: i32, %arg1: i32) -> (i32, i32, i32) {
    %c0_i32 = arith.constant 0 : i32
    %c0_i32_0 = arith.constant 0 : i32
    return %arg0, %arg1, %c0_i32 : i32, i32, i32
  }
}

</mosaic_0001>

<bundles_post_ra>
// kernel: fwd_f32.7
= control target key start
LH: loop header
LB: loop body
LE: loop exit
PB: predicated region body
PF: predicated region fallthrough
CT: control target
= control target key end

     0   :  { %s1319_s9 = smov 0   ;;  %s1321_s10 = smov 0   ;;  %s1952_s0 = inlined_call_operand.vmem [shape: f32[2,64,256], index: 0, kind: input, shape index: {}]   ;;  %s1953_s1 = inlined_call_operand.vmem [shape: f32[64,64], index: 1, kind: input, shape index: {}]   ;;  %s1954_s2 = inlined_call_operand.vmem [shape: f32[2,64,256], index: 2, kind: output, shape index: {}]  }
   0x1   :  { %s1323_s11 = smov 0  }
   0x2 LB: > { %s24_s12 = sadd.s32 1, %s1298_s10  ;;  %p1247_p0 = scmp.ge.s32.totalorder %s1302_s11, 1  ;;  %s1302_s11 = sphi %s1323_s11, %s12_s11   ;;  %s1298_s10 = sphi %s1321_s10, %s1956_s10   ;;  %s1294_s9 = sphi %s1319_s9, %s1955_s9  }
   0x3   : > { %p26_p1 = scmp.ge.s32.totalorder %s24_s12, 2  ;;  %p133_p2 = scmp.lt.s32.totalorder %s1302_s11, 3 }
   0x5   : > { %s1958_s12 = smov (%p26_p1, %s24_s12), 0  ;;  %p134_p3 = pnand %p1247_p0, %p133_p2 }
   0x6   : > { %p164_p4 = scmp.lt.s32.totalorder (!%p134_p3), %s1294_s9, 1 }
   0x7   : > { %137 = sbr.rel (%p134_p3) target bundleno = 358 (0x166), region = 28 }
   0xc   : > { %v199_v0 = vld [vmem:[%s1953_s1] sm:$0xff]  ;;  %vm207_vm0 = vcmask 523264   ;;  %s1960_s9 = smov (!%p164_p4, %s1294_s9), 1  ;;  %v200_v2 = vld [vmem:[%s1953_s1 + $0x8] sm:$0xff]  ;;  %v201_v33 = vld [vmem:[%s1953_s1 + $0x10] sm:$0xff] }
   0xd   : > { %v209_v1 = vsel %vm207_vm0, %v199_v0, 0  ;;  %s1254_s17 = sshll.u32 %s1960_s9, 7  ;;  %v212_v7 = vsel %vm207_vm0, %v200_v2, 0  ;;  %v215_v44 = vsel %vm207_vm0, %v201_v33, 0 }
   0xe   : > { %v1347_v3 = vand.u32 4294901760, %v209_v1  ;;  %s1354_s20 = scalar_lea.vmem %s1952_s0, %s1254_s17  ;;  %v1403_v28 = vand.u32 4294901760, %v212_v7  ;;  %v1469_v58 = vand.u32 4294901760, %v215_v44  ;;  %s1856_s7 = scalar_lea.vmem %s1954_s2, %s1254_s17 }
   0xf   : > { %v197_v4 = vld [vmem:[%s1354_s20 + $0x70] sm:$0xff]  ;;  %v195_v5 = vld [vmem:[%s1354_s20 + $0x60] sm:$0xff]  ;;  %v198_v27 = vld [vmem:[%s1354_s20 + $0x78] sm:$0xff] }
  0x10   : > { %v193_v6 = vld [vmem:[%s1354_s20 + $0x50] sm:$0xff]  ;;  %v1360_v8 = vand.u32 4294901760, %v197_v4  ;;  %v1362_v9 = vand.u32 4294901760, %v195_v5  ;;  %v191_v11 = vld [vmem:[%s1354_s20 + $0x40] sm:$0xff]  ;;  %v1378_v19 = vsub.f32 %v209_v1, %v1347_v3  ;;  %v1435_v41 = vand.u32 4294901760, %v198_v27  ;;  %v196_v43 = vld [vmem:[%s1354_s20 + $0x68] sm:$0xff] }
  0x11   : > { %v1364_v10 = vand.u32 4294901760, %v193_v6  ;;  %v189_v12 = vld [vmem:[%s1354_s20 + $0x30] sm:$0xff]  ;;  %v187_v13 = vld [vmem:[%s1354_s20 + $0x20] sm:$0xff]  ;;  %v1369_v14 = vand.u32 4294901760, %v191_v11  ;;  %v194_v49 = vld [vmem:[%s1354_s20 + $0x58] sm:$0xff]  ;;  %v1460_v53 = vsub.f32 %v212_v7, %v1403_v28  ;;  %v1464_v56 = vand.u32 4294901760, %v196_v43 }
  0x12   : > { %v1371_v15 = vand.u32 4294901760, %v189_v12  ;;  %v1373_v16 = vand.u32 4294901760, %v187_v13  ;;  %v185_v17 = vld [vmem:[%s1354_s20 + $0x10] sm:$0xff]  ;;  %v183_v18 = vld [vmem:[%s1354_s20] sm:$0xff]  ;;  %241 = vmatpush.msra.mxu0 %v1360_v8  ;;  %v1382_v20 = vsub.f32 %v197_v4, %v1360_v8  ;;  %492 = vmatpush.msra.mxu3 %v1360_v8  ;;  %v1386_v21 = vsub.f32 %v195_v5, %v1362_v9  ;;  %v192_v0 = vld [vmem:[%s1354_s20 + $0x48] sm:$0xff] }
  0x13   : > { %v1389_v22 = vsub.f32 %v193_v6, %v1364_v10  ;;  %v1391_v23 = vand.u32 4294901760, %v185_v17  ;;  %v1394_v24 = vsub.f32 %v191_v11, %v1369_v14  ;;  %v1410_v32 = vand.u32 4294901760, %v183_v18 }
  0x14   : > { %v1397_v25 = vsub.f32 %v189_v12, %v1371_v15  ;;  %v1400_v26 = vsub.f32 %v187_v13, %v1373_v16  ;;  %243 = vmatpush.msra.mxu0 %v1362_v9  ;;  %420 = vmatpush.msra.mxu2 %v1382_v20  ;;  %v331_v29 = vand.u32 4294901760, %v1382_v20  ;;  %v337_v30 = vand.u32 4294901760, %v1386_v21 }
  0x15   : > { %v343_v31 = vand.u32 4294901760, %v1389_v22  ;;  %494 = vmatpush.msra.mxu3 %v1362_v9  ;;  %v349_v34 = vand.u32 4294901760, %v1394_v24  ;;  %v1418_v35 = vand.u32 4294901760, %v1378_v19  ;;  %v1422_v37 = vsub.f32 %v185_v17, %v1391_v23  ;;  %v202_v17 = vld [vmem:[%s1953_s1 + $0x18] sm:$0xff] }
  0x16   : > { %v355_v36 = vand.u32 4294901760, %v1397_v25  ;;  %245 = vmatpush.msra.mxu0 %v1364_v10  ;;  %423 = vmatpush.msra.mxu2 %v1386_v21  ;;  %v332_v38 = vsub.f32 %v1382_v20, %v331_v29  ;;  %v338_v39 = vsub.f32 %v1386_v21, %v337_v30  ;;  %v361_v42 = vand.u32 4294901760, %v1400_v26 }
  0x17   : > { %v344_v40 = vsub.f32 %v1389_v22, %v343_v31  ;;  %496 = vmatpush.msra.mxu3 %v1364_v10  ;;  %v350_v47 = vsub.f32 %v1394_v24, %v349_v34  ;;  %v1447_v48 = vsub.f32 %v183_v18, %v1410_v32  ;;  %v259_v50 = vsub.f32 %v1378_v19, %v1418_v35 }
  0x18   : > { %247 = vmatpush.msra.mxu0 %v1369_v14  ;;  %v333_v45 = vand.u32 4294901760, %v332_v38  ;;  %426 = vmatpush.msra.mxu2 %v1389_v22  ;;  %v339_v46 = vand.u32 4294901760, %v338_v39  ;;  %v356_v51 = vsub.f32 %v1397_v25, %v355_v36  ;;  %v1457_v52 = vsub.f32 %v198_v27, %v1435_v41 }
  0x19   : > { %498 = vmatpush.msra.mxu3 %v1369_v14  ;;  %v345_v54 = vand.u32 4294901760, %v344_v40  ;;  %v367_v55 = vand.u32 4294901760, %v1422_v37  ;;  %v1471_v59 = vand.u32 4294901760, %v194_v49  ;;  %v351_v60 = vand.u32 4294901760, %v350_v47 }
  0x1a   : > { %249 = vmatpush.msra.mxu0 %v1371_v15  ;;  %334 = vmatpush.msra.mxu1 %v333_v45  ;;  %v785_v57 = vand.u32 4294901760, %v1457_v52  ;;  %v362_v61 = vsub.f32 %v1400_v26, %v361_v42  ;;  %v373_v62 = vand.u32 4294901760, %v1447_v48  ;;  %v1479_v63 = vsub.f32 %v196_v43, %v1464_v56 }
  0x1b   : > { %429 = vmatpush.msra.mxu2 %v1394_v24  ;;  %500 = vmatpush.msra.mxu3 %v1371_v15  ;;  %v1484_v1 = vand.u32 4294901760, %v259_v50  ;;  %v357_v2 = vand.u32 4294901760, %v356_v51  ;;  %v1487_v4 = vand.u32 4294901760, %v1460_v53  ;;  %v1490_v5 = vsub.f32 %v194_v49, %v1471_v59  ;;  %v190_v51 = vld [vmem:[%s1354_s20 + $0x38] sm:$0xff] }
  0x1c   : > { %251 = vmatpush.msra.mxu0 %v1373_v16  ;;  %340 = vmatpush.msra.mxu1 %v339_v46  ;;  %v368_v6 = vsub.f32 %v1422_v37, %v367_v55  ;;  %v786_v7 = vsub.f32 %v1457_v52, %v785_v57  ;;  %v791_v11 = vand.u32 4294901760, %v1479_v63  ;;  %v1500_v12 = vand.u32 4294901760, %v192_v0 }
  0x1d   : > { %432 = vmatpush.msra.mxu2 %v1397_v25  ;;  %502 = vmatpush.msra.mxu3 %v1373_v16  ;;  %v1505_v13 = vsub.f32 %v215_v44, %v1469_v58  ;;  %v363_v18 = vand.u32 4294901760, %v362_v61  ;;  %v374_v27 = vsub.f32 %v1447_v48, %v373_v62  ;;  %v267_v39 = vsub.f32 %v1460_v53, %v1487_v4 }
  0x1e   : > { %253 = vmatpush.msra.mxu0 %v1391_v23  ;;  %346 = vmatpush.msra.mxu1 %v345_v54  ;;  %v792_v33 = vsub.f32 %v1479_v63, %v791_v11  ;;  %v1518_v38 = vsub.f32 %v192_v0, %v1500_v12  ;;  %v797_v40 = vand.u32 4294901760, %v1490_v5  ;;  %v369_v43 = vand.u32 4294901760, %v368_v6 }
  0x1f   : > { %435 = vmatpush.msra.mxu2 %v1400_v26  ;;  %504 = vmatpush.msra.mxu3 %v1391_v23  ;;  %v787_v44 = vand.u32 4294901760, %v786_v7  ;;  %v218_v45 = vsel %vm207_vm0, %v202_v17, 0  ;;  %v375_v47 = vand.u32 4294901760, %v374_v27  ;;  %v1532_v50 = vand.u32 4294901760, %v1505_v13  ;;  %v205_v26 = vld [vmem:[%s1953_s1 + $0x30] sm:$0xff] }
  0x20   : > { %255 = vmatpush.msra.mxu0 %v1410_v32  ;;  %352 = vmatpush.msra.mxu1 %v351_v60  ;;  %v803_v46 = vand.u32 4294901760, %v1518_v38  ;;  %v793_v49 = vand.u32 4294901760, %v792_v33  ;;  %v1538_v54 = vand.u32 4294901760, %v267_v39  ;;  %v798_v60 = vsub.f32 %v1490_v5, %v797_v40  ;;  %v188_v33 = vld [vmem:[%s1354_s20 + $0x28] sm:$0xff] }
  0x21   : > { %261 = vmatmul.f32.vlgmr.msra.gmra.mxu0 %v1484_v1  ;;  %438 = vmatpush.msra.mxu2 %v1422_v37  ;;  %v1543_v61 = vand.u32 4294901760, %v218_v45  ;;  %v1545_v0 = vand.u32 4294901760, %v190_v51  ;;  %v275_v21 = vsub.f32 %v1505_v13, %v1532_v50 }
  0x22   : > { %358 = vmatpush.msra.mxu1 %v357_v2  ;;  %506 = vmatpush.msra.mxu3 %v1410_v32  ;;  %v804_v20 = vsub.f32 %v1518_v38, %v803_v46 }
  0x23   : > { %441 = vmatpush.msra.mxu2 %v1447_v48  ;;  %510 = vmatmul.f32.vlgmr.msra.gmra.mxu3 %v1418_v35  ;;  %v1557_v2 = vsub.f32 %v190_v51, %v1545_v0  ;;  %v1564_v6 = vsub.f32 %v218_v45, %v1543_v61 }
  0x24   : > { %364 = vmatpush.msra.mxu1 %v363_v18  ;;  %444 = vmatmul.f32.vlgmr.msra.gmra.mxu2 %v1378_v19  ;;  %v805_v18 = vand.u32 4294901760, %v804_v20  ;;  %v227_v20 = vsel %vm207_vm0, %v205_v26, 0 }
  0x25   : > { %695 = vmatpush.msrb.mxu2 %v1435_v41  ;;  %567 = vmatpush.msrb.mxu0 %v331_v29  ;;  %v203_v29 = vld [vmem:[%s1953_s1 + $0x20] sm:$0xff]  ;;  %v809_v7 = vand.u32 4294901760, %v1557_v2  ;;  %v1582_v39 = vand.u32 4294901760, %v1564_v6 }
  0x26   : > { %370 = vmatpush.msra.mxu1 %v369_v43  ;;  %788 = vmatpush.msrb.mxu3 %v787_v44  ;;  %v221_v17 = vsel %vm207_vm0, %v203_v29, 0 }
  0x27   : > { %697 = vmatpush.msrb.mxu2 %v1464_v56  ;;  %571 = vmatpush.msrb.mxu0 %v337_v30  ;;  %v799_v30 = vand.u32 4294901760, %v798_v60  ;;  %v810_v27 = vsub.f32 %v1557_v2, %v809_v7  ;;  %v1585_v22 = vand.u32 4294901760, %v221_v17  ;;  %v184_v60 = vld [vmem:[%s1354_s20 + $0x8] sm:$0xff] }
  0x28   : > { %376 = vmatpush.msra.mxu1 %v375_v47  ;;  %794 = vmatpush.msrb.mxu3 %v793_v49  ;;  %v1653_v29 = vand.u32 4294901760, %v184_v60 }
  0x29   : > { %269 = vmatmul.f32.gmra.mxu0 %v1538_v54  ;;  %378 = vmatmul.f32.vlgmr.msra.gmra.mxu1 %v1347_v3  ;;  %v811_v43 = vand.u32 4294901760, %v810_v27  ;;  %v1607_v24 = vsub.f32 %v221_v17, %v1585_v22 }
  0x2a   : > { %638 = vmatpush.msrb.mxu1 %v1360_v8  ;;  %699 = vmatpush.msrb.mxu2 %v1471_v59  ;;  %v1579_v8 = vand.u32 4294901760, %v275_v21  ;;  %v826_v48 = vsub.f32 %v184_v60, %v1653_v29 }
  0x2b   : > { %516 = vmatmul.f32.gmra.mxu3 %v1487_v4  ;;  %575 = vmatpush.msrb.mxu0 %v343_v31  ;;  %v1587_v31 = vand.u32 4294901760, %v188_v33 }
  0x2c   : > { %449 = vmatmul.f32.gmra.mxu2 %v1460_v53  ;;  %640 = vmatpush.msrb.mxu1 %v1362_v9  ;;  %v204_v9 = vld [vmem:[%s1953_s1 + $0x28] sm:$0xff]  ;;  %v827_v17 = vand.u32 4294901760, %v826_v48 }
  0x2d   : > { %800 = vmatpush.msrb.mxu3 %v799_v30  ;;  %701 = vmatpush.msrb.mxu2 %v1500_v12  ;;  %v1597_v44 = vsub.f32 %v188_v33, %v1587_v31 }
  0x2e   : > { %642 = vmatpush.msrb.mxu1 %v1364_v10  ;;  %579 = vmatpush.msrb.mxu0 %v349_v34  ;;  %v283_v10 = vsub.f32 %v1564_v6, %v1582_v39  ;;  %v224_v34 = vsel %vm207_vm0, %v204_v9, 0  ;;  %v828_v27 = vsub.f32 %v826_v48, %v827_v17 }
  0x2f   : > { %806 = vmatpush.msrb.mxu3 %v805_v18  ;;  %703 = vmatpush.msrb.mxu2 %v1545_v0  ;;  %v815_v45 = vand.u32 4294901760, %v1597_v44  ;;  %v1618_v25 = vand.u32 4294901760, %v224_v34  ;;  %v206_v18 = vld [vmem:[%s1953_s1 + $0x38] sm:$0xff] }
  0x30   : > { %644 = vmatpush.msrb.mxu1 %v1369_v14  ;;  %583 = vmatpush.msrb.mxu0 %v355_v36  ;;  %v186_v36 = vld [vmem:[%s1354_s20 + $0x18] sm:$0xff]  ;;  %v1623_v47 = vand.u32 4294901760, %v283_v10  ;;  %v230_v33 = vsel %vm207_vm0, %v206_v18, 0 }
  0x31   : > { %277 = vmatmul.f32.gmra.mxu0 %v1579_v8  ;;  %382 = vmatmul.f32.gmra.mxu1 %v1403_v28  ;;  %v816_v14 = vsub.f32 %v1597_v44, %v815_v45  ;;  %v1629_v51 = vand.u32 4294901760, %v186_v36  ;;  %v1648_v37 = vsub.f32 %v224_v34, %v1618_v25  ;;  %v1701_v9 = vand.u32 4294901760, %v230_v33 }
  0x32   : > { %812 = vmatpush.msrb.mxu3 %v811_v43  ;;  %646 = vmatpush.msrb.mxu1 %v1371_v15  ;;  %v1626_v15 = vand.u32 4294901760, %v1607_v24  ;;  %v829_v43 = vand.u32 4294901760, %v828_v27 }
  0x33   : > { %522 = vmatmul.f32.gmra.mxu3 %v1532_v50  ;;  %705 = vmatpush.msrb.mxu2 %v1587_v31  ;;  %v817_v49 = vand.u32 4294901760, %v816_v14  ;;  %v1666_v21 = vand.u32 4294901760, %v1648_v37 }
  0x34   : > { %454 = vmatmul.f32.gmra.mxu2 %v1505_v13  ;;  %587 = vmatpush.msrb.mxu0 %v361_v42  ;;  %v1638_v42 = vsub.f32 %v186_v36, %v1629_v51 }
  0x35   : > { %648 = vmatpush.msrb.mxu1 %v1373_v16  ;;  %818 = vmatpush.msrb.mxu3 %v817_v49  ;;  %v291_v16 = vsub.f32 %v1607_v24, %v1626_v15 }
  0x36   : > { %591 = vmatpush.msrb.mxu0 %v367_v55  ;;  %707 = vmatpush.msrb.mxu2 %v1629_v51  ;;  %v821_v55 = vand.u32 4294901760, %v1638_v42 }
  0x37   : > { %650 = vmatpush.msrb.mxu1 %v1391_v23 }
  0x38   : > { %595 = vmatpush.msrb.mxu0 %v373_v62  ;;  %v822_v23 = vsub.f32 %v1638_v42, %v821_v55  ;;  %v1663_v62 = vand.u32 4294901760, %v291_v16  ;;  %709 = vmatpush.msrb.mxu2 %v1653_v29 }
  0x39   : > { %285 = vmatmul.f32.gmra.mxu0 %v1623_v47  ;;  %386 = vmatmul.f32.gmra.mxu1 %v1469_v58 }
  0x3a   : > { %652 = vmatpush.msrb.mxu1 %v1410_v32  ;;  %874 = vmatpush.msra.mxu0 %v1457_v52  ;;  %v1668_v32 = vand.u32 4294901760, %v227_v20  ;;  %v823_v30 = vand.u32 4294901760, %v822_v23  ;;  %v299_v52 = vsub.f32 %v1648_v37, %v1666_v21 }
  0x3b   : > { %528 = vmatmul.f32.gmra.mxu3 %v1582_v39  ;;  %1021 = vmatpush.msra.mxu2 %v785_v57 }
  0x3c   : > { %946 = vmatpush.msra.mxu1 %v1435_v41  ;;  %459 = vmatmul.f32.gmra.mxu2 %v1564_v6  ;;  %v1687_v57 = vsub.f32 %v227_v20, %v1668_v32 }
  0x3d   : > { %877 = vmatpush.msra.mxu0 %v1479_v63  ;;  %824 = vmatpush.msrb.mxu3 %v823_v30  ;;  %v1696_v63 = vand.u32 4294901760, %v299_v52 }
  0x3e   : > { %948 = vmatpush.msra.mxu1 %v1464_v56  ;;  %1025 = vmatpush.msra.mxu2 %v791_v11  ;;  %v1699_v11 = vand.u32 4294901760, %v1687_v57 }
  0x3f   : > { %880 = vmatpush.msra.mxu0 %v1490_v5  ;;  %830 = vmatpush.msrb.mxu3 %v829_v43  ;;  %v1718_v5 = vsub.f32 %v230_v33, %v1701_v9 }
  0x40   : > { %950 = vmatpush.msra.mxu1 %v1471_v59  ;;  %1029 = vmatpush.msra.mxu2 %v797_v40 }
  0x41   : > { %883 = vmatpush.msra.mxu0 %v1518_v38  ;;  %390 = vmatmul.f32.gmra.mxu1 %v1543_v61  ;;  %v1728_v38 = vand.u32 4294901760, %v1718_v5 }
  0x42   : > { %293 = vmatmul.f32.gmra.mxu0 %v1663_v62  ;;  %952 = vmatpush.msra.mxu1 %v1500_v12 }
  0x43   : > { %534 = vmatmul.f32.gmra.mxu3 %v1626_v15  ;;  %886 = vmatpush.msra.mxu0 %v1557_v2 }
  0x44   : > { %464 = vmatmul.f32.gmra.mxu2 %v1607_v24  ;;  %1092 = vmatpush.msra.mxu3 %v1435_v41  ;;  %v307_v41 = vsub.f32 %v1687_v57, %v1699_v11 }
  0x45   : > { %1033 = vmatpush.msra.mxu2 %v803_v46  ;;  %954 = vmatpush.msra.mxu1 %v1545_v0 }
  0x46   : > { %889 = vmatpush.msra.mxu0 %v1597_v44  ;;  %1094 = vmatpush.msra.mxu3 %v1464_v56  ;;  %v308_v56 = vand.u32 4294901760, %v307_v41 }
  0x47   : > { %1037 = vmatpush.msra.mxu2 %v809_v7  ;;  %956 = vmatpush.msra.mxu1 %v1587_v31 }
  0x48   : > { %892 = vmatpush.msra.mxu0 %v1638_v42  ;;  %1096 = vmatpush.msra.mxu3 %v1471_v59  ;;  %v315_v59 = vsub.f32 %v1718_v5, %v1728_v38 }
  0x49   : > { %394 = vmatmul.f32.gmra.mxu1 %v1585_v22  ;;  %1041 = vmatpush.msra.mxu2 %v815_v45 }
  0x4a   : > { %301 = vmatmul.f32.gmra.mxu0 %v1696_v63  ;;  %958 = vmatpush.msra.mxu1 %v1629_v51 }
  0x4b   : > { %540 = vmatmul.f32.gmra.mxu3 %v1666_v21  ;;  %1045 = vmatpush.msra.mxu2 %v821_v55 }
  0x4c   : > { %469 = vmatmul.f32.gmra.mxu2 %v1648_v37  ;;  %1098 = vmatpush.msra.mxu3 %v1500_v12  ;;  %v316_v12 = vand.u32 4294901760, %v315_v59 }
  0x4d   : > { %895 = vmatpush.msra.mxu0 %v826_v48  ;;  %960 = vmatpush.msra.mxu1 %v1653_v29 }
  0x4e   : > { %1100 = vmatpush.msra.mxu3 %v1545_v0  ;;  %1049 = vmatpush.msra.mxu2 %v827_v17 }
  0x50   : > { %1102 = vmatpush.msra.mxu3 %v1587_v31 }
  0x51   : > { %398 = vmatmul.f32.gmra.mxu1 %v1618_v25 }
  0x52   : > { %309 = vmatmul.f32.gmra.mxu0 %v308_v56  ;;  %1104 = vmatpush.msra.mxu3 %v1629_v51 }
  0x53   : > { %546 = vmatmul.f32.gmra.mxu3 %v1699_v11 }
  0x54   : > { %474 = vmatmul.f32.gmra.mxu2 %v1687_v57  ;;  %1106 = vmatpush.msra.mxu3 %v1653_v29 }
  0x59   : > { %402 = vmatmul.f32.gmra.mxu1 %v1668_v32 }
  0x5a   : > { %317 = vmatmul.f32.gmra.mxu0 %v316_v12 }
  0x5b   : > { %552 = vmatmul.f32.gmra.mxu3 %v1728_v38 }
  0x5c   : > { %479 = vmatmul.f32.gmra.mxu2 %v1718_v5 }
  0x61   : > { %406 = vmatmul.f32.gmra.mxu1 %v1701_v9 }
  0x62   : > { %597 = vmatmul.f32.vlgmr.msrb.gmra.mxu0 %v1347_v3 }
  0x63   : > { %832 = vmatmul.f32.vlgmr.msrb.gmra.mxu3 %v1347_v3 }
  0x64   : > { %715 = vmatmul.f32.vlgmr.msrb.gmra.mxu2 %v1484_v1 }
  0x69   : > { %654 = vmatmul.f32.vlgmr.msrb.gmra.mxu1 %v1347_v3 }
  0x6a   : > { %601 = vmatmul.f32.gmra.mxu0 %v1403_v28 }
  0x6b   : > { %836 = vmatmul.f32.gmra.mxu3 %v1403_v28 }
  0x6c   : > { %723 = vmatmul.f32.gmra.mxu2 %v1538_v54 }
  0x71   : > { %658 = vmatmul.f32.gmra.mxu1 %v1403_v28 }
  0x72   : > { %605 = vmatmul.f32.gmra.mxu0 %v1469_v58 }
  0x73   : > { %840 = vmatmul.f32.gmra.mxu3 %v1469_v58 }
  0x74   : > { %731 = vmatmul.f32.gmra.mxu2 %v1579_v8 }
  0x79   : > { %662 = vmatmul.f32.gmra.mxu1 %v1469_v58 }
  0x7a   : > { %609 = vmatmul.f32.gmra.mxu0 %v1543_v61 }
  0x7b   : > { %844 = vmatmul.f32.gmra.mxu3 %v1543_v61 }
  0x7c   : > { %739 = vmatmul.f32.gmra.mxu2 %v1623_v47 }
  0x81   : > { %666 = vmatmul.f32.gmra.mxu1 %v1543_v61 }
  0x82   : > { %613 = vmatmul.f32.gmra.mxu0 %v1585_v22 }
  0x83   : > { %848 = vmatmul.f32.gmra.mxu3 %v1585_v22 }
  0x84   : > { %747 = vmatmul.f32.gmra.mxu2 %v1663_v62 }
  0x89   : > { %670 = vmatmul.f32.gmra.mxu1 %v1585_v22 }
  0x8a   : > { %617 = vmatmul.f32.gmra.mxu0 %v1618_v25 }
  0x8b   : > { %852 = vmatmul.f32.gmra.mxu3 %v1618_v25 }
  0x8c   : > { %755 = vmatmul.f32.gmra.mxu2 %v1696_v63 }
  0x91   : > { %674 = vmatmul.f32.gmra.mxu1 %v1618_v25 }
  0x92   : > { %621 = vmatmul.f32.gmra.mxu0 %v1668_v32 }
  0x93   : > { %856 = vmatmul.f32.gmra.mxu3 %v1668_v32 }
  0x94   : > { %763 = vmatmul.f32.gmra.mxu2 %v308_v56 }
  0x99   : > { %678 = vmatmul.f32.gmra.mxu1 %v1668_v32 }
  0x9a   : > { %625 = vmatmul.f32.gmra.mxu0 %v1701_v9 }
  0x9b   : > { %860 = vmatmul.f32.gmra.mxu3 %v1701_v9 }
  0x9c   : > { %771 = vmatmul.f32.gmra.mxu2 %v316_v12 }
  0x9e   : > { %v262_v1 = vpop.f32.mrf.mxu0 }
  0xa1   : > { %682 = vmatmul.f32.gmra.mxu1 %v1701_v9 }
  0xa2   : > { %898 = vmatmul.f32.vlgmr.msra.gmra.mxu0 %v1378_v19 }
  0xa3   : > { %1108 = vmatmul.f32.vlgmr.msra.gmra.mxu3 %v1347_v3 }
  0xa4   : > { %1051 = vmatmul.f32.vlgmr.msra.gmra.mxu2 %v1347_v3 }
  0xa6   : > { %v1777_v40 = vpop.f32.mrf.mxu0  ;;  %v379_v46 = vpop.f32.mrf.mxu1 }
  0xa7   : > { %v445_v54 = vpop.f32.mrf.mxu2  ;;  %v511_v0 = vpop.f32.mrf.mxu3  ;;  %v380_v36 = vadd.f32 %v379_v46, %v262_v1 }
  0xa9   : > { %964 = vmatmul.f32.vlgmr.msra.gmra.mxu1 %v1418_v35  ;;  %v446_v49 = vadd.f32 %v445_v54, %v380_v36 }
  0xaa   : > { %903 = vmatmul.f32.gmra.mxu0 %v1460_v53 }
  0xab   : > { %1112 = vmatmul.f32.gmra.mxu3 %v1403_v28  ;;  %v512_v42 = vadd.f32 %v511_v0, %v446_v49 }
  0xac   : > { %1055 = vmatmul.f32.gmra.mxu2 %v1403_v28 }
  0xae   : > { %v1783_v2 = vpop.f32.mrf.mxu0  ;;  %v383_v19 = vpop.f32.mrf.mxu1 }
  0xaf   : > { %v450_v7 = vpop.f32.mrf.mxu2  ;;  %v1785_v8 = vpop.f32.mrf.mxu3  ;;  %v384_v16 = vadd.f32 %v383_v19, %v1777_v40 }
  0xb1   : > { %970 = vmatmul.f32.gmra.mxu1 %v1487_v4  ;;  %v451_v20 = vadd.f32 %v450_v7, %v384_v16 }
  0xb2   : > { %908 = vmatmul.f32.gmra.mxu0 %v1505_v13 }
  0xb3   : > { %1116 = vmatmul.f32.gmra.mxu3 %v1469_v58  ;;  %v518_v62 = vadd.f32 %v1785_v8, %v451_v20 }
  0xb4   : > { %1059 = vmatmul.f32.gmra.mxu2 %v1469_v58 }
  0xb6   : > { %v1791_v3 = vpop.f32.mrf.mxu0  ;;  %v387_v35 = vpop.f32.mrf.mxu1 }
  0xb7   : > { %v455_v53 = vpop.f32.mrf.mxu2  ;;  %v1793_v31 = vpop.f32.mrf.mxu3 }
  0xb9   : > { %976 = vmatmul.f32.gmra.mxu1 %v1532_v50 }
  0xba   : > { %913 = vmatmul.f32.gmra.mxu0 %v1564_v6 }
  0xbb   : > { %1120 = vmatmul.f32.gmra.mxu3 %v1543_v61 }
  0xbc   : > { %1063 = vmatmul.f32.gmra.mxu2 %v1543_v61 }
  0xbe   : > { %v391_v4 = vpop.f32.mrf.mxu1 }
  0xbf   : > { %v1799_v28 = vpop.f32.mrf.mxu0  ;;  %v1801_v13 = vpop.f32.mrf.mxu2  ;;  %v392_v43 = vadd.f32 %v391_v4, %v1791_v3 }
  0xc0   : > { %v1803_v58 = vpop.f32.mrf.mxu3 }
  0xc1   : > { %982 = vmatmul.f32.gmra.mxu1 %v1582_v39  ;;  %v461_v41 = vadd.f32 %v1801_v13, %v392_v43 }
  0xc2   : > { %918 = vmatmul.f32.gmra.mxu0 %v1607_v24 }
  0xc3   : > { %1124 = vmatmul.f32.gmra.mxu3 %v1585_v22  ;;  %v530_v59 = vadd.f32 %v1803_v58, %v461_v41 }
  0xc4   : > { %1067 = vmatmul.f32.gmra.mxu2 %v1585_v22 }
  0xc6   : > { %v395_v6 = vpop.f32.mrf.mxu1 }
  0xc7   : > { %v1809_v50 = vpop.f32.mrf.mxu0  ;;  %v1811_v44 = vpop.f32.mrf.mxu2  ;;  %v396_v12 = vadd.f32 %v395_v6, %v1799_v28 }
  0xc8   : > { %v1813_v61 = vpop.f32.mrf.mxu3 }
  0xc9   : > { %988 = vmatmul.f32.gmra.mxu1 %v1626_v15  ;;  %v466_v54 = vadd.f32 %v1811_v44, %v396_v12 }
  0xca   : > { %923 = vmatmul.f32.gmra.mxu0 %v1648_v37 }
  0xcb   : > { %1128 = vmatmul.f32.gmra.mxu3 %v1618_v25  ;;  %v536_v7 = vadd.f32 %v1813_v61, %v466_v54 }
  0xcc   : > { %1071 = vmatmul.f32.gmra.mxu2 %v1618_v25 }
  0xce   : > { %v1821_v10 = vpop.f32.mrf.mxu1 }
  0xcf   : > { %v1819_v39 = vpop.f32.mrf.mxu0  ;;  %v1823_v22 = vpop.f32.mrf.mxu2  ;;  %v400_v8 = vadd.f32 %v1821_v10, %v1809_v50 }
  0xd0   : > { %v1825_v24 = vpop.f32.mrf.mxu3 }
  0xd1   : > { %994 = vmatmul.f32.gmra.mxu1 %v1666_v21  ;;  %v388_v21 = vadd.f32 %v387_v35, %v1783_v2 }
  0xd2   : > { %928 = vmatmul.f32.gmra.mxu0 %v1687_v57 }
  0xd3   : > { %1132 = vmatmul.f32.gmra.mxu3 %v1668_v32  ;;  %v456_v18 = vadd.f32 %v455_v53, %v388_v21 }
  0xd4   : > { %1075 = vmatmul.f32.gmra.mxu2 %v1668_v32 }
  0xd5   : > { %v524_v33 = vadd.f32 %v1793_v31, %v456_v18  ;;  %v471_v31 = vadd.f32 %v1823_v22, %v400_v8 }
  0xd6   : > { %v1833_v45 = vpop.f32.mrf.mxu1 }
  0xd7   : > { %v1831_v34 = vpop.f32.mrf.mxu0  ;;  %v1835_v14 = vpop.f32.mrf.mxu2  ;;  %v542_v58 = vadd.f32 %v1825_v24, %v471_v31  ;;  %v404_v6 = vadd.f32 %v1833_v45, %v1819_v39 }
  0xd8   : > { %v1837_v25 = vpop.f32.mrf.mxu3 }
  0xd9   : > { %1000 = vmatmul.f32.gmra.mxu1 %v1699_v11  ;;  %v476_v10 = vadd.f32 %v1835_v14, %v404_v6 }
  0xda   : > { %933 = vmatmul.f32.gmra.mxu0 %v1718_v5 }
  0xdb   : > { %1136 = vmatmul.f32.gmra.mxu3 %v1701_v9  ;;  %v548_v49 = vadd.f32 %v1837_v25, %v476_v10 }
  0xdc   : > { %1079 = vmatmul.f32.gmra.mxu2 %v1701_v9 }
  0xde   : > { %v1843_v47 = vpop.f32.mrf.mxu1 }
  0xdf   : > { %v598_v15 = vpop.f32.mrf.mxu0  ;;  %v1845_v51 = vpop.f32.mrf.mxu2  ;;  %v408_v24 = vadd.f32 %v1843_v47, %v1831_v34 }
  0xe0   : > { %v1847_v26 = vpop.f32.mrf.mxu3  ;;  %v599_v37 = vadd.f32 %v598_v15, %v512_v42 }
  0xe1   : > { %1006 = vmatmul.f32.gmra.mxu1 %v1728_v38  ;;  %v481_v16 = vadd.f32 %v1845_v51, %v408_v24 }
  0xe6   : > { %v655_v60 = vpop.f32.mrf.mxu1 }
  0xe7   : > { %v602_v55 = vpop.f32.mrf.mxu0  ;;  %v656_v29 = vadd.f32 %v655_v60, %v599_v37  ;;  %v1858_v23 = vpop.f32.mrf.mxu2  ;;  %v554_v60 = vadd.f32 %v1847_v26, %v481_v16 }
  0xe8   : > { %v1860_v48 = vpop.f32.mrf.mxu3  ;;  %v603_v32 = vadd.f32 %v602_v55, %v518_v62 }
  0xe9   : > { %1140 = vst [vmem:[%s1856_s7] sm:$0xff] %v656_v29  ;;  %v834_v51 = vadd.f32 %v1860_v48, %v1858_v23 }
  0xee   : > { %v659_v17 = vpop.f32.mrf.mxu1 }
  0xef   : > { %v606_v30 = vpop.f32.mrf.mxu0  ;;  %v660_v27 = vadd.f32 %v659_v17, %v603_v32  ;;  %v1865_v52 = vpop.f32.mrf.mxu2 }
  0xf0   : > { %v1867_v57 = vpop.f32.mrf.mxu3  ;;  %v607_v63 = vadd.f32 %v606_v30, %v524_v33 }
  0xf1   : > { %1142 = vst [vmem:[%s1856_s7 + $0x10] sm:$0xff] %v660_v27  ;;  %v838_v33 = vadd.f32 %v1867_v57, %v1865_v52 }
  0xf6   : > { %v663_v9 = vpop.f32.mrf.mxu1 }
  0xf7   : > { %v610_v11 = vpop.f32.mrf.mxu0  ;;  %v664_v5 = vadd.f32 %v663_v9, %v607_v63  ;;  %v1873_v56 = vpop.f32.mrf.mxu2 }
  0xf8   : > { %v1875_v38 = vpop.f32.mrf.mxu3  ;;  %v611_v1 = vadd.f32 %v610_v11, %v530_v59 }
  0xf9   : > { %1144 = vst [vmem:[%s1856_s7 + $0x20] sm:$0xff] %v664_v5  ;;  %v842_v59 = vadd.f32 %v1875_v38, %v1873_v56 }
  0xfe   : > { %v667_v46 = vpop.f32.mrf.mxu1 }
  0xff   : > { %v614_v40 = vpop.f32.mrf.mxu0  ;;  %v668_v0 = vadd.f32 %v667_v46, %v611_v1  ;;  %v1881_v2 = vpop.f32.mrf.mxu2 }
 0x100   : > { %v1883_v19 = vpop.f32.mrf.mxu3  ;;  %v615_v3 = vadd.f32 %v614_v40, %v536_v7 }
 0x101   : > { %1146 = vst [vmem:[%s1856_s7 + $0x30] sm:$0xff] %v668_v0  ;;  %v846_v7 = vadd.f32 %v1883_v19, %v1881_v2 }
 0x106   : > { %v671_v53 = vpop.f32.mrf.mxu1 }
 0x107   : > { %v618_v35 = vpop.f32.mrf.mxu0  ;;  %v672_v28 = vadd.f32 %v671_v53, %v615_v3  ;;  %v1890_v4 = vpop.f32.mrf.mxu2 }
 0x108   : > { %v1892_v13 = vpop.f32.mrf.mxu3  ;;  %v619_v44 = vadd.f32 %v618_v35, %v542_v58 }
 0x109   : > { %1148 = vst [vmem:[%s1856_s7 + $0x40] sm:$0xff] %v672_v28  ;;  %v850_v58 = vadd.f32 %v1892_v13, %v1890_v4 }
 0x10e   : > { %v675_v50 = vpop.f32.mrf.mxu1 }
 0x10f   : > { %v622_v61 = vpop.f32.mrf.mxu0  ;;  %v676_v36 = vadd.f32 %v675_v50, %v619_v44  ;;  %v1899_v15 = vpop.f32.mrf.mxu2 }
 0x110   : > { %v1901_v22 = vpop.f32.mrf.mxu3  ;;  %v623_v42 = vadd.f32 %v622_v61, %v548_v49 }
 0x111   : > { %1150 = vst [vmem:[%s1856_s7 + $0x50] sm:$0xff] %v676_v36  ;;  %v854_v49 = vadd.f32 %v1901_v22, %v1899_v15 }
 0x116   : > { %v679_v45 = vpop.f32.mrf.mxu1 }
 0x117   : > { %v626_v39 = vpop.f32.mrf.mxu0  ;;  %v680_v37 = vadd.f32 %v679_v45, %v623_v42  ;;  %v1908_v55 = vpop.f32.mrf.mxu2 }
 0x118   : > { %v1910_v14 = vpop.f32.mrf.mxu3  ;;  %v627_v20 = vadd.f32 %v626_v39, %v554_v60 }
 0x119   : > { %1152 = vst [vmem:[%s1856_s7 + $0x60] sm:$0xff] %v680_v37  ;;  %v858_v60 = vadd.f32 %v1910_v14, %v1908_v55 }
 0x11e   : > { %v683_v29 = vpop.f32.mrf.mxu1 }
 0x11f   : > { %v899_v25 = vpop.f32.mrf.mxu0  ;;  %v684_v62 = vadd.f32 %v683_v29, %v627_v20  ;;  %v1914_v34 = vpop.f32.mrf.mxu2 }
 0x120   : > { %v1916_v47 = vpop.f32.mrf.mxu3  ;;  %v900_v21 = vadd.f32 %v899_v25, %v834_v51 }
 0x121   : > { %1154 = vst [vmem:[%s1856_s7 + $0x70] sm:$0xff] %v684_v62 }
 0x126   : > { %v965_v30 = vpop.f32.mrf.mxu1 }
 0x127   : > { %v904_v32 = vpop.f32.mrf.mxu0  ;;  %v966_v17 = vadd.f32 %v965_v30, %v900_v21  ;;  %v1052_v18 = vpop.f32.mrf.mxu2 }
 0x128   : > { %v1109_v26 = vpop.f32.mrf.mxu3  ;;  %v905_v63 = vadd.f32 %v904_v32, %v838_v33  ;;  %v862_v32 = vadd.f32 %v1916_v47, %v1914_v34 }
 0x129   : > { %v1053_v27 = vadd.f32 %v1052_v18, %v966_v17 }
 0x12b   : > { %v1110_v43 = vadd.f32 %v1109_v26, %v1053_v27 }
 0x12d   : > { %1141 = vst [vmem:[%s1856_s7 + $0x8] sm:$0xff] %v1110_v43 }
 0x12e   : > { %v971_v9 = vpop.f32.mrf.mxu1 }
 0x12f   : > { %v909_v11 = vpop.f32.mrf.mxu0  ;;  %v972_v41 = vadd.f32 %v971_v9, %v905_v63  ;;  %v1056_v5 = vpop.f32.mrf.mxu2 }
 0x130   : > { %v1113_v23 = vpop.f32.mrf.mxu3  ;;  %v910_v1 = vadd.f32 %v909_v11, %v842_v59 }
 0x131   : > { %v1057_v48 = vadd.f32 %v1056_v5, %v972_v41 }
 0x133   : > { %v1114_v12 = vadd.f32 %v1113_v23, %v1057_v48 }
 0x135   : > { %1143 = vst [vmem:[%s1856_s7 + $0x18] sm:$0xff] %v1114_v12 }
 0x136   : > { %v977_v46 = vpop.f32.mrf.mxu1 }
 0x137   : > { %v914_v40 = vpop.f32.mrf.mxu0  ;;  %v978_v54 = vadd.f32 %v977_v46, %v910_v1  ;;  %v1060_v52 = vpop.f32.mrf.mxu2 }
 0x138   : > { %v1117_v57 = vpop.f32.mrf.mxu3  ;;  %v915_v3 = vadd.f32 %v914_v40, %v846_v7 }
 0x139   : > { %v1061_v0 = vadd.f32 %v1060_v52, %v978_v54 }
 0x13b   : > { %v1118_v8 = vadd.f32 %v1117_v57, %v1061_v0 }
 0x13d   : > { %1145 = vst [vmem:[%s1856_s7 + $0x28] sm:$0xff] %v1118_v8 }
 0x13e   : > { %v983_v53 = vpop.f32.mrf.mxu1 }
 0x13f   : > { %v919_v35 = vpop.f32.mrf.mxu0  ;;  %v984_v31 = vadd.f32 %v983_v53, %v915_v3  ;;  %v1064_v56 = vpop.f32.mrf.mxu2 }
 0x140   : > { %v1121_v38 = vpop.f32.mrf.mxu3  ;;  %v920_v44 = vadd.f32 %v919_v35, %v850_v58 }
 0x141   : > { %v1065_v28 = vadd.f32 %v1064_v56, %v984_v31 }
 0x143   : > { %v1122_v6 = vadd.f32 %v1121_v38, %v1065_v28 }
 0x145   : > { %1147 = vst [vmem:[%s1856_s7 + $0x38] sm:$0xff] %v1122_v6 }
 0x146   : > { %v989_v50 = vpop.f32.mrf.mxu1 }
 0x147   : > { %v924_v61 = vpop.f32.mrf.mxu0  ;;  %v990_v10 = vadd.f32 %v989_v50, %v920_v44  ;;  %v1068_v2 = vpop.f32.mrf.mxu2 }
 0x148   : > { %v1125_v19 = vpop.f32.mrf.mxu3  ;;  %v925_v42 = vadd.f32 %v924_v61, %v854_v49 }
 0x149   : > { %v1069_v36 = vadd.f32 %v1068_v2, %v990_v10 }
 0x14b   : > { %v1126_v24 = vadd.f32 %v1125_v19, %v1069_v36 }
 0x14d   : > { %1149 = vst [vmem:[%s1856_s7 + $0x48] sm:$0xff] %v1126_v24 }
 0x14e   : > { %v995_v39 = vpop.f32.mrf.mxu1 }
 0x14f   : > { %v996_v45 = vadd.f32 %v995_v39, %v925_v42  ;;  %v1072_v16 = vpop.f32.mrf.mxu2  ;;  %v929_v13 = vpop.f32.mrf.mxu0 }
 0x150   : > { %v1129_v4 = vpop.f32.mrf.mxu3  ;;  %v930_v29 = vadd.f32 %v929_v13, %v858_v60 }
 0x151   : > { %v1073_v37 = vadd.f32 %v1072_v16, %v996_v45 }
 0x153   : > { %v1130_v20 = vadd.f32 %v1129_v4, %v1073_v37 }
 0x155   : > { %1151 = vst [vmem:[%s1856_s7 + $0x58] sm:$0xff] %v1130_v20 }
 0x156   : > { %v1001_v25 = vpop.f32.mrf.mxu1 }
 0x157   : > { %v1002_v62 = vadd.f32 %v1001_v25, %v930_v29  ;;  %v1076_v15 = vpop.f32.mrf.mxu2  ;;  %v934_v21 = vpop.f32.mrf.mxu0 }
 0x158   : > { %v1133_v22 = vpop.f32.mrf.mxu3  ;;  %v935_v17 = vadd.f32 %v934_v21, %v862_v32 }
 0x159   : > { %v1077_v51 = vadd.f32 %v1076_v15, %v1002_v62 }
 0x15b   : > { %v1134_v30 = vadd.f32 %v1133_v22, %v1077_v51 }
 0x15d   : > { %1153 = vst [vmem:[%s1856_s7 + $0x68] sm:$0xff] %v1134_v30 }
 0x15e   : > { %v1007_v18 = vpop.f32.mrf.mxu1 }
 0x15f   : > { %v1008_v26 = vadd.f32 %v1007_v18, %v935_v17  ;;  %v1080_v27 = vpop.f32.mrf.mxu2 }
 0x160   : > { %v1137_v55 = vpop.f32.mrf.mxu3 }
 0x161   : > { %v1081_v14 = vadd.f32 %v1080_v27, %v1008_v26 }
 0x163   : > { %v1138_v33 = vadd.f32 %v1137_v55, %v1081_v14 }
 0x165   : > { %1155 = vst [vmem:[%s1856_s7 + $0x78] sm:$0xff] %v1138_v33 }
 0x166 PF: > { %s12_s11 = sadd.s32 1, %s1302_s11   ;;  %s1955_s9 = smov %s1298_s10 }
 0x167   : > { %p9_p5 = scmp.ge.s32.totalorder %s12_s11, 4   ;;  %s1956_s10 = smov %s1958_s12 }
 0x169   :  { %11 = sbr.rel (!%p9_p5) target bundleno = 2 (0x2), region = 58 }

// kernel: fwd_f32.6
= control target key start
LH: loop header
LB: loop body
LE: loop exit
PB: predicated region body
PF: predicated region fallthrough
CT: control target
= control target key end

     0   :  { %s2131_s15 = smov 0   ;;  %s2133_s16 = smov 0   ;;  %s2556_s0 = inlined_call_operand.vmem [shape: f32[2,64,256], index: 0, kind: input, shape index: {}]   ;;  %s2557_s1 = inlined_call_operand.vmem [shape: f32[2,128,256], index: 1, kind: input, shape index: {}, may-alias: {1,2}]   ;;  %s2558_s2 = inlined_call_operand.vmem [shape: f32[2,128,256], index: 2, kind: input, shape index: {}, may-alias: {1,2}]   ;;  %s2559_s3 = inlined_call_operand.vmem [shape: f32[64,1], index: 3, kind: input, shape index: {}]   ;;  %s2560_s4 = inlined_call_operand.vmem [shape: f32[2,64,256], index: 4, kind: output, shape index: {}]  }
   0x1   :  { %s2135_s17 = smov 0   ;;  %s2137_s18 = smov 0  }
   0x2   :  { %s2139_s19 = smov 0  }
   0x3 LB: > { %s23_s20 = sadd.s32 1, %s2095_s17  ;;  %s26_s21 = sadd.s32 1, %s2099_s18  ;;  %s2103_s19 = sphi %s2139_s19, %s14_s19   ;;  %s2099_s18 = sphi %s2137_s18, %s2568_s18   ;;  %s2095_s17 = sphi %s2135_s17, %s2567_s17   ;;  %s2091_s16 = sphi %s2133_s16, %s2566_s16   ;;  %s2087_s15 = sphi %s2131_s15, %s2565_s15  }
   0x4   : > { %p24_p0 = scmp.ge.s32.totalorder %s23_s20, 2  ;;  %p1966_p1 = scmp.ge.s32.totalorder %s2103_s19, 1 }
   0x5   : > { %p235_p2 = scmp.lt.s32.totalorder %s2103_s19, 5 }
   0x6   : > { %s2570_s20 = smov (%p24_p0, %s23_s20), 0  ;;  %s2572_s21 = smov (!%p24_p0, %s26_s21), %s2099_s18 }
   0x7   : > { %p236_p3 = pnand %p1966_p1, %p235_p2  ;;  %p28_p4 = scmp.ge.s32.totalorder %s2572_s21, 2 }
   0x8   : > { %s1967_s22 = sshll.u32 (!%p236_p3), %s2087_s15, 2  ;;  %p298_p5 = scmp.lt.s32.totalorder (!%p236_p3), %s2091_s16, 1 }
   0x9   : > { %s2574_s21 = smov (%p28_p4, %s2572_s21), 0  ;;  %239 = sbr.rel (%p236_p3) target bundleno = 990 (0x3de), region = 36 }
   0xa   : > { %p300_p6 = scmp.lt.s32.totalorder (!%p236_p3), %s1967_s22, 7  ;;  %p311_p7 = scmp.lt.s32.totalorder (!%p236_p3), %s1967_s22, 15 }
   0xb   : > { %s1988_s26 = sadd.s32 (!%p236_p3), 8, %s1967_s22 }
   0xc   : > { %p323_p8 = scmp.lt.s32.totalorder (!%p236_p3), %s1988_s26, 15 }
   0xe   : > { %s2576_s16 = smov (!%p298_p5, %s2091_s16), 1  ;;  %s2580_s26 = smov (!%p323_p8, %s1988_s26), 15  ;;  %v2105_v40 = vmov 0  }
   0xf   : > { %s2163_s23 = scalar_select %p300_p6, %s1967_s22, 7  ;;  %2032 = vset.pattern.permute.xlu1 %v2105_v40  ;;  %2030 = vset.pattern.permute.xlu2 %v2105_v40 }
  0x10   : > { %s1969_s24 = sshll.u32 %s2576_s16, 4  ;;  %s1973_s6 = sshll.u32 %s2576_s16, 5  ;;  %2031 = vset.pattern.permute.xlu0 %v2105_v40 }
  0x11   : > { %s1968_s25 = sshll.u32 %s2163_s23, 1  ;;  %s2578_s22 = smov (!%p311_p7, %s1967_s22), 15 }
  0x12   : > { %s2167_s27 = sadd.s32 %s1969_s24, %s1968_s25  ;;  %s1972_s7 = sshll.u32 %s2578_s22, 1 }
  0x13   : > { %s1970_s28 = sshll.u32 %s2167_s27, 3  ;;  %s315_s8 = sadd.s32 %s1973_s6, %s1972_s7 }
  0x14   : > { %s306_s5 = scalar_lea.vmem %s2556_s0, %s1970_s28  ;;  %s1976_s9 = sshll.u32 %s2580_s26, 1 }
  0x15   : > { %v2176_v0 = vld [vmem:[%s306_s5 + $0x20] sm:$0xff]  ;;  %v2178_v1 = vld [vmem:[%s306_s5 + $0x28] sm:$0xff]  ;;  %v2192_v8 = vld [vmem:[%s306_s5 + $0x30] sm:$0xff]  ;;  %s1974_s10 = sshll.u32 %s315_s8, 3  ;;  %s2200_s11 = sadd.s32 %s1976_s9, %s1973_s6 }
  0x16   : > { %v2180_v2 = vld [vmem:[%s306_s5] sm:$0xff]  ;;  %v381_v3 = vmul.f32 %v2176_v0, %v2176_v0  ;;  %v382_v4 = vmul.f32 %v2178_v1, %v2178_v1  ;;  %v2186_v5 = vld [vmem:[%s306_s5 + $0x8] sm:$0xff]  ;;  %v2194_v9 = vld [vmem:[%s306_s5 + $0x38] sm:$0xff]  ;;  %v383_v14 = vmul.f32 %v2192_v8, %v2192_v8  ;;  %s317_s14 = scalar_lea.vmem %s2557_s1, %s1974_s10  ;;  %s1980_s15 = sshll.u32 %s2163_s23, 3 }
  0x17   : > { %v377_v6 = vmul.f32 %v2180_v2, %v2180_v2  ;;  %v378_v7 = vmul.f32 %v2186_v5, %v2186_v5  ;;  %v2196_v11 = vld [vmem:[%s306_s5 + $0x10] sm:$0xff]  ;;  %v2198_v12 = vld [vmem:[%s306_s5 + $0x18] sm:$0xff]  ;;  %v384_v15 = vmul.f32 %v2194_v9, %v2194_v9  ;;  %v2221_v22 = vld [vmem:[%s317_s14 + $0x20] sm:$0xff]  ;;  %s2255_s24 = scalar_lea.vmem %s2559_s3, %s1980_s15  ;;  %s1978_s23 = sshll.u32 %s2200_s11, 3 }
  0x18   : > { %v391_v10 = vadd.f32 %v382_v4, %v381_v3  ;;  %v379_v16 = vmul.f32 %v2196_v11, %v2196_v11  ;;  %v380_v17 = vmul.f32 %v2198_v12, %v2198_v12  ;;  %v2213_v18 = vld [vmem:[%s317_s14 + $0x30] sm:$0xff]  ;;  %v2215_v19 = vld [vmem:[%s317_s14 + $0x38] sm:$0xff]  ;;  %v2223_v23 = vld [vmem:[%s317_s14 + $0x28] sm:$0xff]  ;;  %v445_v29 = vmul.f32 %v2221_v22, %v2221_v22  ;;  %s2384_s29 = scalar_lea.vmem %s2558_s2, %s1978_s23  ;;  %s2531_s6 = scalar_lea.vmem %s2560_s4, %s1970_s28 }
  0x19   : > { %v385_v13 = vadd.f32 %v378_v7, %v377_v6  ;;  %v447_v20 = vmul.f32 %v2213_v18, %v2213_v18  ;;  %v448_v21 = vmul.f32 %v2215_v19, %v2215_v19  ;;  %v394_v24 = vadd.f32 %v384_v15, %v383_v14  ;;  %v2225_v27 = vld [vmem:[%s317_s14] sm:$0xff]  ;;  %v2227_v28 = vld [vmem:[%s317_s14 + $0x8] sm:$0xff]  ;;  %v2233_v31 = vld [vmem:[%s317_s14 + $0x10] sm:$0xff] }
  0x1a   : > { %392 = vadd.xlane.f32.xlu1 %v391_v10  ;;  %v388_v26 = vadd.f32 %v380_v17, %v379_v16  ;;  %v446_v30 = vmul.f32 %v2223_v23, %v2223_v23  ;;  %v2235_v32 = vld [vmem:[%s317_s14 + $0x18] sm:$0xff]  ;;  %v441_v33 = vmul.f32 %v2225_v27, %v2225_v27  ;;  %v442_v34 = vmul.f32 %v2227_v28, %v2227_v28  ;;  %v375_v16 = vld [vmem:[%s2255_s24 + $0x10] sm:$0xff] }
  0x1b   : > { %386 = vadd.xlane.f32.xlu0 %v385_v13  ;;  %v458_v25 = vadd.f32 %v448_v21, %v447_v20  ;;  %v443_v35 = vmul.f32 %v2233_v31, %v2233_v31  ;;  %v444_v36 = vmul.f32 %v2235_v32, %v2235_v32 }
  0x1c   : > { %v455_v37 = vadd.f32 %v446_v30, %v445_v29  ;;  %v449_v38 = vadd.f32 %v442_v34, %v441_v33 }
  0x1d   : > { %459 = vadd.xlane.f32.xlu2 %v458_v25  ;;  %v452_v39 = vadd.f32 %v444_v36, %v443_v35 }
  0x22   : > { %395 = vadd.xlane.f32.xlu1 %v394_v24  ;;  %v373_v24 = vld [vmem:[%s2255_s24] sm:$0xff] }
  0x23   : > { %389 = vadd.xlane.f32.xlu0 %v388_v26 }
  0x25   : > { %456 = vadd.xlane.f32.xlu2 %v455_v37 }
  0x2a   : > { %450 = vadd.xlane.f32.xlu1 %v449_v38 }
  0x2b   : > { %453 = vadd.xlane.f32.xlu0 %v452_v39 }
  0x8d   : > { %v393_v41 = vpop.xlane.xlu1 %392 }
  0x8e   : > { %v399_v42 = vmax.f32 %v393_v41, 1e-24  ;;  %v387_v43 = vpop.xlane.xlu0 %386 }
  0x8f   : > { %v397_v44 = vmax.f32 %v387_v43, 1e-24 }
  0x90   : > { %2033 = vrsqrt.f32 %v399_v42  ;;  %v460_v45 = vpop.xlane.xlu2 %459  ;;  %vm427_vm0 = vweird.f32 %v399_v42 }
  0x91   : > { %2035 = vrsqrt.f32 %v397_v44  ;;  %v464_v46 = vmax.f32 %v460_v45, 1e-24  ;;  %vm407_vm2 = vweird.f32 %v397_v44 }
  0x93   : > { %2037 = vrsqrt.f32 %v464_v46  ;;  %vm501_vm3 = vweird.f32 %v464_v46 }
  0x95   : > { %v396_v47 = vpop.xlane.xlu1 %395 }
  0x96   : > { %v2034_v48 = vpop.eup %2033  ;;  %v390_v49 = vpop.xlane.xlu0 %389  ;;  %v2245_v50 = vmax.f32 %v396_v47, 1e-24 }
  0x97   : > { %v2036_v51 = vpop.eup %2035  ;;  %v422_v52 = vmul.f32 %v2034_v48, %v399_v42  ;;  %v2247_v53 = vmax.f32 %v390_v49, 1e-24  ;;  %vm428_vm1 = vweird.f32 %v2034_v48  ;;  %v376_v49 = vld [vmem:[%s2255_s24 + $0x18] sm:$0xff] }
  0x98   : > { %v402_v54 = vmul.f32 %v2036_v51, %v397_v44  ;;  %2039 = vrsqrt.f32 %v2245_v50  ;;  %v457_v58 = vpop.xlane.xlu2 %456  ;;  %vm2259_vm4 = vmor %vm427_vm0, %vm428_vm1  ;;  %vm408_vm5 = vweird.f32 %v2036_v51  ;;  %vm437_vm6 = vweird.f32 %v2245_v50 }
  0x99   : > { %v423_v55 = vmul.f32 %v2034_v48, %v422_v52  ;;  %2041 = vrsqrt.f32 %v2247_v53  ;;  %v2038_v59 = vpop.eup %2037  ;;  %v2257_v61 = vmax.f32 %v457_v58, 1e-24  ;;  %vm409_vm8 = vmor %vm407_vm2, %vm408_vm5  ;;  %vm417_vm11 = vweird.f32 %v2247_v53 }
  0x9a   : > { %v403_v56 = vmul.f32 %v2036_v51, %v402_v54  ;;  %v496_v63 = vmul.f32 %v2038_v59, %v464_v46  ;;  %vm502_vm7 = vweird.f32 %v2038_v59 }
  0x9b   : > { %v424_v57 = vmul.f32 0.5, %v423_v55  ;;  %2043 = vrsqrt.f32 %v2257_v61  ;;  %vm503_vm10 = vmor %vm501_vm3, %vm502_vm7  ;;  %vm491_vm14 = vweird.f32 %v2257_v61  ;;  %v374_v55 = vld [vmem:[%s2255_s24 + $0x8] sm:$0xff] }
  0x9c   : > { %v404_v60 = vmul.f32 0.5, %v403_v56  ;;  %v497_v20 = vmul.f32 %v2038_v59, %v496_v63 }
  0x9d   : > { %v425_v62 = vsub.f32 1.5, %v424_v57  ;;  %v451_v3 = vpop.xlane.xlu1 %450 }
  0x9e   : > { %v2040_v4 = vpop.eup %2039  ;;  %v405_v7 = vsub.f32 1.5, %v404_v60  ;;  %v454_v10 = vpop.xlane.xlu0 %453  ;;  %v2264_v13 = vmax.f32 %v451_v3, 1e-24  ;;  %v498_v33 = vmul.f32 0.5, %v497_v20 }
  0x9f   : > { %v2042_v14 = vpop.eup %2041  ;;  %v432_v15 = vmul.f32 %v2040_v4, %v2245_v50  ;;  %v426_v17 = vmul.f32 %v2034_v48, %v425_v62  ;;  %v2271_v26 = vmax.f32 %v454_v10, 1e-24  ;;  %vm438_vm9 = vweird.f32 %v2040_v4 }
  0xa0   : > { %v412_v21 = vmul.f32 %v2042_v14, %v2247_v53  ;;  %v406_v25 = vmul.f32 %v2036_v51, %v405_v7  ;;  %2045 = vrsqrt.f32 %v2264_v13  ;;  %v499_v39 = vsub.f32 1.5, %v498_v33  ;;  %vm2285_vm13 = vmor %vm437_vm6, %vm438_vm9 }
  0xa1   : > { %v433_v29 = vmul.f32 %v2040_v4, %v432_v15  ;;  %v430_v30 = vsel %vm2259_vm4, %v2034_v48, %v426_v17  ;;  %2047 = vrsqrt.f32 %v2271_v26  ;;  %v2044_v40 = vpop.eup %2043  ;;  %vm418_vm12 = vweird.f32 %v2042_v14 }
  0xa2   : > { %v413_v34 = vmul.f32 %v2042_v14, %v412_v21  ;;  %v507_v35 = vmul.f32 %v430_v30, %v375_v16  ;;  %v410_v36 = vsel %vm409_vm8, %v2036_v51, %v406_v25  ;;  %v500_v43 = vmul.f32 %v2038_v59, %v499_v39  ;;  %vm419_vm0 = vmor %vm417_vm11, %vm418_vm12 }
  0xa3   : > { %v434_v37 = vmul.f32 0.5, %v433_v29  ;;  %v505_v38 = vmul.f32 %v410_v36, %v373_v24  ;;  %v486_v44 = vmul.f32 %v2044_v40, %v2257_v61  ;;  %vm481_vm15 = vweird.f32 %v2271_v26 }
  0xa4   : > { %v414_v41 = vmul.f32 0.5, %v413_v34  ;;  %521 = vperm.xlu1 %2032, %v507_v35   ;;  %v504_v52 = vsel %vm503_vm10, %v2038_v59, %v500_v43  ;;  %vm492_vm1 = vweird.f32 %v2044_v40  ;;  %vm471_vm3 = vweird.f32 %v2264_v13 }
  0xa5   : > { %v435_v42 = vsub.f32 1.5, %v434_v37  ;;  %511 = vperm.xlu2 %2030, %v505_v38   ;;  %v487_v51 = vmul.f32 %v2044_v40, %v486_v44  ;;  %v543_v50 = vmul.f32 %v504_v52, %v2213_v18  ;;  %v544_v6 = vmul.f32 %v504_v52, %v2215_v19  ;;  %vm493_vm2 = vmor %vm491_vm14, %vm492_vm1 }
  0xa6   : > { %v415_v45 = vsub.f32 1.5, %v414_v41  ;;  %v2046_v48 = vpop.eup %2045  ;;  %vm1136_vm9 = vcmask 261120  }
  0xa7   : > { %v436_v46 = vmul.f32 %v2040_v4, %v435_v42  ;;  %v2048_v54 = vpop.eup %2047  ;;  %v466_v57 = vmul.f32 %v2046_v48, %v2264_v13  ;;  %v488_v60 = vmul.f32 0.5, %v487_v51  ;;  %v2301_v16 = vand.u32 4294901760, %v543_v50 }
  0xa8   : > { %v416_v56 = vmul.f32 %v2042_v14, %v415_v45  ;;  %v476_v62 = vmul.f32 %v2048_v54, %v2271_v26  ;;  %vm472_vm4 = vweird.f32 %v2046_v48  ;;  %v2306_v53 = vand.u32 4294901760, %v544_v6 }
  0xa9   : > { %v440_v58 = vsel %vm2285_vm13, %v2040_v4, %v436_v46  ;;  %v467_v3 = vmul.f32 %v2046_v48, %v466_v57  ;;  %v489_v10 = vsub.f32 1.5, %v488_v60  ;;  %vm482_vm5 = vweird.f32 %v2048_v54  ;;  %709 = vmatpush.xpose.msra.mxu3 %v2301_v16  ;;  %558 = vmatpush.xpose.msra.mxu0 %v2301_v16  ;;  %vm473_vm6 = vmor %vm471_vm3, %vm472_vm4 }
  0xaa   : > { %v420_v59 = vsel %vm419_vm0, %v2042_v14, %v416_v56  ;;  %v508_v63 = vmul.f32 %v440_v58, %v376_v49  ;;  %v477_v15 = vmul.f32 %v2048_v54, %v476_v62  ;;  %v611_v19 = vsub.f32 %v543_v50, %v2301_v16  ;;  %vm483_vm7 = vmor %vm481_vm15, %vm482_vm5 }
  0xab   : > { %v506_v7 = vmul.f32 %v420_v59, %v374_v55  ;;  %v468_v18 = vmul.f32 0.5, %v467_v3  ;;  %v490_v4 = vmul.f32 %v2044_v40, %v489_v10  ;;  %v2312_v61 = vsub.f32 %v544_v6, %v2306_v53 }
  0xac   : > { %v478_v14 = vmul.f32 0.5, %v477_v15  ;;  %v612_v24 = vand.u32 4294901760, %v611_v19  ;;  %665 = vmatpush.xpose.msra.mxu2 %v611_v19 }
  0xad   : > { %516 = vperm.xlu0 %2031, %v506_v7   ;;  %526 = vperm.xlu2 %2030, %v508_v63   ;;  %v469_v17 = vsub.f32 1.5, %v468_v18  ;;  %v494_v20 = vsel %vm493_vm2, %v2044_v40, %v490_v4  ;;  %v890_v34 = vand.u32 4294901760, %v2312_v61 }
  0xae   : > { %v479_v21 = vsub.f32 1.5, %v478_v14  ;;  %v541_v29 = vmul.f32 %v494_v20, %v2221_v22  ;;  %v613_v33 = vsub.f32 %v611_v19, %v612_v24  ;;  %v542_v51 = vmul.f32 %v494_v20, %v2223_v23 }
  0xaf   : > { %v470_v25 = vmul.f32 %v2046_v48, %v469_v17  ;;  %v891_v22 = vsub.f32 %v2312_v61, %v890_v34 }
  0xb0   : > { %v480_v30 = vmul.f32 %v2048_v54, %v479_v21  ;;  %v559_v36 = vand.u32 4294901760, %v541_v29  ;;  %v614_v38 = vand.u32 4294901760, %v613_v33  ;;  %v837_v55 = vand.u32 4294901760, %v542_v51 }
  0xb1   : > { %v474_v35 = vsel %vm473_vm6, %v2046_v48, %v470_v25  ;;  %v892_v47 = vand.u32 4294901760, %v891_v22 }
  0xb2   : > { %v484_v37 = vsel %vm483_vm7, %v2048_v54, %v480_v30  ;;  %v537_v39 = vmul.f32 %v474_v35, %v2225_v27  ;;  %v617_v13 = vsub.f32 %v541_v29, %v559_v36  ;;  %711 = vmatpush.xpose.msra.mxu3 %v559_v36  ;;  %560 = vmatpush.xpose.msra.mxu0 %v559_v36 }
  0xb3   : > { %v539_v40 = vmul.f32 %v484_v37, %v2233_v31  ;;  %615 = vmatpush.xpose.msra.mxu1 %v614_v38  ;;  %v540_v23 = vmul.f32 %v484_v37, %v2235_v32  ;;  %v895_v56 = vsub.f32 %v542_v51, %v837_v55  ;;  %v538_v58 = vmul.f32 %v474_v35, %v2227_v28 }
  0xb4   : > { %v563_v26 = vand.u32 4294901760, %v537_v39  ;;  %v618_v41 = vand.u32 4294901760, %v617_v13  ;;  %668 = vmatpush.xpose.msra.mxu2 %v617_v13 }
  0xb5   : > { %v561_v42 = vand.u32 4294901760, %v539_v40  ;;  %v896_v57 = vand.u32 4294901760, %v895_v56  ;;  %v839_v50 = vand.u32 4294901760, %v540_v23  ;;  %v841_v3 = vand.u32 4294901760, %v538_v58 }
  0xb6   : > { %v629_v43 = vsub.f32 %v537_v39, %v563_v26  ;;  %v619_v44 = vsub.f32 %v617_v13, %v618_v41 }
  0xb7   : > { %v623_v45 = vsub.f32 %v539_v40, %v561_v42  ;;  %713 = vmatpush.xpose.msra.mxu3 %v561_v42  ;;  %562 = vmatpush.xpose.msra.mxu0 %v561_v42  ;;  %v897_v60 = vsub.f32 %v895_v56, %v896_v57  ;;  %v901_v62 = vsub.f32 %v540_v23, %v839_v50 }
  0xb8   : > { %v630_v27 = vand.u32 4294901760, %v629_v43  ;;  %v620_v48 = vand.u32 4294901760, %v619_v44  ;;  %v907_v7 = vsub.f32 %v538_v58, %v841_v3 }
  0xb9   : > { %v624_v31 = vand.u32 4294901760, %v623_v45  ;;  %671 = vmatpush.xpose.msra.mxu2 %v623_v45  ;;  %v898_v59 = vand.u32 4294901760, %v897_v60  ;;  %v902_v63 = vand.u32 4294901760, %v901_v62 }
  0xba   : > { %621 = vmatpush.xpose.msra.mxu1 %v620_v48  ;;  %v631_v46 = vsub.f32 %v629_v43, %v630_v27  ;;  %v908_v15 = vand.u32 4294901760, %v907_v7 }
  0xbb   : > { %v625_v49 = vsub.f32 %v623_v45, %v624_v31  ;;  %715 = vmatpush.xpose.msra.mxu3 %v563_v26  ;;  %564 = vmatpush.xpose.msra.mxu0 %v563_v26  ;;  %v903_v6 = vsub.f32 %v901_v62, %v902_v63 }
  0xbc   : > { %v632_v54 = vand.u32 4294901760, %v631_v46 }
  0xbd   : > { %v626_v52 = vand.u32 4294901760, %v625_v49  ;;  %674 = vmatpush.xpose.msra.mxu2 %v629_v43  ;;  %v904_v10 = vand.u32 4294901760, %v903_v6 }
  0xbf   : > { %893 = vmatpush.xpose.msrb.mxu3 %v892_v47  ;;  %756 = vmatpush.xpose.msrb.mxu0 %v612_v24 }
  0xc0   : > { %627 = vmatpush.xpose.msra.mxu1 %v626_v52 }
  0xc1   : > { %836 = vmatpush.xpose.msrb.mxu2 %v2306_v53 }
  0xc3   : > { %760 = vmatpush.xpose.msrb.mxu0 %v618_v41  ;;  %899 = vmatpush.xpose.msrb.mxu3 %v898_v59 }
  0xc4   : > { %633 = vmatpush.xpose.msra.mxu1 %v632_v54 }
  0xc5   : > { %838 = vmatpush.xpose.msrb.mxu2 %v837_v55 }
  0xc7   : > { %764 = vmatpush.xpose.msrb.mxu0 %v624_v31  ;;  %905 = vmatpush.xpose.msrb.mxu3 %v904_v10 }
  0xc8   : > { %799 = vmatpush.xpose.msrb.mxu1 %v2301_v16  ;;  %v909_v16 = vsub.f32 %v907_v7, %v908_v15 }
  0xc9   : > { %840 = vmatpush.xpose.msrb.mxu2 %v839_v50 }
  0xca   : > { %v910_v32 = vand.u32 4294901760, %v909_v16 }
  0xcb   : > { %768 = vmatpush.xpose.msrb.mxu0 %v630_v27 }
  0xcc   : > { %801 = vmatpush.xpose.msrb.mxu1 %v559_v36  ;;  %911 = vmatpush.xpose.msrb.mxu3 %v910_v32 }
  0xcd   : > { %842 = vmatpush.xpose.msrb.mxu2 %v841_v3 }
  0xd0   : > { %803 = vmatpush.xpose.msrb.mxu1 %v561_v42 }
  0xd4   : > { %805 = vmatpush.xpose.msrb.mxu1 %v563_v26 }
  0xff   : > { %v512_v18 = vpop.permute.xlu2 %511 }
 0x100   : > { %v529_v4 = vmul.f32 %v512_v18, %v2180_v2  ;;  %v530_v36 = vmul.f32 %v512_v18, %v2186_v5 }
 0x102   : > { %v2331_v28 = vand.u32 4294901760, %v529_v4 }
 0x104   : > { %v566_v14 = vsub.f32 %v529_v4, %v2331_v28  ;;  %635 = vmatmul.f32.vlgmr.msra.gmra.mxu1 %v2331_v28 }
 0x105   : > { %987 = vmatpush.xpose.msra.mxu1 %v2306_v53 }
 0x106   : > { %677 = vmatmul.f32.vlgmr.msra.gmra.mxu2 %v566_v14  ;;  %v567_v19 = vand.u32 4294901760, %v566_v14 }
 0x107   : > { %1034 = vmatpush.xpose.msra.mxu2 %v890_v34 }
 0x108   : > { %719 = vmatmul.f32.vlgmr.msra.gmra.mxu3 %v567_v19  ;;  %v568_v17 = vsub.f32 %v566_v14, %v567_v19 }
 0x109   : > { %989 = vmatpush.xpose.msra.mxu1 %v837_v55  ;;  %1077 = vmatpush.xpose.msra.mxu3 %v2306_v53 }
 0x10a   : > { %v569_v20 = vand.u32 4294901760, %v568_v17 }
 0x10b   : > { %1038 = vmatpush.xpose.msra.mxu2 %v896_v57 }
 0x10c   : > { %570 = vmatmul.f32.vlgmr.msra.gmra.mxu0 %v569_v20 }
 0x10d   : > { %943 = vmatpush.xpose.msra.mxu0 %v2312_v61  ;;  %991 = vmatpush.xpose.msra.mxu1 %v839_v50  ;;  %v527_v61 = vpop.permute.xlu2 %526 }
 0x10e   : > { %1079 = vmatpush.xpose.msra.mxu3 %v837_v55  ;;  %v535_v33 = vmul.f32 %v527_v61, %v2192_v8  ;;  %v536_v49 = vmul.f32 %v527_v61, %v2194_v9 }
 0x10f   : > { %1042 = vmatpush.xpose.msra.mxu2 %v902_v63 }
 0x110   : > { %v867_v52 = vand.u32 4294901760, %v536_v49 }
 0x111   : > { %946 = vmatpush.xpose.msra.mxu0 %v895_v56  ;;  %993 = vmatpush.xpose.msra.mxu1 %v841_v3 }
 0x112   : > { %1081 = vmatpush.xpose.msra.mxu3 %v839_v50  ;;  %v868_v55 = vsub.f32 %v536_v49, %v867_v52 }
 0x113   : > { %1046 = vmatpush.xpose.msra.mxu2 %v908_v15 }
 0x114   : > { %v869_v57 = vand.u32 4294901760, %v868_v55 }
 0x115   : > { %949 = vmatpush.xpose.msra.mxu0 %v901_v62 }
 0x116   : > { %1083 = vmatpush.xpose.msra.mxu3 %v841_v3  ;;  %v522_v2 = vpop.permute.xlu1 %521  ;;  %v870_v9 = vsub.f32 %v868_v55, %v869_v57 }
 0x117   : > { %v533_v21 = vmul.f32 %v522_v2, %v2176_v0  ;;  %v589_v0 = vand.u32 4294901760, %v535_v33  ;;  %v534_v44 = vmul.f32 %v522_v2, %v2178_v1 }
 0x118   : > { %v871_v50 = vand.u32 4294901760, %v870_v9 }
 0x119   : > { %952 = vmatpush.xpose.msra.mxu0 %v907_v7  ;;  %v2342_v25 = vand.u32 4294901760, %v533_v21  ;;  %v590_v13 = vsub.f32 %v535_v33, %v589_v0  ;;  %v859_v48 = vand.u32 4294901760, %v534_v44  ;;  %v1101_v33 = vlaneseq }
 0x11b   : > { %v582_v34 = vsub.f32 %v533_v21, %v2342_v25  ;;  %v591_v41 = vand.u32 4294901760, %v590_v13  ;;  %v860_v46 = vsub.f32 %v534_v44, %v859_v48 }
 0x11d   : > { %v583_v39 = vand.u32 4294901760, %v582_v34  ;;  %v592_v43 = vsub.f32 %v590_v13, %v591_v41  ;;  %v861_v54 = vand.u32 4294901760, %v860_v46 }
 0x11f   : > { %v517_v24 = vpop.permute.xlu0 %516  ;;  %v584_v40 = vsub.f32 %v582_v34, %v583_v39  ;;  %v593_v47 = vand.u32 4294901760, %v592_v43  ;;  %v862_v23 = vsub.f32 %v860_v46, %v861_v54 }
 0x120   : > { %v531_v53 = vmul.f32 %v517_v24, %v2196_v11  ;;  %v843_v11 = vand.u32 4294901760, %v530_v36  ;;  %v532_v8 = vmul.f32 %v517_v24, %v2198_v12 }
 0x121   : > { %v585_v22 = vand.u32 4294901760, %v584_v40  ;;  %v863_v56 = vand.u32 4294901760, %v862_v23 }
 0x122   : > { %v573_v29 = vand.u32 4294901760, %v531_v53  ;;  %v844_v26 = vsub.f32 %v530_v36, %v843_v11  ;;  %v851_v42 = vand.u32 4294901760, %v532_v8 }
 0x124   : > { %v574_v30 = vsub.f32 %v531_v53, %v573_v29  ;;  %639 = vmatmul.f32.gmra.mxu1 %v573_v29  ;;  %v845_v5 = vand.u32 4294901760, %v844_v26  ;;  %v852_v45 = vsub.f32 %v532_v8, %v851_v42 }
 0x126   : > { %682 = vmatmul.f32.gmra.mxu2 %v574_v30  ;;  %v575_v35 = vand.u32 4294901760, %v574_v30  ;;  %v846_v27 = vsub.f32 %v844_v26, %v845_v5  ;;  %v853_v31 = vand.u32 4294901760, %v852_v45 }
 0x128   : > { %725 = vmatmul.f32.gmra.mxu3 %v575_v35  ;;  %v576_v37 = vsub.f32 %v574_v30, %v575_v35  ;;  %v847_v12 = vand.u32 4294901760, %v846_v27  ;;  %v854_v51 = vsub.f32 %v852_v45, %v853_v31 }
 0x12a   : > { %v577_v38 = vand.u32 4294901760, %v576_v37  ;;  %v855_v1 = vand.u32 4294901760, %v854_v51 }
 0x12c   : > { %578 = vmatmul.f32.gmra.mxu0 %v577_v38  ;;  %643 = vmatmul.f32.gmra.mxu1 %v2342_v25 }
 0x12e   : > { %687 = vmatmul.f32.gmra.mxu2 %v582_v34 }
 0x130   : > { %731 = vmatmul.f32.gmra.mxu3 %v583_v39  ;;  %v1102_v39 = vshrl.u32 %v1101_v33, 7 }
 0x134   : > { %586 = vmatmul.f32.gmra.mxu0 %v585_v22  ;;  %647 = vmatmul.f32.gmra.mxu1 %v589_v0 }
 0x136   : > { %692 = vmatmul.f32.gmra.mxu2 %v590_v13 }
 0x138   : > { %737 = vmatmul.f32.gmra.mxu3 %v591_v41 }
 0x13c   : > { %594 = vmatmul.f32.gmra.mxu0 %v593_v47  ;;  %807 = vmatmul.f32.vlgmr.msrb.gmra.mxu1 %v2331_v28  ;;  %v1103_v47 = vadd.s32 8, %v1102_v39 }
 0x13e   : > { %848 = vmatmul.f32.vlgmr.msrb.gmra.mxu2 %v847_v12 }
 0x140   : > { %913 = vmatmul.f32.vlgmr.msrb.gmra.mxu3 %v843_v11 }
 0x144   : > { %770 = vmatmul.f32.vlgmr.msrb.gmra.mxu0 %v2331_v28  ;;  %811 = vmatmul.f32.gmra.mxu1 %v573_v29 }
 0x146   : > { %856 = vmatmul.f32.gmra.mxu2 %v855_v1 }
 0x148   : > { %917 = vmatmul.f32.gmra.mxu3 %v851_v42 }
 0x14c   : > { %774 = vmatmul.f32.gmra.mxu0 %v573_v29  ;;  %815 = vmatmul.f32.gmra.mxu1 %v2342_v25 }
 0x14e   : > { %864 = vmatmul.f32.gmra.mxu2 %v863_v56 }
 0x150   : > { %921 = vmatmul.f32.gmra.mxu3 %v859_v48 }
 0x154   : > { %778 = vmatmul.f32.gmra.mxu0 %v2342_v25  ;;  %819 = vmatmul.f32.gmra.mxu1 %v589_v0 }
 0x156   : > { %872 = vmatmul.f32.gmra.mxu2 %v871_v50 }
 0x158   : > { %925 = vmatmul.f32.gmra.mxu3 %v867_v52 }
 0x15c   : > { %782 = vmatmul.f32.gmra.mxu0 %v589_v0  ;;  %997 = vmatmul.f32.vlgmr.msra.gmra.mxu1 %v845_v5 }
 0x15e   : > { %1048 = vmatmul.f32.vlgmr.msra.gmra.mxu2 %v843_v11 }
 0x160   : > { %1085 = vmatmul.f32.vlgmr.msra.gmra.mxu3 %v843_v11  ;;  %v1123_v11 = vand.u32 127, %v1101_v33  ;;  %v1105_v33 = vadd.s32 24, %v1102_v39 }
 0x162   : > { %v1124_v8 = vcvt.s32.f32 %v1123_v11  ;;  %v1109_v11 = vcvt.s32.f32 %v1105_v33 }
 0x164   : > { %955 = vmatmul.f32.vlgmr.msra.gmra.mxu0 %v844_v26  ;;  %1003 = vmatmul.f32.gmra.mxu1 %v853_v31  ;;  %v1106_v26 = vcvt.s32.f32 %v1102_v39  ;;  %v1125_v27 = vadd.f32 0.5, %v1124_v8 }
 0x166   : > { %1052 = vmatmul.f32.gmra.mxu2 %v851_v42  ;;  %v1126_v51 = vmul.f32 0.125, %v1125_v27 }
 0x168   : > { %1089 = vmatmul.f32.gmra.mxu3 %v851_v42 }
 0x16c   : > { %960 = vmatmul.f32.gmra.mxu0 %v852_v45  ;;  %1009 = vmatmul.f32.gmra.mxu1 %v861_v54  ;;  %v1110_v45 = vadd.f32 0.5, %v1106_v26 }
 0x16e   : > { %1056 = vmatmul.f32.gmra.mxu2 %v859_v48 }
 0x170   : > { %1093 = vmatmul.f32.gmra.mxu3 %v859_v48 }
 0x174   : > { %965 = vmatmul.f32.gmra.mxu0 %v860_v46  ;;  %1015 = vmatmul.f32.gmra.mxu1 %v869_v57  ;;  %v1114_v46 = vmul.f32 0.125, %v1110_v45 }
 0x176   : > { %1060 = vmatmul.f32.gmra.mxu2 %v867_v52 }
 0x178   : > { %1097 = vmatmul.f32.gmra.mxu3 %v867_v52  ;;  %v1107_v52 = vcvt.s32.f32 %v1103_v47 }
 0x17c   : > { %970 = vmatmul.f32.gmra.mxu0 %v868_v55 }
 0x181   : > { %v636_v58 = vpop.f32.mrf.mxu1 }
 0x189   : > { %v571_v60 = vpop.f32.mrf.mxu0  ;;  %v678_v59 = vpop.f32.mrf.mxu2 }
 0x18a   : > { %v637_v25 = vadd.f32 %v636_v58, %v571_v60  ;;  %v1118_v58 = vfloor.f32 %v1114_v46  ;;  %v2365_v60 = vfloor.f32 %v1126_v51 }
 0x18b   : > { %v720_v63 = vpop.f32.mrf.mxu3 }
 0x18c   : > { %v679_v30 = vadd.f32 %v678_v59, %v637_v25  ;;  %v1104_v59 = vadd.s32 16, %v1102_v39  ;;  %vm1128_vm8 = vcmp.eq.f32.partialorder %v1118_v58, %v2365_v60 }
 0x18e   : > { %v721_v35 = vadd.f32 %v720_v63, %v679_v30 }
 0x1a1   : > { %v640_v62 = vpop.f32.mrf.mxu1 }
 0x1a9   : > { %v579_v3 = vpop.f32.mrf.mxu0  ;;  %v644_v6 = vpop.f32.mrf.mxu1 }
 0x1aa   : > { %v683_v7 = vpop.f32.mrf.mxu2  ;;  %v641_v36 = vadd.f32 %v640_v62, %v579_v3  ;;  %v1111_v62 = vadd.f32 0.5, %v1107_v52 }
 0x1ab   : > { %v726_v10 = vpop.f32.mrf.mxu3 }
 0x1ac   : > { %v684_v40 = vadd.f32 %v683_v7, %v641_v36 }
 0x1ae   : > { %v727_v42 = vadd.f32 %v726_v10, %v684_v40 }
 0x1b1   : > { %v587_v15 = vpop.f32.mrf.mxu0  ;;  %v648_v16 = vpop.f32.mrf.mxu1 }
 0x1b2   : > { %v688_v32 = vpop.f32.mrf.mxu2  ;;  %v645_v5 = vadd.f32 %v644_v6, %v587_v15 }
 0x1b3   : > { %v732_v18 = vpop.f32.mrf.mxu3 }
 0x1b4   : > { %v689_v49 = vadd.f32 %v688_v32, %v645_v5  ;;  %v1115_v32 = vmul.f32 0.125, %v1111_v62  ;;  %v371_v62 = vld [vmem:[%s2384_s29 + $0x30] sm:$0xff] }
 0x1b6   : > { %v733_v23 = vadd.f32 %v732_v18, %v689_v49 }
 0x1b9   : > { %v595_v4 = vpop.f32.mrf.mxu0  ;;  %v808_v28 = vpop.f32.mrf.mxu1 }
 0x1ba   : > { %v693_v14 = vpop.f32.mrf.mxu2  ;;  %v649_v56 = vadd.f32 %v648_v16, %v595_v4 }
 0x1bb   : > { %v2355_v19 = vpop.f32.mrf.mxu3 }
 0x1bc   : > { %v694_v7 = vadd.f32 %v693_v14, %v649_v56  ;;  %v1119_v14 = vfloor.f32 %v1115_v32 }
 0x1be   : > { %vm1129_vm10 = vcmp.eq.f32.partialorder %v1119_v14, %v2365_v60 }
 0x1c1   : > { %v771_v17 = vpop.f32.mrf.mxu0  ;;  %v812_v20 = vpop.f32.mrf.mxu1 }
 0x1c2   : > { %v849_v2 = vpop.f32.mrf.mxu2  ;;  %v772_v13 = vadd.f32 %v771_v17, %v721_v35 }
 0x1c3   : > { %v914_v21 = vpop.f32.mrf.mxu3 }
 0x1c4   : > { %v809_v22 = vadd.f32 %v808_v28, %v772_v13  ;;  %v1108_v28 = vcvt.s32.f32 %v1104_v59  ;;  %v2387_v59 = vand.u32 4294901760, %v371_v62 }
 0x1c6   : > { %v850_v48 = vadd.f32 %v849_v2, %v809_v22  ;;  %v1112_v30 = vadd.f32 0.5, %v1108_v28  ;;  %1258 = vmatpush.msrb.mxu0 %v2387_v59  ;;  %1409 = vmatpush.msrb.mxu3 %v2387_v59 }
 0x1c8   : > { %v915_v1 = vadd.f32 %v914_v21, %v850_v48 }
 0x1c9   : > { %v775_v24 = vpop.f32.mrf.mxu0  ;;  %v816_v53 = vpop.f32.mrf.mxu1 }
 0x1ca   : > { %v857_v29 = vpop.f32.mrf.mxu2  ;;  %v776_v12 = vadd.f32 %v775_v24, %v727_v42 }
 0x1cb   : > { %v918_v61 = vpop.f32.mrf.mxu3 }
 0x1cc   : > { %v813_v54 = vadd.f32 %v812_v20, %v776_v12  ;;  %v739_v20 = vadd.f32 %v2355_v19, %v694_v7 }
 0x1ce   : > { %v858_v63 = vadd.f32 %v857_v29, %v813_v54 }
 0x1d0   : > { %v919_v18 = vadd.f32 %v918_v61, %v858_v63  ;;  %v1311_v63 = vsub.f32 %v371_v62, %v2387_v59  ;;  %v366_v62 = vld [vmem:[%s2384_s29 + $0x8] sm:$0xff] }
 0x1d1   : > { %v779_v34 = vpop.f32.mrf.mxu0  ;;  %v2357_v0 = vpop.f32.mrf.mxu1 }
 0x1d2   : > { %v865_v37 = vpop.f32.mrf.mxu2  ;;  %v780_v3 = vadd.f32 %v779_v34, %v733_v23  ;;  %1365 = vmatpush.msrb.mxu2 %v1311_v63  ;;  %v1312_v33 = vand.u32 4294901760, %v1311_v63 }
 0x1d3   : > { %v2359_v38 = vpop.f32.mrf.mxu3 }
 0x1d4   : > { %v817_v16 = vadd.f32 %v816_v53, %v780_v3  ;;  %v1116_v53 = vmul.f32 0.125, %v1112_v30  ;;  %v367_v30 = vld [vmem:[%s2384_s29 + $0x10] sm:$0xff] }
 0x1d6   : > { %v866_v34 = vadd.f32 %v865_v37, %v817_v16  ;;  %v1120_v39 = vfloor.f32 %v1116_v53 }
 0x1d8   : > { %v923_v19 = vadd.f32 %v2359_v38, %v866_v34  ;;  %vm1130_vm11 = vcmp.eq.f32.partialorder %v1120_v39, %v2365_v60 }
 0x1d9   : > { %v783_v41 = vpop.f32.mrf.mxu0  ;;  %v998_v31 = vpop.f32.mrf.mxu1 }
 0x1da   : > { %v2361_v43 = vpop.f32.mrf.mxu2  ;;  %v784_v35 = vadd.f32 %v783_v41, %v739_v20  ;;  %v1113_v41 = vadd.f32 0.5, %v1109_v11 }
 0x1db   : > { %v2363_v44 = vpop.f32.mrf.mxu3 }
 0x1dc   : > { %v821_v13 = vadd.f32 %v2357_v0, %v784_v35  ;;  %v1117_v38 = vmul.f32 0.125, %v1113_v41  ;;  %v1261_v35 = vand.u32 4294901760, %v367_v30 }
 0x1de   : > { %v874_v45 = vadd.f32 %v2361_v43, %v821_v13  ;;  %v1323_v11 = vsub.f32 %v367_v30, %v1261_v35 }
 0x1e0   : > { %v927_v0 = vadd.f32 %v2363_v44, %v874_v45 }
 0x1e1   : > { %v956_v55 = vpop.f32.mrf.mxu0  ;;  %v1004_v15 = vpop.f32.mrf.mxu1 }
 0x1e2   : > { %v957_v57 = vadd.f32 %v956_v55, %v915_v1  ;;  %v1049_v9 = vpop.f32.mrf.mxu2  ;;  %v1121_v1 = vfloor.f32 %v1117_v38 }
 0x1e3   : > { %v1086_v50 = vpop.f32.mrf.mxu3 }
 0x1e4   : > { %v999_v6 = vadd.f32 %v998_v31, %v957_v57  ;;  %vm1131_vm12 = vcmp.eq.f32.partialorder %v1121_v1, %v2365_v60 }
 0x1e6   : > { %v1050_v10 = vadd.f32 %v1049_v9, %v999_v6 }
 0x1e8   : > { %v1087_v4 = vadd.f32 %v1086_v50, %v1050_v10 }
 0x1e9   : > { %v961_v17 = vpop.f32.mrf.mxu0  ;;  %v1010_v26 = vpop.f32.mrf.mxu1 }
 0x1ea   : > { %v962_v2 = vadd.f32 %v961_v17, %v919_v18  ;;  %v1053_v21 = vpop.f32.mrf.mxu2  ;;  %v1132_v24 = vsel %vm1128_vm8, %v1087_v4, -1e+30 }
 0x1eb   : > { %v1090_v25 = vpop.f32.mrf.mxu3  ;;  %v1137_v29 = vsel %vm1136_vm9, %v1132_v24, -inf }
 0x1ec   : > { %v1005_v36 = vadd.f32 %v1004_v15, %v962_v2  ;;  %1138 = vmax.xlane.f32.xlu2 %v1137_v29  ;;  %v369_v29 = vld [vmem:[%s2384_s29 + $0x20] sm:$0xff] }
 0x1ed   : > { %v1259_v14 = vand.u32 4294901760, %v369_v29 }
 0x1ee   : > { %v1054_v61 = vadd.f32 %v1053_v21, %v1005_v36  ;;  %v365_v36 = vld [vmem:[%s2384_s29] sm:$0xff] }
 0x1ef   : > { %v1317_v34 = vsub.f32 %v369_v29, %v1259_v14  ;;  %1260 = vmatpush.msrb.mxu0 %v1259_v14  ;;  %1411 = vmatpush.msrb.mxu3 %v1259_v14 }
 0x1f0   : > { %v1091_v40 = vadd.f32 %v1090_v25, %v1054_v61  ;;  %v1313_v61 = vsub.f32 %v1311_v63, %v1312_v33 }
 0x1f1   : > { %v966_v8 = vpop.f32.mrf.mxu0  ;;  %v1016_v51 = vpop.f32.mrf.mxu1  ;;  %1368 = vmatpush.msrb.mxu2 %v1317_v34  ;;  %v1318_v53 = vand.u32 4294901760, %v1317_v34  ;;  %1262 = vmatpush.msrb.mxu0 %v1261_v35 }
 0x1f2   : > { %v967_v22 = vadd.f32 %v966_v8, %v923_v19  ;;  %v1133_v42 = vsel %vm1129_vm10, %v1091_v40, -1e+30  ;;  %v1057_v5 = vpop.f32.mrf.mxu2  ;;  %v1263_v19 = vand.u32 4294901760, %v365_v36  ;;  %1413 = vmatpush.msrb.mxu3 %v1261_v35  ;;  %v1314_v13 = vand.u32 4294901760, %v1313_v61 }
 0x1f3   : > { %v1140_v37 = vsel %vm1136_vm9, %v1133_v42, -inf  ;;  %v1094_v47 = vpop.f32.mrf.mxu3  ;;  %v1319_v40 = vsub.f32 %v1317_v34, %v1318_v53  ;;  %1371 = vmatpush.msrb.mxu2 %v1323_v11 }
 0x1f4   : > { %v1011_v27 = vadd.f32 %v1010_v26, %v967_v22  ;;  %1141 = vmax.xlane.f32.xlu1 %v1140_v37  ;;  %v1324_v26 = vand.u32 4294901760, %v1323_v11  ;;  %v1329_v8 = vsub.f32 %v365_v36, %v1263_v19  ;;  %1264 = vmatpush.msrb.mxu0 %v1263_v19 }
 0x1f5   : > { %1415 = vmatpush.msrb.mxu3 %v1263_v19  ;;  %1315 = vmatpush.msrb.mxu1 %v1314_v13  ;;  %v1320_v22 = vand.u32 4294901760, %v1319_v40 }
 0x1f6   : > { %v1058_v48 = vadd.f32 %v1057_v5, %v1011_v27  ;;  %1456 = vmatpush.msra.mxu0 %v1312_v33  ;;  %1374 = vmatpush.msrb.mxu2 %v1329_v8  ;;  %v1330_v5 = vand.u32 4294901760, %v1329_v8 }
 0x1f7   : > { %1321 = vmatpush.msrb.mxu1 %v1320_v22 }
 0x1f8   : > { %v1095_v12 = vadd.f32 %v1094_v47, %v1058_v48  ;;  %1460 = vmatpush.msra.mxu0 %v1318_v53  ;;  %v1331_v39 = vsub.f32 %v1329_v8, %v1330_v5 }
 0x1f9   : > { %v971_v31 = vpop.f32.mrf.mxu0 }
 0x1fa   : > { %v972_v49 = vadd.f32 %v971_v31, %v927_v0  ;;  %v1134_v46 = vsel %vm1130_vm11, %v1095_v12, -1e+30  ;;  %v1061_v43 = vpop.f32.mrf.mxu2  ;;  %1464 = vmatpush.msra.mxu0 %v1324_v26  ;;  %v1332_v41 = vand.u32 4294901760, %v1331_v39  ;;  %v372_v12 = vld [vmem:[%s2384_s29 + $0x38] sm:$0xff] }
 0x1fb   : > { %v1143_v52 = vsel %vm1136_vm9, %v1134_v46, -inf  ;;  %v1098_v23 = vpop.f32.mrf.mxu3 }
 0x1fc   : > { %v1017_v54 = vadd.f32 %v1016_v51, %v972_v49  ;;  %1144 = vmax.xlane.f32.xlu0 %v1143_v52  ;;  %1468 = vmatpush.msra.mxu0 %v1330_v5  ;;  %v370_v51 = vld [vmem:[%s2384_s29 + $0x28] sm:$0xff]  ;;  %v368_v52 = vld [vmem:[%s2384_s29 + $0x18] sm:$0xff] }
 0x1fe   : > { %v1062_v55 = vadd.f32 %v1061_v43, %v1017_v54  ;;  %v2421_v43 = vand.u32 4294901760, %v370_v51 }
 0x200   : > { %v1099_v56 = vadd.f32 %v1098_v23, %v1062_v55 }
 0x202   : > { %v1135_v57 = vsel %vm1131_vm12, %v1099_v56, -1e+30  ;;  %v2423_v56 = vand.u32 4294901760, %v368_v52 }
 0x203   : > { %v1146_v44 = vsel %vm1136_vm9, %v1135_v57, -inf }
 0x204   : > { %1147 = vmax.xlane.f32.xlu2 %v1146_v44 }
 0x25f   : > { %v1139_v9 = vpop.xlane.xlu2 %1138 }
 0x260   : > { %v1149_v50 = vsub.f32 %v1132_v24, %v1139_v9 }
 0x262   : > { %v1153_v58 = vmul.f32 1.442695, %v1149_v50 }
 0x264   : > { %2049 = vpow2.f32 %v1153_v58 }
 0x267   : > { %v1142_v60 = vpop.xlane.xlu1 %1141 }
 0x268   : > { %v1150_v3 = vsub.f32 %v1133_v42, %v1142_v60  ;;  %v1325_v42 = vsub.f32 %v1323_v11, %v1324_v26 }
 0x26a   : > { %v2392_v6 = vpop.eup %2049  ;;  %v1155_v7 = vmul.f32 1.442695, %v1150_v3  ;;  %v1326_v37 = vand.u32 4294901760, %v1325_v42 }
 0x26b   : > { %v1161_v10 = vsel %vm1136_vm9, %v2392_v6, 0.0 }
 0x26c   : > { %2051 = vpow2.f32 %v1155_v7  ;;  %1162 = vadd.xlane.f32.xlu1 %v1161_v10  ;;  %1327 = vmatpush.msrb.mxu1 %v1326_v37  ;;  %v2435_v10 = vsub.f32 %v370_v51, %v2421_v43 }
 0x26e   : > { %1333 = vmatpush.msrb.mxu1 %v1332_v41 }
 0x26f   : > { %v1145_v15 = vpop.xlane.xlu0 %1144 }
 0x270   : > { %v1151_v32 = vsub.f32 %v1134_v46, %v1145_v15  ;;  %1499 = vmatpush.msra.mxu1 %v2387_v59  ;;  %v2413_v46 = vand.u32 4294901760, %v372_v12  ;;  %v2438_v15 = vsub.f32 %v368_v52, %v2423_v56 }
 0x272   : > { %v2396_v28 = vpop.eup %2051  ;;  %v1157_v18 = vmul.f32 1.442695, %v1151_v32  ;;  %1501 = vmatpush.msra.mxu1 %v1259_v14  ;;  %1536 = vmatpush.msra.mxu2 %v2413_v46  ;;  %v2419_v54 = vsub.f32 %v372_v12, %v2413_v46  ;;  %v2440_v32 = vand.u32 4294901760, %v366_v62 }
 0x273   : > { %v1164_v16 = vsel %vm1136_vm9, %v2396_v28, 0.0 }
 0x274   : > { %2053 = vpow2.f32 %v1157_v18  ;;  %1165 = vadd.xlane.f32.xlu2 %v1164_v16  ;;  %1503 = vmatpush.msra.mxu1 %v1261_v35  ;;  %v1590_v50 = vand.u32 4294901760, %v2419_v54 }
 0x275   : > { %1538 = vmatpush.msra.mxu2 %v2421_v43 }
 0x276   : > { %1505 = vmatpush.msra.mxu1 %v1263_v19  ;;  %v1591_v3 = vsub.f32 %v2419_v54, %v1590_v50 }
 0x277   : > { %v1148_v4 = vpop.xlane.xlu2 %1147  ;;  %1540 = vmatpush.msra.mxu2 %v2423_v56 }
 0x278   : > { %v1152_v17 = vsub.f32 %v1135_v57, %v1148_v4 }
 0x279   : > { %1542 = vmatpush.msra.mxu2 %v2440_v32 }
 0x27a   : > { %v2400_v20 = vpop.eup %2053  ;;  %v1159_v2 = vmul.f32 1.442695, %v1152_v17  ;;  %v1596_v17 = vand.u32 4294901760, %v2435_v10 }
 0x27b   : > { %v1167_v21 = vsel %vm1136_vm9, %v2400_v20, 0.0 }
 0x27c   : > { %2055 = vpow2.f32 %v1159_v2  ;;  %1168 = vadd.xlane.f32.xlu1 %v1167_v21  ;;  %v1602_v2 = vand.u32 4294901760, %v2438_v15  ;;  %v2449_v21 = vsub.f32 %v366_v62, %v2440_v32  ;;  %v1597_v33 = vsub.f32 %v2435_v10, %v1596_v17 }
 0x27e   : > { %v1603_v34 = vsub.f32 %v2438_v15, %v1602_v2  ;;  %v1608_v35 = vand.u32 4294901760, %v2449_v21  ;;  %v1598_v22 = vand.u32 4294901760, %v1597_v33 }
 0x280   : > { %v1604_v42 = vand.u32 4294901760, %v1603_v34  ;;  %v1609_v5 = vsub.f32 %v2449_v21, %v1608_v35 }
 0x282   : > { %v2404_v24 = vpop.eup %2055 }
 0x283   : > { %v1170_v25 = vsel %vm1136_vm9, %v2404_v24, 0.0 }
 0x284   : > { %1171 = vadd.xlane.f32.xlu2 %v1170_v25 }
 0x2df   : > { %v1163_v45 = vpop.xlane.xlu1 %1162 }
 0x2e0   : > { %2057 = vrcp.f32 %v1163_v45  ;;  %v1184_v0 = vand.u32 2147483648, %v1163_v45  ;;  %v1182_v49 = vand.u32 2147483647, %v1163_v45  ;;  %vm1178_vm14 = vweird.f32 %v1163_v45 }
 0x2e2   : > { %v1185_v23 = vor.u32 1.1754944e-38, %v1184_v0  ;;  %vm1183_vm0 = vcmp.eq.f32.partialorder %v1182_v49, 8.507059e+37 }
 0x2e6   : > { %v2058_v27 = vpop.eup %2057 }
 0x2e7   : > { %v1174_v47 = vmul.f32 %v2058_v27, %v1163_v45  ;;  %v1166_v48 = vpop.xlane.xlu2 %1165  ;;  %vm1179_vm13 = vweird.f32 %v2058_v27  ;;  %v1610_v45 = vand.u32 4294901760, %v1609_v5 }
 0x2e8   : > { %2059 = vrcp.f32 %v1166_v48  ;;  %vm1180_vm15 = vmor %vm1178_vm14, %vm1179_vm13  ;;  %v1198_v63 = vand.u32 2147483648, %v1166_v48  ;;  %v1196_v7 = vand.u32 2147483647, %v1166_v48  ;;  %vm1192_vm2 = vweird.f32 %v1166_v48 }
 0x2e9   : > { %v1175_v38 = vsub.f32 1.0, %v1174_v47 }
 0x2ea   : > { %v1199_v29 = vor.u32 1.1754944e-38, %v1198_v63  ;;  %vm1197_vm4 = vcmp.eq.f32.partialorder %v1196_v7, 8.507059e+37 }
 0x2eb   : > { %v1176_v31 = vmul.f32 %v2058_v27, %v1175_v38 }
 0x2ed   : > { %v1177_v1 = vadd.f32 %v2058_v27, %v1176_v31 }
 0x2ee   : > { %v2060_v55 = vpop.eup %2059 }
 0x2ef   : > { %v1181_v57 = vsel %vm1180_vm15, %v2058_v27, %v1177_v1  ;;  %v1188_v44 = vmul.f32 %v2060_v55, %v1166_v48  ;;  %v2425_v9 = vpop.xlane.xlu1 %1168  ;;  %vm1193_vm1 = vweird.f32 %v2060_v55 }
 0x2f0   : > { %v1186_v58 = vsel %vm1183_vm0, %v1185_v23, %v1181_v57  ;;  %2061 = vrcp.f32 %v2425_v9  ;;  %vm1194_vm3 = vmor %vm1192_vm2, %vm1193_vm1  ;;  %v1210_v40 = vand.u32 2147483647, %v2425_v9  ;;  %v1212_v8 = vand.u32 2147483648, %v2425_v9 }
 0x2f1   : > { %v1229_v59 = vmul.f32 %v2392_v6, %v1186_v58  ;;  %v1189_v60 = vsub.f32 1.0, %v1188_v44  ;;  %v1592_v6 = vand.u32 4294901760, %v1591_v3  ;;  %vm1206_vm6 = vweird.f32 %v2425_v9 }
 0x2f2   : > { %v1213_v38 = vor.u32 1.1754944e-38, %v1212_v8  ;;  %vm1211_vm8 = vcmp.eq.f32.partialorder %v1210_v40, 8.507059e+37 }
 0x2f3   : > { %v1234_v18 = vsel %vm1136_vm9, %v1229_v59, 0  ;;  %v1190_v16 = vmul.f32 %v2060_v55, %v1189_v60  ;;  %1593 = vmatpush.msra.mxu3 %v1592_v6 }
 0x2f4   : > { %v2443_v4 = vand.u32 4294901760, %v1234_v18 }
 0x2f5   : > { %v1191_v25 = vadd.f32 %v2060_v55, %v1190_v16  ;;  %1599 = vmatpush.msra.mxu3 %v1598_v22 }
 0x2f6   : > { %v2062_v14 = vpop.eup %2061  ;;  %1335 = vmatmul.f32.vlgmr.msrb.gmra.mxu1 %v2443_v4  ;;  %v2453_v30 = vsub.f32 %v1234_v18, %v2443_v4 }
 0x2f7   : > { %v1195_v36 = vsel %vm1194_vm3, %v2060_v55, %v1191_v25  ;;  %v1202_v61 = vmul.f32 %v2062_v14, %v2425_v9  ;;  %v2459_v53 = vpop.xlane.xlu2 %1171  ;;  %1687 = vmatpush.msrb.mxu1 %v2413_v46  ;;  %vm1207_vm5 = vweird.f32 %v2062_v14  ;;  %1605 = vmatpush.msra.mxu3 %v1604_v42 }
 0x2f8   : > { %v1200_v11 = vsel %vm1197_vm4, %v1199_v29, %v1195_v36  ;;  %2063 = vrcp.f32 %v2459_v53  ;;  %1377 = vmatmul.f32.vlgmr.msrb.gmra.mxu2 %v2453_v30  ;;  %v2467_v26 = vand.u32 4294901760, %v2453_v30  ;;  %vm1208_vm7 = vmor %vm1206_vm6, %vm1207_vm5  ;;  %v1226_v55 = vand.u32 2147483648, %v2459_v53 }
 0x2f9   : > { %v1230_v19 = vmul.f32 %v2396_v28, %v1200_v11  ;;  %v1203_v13 = vsub.f32 1.0, %v1202_v61  ;;  %1734 = vmatpush.msrb.mxu2 %v1590_v50  ;;  %1689 = vmatpush.msrb.mxu1 %v2421_v43  ;;  %v1224_v9 = vand.u32 2147483647, %v2459_v53  ;;  %vm1220_vm11 = vweird.f32 %v2459_v53 }
 0x2fa   : > { %1419 = vmatmul.f32.vlgmr.msrb.gmra.mxu3 %v2467_v26  ;;  %v1268_v28 = vsub.f32 %v2453_v30, %v2467_v26  ;;  %v1227_v50 = vor.u32 1.1754944e-38, %v1226_v55 }
 0x2fb   : > { %v1237_v37 = vsel %vm1136_vm9, %v1230_v19, 0  ;;  %v1204_v39 = vmul.f32 %v2062_v14, %v1203_v13  ;;  %1738 = vmatpush.msrb.mxu2 %v1596_v17  ;;  %1691 = vmatpush.msrb.mxu1 %v2423_v56  ;;  %vm1225_vm13 = vcmp.eq.f32.partialorder %v1224_v9, 8.507059e+37 }
 0x2fc   : > { %v2476_v41 = vand.u32 4294901760, %v1237_v37  ;;  %v2480_v47 = vand.u32 4294901760, %v1268_v28  ;;  %1611 = vmatpush.msra.mxu3 %v1610_v45 }
 0x2fd   : > { %v1205_v27 = vadd.f32 %v2062_v14, %v1204_v39  ;;  %1742 = vmatpush.msrb.mxu2 %v1602_v2  ;;  %1693 = vmatpush.msrb.mxu1 %v2440_v32 }
 0x2fe   : > { %v2064_v48 = vpop.eup %2063  ;;  %1339 = vmatmul.f32.gmra.mxu1 %v2476_v41  ;;  %v2484_v0 = vsub.f32 %v1237_v37, %v2476_v41  ;;  %1270 = vmatmul.f32.vlgmr.msrb.gmra.mxu0 %v2480_v47 }
 0x2ff   : > { %v1209_v12 = vsel %vm1208_vm7, %v2062_v14, %v1205_v27  ;;  %v1216_v31 = vmul.f32 %v2064_v48, %v2459_v53  ;;  %1746 = vmatpush.msrb.mxu2 %v1608_v35  ;;  %1643 = vmatpush.msrb.mxu0 %v2419_v54  ;;  %vm1221_vm10 = vweird.f32 %v2064_v48 }
 0x300   : > { %v1214_v49 = vsel %vm1211_vm8, %v1213_v38, %v1209_v12  ;;  %1382 = vmatmul.f32.gmra.mxu2 %v2484_v0  ;;  %v2490_v51 = vand.u32 4294901760, %v2484_v0  ;;  %1777 = vmatpush.msrb.mxu3 %v2413_v46  ;;  %vm1222_vm12 = vmor %vm1220_vm11, %vm1221_vm10 }
 0x301   : > { %v1231_v52 = vmul.f32 %v2400_v20, %v1214_v49  ;;  %v1217_v1 = vsub.f32 1.0, %v1216_v31  ;;  %1646 = vmatpush.msrb.mxu0 %v2435_v10 }
 0x302   : > { %v1276_v23 = vsub.f32 %v2484_v0, %v2490_v51  ;;  %1425 = vmatmul.f32.gmra.mxu3 %v2490_v51 }
 0x303   : > { %v1240_v57 = vsel %vm1136_vm9, %v1231_v52, 0  ;;  %v1218_v44 = vmul.f32 %v2064_v48, %v1217_v1  ;;  %1779 = vmatpush.msrb.mxu3 %v2421_v43  ;;  %1649 = vmatpush.msrb.mxu0 %v2438_v15 }
 0x304   : > { %v1281_v20 = vand.u32 4294901760, %v1240_v57  ;;  %v1277_v54 = vand.u32 4294901760, %v1276_v23 }
 0x305   : > { %v1219_v46 = vadd.f32 %v2064_v48, %v1218_v44  ;;  %1781 = vmatpush.msrb.mxu3 %v2423_v56  ;;  %1652 = vmatpush.msrb.mxu0 %v2449_v21 }
 0x306   : > { %1343 = vmatmul.f32.gmra.mxu1 %v1281_v20  ;;  %v1282_v58 = vsub.f32 %v1240_v57, %v1281_v20  ;;  %1278 = vmatmul.f32.gmra.mxu0 %v1277_v54 }
 0x307   : > { %v1223_v62 = vsel %vm1222_vm12, %v2064_v48, %v1219_v46  ;;  %1783 = vmatpush.msrb.mxu3 %v2440_v32 }
 0x308   : > { %v1228_v59 = vsel %vm1225_vm13, %v1227_v50, %v1223_v62  ;;  %1387 = vmatmul.f32.gmra.mxu2 %v1282_v58  ;;  %v1283_v60 = vand.u32 4294901760, %v1282_v58 }
 0x309   : > { %v1232_v43 = vmul.f32 %v2404_v24, %v1228_v59 }
 0x30a   : > { %v1284_v63 = vsub.f32 %v1282_v58, %v1283_v60  ;;  %1431 = vmatmul.f32.gmra.mxu3 %v1283_v60 }
 0x30b   : > { %v1243_v3 = vsel %vm1136_vm9, %v1232_v43, 0 }
 0x30c   : > { %v1289_v7 = vand.u32 4294901760, %v1243_v3  ;;  %v1285_v10 = vand.u32 4294901760, %v1284_v63 }
 0x30e   : > { %1347 = vmatmul.f32.gmra.mxu1 %v1289_v7  ;;  %v1290_v56 = vsub.f32 %v1243_v3, %v1289_v7  ;;  %1286 = vmatmul.f32.gmra.mxu0 %v1285_v10 }
 0x310   : > { %1392 = vmatmul.f32.gmra.mxu2 %v1290_v56  ;;  %v1291_v15 = vand.u32 4294901760, %v1290_v56 }
 0x312   : > { %v1292_v18 = vsub.f32 %v1290_v56, %v1291_v15  ;;  %1437 = vmatmul.f32.gmra.mxu3 %v1291_v15 }
 0x314   : > { %v1293_v16 = vand.u32 4294901760, %v1292_v18 }
 0x316   : > { %1507 = vmatmul.f32.vlgmr.msra.gmra.mxu1 %v2443_v4  ;;  %1294 = vmatmul.f32.gmra.mxu0 %v1293_v16 }
 0x318   : > { %1548 = vmatmul.f32.vlgmr.msra.gmra.mxu2 %v2480_v47 }
 0x31a   : > { %1613 = vmatmul.f32.vlgmr.msra.gmra.mxu3 %v2443_v4 }
 0x31e   : > { %1511 = vmatmul.f32.gmra.mxu1 %v2476_v41  ;;  %1470 = vmatmul.f32.vlgmr.msra.gmra.mxu0 %v2443_v4 }
 0x320   : > { %1556 = vmatmul.f32.gmra.mxu2 %v1277_v54 }
 0x322   : > { %1617 = vmatmul.f32.gmra.mxu3 %v2476_v41 }
 0x326   : > { %1515 = vmatmul.f32.gmra.mxu1 %v1281_v20  ;;  %1474 = vmatmul.f32.gmra.mxu0 %v2476_v41 }
 0x328   : > { %1564 = vmatmul.f32.gmra.mxu2 %v1285_v10 }
 0x32a   : > { %1621 = vmatmul.f32.gmra.mxu3 %v1281_v20 }
 0x32e   : > { %1519 = vmatmul.f32.gmra.mxu1 %v1289_v7  ;;  %1478 = vmatmul.f32.gmra.mxu0 %v1281_v20 }
 0x330   : > { %1572 = vmatmul.f32.gmra.mxu2 %v1293_v16 }
 0x332   : > { %1625 = vmatmul.f32.gmra.mxu3 %v1289_v7 }
 0x336   : > { %1697 = vmatmul.f32.vlgmr.msrb.gmra.mxu1 %v2467_v26  ;;  %1482 = vmatmul.f32.gmra.mxu0 %v1289_v7 }
 0x338   : > { %1748 = vmatmul.f32.vlgmr.msrb.gmra.mxu2 %v2443_v4 }
 0x33a   : > { %1785 = vmatmul.f32.vlgmr.msrb.gmra.mxu3 %v2443_v4 }
 0x33e   : > { %1703 = vmatmul.f32.gmra.mxu1 %v2490_v51  ;;  %1655 = vmatmul.f32.vlgmr.msrb.gmra.mxu0 %v2453_v30 }
 0x340   : > { %1752 = vmatmul.f32.gmra.mxu2 %v2476_v41 }
 0x342   : > { %1789 = vmatmul.f32.gmra.mxu3 %v2476_v41 }
 0x346   : > { %1709 = vmatmul.f32.gmra.mxu1 %v1283_v60  ;;  %1660 = vmatmul.f32.gmra.mxu0 %v2484_v0 }
 0x348   : > { %1756 = vmatmul.f32.gmra.mxu2 %v1281_v20 }
 0x34a   : > { %1793 = vmatmul.f32.gmra.mxu3 %v1281_v20 }
 0x34e   : > { %1715 = vmatmul.f32.gmra.mxu1 %v1291_v15  ;;  %1665 = vmatmul.f32.gmra.mxu0 %v1282_v58 }
 0x350   : > { %1760 = vmatmul.f32.gmra.mxu2 %v1289_v7 }
 0x352   : > { %1797 = vmatmul.f32.gmra.mxu3 %v1289_v7 }
 0x356   : > { %1670 = vmatmul.f32.gmra.mxu0 %v1290_v56 }
 0x373   : > { %v1336_v24 = vpop.f32.mrf.mxu1 }
 0x37b   : > { %v1340_v32 = vpop.f32.mrf.mxu1  ;;  %v1378_v6 = vpop.f32.mrf.mxu2 }
 0x37c   : > { %v1271_v4 = vpop.f32.mrf.mxu0 }
 0x37d   : > { %v1420_v17 = vpop.f32.mrf.mxu3  ;;  %v1337_v35 = vadd.f32 %v1336_v24, %v1271_v4 }
 0x37f   : > { %v1379_v19 = vadd.f32 %v1378_v6, %v1337_v35 }
 0x381   : > { %v1421_v13 = vadd.f32 %v1420_v17, %v1379_v19 }
 0x383   : > { %v1344_v2 = vpop.f32.mrf.mxu1  ;;  %v1383_v21 = vpop.f32.mrf.mxu2 }
 0x384   : > { %v1279_v25 = vpop.f32.mrf.mxu0 }
 0x385   : > { %v1426_v29 = vpop.f32.mrf.mxu3  ;;  %v1341_v40 = vadd.f32 %v1340_v32, %v1279_v25 }
 0x387   : > { %v1384_v37 = vadd.f32 %v1383_v21, %v1341_v40 }
 0x389   : > { %v1427_v28 = vadd.f32 %v1426_v29, %v1384_v37 }
 0x38b   : > { %v1348_v14 = vpop.f32.mrf.mxu1  ;;  %v1388_v30 = vpop.f32.mrf.mxu2 }
 0x38c   : > { %v1287_v33 = vpop.f32.mrf.mxu0 }
 0x38d   : > { %v1432_v34 = vpop.f32.mrf.mxu3  ;;  %v1345_v41 = vadd.f32 %v1344_v2, %v1287_v33 }
 0x38f   : > { %v1389_v0 = vadd.f32 %v1388_v30, %v1345_v41 }
 0x391   : > { %v1433_v31 = vadd.f32 %v1432_v34, %v1389_v0 }
 0x393   : > { %v1393_v36 = vpop.f32.mrf.mxu2  ;;  %v1508_v61 = vpop.f32.mrf.mxu1 }
 0x394   : > { %v1295_v53 = vpop.f32.mrf.mxu0 }
 0x395   : > { %v1438_v11 = vpop.f32.mrf.mxu3  ;;  %v1349_v49 = vadd.f32 %v1348_v14, %v1295_v53 }
 0x397   : > { %v1394_v57 = vadd.f32 %v1393_v36, %v1349_v49 }
 0x399   : > { %v1439_v9 = vadd.f32 %v1438_v11, %v1394_v57 }
 0x39b   : > { %v1512_v26 = vpop.f32.mrf.mxu1  ;;  %v1549_v8 = vpop.f32.mrf.mxu2 }
 0x39c   : > { %v1471_v22 = vpop.f32.mrf.mxu0 }
 0x39d   : > { %v1472_v42 = vadd.f32 %v1471_v22, %v1421_v13  ;;  %v1614_v5 = vpop.f32.mrf.mxu3 }
 0x39e   : > { %v1615_v59 = vadd.f32 %v1614_v5, %v1549_v8 }
 0x39f   : > { %v1509_v39 = vadd.f32 %v1508_v61, %v1472_v42 }
 0x3a1   : > { %1801 = vst [vmem:[%s2531_s6] sm:$0xff] %v1509_v39 }
 0x3a3   : > { %v1557_v45 = vpop.f32.mrf.mxu2  ;;  %v1516_v47 = vpop.f32.mrf.mxu1 }
 0x3a4   : > { %v1475_v27 = vpop.f32.mrf.mxu0 }
 0x3a5   : > { %v1476_v48 = vadd.f32 %v1475_v27, %v1427_v28  ;;  %v1618_v38 = vpop.f32.mrf.mxu3 }
 0x3a6   : > { %v1619_v15 = vadd.f32 %v1618_v38, %v1557_v45 }
 0x3a7   : > { %v1513_v12 = vadd.f32 %v1512_v26, %v1476_v48 }
 0x3a9   : > { %1803 = vst [vmem:[%s2531_s6 + $0x10] sm:$0xff] %v1513_v12 }
 0x3ab   : > { %v1565_v51 = vpop.f32.mrf.mxu2  ;;  %v1520_v55 = vpop.f32.mrf.mxu1 }
 0x3ac   : > { %v1479_v52 = vpop.f32.mrf.mxu0 }
 0x3ad   : > { %v1480_v1 = vadd.f32 %v1479_v52, %v1433_v31  ;;  %v1622_v23 = vpop.f32.mrf.mxu3 }
 0x3ae   : > { %v1623_v2 = vadd.f32 %v1622_v23, %v1565_v51 }
 0x3af   : > { %v1517_v44 = vadd.f32 %v1516_v47, %v1480_v1 }
 0x3b1   : > { %1805 = vst [vmem:[%s2531_s6 + $0x20] sm:$0xff] %v1517_v44 }
 0x3b3   : > { %v1573_v20 = vpop.f32.mrf.mxu2  ;;  %v1698_v62 = vpop.f32.mrf.mxu1 }
 0x3b4   : > { %v1483_v54 = vpop.f32.mrf.mxu0 }
 0x3b5   : > { %v1484_v46 = vadd.f32 %v1483_v54, %v1439_v9  ;;  %v1626_v50 = vpop.f32.mrf.mxu3 }
 0x3b6   : > { %v1627_v36 = vadd.f32 %v1626_v50, %v1573_v20 }
 0x3b7   : > { %v1521_v58 = vadd.f32 %v1520_v55, %v1484_v46 }
 0x3b9   : > { %1807 = vst [vmem:[%s2531_s6 + $0x30] sm:$0xff] %v1521_v58 }
 0x3bb   : > { %v1749_v60 = vpop.f32.mrf.mxu2  ;;  %v1704_v56 = vpop.f32.mrf.mxu1 }
 0x3bc   : > { %v1656_v43 = vpop.f32.mrf.mxu0 }
 0x3bd   : > { %v1657_v63 = vadd.f32 %v1656_v43, %v1615_v59  ;;  %v1786_v3 = vpop.f32.mrf.mxu3 }
 0x3bf   : > { %v1699_v7 = vadd.f32 %v1698_v62, %v1657_v63 }
 0x3c1   : > { %v1750_v10 = vadd.f32 %v1749_v60, %v1699_v7 }
 0x3c3   : > { %v1787_v18 = vadd.f32 %v1786_v3, %v1750_v10  ;;  %v1753_v24 = vpop.f32.mrf.mxu2  ;;  %v1710_v25 = vpop.f32.mrf.mxu1 }
 0x3c4   : > { %v1661_v16 = vpop.f32.mrf.mxu0 }
 0x3c5   : > { %1802 = vst [vmem:[%s2531_s6 + $0x8] sm:$0xff] %v1787_v18  ;;  %v1662_v32 = vadd.f32 %v1661_v16, %v1619_v15  ;;  %v1790_v6 = vpop.f32.mrf.mxu3 }
 0x3c7   : > { %v1705_v4 = vadd.f32 %v1704_v56, %v1662_v32 }
 0x3c9   : > { %v1754_v17 = vadd.f32 %v1753_v24, %v1705_v4 }
 0x3cb   : > { %v1791_v21 = vadd.f32 %v1790_v6, %v1754_v17  ;;  %v1757_v30 = vpop.f32.mrf.mxu2  ;;  %v1716_v19 = vpop.f32.mrf.mxu1 }
 0x3cc   : > { %v1666_v29 = vpop.f32.mrf.mxu0 }
 0x3cd   : > { %1804 = vst [vmem:[%s2531_s6 + $0x18] sm:$0xff] %v1791_v21  ;;  %v1667_v14 = vadd.f32 %v1666_v29, %v1623_v2  ;;  %v1794_v34 = vpop.f32.mrf.mxu3 }
 0x3cf   : > { %v1711_v33 = vadd.f32 %v1710_v25, %v1667_v14 }
 0x3d1   : > { %v1758_v35 = vadd.f32 %v1757_v30, %v1711_v33 }
 0x3d3   : > { %v1795_v61 = vadd.f32 %v1794_v34, %v1758_v35  ;;  %v1761_v40 = vpop.f32.mrf.mxu2 }
 0x3d4   : > { %v1671_v53 = vpop.f32.mrf.mxu0 }
 0x3d5   : > { %1806 = vst [vmem:[%s2531_s6 + $0x28] sm:$0xff] %v1795_v61  ;;  %v1672_v11 = vadd.f32 %v1671_v53, %v1627_v36  ;;  %v1798_v8 = vpop.f32.mrf.mxu3 }
 0x3d7   : > { %v1717_v13 = vadd.f32 %v1716_v19, %v1672_v11 }
 0x3d9   : > { %v1762_v26 = vadd.f32 %v1761_v40, %v1717_v13 }
 0x3db   : > { %v1799_v22 = vadd.f32 %v1798_v8, %v1762_v26 }
 0x3dd   : > { %1808 = vst [vmem:[%s2531_s6 + $0x38] sm:$0xff] %v1799_v22 }
 0x3de PF: > { %s14_s19 = sadd.s32 1, %s2103_s19   ;;  %s2565_s15 = smov %s2095_s17 }
 0x3df   : > { %p11_p9 = scmp.ge.s32.totalorder %s14_s19, 6   ;;  %s2566_s16 = smov %s2099_s18 }
 0x3e0   : > { %s2567_s17 = smov %s2570_s20  ;;  %s2568_s18 = smov %s2574_s21 }
 0x3e1   :  { %13 = sbr.rel (!%p11_p9) target bundleno = 3 (0x3), region = 75 }

// kernel: fwd_f32.5
= control target key start
LH: loop header
LB: loop body
LE: loop exit
PB: predicated region body
PF: predicated region fallthrough
CT: control target
= control target key end

     0   :  { %s2682_s15 = smov 0   ;;  %s2684_s16 = smov 0   ;;  %s5001_s0 = inlined_call_operand.vmem [shape: f32[2,64,256], index: 0, kind: input, shape index: {}]   ;;  %s5002_s1 = inlined_call_operand.vmem [shape: s32[2,256], index: 1, kind: input, shape index: {}]   ;;  %s5003_s2 = inlined_call_operand.vmem [shape: f32[64,64], index: 2, kind: input, shape index: {}]   ;;  %s5004_s3 = inlined_call_operand.vmem [shape: f32[64,9], index: 3, kind: input, shape index: {}]   ;;  %s5005_s4 = inlined_call_operand.vmem [shape: f32[2,64,256], index: 4, kind: output, shape index: {}]  }
   0x1   :  { %s2686_s17 = smov 0  }
   0x2 LB: > { %s26_s18 = sadd.s32 1, %s2634_s16  ;;  %p2528_p0 = scmp.ge.s32.totalorder %s2638_s17, 1  ;;  %s2638_s17 = sphi %s2686_s17, %s14_s17   ;;  %s2634_s16 = sphi %s2684_s16, %s5279_s16   ;;  %s2630_s15 = sphi %s2682_s15, %s5278_s15  }
   0x3   : > { %p28_p1 = scmp.ge.s32.totalorder %s26_s18, 2  ;;  %p198_p2 = scmp.lt.s32.totalorder %s2638_s17, 3 }
   0x5   : > { %s5281_s18 = smov (%p28_p1, %s26_s18), 0  ;;  %p199_p3 = pnand %p2528_p0, %p198_p2 }
   0x7   : > { %202 = sbr.rel (%p199_p3) target bundleno = 774 (0x306), region = 36 }
   0xc   : > { %v2703_v0 = vld [vmem:[%s5004_s3] sm:$0xff]  ;;  %p239_p4 = scmp.lt.s32.totalorder %s2630_s15, 1  ;;  %vm291_vm0 = vcmask 523264   ;;  %v5006_v2 = vmov 0   ;;  %v2717_v4 = vld [vmem:[%s5004_s3 + $0x10] sm:$0xff]  ;;  %v284_v5 = vld [vmem:[%s5003_s2 + $0x8] sm:$0xff] }
   0xd   : > { %v283_v1 = vld [vmem:[%s5003_s2] sm:$0xff]  ;;  %2579 = vset.pattern.permute.xlu1 %v5006_v2  ;;  %2580 = vset.pattern.permute.xlu2 %v5006_v2  ;;  %v2737_v7 = vld [vmem:[%s5004_s3 + $0x18] sm:$0xff]  ;;  %v296_v11 = vsel %vm291_vm0, %v284_v5, 0  ;;  %v2766_v24 = vld [vmem:[%s5004_s3 + $0x8] sm:$0xff]  ;;  %s2646_s8 = smov 15   ;;  %s2647_s9 = smov 16  }
   0xe   : > { %v293_v3 = vsel %vm291_vm0, %v283_v1, 0  ;;  %1312 = vperm.xlu1 %2579, %v2703_v0   ;;  %s5283_s15 = smov (!%p239_p4, %s2630_s15), 1  ;;  %2581 = vset.pattern.permute.xlu0 %v5006_v2  ;;  %v2807_v39 = vand.u32 4294901760, %v296_v11  ;;  %v285_v45 = vld [vmem:[%s5003_s2 + $0x10] sm:$0xff]  ;;  %v2844_v53 = vld [vmem:[%s5004_s3 + $0x28] sm:$0xff]  ;;  %s2648_s10 = smov 17  }
   0xf   : > { %1322 = vperm.xlu0 %2581, %v2717_v4   ;;  %s2536_s27 = sshll.u32 %s5283_s15, 7  ;;  %v2725_v6 = vand.u32 4294901760, %v293_v3  ;;  %1317 = vperm.xlu2 %2580, %v2766_v24   ;;  %v299_v56 = vsel %vm291_vm0, %v285_v45, 0  ;;  %s2649_s11 = smov 127  }
  0x10   : > { %s2732_s30 = scalar_lea.vmem %s5001_s0, %s2536_s27  ;;  %v2838_v51 = vsub.f32 %v296_v11, %v2807_v39  ;;  %v2865_v62 = vand.u32 4294901760, %v299_v56  ;;  %s2650_s12 = smov 1  }
  0x11   : > { %v281_v8 = vld [vmem:[%s2732_s30 + $0x70] sm:$0xff]  ;;  %v279_v9 = vld [vmem:[%s2732_s30 + $0x60] sm:$0xff]  ;;  %v2761_v23 = vsub.f32 %v293_v3, %v2725_v6  ;;  %v286_v3 = vld [vmem:[%s5003_s2 + $0x18] sm:$0xff]  ;;  %s2651_s21 = smov 113   ;;  %s2653_s13 = smov 112  }
  0x12   : > { %v277_v10 = vld [vmem:[%s2732_s30 + $0x50] sm:$0xff]  ;;  %v2743_v12 = vand.u32 4294901760, %v281_v8  ;;  %v2745_v13 = vand.u32 4294901760, %v279_v9  ;;  %v275_v15 = vld [vmem:[%s2732_s30 + $0x40] sm:$0xff]  ;;  %v2863_v61 = vand.u32 4294901760, %v2838_v51  ;;  %s2655_s14 = smov 111   ;;  %s4898_s25 = scalar_lea.vmem %s5005_s4, %s2536_s27 }
  0x13   : > { %v2747_v14 = vand.u32 4294901760, %v277_v10  ;;  %v273_v16 = vld [vmem:[%s2732_s30 + $0x30] sm:$0xff]  ;;  %v271_v17 = vld [vmem:[%s2732_s30 + $0x20] sm:$0xff]  ;;  %v2752_v18 = vand.u32 4294901760, %v275_v15  ;;  %v2802_v37 = vand.u32 4294901760, %v2761_v23 }
  0x14   : > { %v2754_v19 = vand.u32 4294901760, %v273_v16  ;;  %v2756_v20 = vand.u32 4294901760, %v271_v17  ;;  %v269_v21 = vld [vmem:[%s2732_s30 + $0x10] sm:$0xff]  ;;  %v267_v22 = vld [vmem:[%s2732_s30] sm:$0xff]  ;;  %325 = vmatpush.msra.mxu0 %v2743_v12  ;;  %v2770_v25 = vsub.f32 %v281_v8, %v2743_v12  ;;  %v2773_v26 = vsub.f32 %v279_v9, %v2745_v13  ;;  %576 = vmatpush.msra.mxu3 %v2743_v12 }
  0x15   : > { %v2777_v27 = vsub.f32 %v277_v10, %v2747_v14  ;;  %v2779_v28 = vand.u32 4294901760, %v269_v21  ;;  %v2783_v29 = vsub.f32 %v275_v15, %v2752_v18  ;;  %v2797_v35 = vand.u32 4294901760, %v267_v22 }
  0x16   : > { %1327 = vperm.xlu1 %2579, %v2737_v7   ;;  %v2786_v30 = vsub.f32 %v273_v16, %v2754_v19  ;;  %v2789_v31 = vsub.f32 %v271_v17, %v2756_v20  ;;  %327 = vmatpush.msra.mxu0 %v2745_v13  ;;  %v415_v32 = vand.u32 4294901760, %v2770_v25  ;;  %v421_v33 = vand.u32 4294901760, %v2773_v26 }
  0x17   : > { %504 = vmatpush.msra.mxu2 %v2770_v25  ;;  %v427_v34 = vand.u32 4294901760, %v2777_v27  ;;  %578 = vmatpush.msra.mxu3 %v2745_v13  ;;  %v433_v36 = vand.u32 4294901760, %v2783_v29  ;;  %v2805_v38 = vsub.f32 %v269_v21, %v2779_v28  ;;  %v2832_v49 = vsub.f32 %v267_v22, %v2797_v35 }
  0x18   : > { %329 = vmatpush.msra.mxu0 %v2747_v14  ;;  %v416_v40 = vsub.f32 %v2770_v25, %v415_v32  ;;  %v422_v41 = vsub.f32 %v2773_v26, %v421_v33  ;;  %v439_v43 = vand.u32 4294901760, %v2786_v30  ;;  %v445_v44 = vand.u32 4294901760, %v2789_v31  ;;  %v2909_v25 = vld [vmem:[%s5004_s3 + $0x20] sm:$0xff] }
  0x19   : > { %507 = vmatpush.msra.mxu2 %v2773_v26  ;;  %v428_v42 = vsub.f32 %v2777_v27, %v427_v34  ;;  %580 = vmatpush.msra.mxu3 %v2747_v14  ;;  %v434_v48 = vsub.f32 %v2783_v29, %v433_v36  ;;  %v343_v50 = vsub.f32 %v2761_v23, %v2802_v37  ;;  %v451_v55 = vand.u32 4294901760, %v2805_v38 }
  0x1a   : > { %331 = vmatpush.msra.mxu0 %v2752_v18  ;;  %v417_v46 = vand.u32 4294901760, %v416_v40  ;;  %v423_v47 = vand.u32 4294901760, %v422_v41  ;;  %v440_v54 = vsub.f32 %v2786_v30, %v439_v43  ;;  %v446_v58 = vsub.f32 %v2789_v31, %v445_v44  ;;  %1332 = vperm.xlu2 %2580, %v2909_v25   ;;  %v2928_v41 = vld [vmem:[%s5004_s3 + $0x38] sm:$0xff] }
  0x1b   : > { %510 = vmatpush.msra.mxu2 %v2777_v27  ;;  %582 = vmatpush.msra.mxu3 %v2752_v18  ;;  %v429_v52 = vand.u32 4294901760, %v428_v42  ;;  %v435_v57 = vand.u32 4294901760, %v434_v48  ;;  %v457_v59 = vand.u32 4294901760, %v2832_v49  ;;  %v2859_v60 = vand.u32 4294901760, %v343_v50  ;;  %v278_v48 = vld [vmem:[%s2732_s30 + $0x58] sm:$0xff] }
  0x1c   : > { %333 = vmatpush.msra.mxu0 %v2754_v19  ;;  %418 = vmatpush.msra.mxu1 %v417_v46  ;;  %v441_v63 = vand.u32 4294901760, %v440_v54  ;;  %v452_v1 = vsub.f32 %v2805_v38, %v451_v55  ;;  %v447_v5 = vand.u32 4294901760, %v446_v58  ;;  %v351_v9 = vsub.f32 %v2838_v51, %v2863_v61  ;;  %v282_v46 = vld [vmem:[%s2732_s30 + $0x78] sm:$0xff] }
  0x1d   : > { %513 = vmatpush.msra.mxu2 %v2783_v29  ;;  %584 = vmatpush.msra.mxu3 %v2754_v19  ;;  %v458_v8 = vsub.f32 %v2832_v49, %v457_v59  ;;  %v2885_v10 = vsub.f32 %v299_v56, %v2865_v62  ;;  %v302_v15 = vsel %vm291_vm0, %v286_v3, 0  ;;  %v2641_v21 = vmov 1   ;;  %v288_v29 = vld [vmem:[%s5003_s2 + $0x28] sm:$0xff] }
  0x1e   : > { %335 = vmatpush.msra.mxu0 %v2756_v20  ;;  %424 = vmatpush.msra.mxu1 %v423_v47  ;;  %v453_v11 = vand.u32 4294901760, %v452_v1  ;;  %v2894_v17 = vand.u32 4294901760, %v351_v9  ;;  %v2900_v40 = vand.u32 4294901760, %v302_v15  ;;  %v276_v56 = vld [vmem:[%s2732_s30 + $0x48] sm:$0xff] }
  0x1f   : > { %516 = vmatpush.msra.mxu2 %v2786_v30  ;;  %1337 = vperm.xlu1 %2579, %v2844_v53   ;;  %v459_v16 = vand.u32 4294901760, %v458_v8  ;;  %v2898_v22 = vand.u32 4294901760, %v2885_v10 }
  0x20   : > { %337 = vmatpush.msra.mxu0 %v2779_v28  ;;  %430 = vmatpush.msra.mxu1 %v429_v52  ;;  %v2980_v52 = vand.u32 4294901760, %v278_v48 }
  0x21   : > { %519 = vmatpush.msra.mxu2 %v2789_v31  ;;  %586 = vmatpush.msra.mxu3 %v2756_v20  ;;  %v359_v26 = vsub.f32 %v2885_v10, %v2898_v22 }
  0x22   : > { %339 = vmatpush.msra.mxu0 %v2797_v35  ;;  %436 = vmatpush.msra.mxu1 %v435_v57  ;;  %v2997_v57 = vsub.f32 %v278_v48, %v2980_v52 }
  0x23   : > { %345 = vmatmul.f32.vlgmr.msra.gmra.mxu0 %v2859_v60  ;;  %522 = vmatpush.msra.mxu2 %v2805_v38  ;;  %v2934_v45 = vand.u32 4294901760, %v359_v26  ;;  %v289_v38 = vld [vmem:[%s5003_s2 + $0x30] sm:$0xff] }
  0x24   : > { %442 = vmatpush.msra.mxu1 %v441_v63  ;;  %588 = vmatpush.msra.mxu3 %v2779_v28  ;;  %v5011_v8 = vand.u32 4294901760, %v2997_v57 }
  0x25   : > { %525 = vmatpush.msra.mxu2 %v2832_v49  ;;  %651 = vmatpush.msrb.mxu0 %v415_v32  ;;  %v287_v32 = vld [vmem:[%s5003_s2 + $0x20] sm:$0xff] }
  0x26   : > { %448 = vmatpush.msra.mxu1 %v447_v5  ;;  %528 = vmatmul.f32.vlgmr.msra.gmra.mxu2 %v2761_v23  ;;  %v305_v42 = vsel %vm291_vm0, %v287_v32, 0 }
  0x27   : > { %590 = vmatpush.msra.mxu3 %v2797_v35  ;;  %2584 = vset.pattern.permute.xlu1 %v2641_v21  ;;  %v2941_v27 = vand.u32 4294901760, %v305_v42 }
  0x28   : > { %454 = vmatpush.msra.mxu1 %v453_v11  ;;  %594 = vmatmul.f32.vlgmr.msra.gmra.mxu3 %v2802_v37  ;;  %v272_v11 = vld [vmem:[%s2732_s30 + $0x28] sm:$0xff] }
  0x29   : > { %1461 = vperm.xlu1 %2584, %v2717_v4   ;;  %655 = vmatpush.msrb.mxu0 %v421_v33  ;;  %v2920_v33 = vsub.f32 %v302_v15, %v2900_v40  ;;  %v3031_v32 = vand.u32 4294901760, %v272_v11 }
  0x2a   : > { %460 = vmatpush.msra.mxu1 %v459_v16  ;;  %1347 = vperm.xlu0 %2581, %v2928_v41   ;;  %v882_v16 = vsub.f32 %v2997_v57, %v5011_v8 }
  0x2b   : > { %353 = vmatmul.f32.gmra.mxu0 %v2894_v17  ;;  %462 = vmatmul.f32.vlgmr.msra.gmra.mxu1 %v2725_v6  ;;  %v3052_v48 = vsub.f32 %v272_v11, %v3031_v32 }
  0x2c   : > { %722 = vmatpush.msrb.mxu1 %v2743_v12  ;;  %659 = vmatpush.msrb.mxu0 %v427_v34  ;;  %v2937_v12 = vand.u32 4294901760, %v2920_v33  ;;  %v2946_v34 = vld [vmem:[%s5004_s3 + $0x30] sm:$0xff] }
  0x2d   : > { %1342 = vperm.xlu2 %2580, %v2946_v34  }
  0x2e   : > { %533 = vmatmul.f32.gmra.mxu2 %v2838_v51  ;;  %724 = vmatpush.msrb.mxu1 %v2745_v13  ;;  %v2951_v13 = vand.u32 4294901760, %v282_v46  ;;  %v367_v30 = vsub.f32 %v2920_v33, %v2937_v12 }
  0x2f   : > { %663 = vmatpush.msrb.mxu0 %v433_v36  ;;  %v280_v36 = vld [vmem:[%s2732_s30 + $0x68] sm:$0xff] }
  0x30   : > { %600 = vmatmul.f32.gmra.mxu3 %v2863_v61  ;;  %726 = vmatpush.msrb.mxu1 %v2747_v14  ;;  %v2963_v47 = vsub.f32 %v282_v46, %v2951_v13  ;;  %v2965_v14 = vand.u32 4294901760, %v280_v36  ;;  %v2999_v58 = vand.u32 4294901760, %v367_v30  ;;  %v270_v46 = vld [vmem:[%s2732_s30 + $0x18] sm:$0xff] }
  0x31   : > { %1469 = vperm.xlu1 %2584, %v2909_v25   ;;  %667 = vmatpush.msrb.mxu0 %v439_v43  ;;  %v2972_v43 = vsub.f32 %v305_v42, %v2941_v27  ;;  %v3049_v30 = vand.u32 4294901760, %v270_v46 }
  0x32   : > { %728 = vmatpush.msrb.mxu1 %v2752_v18  ;;  %v308_v18 = vsel %vm291_vm0, %v288_v29, 0  ;;  %v869_v50 = vand.u32 4294901760, %v2963_v47  ;;  %v2983_v54 = vsub.f32 %v280_v36, %v2965_v14  ;;  %779 = vmatpush.msrb.mxu2 %v2951_v13  ;;  %v311_v29 = vsel %vm291_vm0, %v289_v38, 0 }
  0x33   : > { %361 = vmatmul.f32.gmra.mxu0 %v2934_v45  ;;  %466 = vmatmul.f32.gmra.mxu1 %v2807_v39  ;;  %v3002_v63 = vand.u32 4294901760, %v2972_v43  ;;  %v3004_v1 = vand.u32 4294901760, %v308_v18  ;;  %v3069_v38 = vsub.f32 %v270_v46, %v3049_v30  ;;  %v290_v46 = vld [vmem:[%s5003_s2 + $0x38] sm:$0xff] }
  0x34   : > { %730 = vmatpush.msrb.mxu1 %v2754_v19  ;;  %671 = vmatpush.msrb.mxu0 %v445_v44  ;;  %v870_v19 = vsub.f32 %v2963_v47, %v869_v50  ;;  %v875_v31 = vand.u32 4294901760, %v2983_v54  ;;  %v2994_v44 = vand.u32 4294901760, %v276_v56 }
  0x35   : > { %2583 = vset.pattern.permute.xlu0 %v2641_v21  ;;  %781 = vmatpush.msrb.mxu2 %v2965_v14 }
  0x36   : > { %538 = vmatmul.f32.gmra.mxu2 %v2885_v10  ;;  %732 = vmatpush.msrb.mxu1 %v2756_v20  ;;  %v274_v20 = vld [vmem:[%s2732_s30 + $0x38] sm:$0xff]  ;;  %v871_v3 = vand.u32 4294901760, %v870_v19  ;;  %v876_v5 = vsub.f32 %v2983_v54, %v875_v31  ;;  %v268_v19 = vld [vmem:[%s2732_s30 + $0x8] sm:$0xff] }
  0x37   : > { %1457 = vperm.xlu0 %2583, %v2766_v24   ;;  %675 = vmatpush.msrb.mxu0 %v451_v55  ;;  %v3016_v9 = vand.u32 4294901760, %v274_v20  ;;  %v3024_v55 = vsub.f32 %v276_v56, %v2994_v44  ;;  %v883_v56 = vand.u32 4294901760, %v882_v16 }
  0x38   : > { %606 = vmatmul.f32.gmra.mxu3 %v2898_v22  ;;  %734 = vmatpush.msrb.mxu1 %v2779_v28  ;;  %v877_v15 = vand.u32 4294901760, %v876_v5  ;;  %v375_v28 = vsub.f32 %v2972_v43, %v3002_v63  ;;  %v3066_v5 = vand.u32 4294901760, %v268_v19 }
  0x39   : > { %1481 = vperm.xlu1 %2584, %v2928_v41   ;;  %2582 = vset.pattern.permute.xlu2 %v2641_v21  ;;  %v3034_v26 = vsub.f32 %v274_v20, %v3016_v9  ;;  %v3041_v21 = vsub.f32 %v308_v18, %v3004_v1  ;;  %v5010_v42 = vand.u32 4294901760, %v3024_v55 }
  0x3a   : > { %872 = vmatpush.msrb.mxu3 %v871_v3  ;;  %1453 = vperm.xlu2 %2582, %v2703_v0   ;;  %v5009_v3 = vand.u32 4294901760, %v3052_v48  ;;  %v3071_v11 = vand.u32 4294901760, %v375_v28  ;;  %v3083_v16 = vsub.f32 %v268_v19, %v3066_v5  ;;  %v2642_v28 = vmov 2  }
  0x3b   : > { %369 = vmatmul.f32.gmra.mxu0 %v2999_v58  ;;  %470 = vmatmul.f32.gmra.mxu1 %v2865_v62  ;;  %v5008_v36 = vand.u32 4294901760, %v3034_v26  ;;  %v888_v18 = vsub.f32 %v3024_v55, %v5010_v42  ;;  %v3074_v49 = vand.u32 4294901760, %v3041_v21 }
  0x3c   : > { %783 = vmatpush.msrb.mxu2 %v2980_v52  ;;  %878 = vmatpush.msrb.mxu3 %v877_v15  ;;  %v905_v15 = vand.u32 4294901760, %v3069_v38  ;;  %v900_v2 = vsub.f32 %v3052_v48, %v5009_v3  ;;  %v5012_v19 = vand.u32 4294901760, %v3083_v16  ;;  %v314_v3 = vsel %vm291_vm0, %v290_v46, 0 }
  0x3d   : > { %679 = vmatpush.msrb.mxu0 %v457_v59  ;;  %v894_v20 = vsub.f32 %v3034_v26, %v5008_v36  ;;  %736 = vmatpush.msrb.mxu1 %v2797_v35  ;;  %v3076_v59 = vand.u32 4294901760, %v311_v29  ;;  %v889_v35 = vand.u32 4294901760, %v888_v18  ;;  %v383_v36 = vsub.f32 %v3041_v21, %v3074_v49 }
  0x3e   : > { %543 = vmatmul.f32.gmra.mxu2 %v2920_v33  ;;  %884 = vmatpush.msrb.mxu3 %v883_v56  ;;  %v901_v42 = vand.u32 4294901760, %v900_v2  ;;  %v3118_v46 = vand.u32 4294901760, %v314_v3 }
  0x3f   : > { %1477 = vperm.xlu0 %2583, %v2946_v34   ;;  %785 = vmatpush.msrb.mxu2 %v2994_v44  ;;  %v895_v18 = vand.u32 4294901760, %v894_v20  ;;  %v3100_v56 = vsub.f32 %v311_v29, %v3076_v59  ;;  %v906_v20 = vsub.f32 %v3069_v38, %v905_v15  ;;  %v912_v29 = vsub.f32 %v3083_v16, %v5012_v19 }
  0x40   : > { %612 = vmatmul.f32.gmra.mxu3 %v2937_v12  ;;  %958 = vmatpush.msra.mxu0 %v2963_v47  ;;  %v3113_v8 = vand.u32 4294901760, %v383_v36  ;;  %v3132_v19 = vsub.f32 %v314_v3, %v3118_v46  ;;  %v2643_v3 = vmov 3  }
  0x41   : > { %2586 = vset.pattern.permute.xlu1 %v2642_v28  ;;  %787 = vmatpush.msrb.mxu2 %v3016_v9  ;;  %v907_v2 = vand.u32 4294901760, %v906_v20  ;;  %v913_v36 = vand.u32 4294901760, %v912_v29 }
  0x42   : > { %1593 = vperm.xlu1 %2586, %v2766_v24   ;;  %1465 = vperm.xlu2 %2582, %v2737_v7  }
  0x43   : > { %377 = vmatmul.f32.gmra.mxu0 %v3071_v11  ;;  %474 = vmatmul.f32.gmra.mxu1 %v2900_v40 }
  0x44   : > { %890 = vmatpush.msrb.mxu3 %v889_v35  ;;  %789 = vmatpush.msrb.mxu2 %v3031_v32  ;;  %v3116_v35 = vand.u32 4294901760, %v3100_v56 }
  0x45   : > { %961 = vmatpush.msra.mxu0 %v2983_v54  ;;  %1030 = vmatpush.msra.mxu1 %v2951_v13 }
  0x46   : > { %548 = vmatmul.f32.gmra.mxu2 %v2972_v43  ;;  %896 = vmatpush.msrb.mxu3 %v895_v18  ;;  %v391_v18 = vsub.f32 %v3100_v56, %v3116_v35 }
  0x47   : > { %791 = vmatpush.msrb.mxu2 %v3049_v30  ;;  %2585 = vset.pattern.permute.xlu0 %v2642_v28 }
  0x48   : > { %618 = vmatmul.f32.gmra.mxu3 %v3002_v63  ;;  %1589 = vperm.xlu0 %2585, %v2703_v0   ;;  %v3138_v47 = vand.u32 4294901760, %v391_v18 }
  0x49   : > { %902 = vmatpush.msrb.mxu3 %v901_v42  ;;  %793 = vmatpush.msrb.mxu2 %v3066_v5  ;;  %v5089_v42 = vand.u32 4294901760, %v2997_v57 }
  0x4a   : > { %1601 = vperm.xlu1 %2586, %v2737_v7   ;;  %1473 = vperm.xlu2 %2582, %v2844_v53  }
  0x4b   : > { %1105 = vmatpush.msra.mxu2 %v869_v50  ;;  %385 = vmatmul.f32.gmra.mxu0 %v3113_v8  ;;  %v3141_v50 = vand.u32 4294901760, %v3132_v19 }
  0x4c   : > { %478 = vmatmul.f32.gmra.mxu1 %v2941_v27  ;;  %908 = vmatpush.msrb.mxu3 %v907_v2 }
  0x4d   : > { %964 = vmatpush.msra.mxu0 %v2997_v57  ;;  %1109 = vmatpush.msra.mxu2 %v875_v31  ;;  %v5090_v31 = vand.u32 4294901760, %v3024_v55  ;;  %v2644_v57 = vmov 4  }
  0x4e   : > { %553 = vmatmul.f32.gmra.mxu2 %v3041_v21  ;;  %914 = vmatpush.msrb.mxu3 %v913_v36 }
  0x4f   : > { %967 = vmatpush.msra.mxu0 %v3024_v55  ;;  %1113 = vmatpush.msra.mxu2 %v5089_v42 }
  0x50   : > { %1176 = vmatpush.msra.mxu3 %v2951_v13  ;;  %1609 = vperm.xlu0 %2585, %v2844_v53   ;;  %v399_v13 = vsub.f32 %v3132_v19, %v3141_v50 }
  0x51   : > { %624 = vmatmul.f32.gmra.mxu3 %v3074_v49  ;;  %970 = vmatpush.msra.mxu0 %v3034_v26 }
  0x52   : > { %1613 = vperm.xlu1 %2586, %v2946_v34   ;;  %1178 = vmatpush.msra.mxu3 %v2965_v14  ;;  %v3162_v54 = vand.u32 4294901760, %v399_v13 }
  0x53   : > { %393 = vmatmul.f32.gmra.mxu0 %v3138_v47  ;;  %2587 = vset.pattern.permute.xlu2 %v2642_v28 }
  0x54   : > { %482 = vmatmul.f32.gmra.mxu1 %v3004_v1  ;;  %1597 = vperm.xlu2 %2587, %v2717_v4  }
  0x55   : > { %973 = vmatpush.msra.mxu0 %v3052_v48  ;;  %1032 = vmatpush.msra.mxu1 %v2965_v14  ;;  %v5091_v14 = vand.u32 4294901760, %v3034_v26 }
  0x56   : > { %558 = vmatmul.f32.gmra.mxu2 %v3100_v56  ;;  %1180 = vmatpush.msra.mxu3 %v2980_v52 }
  0x57   : > { %1117 = vmatpush.msra.mxu2 %v5090_v31  ;;  %976 = vmatpush.msra.mxu0 %v3069_v38 }
  0x58   : > { %2590 = vset.pattern.permute.xlu0 %v2643_v3  ;;  %1034 = vmatpush.msra.mxu1 %v2980_v52  ;;  %v5092_v52 = vand.u32 4294901760, %v3052_v48 }
  0x59   : > { %630 = vmatmul.f32.gmra.mxu3 %v3116_v35  ;;  %1731 = vperm.xlu0 %2590, %v2717_v4  }
  0x5a   : > { %2588 = vset.pattern.permute.xlu1 %v2643_v3  ;;  %1121 = vmatpush.msra.mxu2 %v5091_v14 }
  0x5b   : > { %401 = vmatmul.f32.gmra.mxu0 %v3162_v54  ;;  %1723 = vperm.xlu1 %2588, %v2703_v0  }
  0x5c   : > { %486 = vmatmul.f32.gmra.mxu1 %v3076_v59  ;;  %1605 = vperm.xlu2 %2587, %v2909_v25  }
  0x5d   : > { %1182 = vmatpush.msra.mxu3 %v2994_v44  ;;  %979 = vmatpush.msra.mxu0 %v3083_v16 }
  0x5e   : > { %563 = vmatmul.f32.gmra.mxu2 %v3132_v19  ;;  %1036 = vmatpush.msra.mxu1 %v2994_v44  ;;  %v5093_v44 = vand.u32 4294901760, %v3083_v16 }
  0x5f   : > { %1125 = vmatpush.msra.mxu2 %v5092_v52  ;;  %1184 = vmatpush.msra.mxu3 %v3016_v9 }
  0x60   : > { %1038 = vmatpush.msra.mxu1 %v3016_v9 }
  0x61   : > { %636 = vmatmul.f32.gmra.mxu3 %v3141_v50  ;;  %1751 = vperm.xlu0 %2590, %v2928_v41  }
  0x62   : > { %1129 = vmatpush.msra.mxu2 %v905_v15  ;;  %1186 = vmatpush.msra.mxu3 %v3031_v32 }
  0x63   : > { %681 = vmatmul.f32.vlgmr.msrb.gmra.mxu0 %v2725_v6  ;;  %1735 = vperm.xlu1 %2588, %v2737_v7  }
  0x64   : > { %490 = vmatmul.f32.gmra.mxu1 %v3118_v46  ;;  %1617 = vperm.xlu2 %2587, %v2928_v41  }
  0x65   : > { %1040 = vmatpush.msra.mxu1 %v3031_v32  ;;  %1188 = vmatpush.msra.mxu3 %v3049_v30 }
  0x66   : > { %799 = vmatmul.f32.vlgmr.msrb.gmra.mxu2 %v2859_v60 }
  0x67   : > { %1133 = vmatpush.msra.mxu2 %v5093_v44  ;;  %1042 = vmatpush.msra.mxu1 %v3049_v30 }
  0x68   : > { %1190 = vmatpush.msra.mxu3 %v3066_v5 }
  0x69   : > { %916 = vmatmul.f32.vlgmr.msrb.gmra.mxu3 %v2725_v6  ;;  %2593 = vset.pattern.permute.xlu0 %v2644_v57  ;;  %v3237_v60 = vpop.permute.xlu2 %1317 }
  0x6a   : > { %1795 = vperm.xlu0 %2593, %v2717_v4   ;;  %1044 = vmatpush.msra.mxu1 %v3066_v5 }
  0x6b   : > { %685 = vmatmul.f32.gmra.mxu0 %v2807_v39  ;;  %1743 = vperm.xlu1 %2588, %v2844_v53  }
  0x6c   : > { %738 = vmatmul.f32.vlgmr.msrb.gmra.mxu1 %v2725_v6  ;;  %2589 = vset.pattern.permute.xlu2 %v2643_v3 }
  0x6d   : > { %1727 = vperm.xlu2 %2589, %v2766_v24  }
  0x6e   : > { %807 = vmatmul.f32.gmra.mxu2 %v2894_v17 }
  0x71   : > { %920 = vmatmul.f32.gmra.mxu3 %v2807_v39 }
  0x72   : > { %1815 = vperm.xlu0 %2593, %v2928_v41  }
  0x73   : > { %689 = vmatmul.f32.gmra.mxu0 %v2865_v62  ;;  %2591 = vset.pattern.permute.xlu1 %v2644_v57 }
  0x74   : > { %742 = vmatmul.f32.gmra.mxu1 %v2807_v39  ;;  %1787 = vperm.xlu1 %2591, %v2703_v0   ;;  %v3247_v41 = vpop.permute.xlu2 %1332 }
  0x75   : > { %1739 = vperm.xlu2 %2589, %v2909_v25   ;;  %5094 = vst [vmem:[#allocation2_spill] sm:$0xff] %v3247_v41 }
  0x76   : > { %815 = vmatmul.f32.gmra.mxu2 %v2934_v45 }
  0x79   : > { %924 = vmatmul.f32.gmra.mxu3 %v2865_v62 }
  0x7b   : > { %693 = vmatmul.f32.gmra.mxu0 %v2900_v40 }
  0x7c   : > { %746 = vmatmul.f32.gmra.mxu1 %v2865_v62  ;;  %1799 = vperm.xlu1 %2591, %v2737_v7  }
  0x7d   : > { %1747 = vperm.xlu2 %2589, %v2946_v34  }
  0x7e   : > { %823 = vmatmul.f32.gmra.mxu2 %v2999_v58 }
  0x80   : > { %v3286_v30 = vpop.permute.xlu1 %1312 }
  0x81   : > { %928 = vmatmul.f32.gmra.mxu3 %v2900_v40 }
  0x83   : > { %697 = vmatmul.f32.gmra.mxu0 %v2941_v27 }
  0x84   : > { %750 = vmatmul.f32.gmra.mxu1 %v2900_v40  ;;  %1807 = vperm.xlu1 %2591, %v2844_v53  }
  0x85   : > { %2592 = vset.pattern.permute.xlu2 %v2644_v57 }
  0x86   : > { %831 = vmatmul.f32.gmra.mxu2 %v3071_v11  ;;  %1791 = vperm.xlu2 %2592, %v2766_v24  }
  0x89   : > { %932 = vmatmul.f32.gmra.mxu3 %v2941_v27 }
  0x8b   : > { %701 = vmatmul.f32.gmra.mxu0 %v3004_v1 }
  0x8c   : > { %754 = vmatmul.f32.gmra.mxu1 %v2941_v27 }
  0x8e   : > { %839 = vmatmul.f32.gmra.mxu2 %v3113_v8  ;;  %1803 = vperm.xlu2 %2592, %v2909_v25   ;;  %v3259_v8 = vpop.permute.xlu2 %1342 }
  0x8f   : > { %5095 = vst [vmem:[#allocation3_spill] sm:$0xff] %v3259_v8 }
  0x91   : > { %936 = vmatmul.f32.gmra.mxu3 %v3004_v1 }
  0x93   : > { %705 = vmatmul.f32.gmra.mxu0 %v3076_v59 }
  0x94   : > { %758 = vmatmul.f32.gmra.mxu1 %v3004_v1 }
  0x96   : > { %847 = vmatmul.f32.gmra.mxu2 %v3138_v47  ;;  %1811 = vperm.xlu2 %2592, %v2946_v34  }
  0x99   : > { %940 = vmatmul.f32.gmra.mxu3 %v3076_v59 }
  0x9b   : > { %709 = vmatmul.f32.gmra.mxu0 %v3118_v46 }
  0x9c   : > { %762 = vmatmul.f32.gmra.mxu1 %v3076_v59 }
  0x9e   : > { %855 = vmatmul.f32.gmra.mxu2 %v3162_v54 }
  0xa0   : > { %v3244_v17 = vpop.f32.mrf.mxu0 }
  0xa1   : > { %944 = vmatmul.f32.gmra.mxu3 %v3118_v46 }
  0xa3   : > { %982 = vmatmul.f32.vlgmr.msra.gmra.mxu0 %v2761_v23 }
  0xa4   : > { %766 = vmatmul.f32.gmra.mxu1 %v3118_v46 }
  0xa6   : > { %1135 = vmatmul.f32.vlgmr.msra.gmra.mxu2 %v2725_v6 }
  0xa8   : > { %v3252_v45 = vpop.f32.mrf.mxu0  ;;  %v3254_v34 = vpop.f32.mrf.mxu1 }
  0xa9   : > { %1192 = vmatmul.f32.vlgmr.msra.gmra.mxu3 %v2725_v6  ;;  %v3257_v58 = vpop.f32.mrf.mxu2  ;;  %v2645_v6 = vmov 5  }
  0xaa   : > { %2594 = vset.pattern.permute.xlu2 %v2645_v6  ;;  %2596 = vset.pattern.permute.xlu1 %v2645_v6 }
  0xab   : > { %987 = vmatmul.f32.gmra.mxu0 %v2838_v51  ;;  %v3263_v9 = vpop.f32.mrf.mxu3  ;;  %1921 = vperm.xlu2 %2594, %v2703_v0  }
  0xac   : > { %1048 = vmatmul.f32.vlgmr.msra.gmra.mxu1 %v2802_v37  ;;  %1929 = vperm.xlu1 %2596, %v2717_v4   ;;  %v3277_v37 = vpop.permute.xlu2 %1453 }
  0xad   : > { %2595 = vset.pattern.permute.xlu0 %v2645_v6 }
  0xae   : > { %1139 = vmatmul.f32.gmra.mxu2 %v2807_v39  ;;  %1925 = vperm.xlu0 %2595, %v2766_v24  }
  0xb0   : > { %v362_v23 = vpop.f32.mrf.mxu0  ;;  %v3266_v55 = vpop.f32.mrf.mxu1 }
  0xb1   : > { %1196 = vmatmul.f32.gmra.mxu3 %v2807_v39  ;;  %v3269_v32 = vpop.f32.mrf.mxu2  ;;  %v468_v31 = vadd.f32 %v3266_v55, %v3252_v45 }
  0xb3   : > { %992 = vmatmul.f32.gmra.mxu0 %v2885_v10  ;;  %v3273_v51 = vpop.f32.mrf.mxu3  ;;  %1933 = vperm.xlu2 %2594, %v2737_v7   ;;  %v3307_v7 = vpop.permute.xlu1 %1327  ;;  %v535_v52 = vadd.f32 %v3269_v32, %v468_v31 }
  0xb4   : > { %1054 = vmatmul.f32.gmra.mxu1 %v2863_v61  ;;  %1937 = vperm.xlu1 %2596, %v2909_v25   ;;  %v3295_v4 = vpop.permute.xlu2 %1465  ;;  %5097 = vst [vmem:[#allocation5_spill] sm:$0xff] %v3307_v7 }
  0xb5   : > { %5096 = vst [vmem:[#allocation4_spill] sm:$0xff] %v3295_v4 }
  0xb6   : > { %1143 = vmatmul.f32.gmra.mxu2 %v2865_v62 }
  0xb8   : > { %v370_v39 = vpop.f32.mrf.mxu0  ;;  %v471_v26 = vpop.f32.mrf.mxu1 }
  0xb9   : > { %1200 = vmatmul.f32.gmra.mxu3 %v2865_v62  ;;  %v3282_v10 = vadd.f32 %v471_v26, %v362_v23  ;;  %v3284_v61 = vpop.f32.mrf.mxu2 }
  0xbb   : > { %997 = vmatmul.f32.gmra.mxu0 %v2920_v33  ;;  %v3290_v0 = vpop.f32.mrf.mxu3  ;;  %1941 = vperm.xlu2 %2594, %v2844_v53   ;;  %v3322_v53 = vpop.permute.xlu1 %1337 }
  0xbc   : > { %1060 = vmatmul.f32.gmra.mxu1 %v2898_v22  ;;  %5099 = vst [vmem:[#allocation7_spill] sm:$0xff] %v3322_v53 }
  0xbe   : > { %1147 = vmatmul.f32.gmra.mxu2 %v2900_v40 }
  0xc0   : > { %v378_v24 = vpop.f32.mrf.mxu0  ;;  %v475_v62 = vpop.f32.mrf.mxu1 }
  0xc1   : > { %1204 = vmatmul.f32.gmra.mxu3 %v2900_v40  ;;  %v3298_v48 = vadd.f32 %v475_v62, %v370_v39  ;;  %v3300_v5 = vpop.f32.mrf.mxu2  ;;  %v3311_v40 = vpop.permute.xlu2 %1473  ;;  %v540_v62 = vadd.f32 %v3284_v61, %v3282_v10 }
  0xc2   : > { %5098 = vst [vmem:[#allocation6_spill] sm:$0xff] %v3311_v40  ;;  %v3392_v39 = vpop.permute.xlu0 %1322 }
  0xc3   : > { %1002 = vmatmul.f32.gmra.mxu0 %v2972_v43  ;;  %v3304_v22 = vpop.f32.mrf.mxu3  ;;  %v3337_v29 = vpop.permute.xlu1 %1461  ;;  %5105 = vst [vmem:[#allocation13_spill] sm:$0xff] %v3392_v39 }
  0xc4   : > { %1066 = vmatmul.f32.gmra.mxu1 %v2937_v12 }
  0xc6   : > { %1151 = vmatmul.f32.gmra.mxu2 %v2941_v27 }
  0xc8   : > { %v386_v25 = vpop.f32.mrf.mxu0 }
  0xc9   : > { %v479_v33 = vpop.f32.mrf.mxu1  ;;  %1208 = vmatmul.f32.gmra.mxu3 %v2941_v27  ;;  %v3315_v11 = vpop.f32.mrf.mxu2 }
  0xca   : > { %v3313_v38 = vadd.f32 %v479_v33, %v378_v24  ;;  %v3329_v28 = vpop.permute.xlu2 %1597 }
  0xcb   : > { %1007 = vmatmul.f32.gmra.mxu0 %v3041_v21  ;;  %v3319_v12 = vpop.f32.mrf.mxu3  ;;  %5100 = vst [vmem:[#allocation8_spill] sm:$0xff] %v3329_v28 }
  0xcc   : > { %1072 = vmatmul.f32.gmra.mxu1 %v3002_v63 }
  0xce   : > { %1155 = vmatmul.f32.gmra.mxu2 %v3004_v1 }
  0xd0   : > { %v394_v43 = vpop.f32.mrf.mxu0 }
  0xd1   : > { %v483_v15 = vpop.f32.mrf.mxu1  ;;  %1212 = vmatmul.f32.gmra.mxu3 %v3004_v1  ;;  %v3327_v16 = vpop.f32.mrf.mxu2 }
  0xd2   : > { %v3325_v27 = vadd.f32 %v483_v15, %v386_v25  ;;  %v3349_v36 = vpop.permute.xlu2 %1605 }
  0xd3   : > { %1012 = vmatmul.f32.gmra.mxu0 %v3100_v56  ;;  %5101 = vst [vmem:[#allocation9_spill] sm:$0xff] %v3349_v36 }
  0xd4   : > { %1078 = vmatmul.f32.gmra.mxu1 %v3074_v49  ;;  %v3333_v63 = vpop.f32.mrf.mxu3  ;;  %v464_v49 = vadd.f32 %v3254_v34, %v3244_v17  ;;  %v602_v34 = vadd.f32 %v3273_v51, %v535_v52 }
  0xd6   : > { %1159 = vmatmul.f32.gmra.mxu2 %v3076_v59  ;;  %v530_v18 = vadd.f32 %v3257_v58, %v464_v49  ;;  %v3413_v49 = vpop.permute.xlu0 %1347 }
  0xd7   : > { %5107 = vst [vmem:[#allocation15_spill] sm:$0xff] %v3413_v49 }
  0xd8   : > { %v402_v21 = vpop.f32.mrf.mxu0  ;;  %v596_v54 = vadd.f32 %v3263_v9, %v530_v18 }
  0xd9   : > { %v487_v20 = vpop.f32.mrf.mxu1  ;;  %1216 = vmatmul.f32.gmra.mxu3 %v3076_v59  ;;  %v3341_v2 = vpop.f32.mrf.mxu2 }
  0xda   : > { %v3339_v1 = vadd.f32 %v487_v20, %v394_v43  ;;  %v3366_v3 = vpop.permute.xlu2 %1617  ;;  %v608_v20 = vadd.f32 %v3290_v0, %v540_v62 }
  0xdb   : > { %1017 = vmatmul.f32.gmra.mxu0 %v3132_v19  ;;  %5103 = vst [vmem:[#allocation11_spill] sm:$0xff] %v3366_v3 }
  0xdc   : > { %1084 = vmatmul.f32.gmra.mxu1 %v3116_v35  ;;  %v3345_v56 = vpop.f32.mrf.mxu3  ;;  %v3358_v35 = vpop.permute.xlu1 %1469 }
  0xdd   : > { %5102 = vst [vmem:[#allocation10_spill] sm:$0xff] %v3358_v35 }
  0xde   : > { %1163 = vmatmul.f32.gmra.mxu2 %v3118_v46  ;;  %v3432_v52 = vpop.permute.xlu0 %1457 }
  0xe0   : > { %v682_v19 = vpop.f32.mrf.mxu0 }
  0xe1   : > { %v491_v59 = vpop.f32.mrf.mxu1  ;;  %1220 = vmatmul.f32.gmra.mxu3 %v3118_v46  ;;  %v3356_v13 = vpop.f32.mrf.mxu2  ;;  %v683_v46 = vadd.f32 %v682_v19, %v596_v54 }
  0xe2   : > { %v3354_v47 = vadd.f32 %v491_v59, %v402_v21  ;;  %v3384_v23 = vpop.permute.xlu2 %1727  ;;  %v545_v59 = vadd.f32 %v3300_v5, %v3298_v48 }
  0xe4   : > { %1090 = vmatmul.f32.gmra.mxu1 %v3141_v50  ;;  %v3361_v42 = vpop.f32.mrf.mxu3  ;;  %v3381_v45 = vpop.permute.xlu1 %1481 }
  0xe5   : > { %5104 = vst [vmem:[#allocation12_spill] sm:$0xff] %v3381_v45 }
  0xe8   : > { %v686_v17 = vpop.f32.mrf.mxu0 }
  0xe9   : > { %v739_v14 = vpop.f32.mrf.mxu1  ;;  %v3371_v57 = vpop.f32.mrf.mxu2  ;;  %v687_v58 = vadd.f32 %v686_v17, %v602_v34  ;;  %v550_v17 = vadd.f32 %v3315_v11, %v3313_v38 }
  0xea   : > { %v3369_v44 = vadd.f32 %v739_v14, %v683_v46  ;;  %v3402_v43 = vpop.permute.xlu2 %1739  ;;  %v614_v14 = vadd.f32 %v3304_v22, %v545_v59 }
  0xeb   : > { %5106 = vst [vmem:[#allocation14_spill] sm:$0xff] %v3402_v43  ;;  %v620_v38 = vadd.f32 %v3319_v12, %v550_v17  ;;  %v555_v17 = vadd.f32 %v3327_v16, %v3325_v27 }
  0xec   : > { %1516 = vrot.lane.b32.xlu2 %v3369_v44, %s2646_s8  ;;  %1382 = vrot.lane.b32.xlu1 %v3369_v44, %s2647_s9  ;;  %v3377_v50 = vpop.f32.mrf.mxu3  ;;  %v3398_v26 = vpop.permute.xlu1 %1593 }
  0xed   : > { %1235 = vrot.lane.b32.xlu0 %v3369_v44, %s2648_s10 }
  0xf0   : > { %v690_v24 = vpop.f32.mrf.mxu0 }
  0xf1   : > { %v743_v9 = vpop.f32.mrf.mxu1  ;;  %v808_v32 = vpop.f32.mrf.mxu2  ;;  %v691_v10 = vadd.f32 %v690_v24, %v608_v20 }
  0xf2   : > { %v3386_v55 = vadd.f32 %v743_v9, %v687_v58  ;;  %v3430_v48 = vpop.permute.xlu2 %1747 }
  0xf3   : > { %5109 = vst [vmem:[#allocation17_spill] sm:$0xff] %v3430_v48 }
  0xf4   : > { %1384 = vrot.lane.b32.xlu2 %v3386_v55, %s2647_s9  ;;  %1850 = vrot.lane.b32.xlu1 %v3369_v44, %s2649_s11  ;;  %v921_v6 = vpop.f32.mrf.mxu3  ;;  %v3415_v61 = vpop.permute.xlu1 %1601 }
  0xf5   : > { %1652 = vrot.lane.b32.xlu0 %v3369_v44, %s2650_s12  ;;  %v3396_v51 = vadd.f32 %v921_v6, %v808_v32  ;;  %5108 = vst [vmem:[#allocation16_spill] sm:$0xff] %v3415_v61 }
  0xf8   : > { %v694_v54 = vpop.f32.mrf.mxu0 }
  0xf9   : > { %v816_v25 = vpop.f32.mrf.mxu2  ;;  %v747_v33 = vpop.f32.mrf.mxu1  ;;  %v695_v5 = vadd.f32 %v694_v54, %v614_v14 }
  0xfa   : > { %v3419_v18 = vadd.f32 %v747_v33, %v691_v10  ;;  %v3449_v24 = vpop.permute.xlu2 %1791 }
  0xfc   : > { %1852 = vrot.lane.b32.xlu2 %v3386_v55, %s2649_s11  ;;  %1654 = vrot.lane.b32.xlu1 %v3386_v55, %s2650_s12  ;;  %v925_v15 = vpop.f32.mrf.mxu3  ;;  %v3438_v9 = vpop.permute.xlu1 %1613 }
  0xfd   : > { %1237 = vrot.lane.b32.xlu0 %v3386_v55, %s2648_s10  ;;  %v3410_v21 = vadd.f32 %v925_v15, %v816_v25  ;;  %5111 = vst [vmem:[#allocation19_spill] sm:$0xff] %v3438_v9  ;;  %v3453_v15 = vpop.permute.xlu0 %1477 }
  0xfe   : > { %5112 = vst [vmem:[#allocation20_spill] sm:$0xff] %v3453_v15 }
 0x100   : > { %v698_v32 = vpop.f32.mrf.mxu0 }
 0x101   : > { %v824_v19 = vpop.f32.mrf.mxu2  ;;  %v751_v0 = vpop.f32.mrf.mxu1  ;;  %v699_v62 = vadd.f32 %v698_v32, %v620_v38 }
 0x102   : > { %v3436_v34 = vadd.f32 %v751_v0, %v695_v5  ;;  %v3465_v59 = vpop.permute.xlu2 %1803 }
 0x103   : > { %5113 = vst [vmem:[#allocation21_spill] sm:$0xff] %v3465_v59 }
 0x104   : > { %1656 = vrot.lane.b32.xlu2 %v3419_v18, %s2650_s12  ;;  %1239 = vrot.lane.b32.xlu1 %v3419_v18, %s2648_s10  ;;  %v929_v31 = vpop.f32.mrf.mxu3  ;;  %5110 = vst [vmem:[#allocation18_spill] sm:$0xff] %v3436_v34  ;;  %v3463_v10 = vpop.permute.xlu1 %1723 }
 0x105   : > { %1518 = vrot.lane.b32.xlu0 %v3386_v55, %s2646_s8  ;;  %v3427_v46 = vadd.f32 %v929_v31, %v824_v19  ;;  %v3471_v31 = vpop.permute.xlu0 %1589 }
 0x108   : > { %v702_v32 = vpop.f32.mrf.mxu0 }
 0x109   : > { %v832_v58 = vpop.f32.mrf.mxu2  ;;  %v755_v11 = vpop.f32.mrf.mxu1 }
 0x10a   : > { %v3451_v25 = vadd.f32 %v755_v11, %v699_v62  ;;  %v3479_v5 = vpop.permute.xlu2 %1811  ;;  %v626_v11 = vadd.f32 %v3333_v63, %v555_v17  ;;  %v560_v17 = vadd.f32 %v3341_v2, %v3339_v1  ;;  %v565_v1 = vadd.f32 %v3356_v13, %v3354_v47 }
 0x10b   : > { %5115 = vst [vmem:[#allocation23_spill] sm:$0xff] %v3479_v5 }
 0x10c   : > { %1522 = vrot.lane.b32.xlu2 %v3436_v34, %s2646_s8  ;;  %1520 = vrot.lane.b32.xlu1 %v3419_v18, %s2646_s8  ;;  %v933_v22 = vpop.f32.mrf.mxu3  ;;  %v3477_v14 = vpop.permute.xlu1 %1735  ;;  %v703_v27 = vadd.f32 %v702_v32, %v626_v11  ;;  %v632_v11 = vadd.f32 %v3345_v56, %v560_v17  ;;  %v638_v47 = vadd.f32 %v3361_v42, %v565_v1 }
 0x10d   : > { %1386 = vrot.lane.b32.xlu0 %v3419_v18, %s2647_s9  ;;  %v3446_v6 = vadd.f32 %v933_v22, %v832_v58  ;;  %5114 = vst [vmem:[#allocation22_spill] sm:$0xff] %v3477_v14  ;;  %v3492_v62 = vpop.permute.xlu0 %1609  ;;  %v918_v42 = vadd.f32 %v3377_v50, %v3371_v57 }
 0x10e   : > { %5116 = vst [vmem:[#allocation24_spill] sm:$0xff] %v3492_v62 }
 0x111   : > { %v840_v33 = vpop.f32.mrf.mxu2 }
 0x112   : > { %v3494_v16 = vpop.permute.xlu2 %1921 }
 0x114   : > { %1243 = vrot.lane.b32.xlu2 %v3451_v25, %s2648_s10  ;;  %1241 = vrot.lane.b32.xlu1 %v3436_v34, %s2648_s10  ;;  %v937_v20 = vpop.f32.mrf.mxu3 }
 0x115   : > { %1854 = vrot.lane.b32.xlu0 %v3419_v18, %s2649_s11  ;;  %v3461_v12 = vadd.f32 %v937_v20, %v840_v33  ;;  %v759_v33 = vpop.f32.mrf.mxu1  ;;  %v3496_v20 = vpop.permute.xlu1 %1743 }
 0x116   : > { %5117 = vst [vmem:[#allocation25_spill] sm:$0xff] %v3496_v20  ;;  %v3506_v63 = vpop.permute.xlu0 %1731 }
 0x117   : > { %5118 = vst [vmem:[#allocation26_spill] sm:$0xff] %v3506_v63 }
 0x119   : > { %v848_v19 = vpop.f32.mrf.mxu2 }
 0x11c   : > { %1390 = vrot.lane.b32.xlu2 %v3451_v25, %s2647_s9  ;;  %1388 = vrot.lane.b32.xlu1 %v3436_v34, %s2647_s9  ;;  %v941_v54 = vpop.f32.mrf.mxu3 }
 0x11d   : > { %1658 = vrot.lane.b32.xlu0 %v3436_v34, %s2650_s12  ;;  %v3475_v0 = vadd.f32 %v941_v54, %v848_v19  ;;  %v3498_v19 = vadd.f32 %v759_v33, %v703_v27  ;;  %v706_v54 = vpop.f32.mrf.mxu0  ;;  %v3512_v32 = vpop.permute.xlu1 %1787 }
 0x11e   : > { %v707_v33 = vadd.f32 %v706_v54, %v632_v11  ;;  %v3525_v27 = vpop.permute.xlu0 %1751 }
 0x11f   : > { %5120 = vst [vmem:[#allocation28_spill] sm:$0xff] %v3525_v27 }
 0x121   : > { %v856_v58 = vpop.f32.mrf.mxu2 }
 0x124   : > { %1858 = vrot.lane.b32.xlu2 %v3451_v25, %s2649_s11  ;;  %1856 = vrot.lane.b32.xlu1 %v3436_v34, %s2649_s11  ;;  %v945_v22 = vpop.f32.mrf.mxu3 }
 0x125   : > { %1524 = vrot.lane.b32.xlu0 %v3451_v25, %s2646_s8  ;;  %v3489_v38 = vadd.f32 %v945_v22, %v856_v58  ;;  %v3510_v58 = vpop.permute.xlu2 %1933  ;;  %v763_v22 = vpop.f32.mrf.mxu1 }
 0x126   : > { %5119 = vst [vmem:[#allocation27_spill] sm:$0xff] %v3510_v58  ;;  %v3523_v2 = vadd.f32 %v763_v22, %v707_v33  ;;  %v710_v5 = vpop.f32.mrf.mxu0  ;;  %v3527_v3 = vpop.permute.xlu1 %1799 }
 0x127   : > { %5121 = vst [vmem:[#allocation29_spill] sm:$0xff] %v3527_v3  ;;  %v711_v13 = vadd.f32 %v710_v5, %v638_v47  ;;  %v3546_v22 = vpop.permute.xlu0 %1795 }
 0x128   : > { %5124 = vst [vmem:[#allocation32_spill] sm:$0xff] %v3546_v22 }
 0x129   : > { %v1136_v47 = vpop.f32.mrf.mxu2 }
 0x12c   : > { %1245 = vrot.lane.b32.xlu2 %v3498_v19, %s2648_s10  ;;  %1660 = vrot.lane.b32.xlu1 %v3451_v25, %s2650_s12  ;;  %v1193_v45 = vpop.f32.mrf.mxu3 }
 0x12d   : > { %1392 = vrot.lane.b32.xlu0 %v3498_v19, %s2647_s9  ;;  %v3533_v49 = vpop.permute.xlu2 %1941  ;;  %v767_v56 = vpop.f32.mrf.mxu1 }
 0x12e   : > { %5122 = vst [vmem:[#allocation30_spill] sm:$0xff] %v3533_v49  ;;  %v3538_v54 = vadd.f32 %v767_v56, %v711_v13  ;;  %v3540_v17 = vpop.permute.xlu1 %1807  ;;  %v983_v11 = vpop.f32.mrf.mxu0 }
 0x12f   : > { %5123 = vst [vmem:[#allocation31_spill] sm:$0xff] %v3540_v17  ;;  %v984_v1 = vadd.f32 %v983_v11, %v918_v42  ;;  %v3560_v27 = vpop.permute.xlu0 %1815 }
 0x130   : > { %5126 = vst [vmem:[#allocation34_spill] sm:$0xff] %v3560_v27 }
 0x134   : > { %1662 = vrot.lane.b32.xlu2 %v3498_v19, %s2650_s12  ;;  %1526 = vrot.lane.b32.xlu1 %v3498_v19, %s2646_s8  ;;  %v1197_v9 = vpop.f32.mrf.mxu3 }
 0x135   : > { %1860 = vrot.lane.b32.xlu0 %v3498_v19, %s2649_s11  ;;  %v1049_v33 = vpop.f32.mrf.mxu1 }
 0x136   : > { %v1050_v56 = vadd.f32 %v1049_v33, %v984_v1  ;;  %v3554_v13 = vpop.permute.xlu1 %1929  ;;  %v988_v42 = vpop.f32.mrf.mxu0 }
 0x137   : > { %5125 = vst [vmem:[#allocation33_spill] sm:$0xff] %v3554_v13  ;;  %v3574_v1 = vpop.permute.xlu0 %1925 }
 0x138   : > { %v1137_v57 = vadd.f32 %v1136_v47, %v1050_v56  ;;  %5127 = vst [vmem:[#allocation35_spill] sm:$0xff] %v3574_v1  ;;  %v1140_v47 = vpop.f32.mrf.mxu2 }
 0x13a   : > { %v3566_v11 = vadd.f32 %v1193_v45, %v1137_v57  ;;  %v989_v45 = vadd.f32 %v988_v42, %v3396_v51 }
 0x13c   : > { %1528 = vrot.lane.b32.xlu2 %v3523_v2, %s2646_s8  ;;  %1394 = vrot.lane.b32.xlu1 %v3523_v2, %s2647_s9  ;;  %v1201_v53 = vpop.f32.mrf.mxu3 }
 0x13d   : > { %1247 = vrot.lane.b32.xlu0 %v3523_v2, %s2648_s10  ;;  %v1055_v33 = vpop.f32.mrf.mxu1 }
 0x13e   : > { %v3576_v27 = vpop.permute.xlu1 %1937  ;;  %v1056_v57 = vadd.f32 %v1055_v33, %v989_v45  ;;  %v993_v48 = vpop.f32.mrf.mxu0 }
 0x13f   : > { %5128 = vst [vmem:[#allocation36_spill] sm:$0xff] %v3576_v27  ;;  %v994_v42 = vadd.f32 %v993_v48, %v3410_v21 }
 0x140   : > { %v1141_v49 = vadd.f32 %v1140_v47, %v1056_v57  ;;  %v1144_v20 = vpop.f32.mrf.mxu2 }
 0x142   : > { %v3594_v33 = vadd.f32 %v1197_v9, %v1141_v49 }
 0x144   : > { %1862 = vrot.lane.b32.xlu1 %v3523_v2, %s2649_s11  ;;  %1396 = vrot.lane.b32.xlu2 %v3538_v54, %s2647_s9  ;;  %v1205_v43 = vpop.f32.mrf.mxu3 }
 0x145   : > { %1664 = vrot.lane.b32.xlu0 %v3523_v2, %s2650_s12  ;;  %v1061_v8 = vpop.f32.mrf.mxu1 }
 0x146   : > { %v3552_v5 = vpop.permute.xlu2 %1516  ;;  %v1062_v45 = vadd.f32 %v1061_v8, %v994_v42  ;;  %v998_v8 = vpop.f32.mrf.mxu0 }
 0x148   : > { %v1145_v47 = vadd.f32 %v1144_v20, %v1062_v45 }
 0x14a   : > { %v3608_v49 = vadd.f32 %v1201_v53, %v1145_v47  ;;  %v999_v53 = vadd.f32 %v998_v8, %v3427_v46  ;;  %v1148_v47 = vpop.f32.mrf.mxu2 }
 0x14c   : > { %1864 = vrot.lane.b32.xlu2 %v3538_v54, %s2649_s11  ;;  %1249 = vrot.lane.b32.xlu1 %v3538_v54, %s2648_s10  ;;  %v1209_v58 = vpop.f32.mrf.mxu3 }
 0x14d   : > { %1530 = vrot.lane.b32.xlu0 %v3538_v54, %s2646_s8  ;;  %v1067_v20 = vpop.f32.mrf.mxu1 }
 0x14e   : > { %v3564_v50 = vpop.permute.xlu2 %1384  ;;  %v1068_v45 = vadd.f32 %v1067_v20, %v999_v53  ;;  %v1003_v8 = vpop.f32.mrf.mxu0 }
 0x150   : > { %v1149_v27 = vadd.f32 %v1148_v47, %v1068_v45 }
 0x152   : > { %v3635_v46 = vadd.f32 %v1205_v43, %v1149_v27  ;;  %v1004_v43 = vadd.f32 %v1003_v8, %v3446_v6  ;;  %v1152_v27 = vpop.f32.mrf.mxu2 }
 0x154   : > { %1251 = vrot.lane.b32.xlu2 %v3566_v11, %s2648_s10  ;;  %1666 = vrot.lane.b32.xlu1 %v3538_v54, %s2650_s12  ;;  %v1213_v3 = vpop.f32.mrf.mxu3 }
 0x155   : > { %1398 = vrot.lane.b32.xlu0 %v3566_v11, %s2647_s9  ;;  %v1073_v20 = vpop.f32.mrf.mxu1 }
 0x156   : > { %v3578_v56 = vpop.permute.xlu2 %1852  ;;  %v1074_v35 = vadd.f32 %v1073_v20, %v1004_v43  ;;  %v1008_v41 = vpop.f32.mrf.mxu0 }
 0x157   : > { %v1009_v8 = vadd.f32 %v1008_v41, %v3461_v12 }
 0x15a   : > { %v1156_v61 = vpop.f32.mrf.mxu2 }
 0x15c   : > { %1668 = vrot.lane.b32.xlu2 %v3566_v11, %s2650_s12  ;;  %1532 = vrot.lane.b32.xlu1 %v3566_v11, %s2646_s8  ;;  %v1217_v13 = vpop.f32.mrf.mxu3 }
 0x15d   : > { %1866 = vrot.lane.b32.xlu0 %v3566_v11, %s2649_s11  ;;  %v1079_v14 = vpop.f32.mrf.mxu1 }
 0x15e   : > { %v3587_v17 = vpop.permute.xlu2 %1656  ;;  %v3589_v15 = vpop.permute.xlu1 %1382  ;;  %v1080_v43 = vadd.f32 %v1079_v14, %v1009_v8 }
 0x15f   : > { %5129 = vst [vmem:[#allocation37_spill] sm:$0xff] %v3587_v17  ;;  %v3591_v51 = vpop.permute.xlu0 %1235  ;;  %v1013_v14 = vpop.f32.mrf.mxu0 }
 0x164   : > { %1534 = vrot.lane.b32.xlu2 %v3594_v33, %s2646_s8  ;;  %1400 = vrot.lane.b32.xlu1 %v3594_v33, %s2647_s9 }
 0x165   : > { %1253 = vrot.lane.b32.xlu0 %v3594_v33, %s2648_s10 }
 0x166   : > { %v3602_v57 = vpop.permute.xlu2 %1522  ;;  %v3604_v62 = vpop.permute.xlu1 %1850 }
 0x167   : > { %5130 = vst [vmem:[#allocation38_spill] sm:$0xff] %v3602_v57  ;;  %v3606_v21 = vpop.permute.xlu0 %1652 }
 0x16c   : > { %1402 = vrot.lane.b32.xlu2 %v3608_v49, %s2647_s9  ;;  %1868 = vrot.lane.b32.xlu1 %v3594_v33, %s2649_s11 }
 0x16d   : > { %1670 = vrot.lane.b32.xlu0 %v3594_v33, %s2650_s12 }
 0x16e   : > { %v3616_v48 = vpop.permute.xlu2 %1243  ;;  %v3618_v9 = vpop.permute.xlu1 %1654 }
 0x16f   : > { %5131 = vst [vmem:[#allocation39_spill] sm:$0xff] %v3616_v48  ;;  %v3620_v42 = vpop.permute.xlu0 %1237 }
 0x174   : > { %1870 = vrot.lane.b32.xlu2 %v3608_v49, %s2649_s11  ;;  %1255 = vrot.lane.b32.xlu1 %v3608_v49, %s2648_s10 }
 0x175   : > { %1536 = vrot.lane.b32.xlu0 %v3608_v49, %s2646_s8 }
 0x176   : > { %v3629_v40 = vpop.permute.xlu2 %1390  ;;  %v3631_v59 = vpop.permute.xlu1 %1239 }
 0x177   : > { %5132 = vst [vmem:[#allocation40_spill] sm:$0xff] %v3629_v40  ;;  %v3633_v36 = vpop.permute.xlu0 %1518 }
 0x17c   : > { %1257 = vrot.lane.b32.xlu2 %v3635_v46, %s2648_s10  ;;  %1672 = vrot.lane.b32.xlu1 %v3608_v49, %s2650_s12 }
 0x17d   : > { %1404 = vrot.lane.b32.xlu0 %v3635_v46, %s2647_s9 }
 0x17e   : > { %v3643_v53 = vpop.permute.xlu2 %1858  ;;  %v3645_v45 = vpop.permute.xlu1 %1520 }
 0x17f   : > { %5133 = vst [vmem:[#allocation41_spill] sm:$0xff] %v3643_v53  ;;  %v3647_v47 = vpop.permute.xlu0 %1386  ;;  %v1153_v53 = vadd.f32 %v1152_v27, %v1074_v35  ;;  %v1157_v35 = vadd.f32 %v1156_v61, %v1080_v43 }
 0x181   : > { %v3663_v20 = vadd.f32 %v1209_v58, %v1153_v53  ;;  %v3677_v12 = vadd.f32 %v1213_v3, %v1157_v35  ;;  %v1085_v53 = vpop.f32.mrf.mxu1  ;;  %v1014_v3 = vadd.f32 %v1013_v14, %v3475_v0  ;;  %v1160_v35 = vpop.f32.mrf.mxu2 }
 0x182   : > { %v1018_v14 = vpop.f32.mrf.mxu0 }
 0x183   : > { %5138 = vst [vmem:[#allocation46_spill] sm:$0xff] %v3677_v12  ;;  %v1086_v43 = vadd.f32 %v1085_v53, %v1014_v3 }
 0x184   : > { %1674 = vrot.lane.b32.xlu2 %v3635_v46, %s2650_s12  ;;  %1538 = vrot.lane.b32.xlu1 %v3635_v46, %s2646_s8 }
 0x185   : > { %1872 = vrot.lane.b32.xlu0 %v3635_v46, %s2649_s11 }
 0x186   : > { %v3656_v48 = vpop.permute.xlu2 %1245  ;;  %v3658_v40 = vpop.permute.xlu1 %1241 }
 0x187   : > { %5134 = vst [vmem:[#allocation42_spill] sm:$0xff] %v3656_v48  ;;  %v3660_v6 = vpop.permute.xlu0 %1854 }
 0x18c   : > { %1540 = vrot.lane.b32.xlu2 %v3663_v20, %s2646_s8  ;;  %1406 = vrot.lane.b32.xlu1 %v3663_v20, %s2647_s9 }
 0x18d   : > { %1259 = vrot.lane.b32.xlu0 %v3663_v20, %s2648_s10 }
 0x18e   : > { %v3671_v27 = vpop.permute.xlu2 %1662  ;;  %v3673_v48 = vpop.permute.xlu1 %1388 }
 0x18f   : > { %5135 = vst [vmem:[#allocation43_spill] sm:$0xff] %v3671_v27  ;;  %v3675_v41 = vpop.permute.xlu0 %1658  ;;  %v1161_v27 = vadd.f32 %v1160_v35, %v1086_v43  ;;  %v1091_v43 = vpop.f32.mrf.mxu1 }
 0x190   : > { %5136 = vst [vmem:[#allocation44_spill] sm:$0xff] %v3673_v48 }
 0x191   : > { %5137 = vst [vmem:[#allocation45_spill] sm:$0xff] %v3675_v41  ;;  %v3704_v0 = vadd.f32 %v1217_v13, %v1161_v27  ;;  %v1019_v13 = vadd.f32 %v1018_v14, %v3489_v38  ;;  %v3734_v38 = vld [vmem:[%s5002_s1] ss:$2 sm:$0x3] }
 0x192   : > { %5151 = vst [vmem:[#allocation59_spill] sm:$0xff] %v3734_v38  ;;  %v3739_v14 = vld [vmem:[%s5002_s1 + $0x1] ss:$2 sm:$0x3]  ;;  %vm1286_vm1 = vcmp.ge.s32.totalorder %v3734_v38, 1 }
 0x193   : > { %5145 = vst [vmem:[#allocation53_spill] sm:$0xff] %v3704_v0  ;;  %v1092_v27 = vadd.f32 %v1091_v43, %v1019_v13  ;;  %vm1287_vm2 = vcmp.ge.s32.totalorder %v3739_v14, 1  ;;  %vm5084_vm7 = vcmp.le.s32.totalorder %v3739_v14, 14 }
 0x194   : > { %1408 = vrot.lane.b32.xlu2 %v3677_v12, %s2647_s9  ;;  %1874 = vrot.lane.b32.xlu1 %v3663_v20, %s2649_s11  ;;  %5152 = vst [vmem:[#allocation60_spill] sm:$0xff] %v3739_v14  ;;  %vm1288_vm3 = vmand %vm1286_vm1, %vm1287_vm2 }
 0x195   : > { %1676 = vrot.lane.b32.xlu0 %v3663_v20, %s2650_s12  ;;  %vm1566_vm10 = vmand %vm1286_vm1, %vm5084_vm7 }
 0x196   : > { %v3685_v61 = vpop.permute.xlu2 %1528  ;;  %v3687_v58 = vpop.permute.xlu1 %1856 }
 0x197   : > { %5139 = vst [vmem:[#allocation47_spill] sm:$0xff] %v3685_v61  ;;  %v3689_v8 = vpop.permute.xlu0 %1524 }
 0x198   : > { %5140 = vst [vmem:[#allocation48_spill] sm:$0xff] %v3687_v58 }
 0x199   : > { %5141 = vst [vmem:[#allocation49_spill] sm:$0xff] %v3689_v8 }
 0x19c   : > { %1876 = vrot.lane.b32.xlu2 %v3677_v12, %s2649_s11  ;;  %1261 = vrot.lane.b32.xlu1 %v3677_v12, %s2648_s10 }
 0x19d   : > { %1542 = vrot.lane.b32.xlu0 %v3677_v12, %s2646_s8 }
 0x19e   : > { %v3698_v61 = vpop.permute.xlu1 %1660  ;;  %v3700_v58 = vpop.permute.xlu2 %1396 }
 0x19f   : > { %5142 = vst [vmem:[#allocation50_spill] sm:$0xff] %v3698_v61  ;;  %v3702_v8 = vpop.permute.xlu0 %1392 }
 0x1a0   : > { %5143 = vst [vmem:[#allocation51_spill] sm:$0xff] %v3700_v58  ;;  %v1164_v58 = vpop.f32.mrf.mxu2 }
 0x1a1   : > { %5144 = vst [vmem:[#allocation52_spill] sm:$0xff] %v3702_v8  ;;  %v1165_v61 = vadd.f32 %v1164_v58, %v1092_v27  ;;  %v1221_v8 = vpop.f32.mrf.mxu3  ;;  %v5155_v27 = vmov 0  }
 0x1a2   : > { %v1431_v63 = vsel %vm1286_vm1, 1, %v5155_v27 }
 0x1a3   : > { %v1433_v4 = vperm.slane %v1431_v63, 1 }
 0x1a4   : > { %1263 = vrot.lane.b32.xlu2 %v3704_v0, %s2648_s10  ;;  %1678 = vrot.lane.b32.xlu1 %v3677_v12, %s2650_s12 }
 0x1a5   : > { %1410 = vrot.lane.b32.xlu0 %v3704_v0, %s2647_s9  ;;  %vm3828_vm12 = vcmp.eq.s32.totalorder %v1433_v4, 1 }
 0x1a6   : > { %v3712_v53 = vpop.permute.xlu1 %1526  ;;  %v3714_v3 = vpop.permute.xlu2 %1864 }
 0x1a7   : > { %5146 = vst [vmem:[#allocation54_spill] sm:$0xff] %v3712_v53  ;;  %v3716_v35 = vpop.permute.xlu0 %1860 }
 0x1a8   : > { %5147 = vst [vmem:[#allocation55_spill] sm:$0xff] %v3714_v3 }
 0x1a9   : > { %5148 = vst [vmem:[#allocation56_spill] sm:$0xff] %v3716_v35  ;;  %v3729_v35 = vadd.f32 %v1221_v8, %v1165_v61  ;;  %v1267_v61 = vlaneseq }
 0x1ab   : > { %v3759_v13 = vand.u32 127, %v1267_v61 }
 0x1ac   : > { %1680 = vrot.lane.b32.xlu2 %v3704_v0, %s2650_s12  ;;  %1544 = vrot.lane.b32.xlu1 %v3704_v0, %s2646_s8 }
 0x1ad   : > { %1878 = vrot.lane.b32.xlu0 %v3704_v0, %s2649_s11  ;;  %vm1548_vm4 = vcmp.lt.s32.totalorder %v3759_v13, 15  ;;  %vm1269_vm5 = vcmp.lt.s32.totalorder %v3759_v13, 17  ;;  %vm1414_vm9 = vcmp.lt.s32.totalorder %v3759_v13, 16  ;;  %vm1684_vm13 = vcmp.lt.s32.totalorder %v3759_v13, 1 }
 0x1ae   : > { %v3725_v53 = vpop.permute.xlu1 %1394  ;;  %v1252_v3 = vpop.permute.xlu2 %1251  ;;  %vm1882_vm14 = vcmp.lt.s32.totalorder %v3759_v13, 127 }
 0x1af   : > { %5149 = vst [vmem:[#allocation57_spill] sm:$0xff] %v3725_v53  ;;  %v3727_v57 = vpop.permute.xlu0 %1247  ;;  %v1289_v53 = vsel %vm1288_vm3, 1, %v5155_v27 }
 0x1b0   : > { %5150 = vst [vmem:[#allocation58_spill] sm:$0xff] %v3727_v57  ;;  %v1290_v57 = vperm.slane %v1289_v53, 0  ;;  %v1291_v17 = vperm.slane %v1289_v53, 1  ;;  %v1278_v53 = vsel %vm1269_vm5, %v1252_v3, %v3591_v51 }
 0x1b2   : > { %vm3787_vm6 = vcmp.eq.s32.totalorder %v1290_v57, 1  ;;  %vm3792_vm8 = vcmp.eq.s32.totalorder %v1291_v17, 1  ;;  %v1701_v17 = vsel %vm1287_vm2, 1, %v5155_v27 }
 0x1b3   : > { %v1702_v38 = vperm.slane %v1701_v17, 0  ;;  %v1703_v0 = vperm.slane %v1701_v17, 1 }
 0x1b4   : > { %1546 = vrot.lane.b32.xlu2 %v3729_v35, %s2646_s8  ;;  %1412 = vrot.lane.b32.xlu1 %v3729_v35, %s2647_s9 }
 0x1b5   : > { %1265 = vrot.lane.b32.xlu0 %v3729_v35, %s2648_s10  ;;  %vm3874_vm15 = vcmp.eq.s32.totalorder %v1702_v38, 1  ;;  %vm3878_vm0 = vcmp.eq.s32.totalorder %v1703_v0, 1  ;;  %v2652_v38 = vmov 6  }
 0x1b6   : > { %v3749_v58 = vpop.permute.xlu1 %1862  ;;  %v3751_v8 = vpop.permute.xlu2 %1668  ;;  %2599 = vset.pattern.permute.xlu2 %v2652_v38 }
 0x1b7   : > { %5153 = vst [vmem:[#allocation61_spill] sm:$0xff] %v3749_v58  ;;  %v3753_v43 = vpop.permute.xlu0 %1664 }
 0x1b8   : > { %5154 = vst [vmem:[#allocation62_spill] sm:$0xff] %v3753_v43 }
 0x1bc   : > { %1984 = vrot.lane.b32.xlu2 %v3369_v44, %s2651_s21  ;;  %1880 = vrot.lane.b32.xlu1 %v3729_v35, %s2649_s11 }
 0x1bd   : > { %1682 = vrot.lane.b32.xlu0 %v3729_v35, %s2650_s12 }
 0x1be   : > { %v1535_v58 = vpop.permute.xlu2 %1534  ;;  %v3769_v43 = vpop.permute.xlu1 %1249 }
 0x1bf   : > { %5156 = vst [vmem:[#allocation63_spill] sm:$0xff] %v3769_v43  ;;  %v3771_v61 = vpop.permute.xlu0 %1530  ;;  %v3776_v41 = vsel %vm1548_vm4, %v3633_v36, %v1535_v58  ;;  %v3781_v22 = vsel %vm1548_vm4, %v1535_v58, %v3633_v36  ;;  %v1432_v43 = vperm.slane %v1431_v63, 0  ;;  %v1270_v36 = vsel %vm1269_vm5, %v3591_v51, %v1252_v3  ;;  %v3807_v63 = vld [vmem:[%s5004_s3 + $0x38] sm:$0xff]  ;;  %v3817_v51 = vld [vmem:[%s5004_s3 + $0x30] sm:$0xff] }
 0x1c0   : > { %5157 = vst [vmem:[#allocation64_spill] sm:$0xff] %v3771_v61 }
 0x1c1   : > { %5162 = vst [vmem:[#allocation65_spill] sm:$0xff] %v3807_v63  ;;  %vm3824_vm11 = vcmp.eq.s32.totalorder %v1432_v43, 1 }
 0x1c2   : > { %5163 = vst [vmem:[#allocation66_spill] sm:$0xff] %v3817_v51 }
 0x1c4   : > { %1990 = vrot.lane.b32.xlu2 %v3436_v34, %s2651_s21  ;;  %1949 = vperm.xlu1 %2596, %v3807_v63   ;;  %v1294_v34 = vsel %vm3787_vm6, %v1278_v53, 0.0 }
 0x1c5   : > { %1945 = vperm.xlu0 %2595, %v3817_v51   ;;  %v1295_v51 = vsel %vm3792_vm8, %v1270_v36, 0.0  ;;  %v1350_v17 = vmul.f32 %v3286_v30, %v1294_v34 }
 0x1c6   : > { %v1403_v58 = vpop.permute.xlu2 %1402  ;;  %v3832_v63 = vpop.permute.xlu1 %1666 }
 0x1c7   : > { %5168 = vst [vmem:[#allocation67_spill] sm:$0xff] %v3832_v63  ;;  %v1399_v48 = vpop.permute.xlu0 %1398  ;;  %v3841_v43 = vsel %vm1414_vm9, %v3647_v47, %v1403_v58  ;;  %v3846_v4 = vsel %vm1414_vm9, %v1403_v58, %v3647_v47  ;;  %v1567_v63 = vsel %vm1566_vm10, 1, %v5155_v27  ;;  %v1899_v47 = vsel %vm5084_vm7, 1, %v5155_v27 }
 0x1c8   : > { %v1415_v53 = vsel %vm1414_vm9, %v3589_v15, %v1399_v48  ;;  %v1423_v36 = vsel %vm1414_vm9, %v1399_v48, %v3589_v15  ;;  %v1351_v58 = vmul.f32 %v3286_v30, %v1295_v51  ;;  %v1568_v48 = vperm.slane %v1567_v63, 0 }
 0x1c9   : > { %v1436_v12 = vsel %vm3824_vm11, %v1423_v36, 0.0  ;;  %v1437_v28 = vsel %vm3828_vm12, %v1415_v53, 0.0  ;;  %v1569_v34 = vperm.slane %v1567_v63, 1  ;;  %v1900_v30 = vperm.slane %v1899_v47, 0 }
 0x1ca   : > { %v1484_v39 = vmul.f32 %v3277_v37, %v1436_v12  ;;  %v1485_v15 = vmul.f32 %v3277_v37, %v1437_v28  ;;  %v1901_v12 = vperm.slane %v1899_v47, 1  ;;  %v1693_v63 = vsel %vm1684_vm13, %v3751_v8, %v3606_v21 }
 0x1cb   : > { %vm3906_vm1 = vcmp.eq.s32.totalorder %v1568_v48, 1  ;;  %vm3910_vm3 = vcmp.eq.s32.totalorder %v1569_v34, 1  ;;  %vm3914_vm10 = vcmp.eq.s32.totalorder %v1900_v30, 1 }
 0x1cc   : > { %v1500_v1 = vadd.f32 %v1484_v39, %v1350_v17  ;;  %v1501_v36 = vadd.f32 %v1485_v15, %v1351_v58  ;;  %1996 = vrot.lane.b32.xlu2 %v3523_v2, %s2651_s21  ;;  %1988 = vrot.lane.b32.xlu1 %v3419_v18, %s2651_s21  ;;  %v1685_v39 = vsel %vm1684_vm13, %v3606_v21, %v3751_v8  ;;  %vm3918_vm7 = vcmp.eq.s32.totalorder %v1901_v12, 1 }
 0x1cd   : > { %1986 = vrot.lane.b32.xlu0 %v3386_v55, %s2651_s21  ;;  %2598 = vset.pattern.permute.xlu1 %v2652_v38  ;;  %v1707_v48 = vsel %vm3878_vm0, %v1685_v39, 0.0 }
 0x1ce   : > { %v1871_v51 = vpop.permute.xlu2 %1870  ;;  %v1533_v53 = vpop.permute.xlu1 %1532  ;;  %2597 = vset.pattern.permute.xlu0 %v2652_v38 }
 0x1cf   : > { %v1867_v47 = vpop.permute.xlu0 %1866  ;;  %v3893_v0 = vsel %vm1882_vm14, %v3660_v6, %v1871_v51  ;;  %v3898_v17 = vsel %vm1882_vm14, %v1871_v51, %v3660_v6  ;;  %v1549_v21 = vsel %vm1548_vm4, %v3552_v5, %v1533_v53  ;;  %v1557_v8 = vsel %vm1548_vm4, %v1533_v53, %v3552_v5 }
 0x1d0   : > { %v1706_v5 = vsel %vm3874_vm15, %v1693_v63, 0.0  ;;  %v1572_v34 = vsel %vm3906_vm1, %v1557_v8, 0.0  ;;  %v1573_v53 = vsel %vm3910_vm3, %v1549_v21, 0.0  ;;  %v1883_v30 = vsel %vm1882_vm14, %v3604_v62, %v1867_v47 }
 0x1d1   : > { %v1891_v12 = vsel %vm1882_vm14, %v1867_v47, %v3604_v62  ;;  %v1620_v38 = vmul.f32 %v3471_v31, %v1572_v34  ;;  %v1621_v63 = vmul.f32 %v3471_v31, %v1573_v53  ;;  %v1754_v39 = vmul.f32 %v3463_v10, %v1706_v5 }
 0x1d2   : > { %v1755_v21 = vmul.f32 %v3463_v10, %v1707_v48  ;;  %v1904_v62 = vsel %vm3914_vm10, %v1883_v30, 0.0  ;;  %v1905_v31 = vsel %vm3918_vm7, %v1891_v12, 0.0  ;;  %v1818_v53 = vmul.f32 %v3512_v32, %v3369_v44 }
 0x1d3   : > { %v1636_v8 = vadd.f32 %v1620_v38, %v1500_v1  ;;  %v1637_v27 = vadd.f32 %v1621_v63, %v1501_v36  ;;  %v1819_v1 = vmul.f32 %v3512_v32, %v3566_v11  ;;  %v1574_v36 = vsel %vm3906_vm1, %v3781_v22, 0.0 }
 0x1d4   : > { %2002 = vrot.lane.b32.xlu2 %v3594_v33, %s2651_s21  ;;  %1994 = vrot.lane.b32.xlu1 %v3498_v19, %s2651_s21  ;;  %v1575_v48 = vsel %vm3910_vm3, %v3776_v41, 0.0  ;;  %v1952_v12 = vmul.f32 %v3494_v16, %v1904_v62  ;;  %v1953_v32 = vmul.f32 %v3494_v16, %v1905_v31 }
 0x1d5   : > { %1992 = vrot.lane.b32.xlu0 %v3451_v25, %s2651_s21  ;;  %v1770_v5 = vadd.f32 %v1754_v39, %v1636_v8  ;;  %v1771_v14 = vadd.f32 %v1755_v21, %v1637_v27 }
 0x1d6   : > { %v3950_v47 = vpop.permute.xlu2 %1257  ;;  %v1401_v34 = vpop.permute.xlu1 %1400 }
 0x1d7   : > { %v1254_v10 = vpop.permute.xlu0 %1253  ;;  %v1416_v39 = vsel %vm1414_vm9, %v3564_v50, %v1401_v34  ;;  %v1834_v8 = vadd.f32 %v1818_v53, %v1770_v5  ;;  %v1835_v62 = vadd.f32 %v1819_v1, %v1771_v14  ;;  %v1622_v53 = vmul.f32 %v3398_v26, %v1574_v36 }
 0x1d8   : > { %v1271_v30 = vsel %vm1269_vm5, %v3620_v42, %v1254_v10  ;;  %v1279_v27 = vsel %vm1269_vm5, %v1254_v10, %v3620_v42  ;;  %v1424_v42 = vsel %vm1414_vm9, %v1401_v34, %v3564_v50  ;;  %v1439_v21 = vsel %vm3828_vm12, %v1416_v39, 0.0 }
 0x1d9   : > { %v1296_v38 = vsel %vm3787_vm6, %v1279_v27, 0.0  ;;  %v1297_v22 = vsel %vm3792_vm8, %v1271_v30, 0.0  ;;  %v1438_v16 = vsel %vm3824_vm11, %v1424_v42, 0.0  ;;  %v3994_v50 = vadd.f32 %v1952_v12, %v1834_v8 }
 0x1da   : > { %v1352_v41 = vmul.f32 %v3237_v60, %v1296_v38  ;;  %v1353_v63 = vmul.f32 %v3237_v60, %v1297_v22  ;;  %v1486_v31 = vmul.f32 %v3432_v52, %v1438_v16  ;;  %v1487_v60 = vmul.f32 %v3432_v52, %v1439_v21 }
 0x1db   : > { %5181 = vst [vmem:[#allocation68_spill] sm:$0xff] %v3994_v50  ;;  %v3996_v34 = vadd.f32 %v1953_v32, %v1835_v62  ;;  %v1623_v14 = vmul.f32 %v3398_v26, %v1575_v48  ;;  %v1820_v42 = vmul.f32 %v3449_v24, %v3386_v55  ;;  %v1441_v16 = vsel %vm3828_vm12, %v3841_v43, 0.0 }
 0x1dc   : > { %2008 = vrot.lane.b32.xlu2 %v3663_v20, %s2651_s21  ;;  %2000 = vrot.lane.b32.xlu1 %v3566_v11, %s2651_s21  ;;  %v1502_v5 = vadd.f32 %v1486_v31, %v1352_v41  ;;  %v1503_v10 = vadd.f32 %v1487_v60, %v1353_v63 }
 0x1dd   : > { %1998 = vrot.lane.b32.xlu0 %v3538_v54, %s2651_s21  ;;  %5182 = vst [vmem:[#allocation69_spill] sm:$0xff] %v3996_v34 }
 0x1de   : > { %v4000_v52 = vpop.permute.xlu2 %1674  ;;  %v1869_v1 = vpop.permute.xlu1 %1868  ;;  %v1638_v27 = vadd.f32 %v1622_v53, %v1502_v5  ;;  %v1639_v38 = vadd.f32 %v1623_v14, %v1503_v10  ;;  %v1489_v5 = vmul.f32 %v3337_v29, %v1441_v16  ;;  %v5188_v16 = vld [vmem:[#allocation46_spill] sm:$0xff] }
 0x1df   : > { %v1671_v30 = vpop.permute.xlu0 %1670  ;;  %v1884_v41 = vsel %vm1882_vm14, %v3578_v56, %v1869_v1  ;;  %v1892_v63 = vsel %vm1882_vm14, %v1869_v1, %v3578_v56  ;;  %v1821_v56 = vmul.f32 %v3449_v24, %v3594_v33 }
 0x1e0   : > { %v1686_v22 = vsel %vm1684_vm13, %v3618_v9, %v1671_v30  ;;  %v1694_v12 = vsel %vm1684_vm13, %v1671_v30, %v3618_v9  ;;  %v1906_v21 = vsel %vm3914_vm10, %v1884_v41, 0.0  ;;  %v1907_v8 = vsel %vm3918_vm7, %v1892_v63, 0.0 }
 0x1e1   : > { %v1708_v36 = vsel %vm3874_vm15, %v1694_v12, 0.0  ;;  %v1709_v26 = vsel %vm3878_vm0, %v1686_v22, 0.0  ;;  %v1273_v30 = vsel %vm1269_vm5, %v3658_v40, %v3950_v47  ;;  %v1281_v22 = vsel %vm1269_vm5, %v3950_v47, %v3658_v40  ;;  %v4084_v40 = vld [vmem:[%s5004_s3 + $0x10] sm:$0xff] }
 0x1e2   : > { %v1756_v48 = vmul.f32 %v3384_v23, %v1708_v36  ;;  %v1757_v32 = vmul.f32 %v3384_v23, %v1709_v26  ;;  %v1440_v23 = vsel %vm3824_vm11, %v3846_v4, 0.0  ;;  %v5184_v26 = vld [vmem:[#allocation13_spill] sm:$0xff] }
 0x1e3   : > { %v1488_v14 = vmul.f32 %v3337_v29, %v1440_v23 }
 0x1e4   : > { %v1772_v39 = vadd.f32 %v1756_v48, %v1638_v27  ;;  %v1773_v9 = vadd.f32 %v1757_v32, %v1639_v38  ;;  %2014 = vrot.lane.b32.xlu2 %v3729_v35, %s2651_s21  ;;  %2006 = vrot.lane.b32.xlu1 %v3635_v46, %s2651_s21 }
 0x1e5   : > { %2004 = vrot.lane.b32.xlu0 %v3608_v49, %s2651_s21 }
 0x1e6   : > { %v4040_v4 = vpop.permute.xlu2 %1540  ;;  %v1256_v62 = vpop.permute.xlu1 %1255  ;;  %v1836_v53 = vadd.f32 %v1820_v42, %v1772_v39  ;;  %v1837_v24 = vadd.f32 %v1821_v56, %v1773_v9  ;;  %v5187_v39 = vld [vmem:[#allocation8_spill] sm:$0xff]  ;;  %v5189_v56 = vld [vmem:[#allocation53_spill] sm:$0xff] }
 0x1e7   : > { %v1537_v31 = vpop.permute.xlu0 %1536  ;;  %v1272_v43 = vsel %vm1269_vm5, %v3631_v59, %v1256_v62  ;;  %v1280_v60 = vsel %vm1269_vm5, %v1256_v62, %v3631_v59  ;;  %v5183_v59 = vld [vmem:[#allocation35_spill] sm:$0xff] }
 0x1e8   : > { %v1551_v10 = vsel %vm1548_vm4, %v3645_v45, %v1537_v31  ;;  %v1559_v1 = vsel %vm1548_vm4, %v1537_v31, %v3645_v45  ;;  %v1954_v27 = vmul.f32 %v5183_v59, %v1906_v21  ;;  %v1955_v38 = vmul.f32 %v5183_v59, %v1907_v8 }
 0x1e9   : > { %v1576_v29 = vsel %vm3906_vm1, %v1559_v1, 0.0  ;;  %v1577_v45 = vsel %vm3910_vm3, %v1551_v10, 0.0  ;;  %v1298_v12 = vsel %vm3787_vm6, %v1280_v60, 0.0  ;;  %v1299_v36 = vsel %vm3792_vm8, %v1272_v43, 0.0  ;;  %v5191_v10 = vld [vmem:[#allocation5_spill] sm:$0xff] }
 0x1ea   : > { %v1354_v48 = vmul.f32 %v5184_v26, %v1298_v12  ;;  %v1355_v32 = vmul.f32 %v5184_v26, %v1299_v36  ;;  %v4076_v41 = vadd.f32 %v1954_v27, %v1836_v53  ;;  %v4078_v63 = vadd.f32 %v1955_v38, %v1837_v24  ;;  %v5190_v24 = vld [vmem:[#allocation44_spill] sm:$0xff] }
 0x1eb   : > { %v1624_v9 = vmul.f32 %v5187_v39, %v1576_v29  ;;  %v1625_v47 = vmul.f32 %v5187_v39, %v1577_v45  ;;  %v1300_v21 = vsel %vm3787_vm6, %v1281_v22, 0.0  ;;  %v1301_v8 = vsel %vm3792_vm8, %v1273_v30, 0.0  ;;  %v5192_v38 = vld [vmem:[#allocation4_spill] sm:$0xff]  ;;  %v5193_v45 = vld [vmem:[#allocation37_spill] sm:$0xff] }
 0x1ec   : > { %5185 = vst [vmem:[#allocation35_spill] sm:$0xff] %v4076_v41  ;;  %2065 = vperm.xlu2 %2599, %v4084_v40   ;;  %v1504_v42 = vadd.f32 %v1488_v14, %v1354_v48  ;;  %v1505_v23 = vadd.f32 %v1489_v5, %v1355_v32  ;;  %2012 = vrot.lane.b32.xlu1 %v5189_v56, %s2651_s21 }
 0x1ed   : > { %5186 = vst [vmem:[#allocation13_spill] sm:$0xff] %v4078_v63  ;;  %2010 = vrot.lane.b32.xlu0 %v5188_v16, %s2651_s21  ;;  %v1356_v1 = vmul.f32 %v5191_v10, %v1300_v21  ;;  %v1357_v59 = vmul.f32 %v5191_v10, %v1301_v8  ;;  %v5195_v21 = vld [vmem:[#allocation32_spill] sm:$0xff] }
 0x1ee   : > { %v4096_v62 = vpop.permute.xlu2 %1408  ;;  %v1673_v31 = vpop.permute.xlu1 %1672  ;;  %v1640_v60 = vadd.f32 %v1624_v9, %v1504_v42  ;;  %v1641_v53 = vadd.f32 %v1625_v47, %v1505_v23  ;;  %v5194_v9 = vld [vmem:[#allocation26_spill] sm:$0xff]  ;;  %v1822_v8 = vmul.f32 %v5195_v21, %v3419_v18 }
 0x1ef   : > { %v1405_v43 = vpop.permute.xlu0 %1404  ;;  %v1687_v12 = vsel %vm1684_vm13, %v5193_v45, %v1673_v31  ;;  %v1695_v36 = vsel %vm1684_vm13, %v1673_v31, %v5193_v45  ;;  %v4127_v23 = vld [vmem:[%s5004_s3 + $0x20] sm:$0xff]  ;;  %v1823_v31 = vmul.f32 %v5195_v21, %v3608_v49 }
 0x1f0   : > { %v1418_v14 = vsel %vm1414_vm9, %v5190_v24, %v1405_v43  ;;  %v1426_v5 = vsel %vm1414_vm9, %v1405_v43, %v5190_v24  ;;  %v1710_v26 = vsel %vm3874_vm15, %v1695_v36, 0.0  ;;  %v1711_v48 = vsel %vm3878_vm0, %v1687_v12, 0.0  ;;  %v4137_v43 = vld [vmem:[%s5004_s3] sm:$0xff]  ;;  %v4143_v24 = vld [vmem:[%s5004_s3 + $0x8] sm:$0xff] }
 0x1f1   : > { %v1442_v30 = vsel %vm3824_vm11, %v1426_v5, 0.0  ;;  %v1443_v27 = vsel %vm3828_vm12, %v1418_v14, 0.0  ;;  %v1758_v47 = vmul.f32 %v5194_v9, %v1710_v26  ;;  %v1759_v42 = vmul.f32 %v5194_v9, %v1711_v48  ;;  %v5197_v12 = vld [vmem:[#allocation38_spill] sm:$0xff]  ;;  %v5200_v9 = vld [vmem:[#allocation29_spill] sm:$0xff] }
 0x1f2   : > { %v1490_v29 = vmul.f32 %v5192_v38, %v1442_v30  ;;  %v1491_v22 = vmul.f32 %v5192_v38, %v1443_v27  ;;  %v1908_v14 = vsel %vm3914_vm10, %v3893_v0, 0.0  ;;  %v1909_v5 = vsel %vm3918_vm7, %v3898_v17, 0.0  ;;  %v5196_v27 = vld [vmem:[#allocation45_spill] sm:$0xff]  ;;  %v5199_v48 = vld [vmem:[#allocation18_spill] sm:$0xff] }
 0x1f3   : > { %v1774_v10 = vadd.f32 %v1758_v47, %v1640_v60  ;;  %v1688_v38 = vsel %vm1684_vm13, %v5196_v27, %v4000_v52  ;;  %v1824_v47 = vmul.f32 %v5200_v9, %v5199_v48 }
 0x1f4   : > { %v1506_v32 = vadd.f32 %v1490_v29, %v1356_v1  ;;  %v1507_v39 = vadd.f32 %v1491_v22, %v1357_v59  ;;  %2073 = vperm.xlu2 %2599, %v4127_v23   ;;  %2061 = vperm.xlu1 %2598, %v4143_v24   ;;  %v1775_v1 = vadd.f32 %v1759_v42, %v1641_v53  ;;  %v5198_v53 = vld [vmem:[#allocation33_spill] sm:$0xff]  ;;  %v1713_v42 = vsel %vm3878_vm0, %v1688_v38, 0.0 }
 0x1f5   : > { %2057 = vperm.xlu0 %2597, %v4137_v43   ;;  %v1696_v29 = vsel %vm1684_vm13, %v4000_v52, %v5196_v27  ;;  %v1838_v22 = vadd.f32 %v1822_v8, %v1774_v10  ;;  %v1956_v36 = vmul.f32 %v5198_v53, %v1908_v14  ;;  %v1957_v26 = vmul.f32 %v5198_v53, %v1909_v5  ;;  %v5203_v5 = vld [vmem:[#allocation48_spill] sm:$0xff]  ;;  %v5207_v53 = vld [vmem:[#allocation49_spill] sm:$0xff] }
 0x1f6   : > { %v4152_v59 = vpop.permute.xlu2 %1876  ;;  %v1539_v30 = vpop.permute.xlu1 %1538  ;;  %v1839_v45 = vadd.f32 %v1823_v31, %v1775_v1  ;;  %v1712_v52 = vsel %vm3874_vm15, %v1696_v29, 0.0  ;;  %v5205_v29 = vld [vmem:[#allocation65_spill] sm:$0xff] }
 0x1f7   : > { %v1873_v0 = vpop.permute.xlu0 %1872  ;;  %v1552_v17 = vsel %vm1548_vm4, %v5197_v12, %v1539_v30  ;;  %v1560_v60 = vsel %vm1548_vm4, %v1539_v30, %v5197_v12  ;;  %v4180_v31 = vadd.f32 %v1956_v36, %v1838_v22  ;;  %v5204_v30 = vld [vmem:[#allocation16_spill] sm:$0xff]  ;;  %v5206_v12 = vld [vmem:[#allocation22_spill] sm:$0xff]  ;;  %v1553_v36 = vsel %vm1548_vm4, %v5207_v53, %v4040_v4 }
 0x1f8   : > { %v1578_v21 = vsel %vm3906_vm1, %v1560_v60, 0.0  ;;  %v1579_v8 = vsel %vm3910_vm3, %v1552_v17, 0.0  ;;  %v4182_v14 = vadd.f32 %v1957_v26, %v1839_v45  ;;  %v1886_v10 = vsel %vm1882_vm14, %v5203_v5, %v1873_v0  ;;  %v4198_v45 = vld [vmem:[%s5004_s3 + $0x28] sm:$0xff] }
 0x1f9   : > { %5201 = vst [vmem:[#allocation8_spill] sm:$0xff] %v4180_v31  ;;  %v1894_v1 = vsel %vm1882_vm14, %v1873_v0, %v5203_v5  ;;  %v1626_v27 = vmul.f32 %v5204_v30, %v1578_v21  ;;  %v1627_v38 = vmul.f32 %v5204_v30, %v1579_v8  ;;  %v1760_v17 = vmul.f32 %v5206_v12, %v1712_v52  ;;  %v4204_v0 = vld [vmem:[%s5004_s3 + $0x18] sm:$0xff] }
 0x1fa   : > { %5202 = vst [vmem:[#allocation46_spill] sm:$0xff] %v4182_v14  ;;  %v1761_v22 = vmul.f32 %v5206_v12, %v1713_v42  ;;  %v1825_v60 = vmul.f32 %v5200_v9, %v3635_v46  ;;  %v1561_v26 = vsel %vm1548_vm4, %v4040_v4, %v5207_v53  ;;  %v1910_v5 = vsel %vm3914_vm10, %v1886_v10, 0.0  ;;  %v5208_v12 = vld [vmem:[#allocation40_spill] sm:$0xff] }
 0x1fb   : > { %v1642_v52 = vadd.f32 %v1626_v27, %v1506_v32  ;;  %v1643_v42 = vadd.f32 %v1627_v38, %v1507_v39  ;;  %v1911_v9 = vsel %vm3918_vm7, %v1894_v1, 0.0  ;;  %v5209_v27 = vld [vmem:[#allocation39_spill] sm:$0xff]  ;;  %v1580_v1 = vsel %vm3906_vm1, %v1561_v26, 0.0  ;;  %v5229_v14 = vld [vmem:[#allocation24_spill] sm:$0xff] }
 0x1fc   : > { %2085 = vperm.xlu2 %2599, %v5205_v29   ;;  %2069 = vperm.xlu1 %2598, %v4204_v0   ;;  %v1581_v53 = vsel %vm3910_vm3, %v1553_v36, 0.0 }
 0x1fd   : > { %2077 = vperm.xlu0 %2597, %v4198_v45   ;;  %v1776_v32 = vadd.f32 %v1760_v17, %v1642_v52  ;;  %v1777_v39 = vadd.f32 %v1761_v22, %v1643_v42  ;;  %v5210_v22 = vld [vmem:[#allocation27_spill] sm:$0xff] }
 0x1fe   : > { %v4217_v21 = vpop.permute.xlu2 %1263  ;;  %v1407_v8 = vpop.permute.xlu1 %1406  ;;  %v1958_v52 = vmul.f32 %v5210_v22, %v1910_v5  ;;  %v1959_v42 = vmul.f32 %v5210_v22, %v1911_v9  ;;  %v5217_v22 = vld [vmem:[#allocation52_spill] sm:$0xff] }
 0x1ff   : > { %v1260_v30 = vpop.permute.xlu0 %1259  ;;  %v1419_v63 = vsel %vm1414_vm9, %v5208_v12, %v1407_v8  ;;  %v1427_v4 = vsel %vm1414_vm9, %v1407_v8, %v5208_v12  ;;  %v5211_v8 = vld [vmem:[#allocation2_spill] sm:$0xff]  ;;  %v1841_v34 = vadd.f32 %v1825_v60, %v1777_v39 }
 0x200   : > { %v1274_v38 = vsel %vm1269_vm5, %v5209_v27, %v1260_v30  ;;  %v1282_v10 = vsel %vm1269_vm5, %v1260_v30, %v5209_v27  ;;  %v1444_v26 = vsel %vm3824_vm11, %v1427_v4, 0.0  ;;  %v1445_v36 = vsel %vm3828_vm12, %v1419_v63, 0.0  ;;  %v5216_v63 = vld [vmem:[#allocation9_spill] sm:$0xff] }
 0x201   : > { %v1302_v41 = vsel %vm3787_vm6, %v1282_v10, 0.0  ;;  %v1303_v17 = vsel %vm3792_vm8, %v1274_v38, 0.0  ;;  %v1840_v27 = vadd.f32 %v1824_v47, %v1776_v32  ;;  %v5212_v10 = vld [vmem:[#allocation10_spill] sm:$0xff]  ;;  %v4260_v9 = vadd.f32 %v1959_v42, %v1841_v34 }
 0x202   : > { %v1358_v12 = vmul.f32 %v5211_v8, %v1302_v41  ;;  %v1359_v30 = vmul.f32 %v5211_v8, %v1303_v17  ;;  %v1492_v50 = vmul.f32 %v5212_v10, %v1444_v26  ;;  %v1493_v38 = vmul.f32 %v5212_v10, %v1445_v36  ;;  %v5213_v41 = vld [vmem:[#allocation66_spill] sm:$0xff] }
 0x203   : > { %v4258_v5 = vadd.f32 %v1958_v52, %v1840_v27  ;;  %5215 = vst [vmem:[#allocation44_spill] sm:$0xff] %v4260_v9  ;;  %v1628_v47 = vmul.f32 %v5216_v63, %v1580_v1  ;;  %v1629_v60 = vmul.f32 %v5216_v63, %v1581_v53  ;;  %v1428_v8 = vsel %vm1414_vm9, %v4096_v62, %v5217_v22  ;;  %v5218_v27 = vld [vmem:[#allocation50_spill] sm:$0xff]  ;;  %v5220_v63 = vld [vmem:[#allocation41_spill] sm:$0xff] }
 0x204   : > { %2124 = vrot.lane.b32.xlu2 %v3419_v18, %s2653_s13  ;;  %2081 = vperm.xlu1 %2598, %v5213_v41   ;;  %v1508_v4 = vadd.f32 %v1492_v50, %v1358_v12  ;;  %v1509_v32 = vadd.f32 %v1493_v38, %v1359_v30  ;;  %v1420_v42 = vsel %vm1414_vm9, %v5217_v22, %v4096_v62  ;;  %v5219_v12 = vld [vmem:[#allocation14_spill] sm:$0xff]  ;;  %v1446_v38 = vsel %vm3824_vm11, %v1428_v8, 0.0  ;;  %v5221_v62 = vld [vmem:[#allocation21_spill] sm:$0xff] }
 0x205   : > { %2120 = vrot.lane.b32.xlu0 %v3369_v44, %s2653_s13  ;;  %5214 = vst [vmem:[#allocation53_spill] sm:$0xff] %v4258_v5  ;;  %v1826_v22 = vmul.f32 %v5221_v62, %v3451_v25  ;;  %v5222_v8 = vld [vmem:[#allocation6_spill] sm:$0xff] }
 0x206   : > { %v4264_v39 = vpop.permute.xlu2 %1680  ;;  %v1875_v17 = vpop.permute.xlu1 %1874  ;;  %v1644_v36 = vadd.f32 %v1628_v47, %v1508_v4  ;;  %v1645_v52 = vadd.f32 %v1629_v60, %v1509_v32 }
 0x207   : > { %v1677_v26 = vpop.permute.xlu0 %1676  ;;  %v1887_v47 = vsel %vm1882_vm14, %v5220_v63, %v1875_v17  ;;  %v1895_v60 = vsel %vm1882_vm14, %v1875_v17, %v5220_v63  ;;  %v1827_v17 = vmul.f32 %v5221_v62, %v3663_v20  ;;  %v5225_v62 = vld [vmem:[#allocation54_spill] sm:$0xff] }
 0x208   : > { %v1689_v34 = vsel %vm1684_vm13, %v5218_v27, %v1677_v26  ;;  %v1697_v50 = vsel %vm1684_vm13, %v1677_v26, %v5218_v27  ;;  %v1447_v26 = vsel %vm3828_vm12, %v1420_v42, 0.0  ;;  %v1913_v27 = vsel %vm3918_vm7, %v1895_v60, 0.0  ;;  %v5223_v42 = vld [vmem:[#allocation42_spill] sm:$0xff] }
 0x209   : > { %v1714_v1 = vsel %vm3874_vm15, %v1697_v50, 0.0  ;;  %v1715_v53 = vsel %vm3878_vm0, %v1689_v34, 0.0  ;;  %v1495_v63 = vmul.f32 %v5222_v8, %v1447_v26 }
 0x20a   : > { %v1762_v30 = vmul.f32 %v5219_v12, %v1714_v1  ;;  %v1763_v10 = vmul.f32 %v5219_v12, %v1715_v53  ;;  %v2654_v1 = vmov 7  }
 0x20b   : > { %2601 = vset.pattern.permute.xlu2 %v2654_v1  ;;  %2602 = vset.pattern.permute.xlu0 %v2654_v1 }
 0x20c   : > { %v1778_v4 = vadd.f32 %v1762_v30, %v1644_v36  ;;  %v1779_v32 = vadd.f32 %v1763_v10, %v1645_v52  ;;  %2130 = vrot.lane.b32.xlu2 %v3498_v19, %s2653_s13  ;;  %2122 = vrot.lane.b32.xlu1 %v3386_v55, %s2653_s13  ;;  %v1494_v36 = vmul.f32 %v5222_v8, %v1446_v38  ;;  %v1912_v52 = vsel %vm3914_vm10, %v1887_v47, 0.0  ;;  %v5224_v47 = vld [vmem:[#allocation56_spill] sm:$0xff] }
 0x20d   : > { %2126 = vrot.lane.b32.xlu0 %v5199_v48, %s2653_s13  ;;  %2600 = vset.pattern.permute.xlu1 %v2654_v1  ;;  %v1888_v60 = vsel %vm1882_vm14, %v5224_v47, %v4152_v59 }
 0x20e   : > { %v4311_v34 = vpop.permute.xlu2 %1546  ;;  %v1262_v50 = vpop.permute.xlu1 %1261  ;;  %v1842_v10 = vadd.f32 %v1826_v22, %v1778_v4  ;;  %v1843_v38 = vadd.f32 %v1827_v17, %v1779_v32  ;;  %v5227_v32 = vld [vmem:[#allocation36_spill] sm:$0xff] }
 0x20f   : > { %v1543_v53 = vpop.permute.xlu0 %1542  ;;  %v1275_v12 = vsel %vm1269_vm5, %v5223_v42, %v1262_v50  ;;  %v1283_v30 = vsel %vm1269_vm5, %v1262_v50, %v5223_v42  ;;  %v5226_v50 = vld [vmem:[#allocation58_spill] sm:$0xff]  ;;  %v1960_v22 = vmul.f32 %v5227_v32, %v1912_v52  ;;  %v1961_v26 = vmul.f32 %v5227_v32, %v1913_v27  ;;  %v5228_v52 = vld [vmem:[#allocation7_spill] sm:$0xff] }
 0x210   : > { %v1554_v9 = vsel %vm1548_vm4, %v5225_v62, %v1543_v53  ;;  %v1562_v5 = vsel %vm1548_vm4, %v1543_v53, %v5225_v62  ;;  %v1276_v4 = vsel %vm1269_vm5, %v5226_v50, %v4217_v21  ;;  %v1284_v8 = vsel %vm1269_vm5, %v4217_v21, %v5226_v50 }
 0x211   : > { %v1582_v17 = vsel %vm3906_vm1, %v1562_v5, 0.0  ;;  %v1583_v1 = vsel %vm3910_vm3, %v1554_v9, 0.0  ;;  %v1304_v53 = vsel %vm3787_vm6, %v1283_v30, 0.0  ;;  %v1305_v42 = vsel %vm3792_vm8, %v1275_v12, 0.0 }
 0x212   : > { %v1360_v62 = vmul.f32 %v5228_v52, %v1304_v53  ;;  %v1361_v27 = vmul.f32 %v5228_v52, %v1305_v42  ;;  %v4350_v32 = vadd.f32 %v1960_v22, %v1842_v10  ;;  %v4352_v5 = vadd.f32 %v1961_v26, %v1843_v38  ;;  %v5232_v52 = vld [vmem:[#allocation25_spill] sm:$0xff] }
 0x213   : > { %v1630_v31 = vmul.f32 %v5229_v14, %v1582_v17  ;;  %v1631_v21 = vmul.f32 %v5229_v14, %v1583_v1  ;;  %v1896_v12 = vsel %vm1882_vm14, %v4152_v59, %v5224_v47  ;;  %v1914_v10 = vsel %vm3914_vm10, %v1888_v60, 0.0  ;;  %v5230_v17 = vld [vmem:[#allocation43_spill] sm:$0xff]  ;;  %v5231_v47 = vld [vmem:[#allocation57_spill] sm:$0xff] }
 0x214   : > { %2136 = vrot.lane.b32.xlu2 %v3566_v11, %s2653_s13  ;;  %v1510_v9 = vadd.f32 %v1494_v36, %v1360_v62  ;;  %v1511_v30 = vadd.f32 %v1495_v63, %v1361_v27  ;;  %2128 = vrot.lane.b32.xlu1 %v3451_v25, %s2653_s13  ;;  %v1306_v38 = vsel %vm3787_vm6, %v1284_v8, 0.0  ;;  %v1307_v14 = vsel %vm3792_vm8, %v1276_v4, 0.0 }
 0x215   : > { %2132 = vrot.lane.b32.xlu0 %v3523_v2, %s2653_s13 }
 0x216   : > { %v4372_v36 = vpop.permute.xlu2 %1984  ;;  %v1679_v63 = vpop.permute.xlu1 %1678  ;;  %v1646_v22 = vadd.f32 %v1630_v31, %v1510_v9  ;;  %v1647_v26 = vadd.f32 %v1631_v21, %v1511_v30  ;;  %v5233_v21 = vld [vmem:[#allocation3_spill] sm:$0xff] }
 0x217   : > { %v1411_v50 = vpop.permute.xlu0 %1410  ;;  %v1690_v1 = vsel %vm1684_vm13, %v5230_v17, %v1679_v63  ;;  %v1698_v59 = vsel %vm1684_vm13, %v1679_v63, %v5230_v17  ;;  %v1362_v9 = vmul.f32 %v5233_v21, %v1306_v38  ;;  %v1363_v30 = vmul.f32 %v5233_v21, %v1307_v14  ;;  %v5234_v63 = vld [vmem:[#allocation20_spill] sm:$0xff]  ;;  %v5237_v14 = vld [vmem:[#allocation62_spill] sm:$0xff]  ;;  %v5238_v21 = vld [vmem:[#allocation47_spill] sm:$0xff] }
 0x218   : > { %v1421_v60 = vsel %vm1414_vm9, %v5231_v47, %v1411_v50  ;;  %v1429_v4 = vsel %vm1414_vm9, %v1411_v50, %v5231_v47  ;;  %v1716_v31 = vsel %vm3874_vm15, %v1698_v59, 0.0  ;;  %v1717_v8 = vsel %vm3878_vm0, %v1690_v1, 0.0  ;;  %v5235_v1 = vld [vmem:[#allocation31_spill] sm:$0xff] }
 0x219   : > { %v1448_v53 = vsel %vm3824_vm11, %v1429_v4, 0.0  ;;  %v1449_v42 = vsel %vm3828_vm12, %v1421_v60, 0.0  ;;  %v1764_v62 = vmul.f32 %v5232_v52, %v1716_v31  ;;  %v1765_v27 = vmul.f32 %v5232_v52, %v1717_v8  ;;  %v5236_v8 = vld [vmem:[#allocation30_spill] sm:$0xff] }
 0x21a   : > { %v1496_v50 = vmul.f32 %v5234_v63, %v1448_v53  ;;  %v1497_v17 = vmul.f32 %v5234_v63, %v1449_v42  ;;  %v1828_v59 = vmul.f32 %v5235_v1, %v3498_v19  ;;  %v1829_v60 = vmul.f32 %v5235_v1, %v5188_v16 }
 0x21b   : > { %v1780_v47 = vadd.f32 %v1764_v62, %v1646_v22  ;;  %v1781_v4 = vadd.f32 %v1765_v27, %v1647_v26  ;;  %v1915_v31 = vsel %vm3918_vm7, %v1896_v12, 0.0  ;;  %v1962_v52 = vmul.f32 %v5236_v8, %v1914_v10 }
 0x21c   : > { %v1512_v38 = vadd.f32 %v1496_v50, %v1362_v9  ;;  %v1513_v48 = vadd.f32 %v1497_v17, %v1363_v30  ;;  %2142 = vrot.lane.b32.xlu2 %v3635_v46, %s2653_s13  ;;  %v1691_v53 = vsel %vm1684_vm13, %v5237_v14, %v4264_v39  ;;  %v1699_v22 = vsel %vm1684_vm13, %v4264_v39, %v5237_v14 }
 0x21d   : > { %2138 = vrot.lane.b32.xlu0 %v3594_v33, %s2653_s13  ;;  %2134 = vrot.lane.b32.xlu1 %v3538_v54, %s2653_s13  ;;  %v1844_v12 = vadd.f32 %v1828_v59, %v1780_v47  ;;  %v1845_v42 = vadd.f32 %v1829_v60, %v1781_v4  ;;  %v1963_v62 = vmul.f32 %v5236_v8, %v1915_v31  ;;  %v1718_v63 = vsel %vm3874_vm15, %v1699_v22, 0.0  ;;  %v5239_v59 = vld [vmem:[#allocation19_spill] sm:$0xff]  ;;  %v5240_v31 = vld [vmem:[#allocation17_spill] sm:$0xff] }
 0x21e   : > { %v4421_v10 = vpop.permute.xlu2 %1990  ;;  %v1545_v26 = vpop.permute.xlu1 %1544  ;;  %v1719_v50 = vsel %vm3878_vm0, %v1691_v53, 0.0  ;;  %v1766_v8 = vmul.f32 %v5240_v31, %v1718_v63  ;;  %v5241_v53 = vld [vmem:[#allocation64_spill] sm:$0xff] }
 0x21f   : > { %v1879_v27 = vpop.permute.xlu0 %1878  ;;  %v1555_v9 = vsel %vm1548_vm4, %v5238_v21, %v1545_v26  ;;  %v1563_v39 = vsel %vm1548_vm4, %v1545_v26, %v5238_v21  ;;  %v4430_v30 = vadd.f32 %v1962_v52, %v1844_v12  ;;  %v4442_v60 = vadd.f32 %v1963_v62, %v1845_v42 }
 0x220   : > { %v1584_v17 = vsel %vm3906_vm1, %v1563_v39, 0.0  ;;  %v1585_v1 = vsel %vm3910_vm3, %v1555_v9, 0.0  ;;  %v1767_v52 = vmul.f32 %v5240_v31, %v1719_v50  ;;  %v1556_v12 = vsel %vm1548_vm4, %v5241_v53, %v4311_v34  ;;  %v5242_v39 = vld [vmem:[#allocation51_spill] sm:$0xff]  ;;  %v5244_v31 = vld [vmem:[#allocation12_spill] sm:$0xff] }
 0x221   : > { %v1632_v47 = vmul.f32 %v5239_v59, %v1584_v17  ;;  %v1633_v4 = vmul.f32 %v5239_v59, %v1585_v1  ;;  %v1564_v26 = vsel %vm1548_vm4, %v4311_v34, %v5241_v53  ;;  %v1587_v34 = vsel %vm3910_vm3, %v1556_v12, 0.0  ;;  %v5243_v17 = vld [vmem:[#allocation63_spill] sm:$0xff] }
 0x222   : > { %v1586_v21 = vsel %vm3906_vm1, %v1564_v26, 0.0  ;;  %v5246_v12 = vld [vmem:[#allocation11_spill] sm:$0xff]  ;;  %vm2016_vm4 = vcmp.lt.s32.totalorder %v3759_v13, 113 }
 0x223   : > { %v1648_v14 = vadd.f32 %v1632_v47, %v1512_v38  ;;  %v1649_v22 = vadd.f32 %v1633_v4, %v1513_v48  ;;  %v1634_v57 = vmul.f32 %v5246_v12, %v1586_v21  ;;  %v1635_v26 = vmul.f32 %v5246_v12, %v1587_v34  ;;  %v5252_v12 = vld [vmem:[#allocation34_spill] sm:$0xff] }
 0x224   : > { %2148 = vrot.lane.b32.xlu2 %v5189_v56, %s2653_s13 }
 0x225   : > { %2144 = vrot.lane.b32.xlu0 %v3663_v20, %s2653_s13  ;;  %2140 = vrot.lane.b32.xlu1 %v3608_v49, %s2653_s13  ;;  %v1782_v48 = vadd.f32 %v1766_v8, %v1648_v14  ;;  %v1783_v38 = vadd.f32 %v1767_v52, %v1649_v22  ;;  %v5245_v14 = vld [vmem:[#allocation15_spill] sm:$0xff] }
 0x226   : > { %v4460_v42 = vpop.permute.xlu2 %1996  ;;  %v1413_v62 = vpop.permute.xlu1 %1412 }
 0x227   : > { %v1266_v9 = vpop.permute.xlu0 %1265  ;;  %v1422_v63 = vsel %vm1414_vm9, %v5242_v39, %v1413_v62  ;;  %v1430_v50 = vsel %vm1414_vm9, %v1413_v62, %v5242_v39 }
 0x228   : > { %v1277_v1 = vsel %vm1269_vm5, %v5243_v17, %v1266_v9  ;;  %v1285_v58 = vsel %vm1269_vm5, %v1266_v9, %v5243_v17  ;;  %v1450_v15 = vsel %vm3824_vm11, %v1430_v50, 0.0  ;;  %v1451_v59 = vsel %vm3828_vm12, %v1422_v63, 0.0  ;;  %v5247_v50 = vld [vmem:[#allocation67_spill] sm:$0xff] }
 0x229   : > { %v1308_v47 = vsel %vm3787_vm6, %v1285_v58, 0.0  ;;  %v1309_v4 = vsel %vm3792_vm8, %v1277_v1, 0.0  ;;  %v1498_v8 = vmul.f32 %v5244_v31, %v1450_v15  ;;  %v1499_v52 = vmul.f32 %v5244_v31, %v1451_v59  ;;  %v5248_v58 = vld [vmem:[#allocation28_spill] sm:$0xff] }
 0x22a   : > { %v1364_v22 = vmul.f32 %v5245_v14, %v1308_v47  ;;  %v1365_v53 = vmul.f32 %v5245_v14, %v1309_v4  ;;  %v5249_v47 = vld [vmem:[#allocation61_spill] sm:$0xff]  ;;  %vm2152_vm8 = vcmp.lt.s32.totalorder %v3759_v13, 112 }
 0x22b   : > { %v1889_v4 = vsel %vm1882_vm14, %v5249_v47, %v1879_v27  ;;  %v1897_v31 = vsel %vm1882_vm14, %v1879_v27, %v5249_v47 }
 0x22c   : > { %v1514_v3 = vadd.f32 %v1498_v8, %v1364_v22  ;;  %v1515_v62 = vadd.f32 %v1499_v52, %v1365_v53  ;;  %2195 = vperm.xlu2 %2601, %v4143_v24   ;;  %v5250_v8 = vld [vmem:[#allocation55_spill] sm:$0xff] }
 0x22d   : > { %2150 = vrot.lane.b32.xlu0 %v3729_v35, %s2653_s13  ;;  %2146 = vrot.lane.b32.xlu1 %v5188_v16, %s2653_s13  ;;  %v5251_v52 = vld [vmem:[#allocation23_spill] sm:$0xff] }
 0x22e   : > { %v1650_v7 = vadd.f32 %v1634_v57, %v1514_v3  ;;  %v1651_v61 = vadd.f32 %v1635_v26, %v1515_v62  ;;  %v2003_v9 = vpop.permute.xlu2 %2002  ;;  %v1881_v39 = vpop.permute.xlu1 %1880  ;;  %v1830_v14 = vmul.f32 %v5251_v52, %v3523_v2  ;;  %v1832_v57 = vmul.f32 %v5252_v12, %v3538_v54 }
 0x22f   : > { %v1683_v63 = vpop.permute.xlu0 %1682  ;;  %v1890_v37 = vsel %vm1882_vm14, %v5250_v8, %v1881_v39  ;;  %v1898_v28 = vsel %vm1882_vm14, %v1881_v39, %v5250_v8  ;;  %v1831_v27 = vmul.f32 %v5251_v52, %v5189_v56  ;;  %v1833_v26 = vmul.f32 %v5252_v12, %v3729_v35  ;;  %v5253_v52 = vld [vmem:[#allocation59_spill] sm:$0xff] }
 0x230   : > { %v1692_v21 = vsel %vm1684_vm13, %v5247_v50, %v1683_v63  ;;  %v1700_v34 = vsel %vm1684_vm13, %v1683_v63, %v5247_v50  ;;  %v1916_v3 = vsel %vm3914_vm10, %v1889_v4, 0.0  ;;  %v1917_v62 = vsel %vm3918_vm7, %v1897_v31, 0.0 }
 0x231   : > { %v1720_v17 = vsel %vm3874_vm15, %v1700_v34, 0.0  ;;  %v1721_v1 = vsel %vm3878_vm0, %v1692_v21, 0.0  ;;  %v1919_v39 = vsel %vm3918_vm7, %v1898_v28, 0.0  ;;  %vm2033_vm5 = vcmp.le.s32.totalorder %v5253_v52, 14 }
 0x232   : > { %v1768_v15 = vmul.f32 %v5248_v58, %v1720_v17  ;;  %v1769_v59 = vmul.f32 %v5248_v58, %v1721_v1  ;;  %v1846_v58 = vadd.f32 %v1830_v14, %v1782_v48  ;;  %vm2034_vm6 = vmand %vm2033_vm5, %vm1287_vm2  ;;  %vm2286_vm14 = vcmp.lt.s32.totalorder %v3759_v13, 111 }
 0x234   : > { %v1784_v22 = vadd.f32 %v1768_v15, %v1650_v7  ;;  %v1785_v53 = vadd.f32 %v1769_v59, %v1651_v61  ;;  %2207 = vperm.xlu2 %2601, %v4127_v23   ;;  %v1918_v61 = vsel %vm3914_vm10, %v1890_v37, 0.0  ;;  %v1847_v15 = vadd.f32 %v1831_v27, %v1783_v38 }
 0x235   : > { %2199 = vperm.xlu0 %2602, %v4084_v40   ;;  %2191 = vperm.xlu1 %2600, %v4137_v43  }
 0x236   : > { %v2009_v7 = vpop.permute.xlu2 %2008  ;;  %v1950_v63 = vpop.permute.xlu1 %1949  ;;  %v1849_v21 = vadd.f32 %v1833_v26, %v1785_v53  ;;  %v1848_v34 = vadd.f32 %v1832_v57, %v1784_v22 }
 0x237   : > { %v1946_v50 = vpop.permute.xlu0 %1945  ;;  %v1966_v17 = vmul.f32 %v1950_v63, %v1918_v61  ;;  %v1967_v1 = vmul.f32 %v1950_v63, %v1919_v39 }
 0x238   : > { %v1964_v59 = vmul.f32 %v1946_v50, %v1916_v3  ;;  %v1965_v47 = vmul.f32 %v1946_v50, %v1917_v62  ;;  %v2656_v3 = vmov 8  }
 0x239   : > { %v4540_v4 = vadd.f32 %v1966_v17, %v1848_v34  ;;  %v4542_v31 = vadd.f32 %v1967_v1, %v1849_v21 }
 0x23a   : > { %v4544_v8 = vadd.f32 %v1964_v59, %v1846_v58  ;;  %v4546_v6 = vadd.f32 %v1965_v47, %v1847_v15 }
 0x23c   : > { %2215 = vperm.xlu2 %2601, %v5213_v41   ;;  %v5254_v41 = vld [vmem:[#allocation60_spill] sm:$0xff] }
 0x23d   : > { %2219 = vperm.xlu0 %2602, %v5205_v29   ;;  %2203 = vperm.xlu1 %2600, %v4204_v0   ;;  %vm5273_vm12 = vcmp.le.s32.totalorder %v5254_v41, 14 }
 0x23e   : > { %v2015_v51 = vpop.permute.xlu2 %2014  ;;  %v1989_v48 = vpop.permute.xlu1 %1988  ;;  %vm2303_vm13 = vmand %vm2033_vm5, %vm5273_vm12 }
 0x23f   : > { %v1987_v38 = vpop.permute.xlu0 %1986 }
 0x240   : > { %v4554_v37 = vsel %vm2016_vm4, %v1987_v38, %v2003_v9  ;;  %v4558_v28 = vsel %vm2016_vm4, %v2003_v9, %v1987_v38  ;;  %v5255_v9 = vmov 0  }
 0x241   : > { %v2035_v22 = vsel %vm2034_vm6, 1, %v5255_v9 }
 0x242   : > { %v2036_v27 = vperm.slane %v2035_v22, 0  ;;  %v2037_v26 = vperm.slane %v2035_v22, 1 }
 0x244   : > { %2256 = vrot.lane.b32.xlu2 %v3386_v55, %s2655_s14  ;;  %vm4581_vm2 = vcmp.eq.s32.totalorder %v2036_v27, 1  ;;  %vm4585_vm7 = vcmp.eq.s32.totalorder %v2037_v26, 1 }
 0x245   : > { %2258 = vrot.lane.b32.xlu0 %v3419_v18, %s2655_s14  ;;  %2211 = vperm.xlu1 %2600, %v4198_v45  }
 0x246   : > { %v2066_v29 = vpop.permute.xlu2 %2065  ;;  %v1995_v14 = vpop.permute.xlu1 %1994  ;;  %2604 = vset.pattern.permute.xlu0 %v2656_v3  ;;  %2603 = vset.pattern.permute.xlu2 %v2656_v3 }
 0x247   : > { %v1993_v53 = vpop.permute.xlu0 %1992 }
 0x248   : > { %v2021_v12 = vsel %vm2016_vm4, %v1993_v53, %v2009_v7  ;;  %v2029_v57 = vsel %vm2016_vm4, %v2009_v7, %v1993_v53 }
 0x249   : > { %v2048_v62 = vsel %vm4581_vm2, %v2021_v12, 0.0 }
 0x24c   : > { %2262 = vrot.lane.b32.xlu2 %v3451_v25, %s2655_s14  ;;  %v2049_v25 = vsel %vm4585_vm7, %v2029_v57, 0.0 }
 0x24d   : > { %2264 = vrot.lane.b32.xlu0 %v3498_v19, %s2655_s14  ;;  %2254 = vrot.lane.b32.xlu1 %v3369_v44, %s2655_s14 }
 0x24e   : > { %v2074_v7 = vpop.permute.xlu2 %2073  ;;  %v2001_v61 = vpop.permute.xlu1 %2000  ;;  %2605 = vset.pattern.permute.xlu1 %v2656_v3  ;;  %v5261_v3 = vld [vmem:[#allocation8_spill] sm:$0xff] }
 0x24f   : > { %v1999_v19 = vpop.permute.xlu0 %1998  ;;  %v2096_v39 = vmul.f32 %v2074_v7, %v2048_v62  ;;  %v2097_v44 = vmul.f32 %v2074_v7, %v2049_v25  ;;  %v2017_v63 = vsel %vm2016_vm4, %v4372_v36, %v2001_v61  ;;  %v2025_v50 = vsel %vm2016_vm4, %v2001_v61, %v4372_v36  ;;  %v5260_v36 = vld [vmem:[#allocation18_spill] sm:$0xff] }
 0x250   : > { %v2024_v21 = vsel %vm2016_vm4, %v1999_v19, %v2015_v51  ;;  %v2032_v34 = vsel %vm2016_vm4, %v2015_v51, %v1999_v19  ;;  %v2040_v19 = vsel %vm4581_vm2, %v2017_v63, 0.0  ;;  %v5264_v63 = vld [vmem:[#allocation69_spill] sm:$0xff] }
 0x251   : > { %v4604_v17 = vadd.f32 %v2096_v39, %v4350_v32  ;;  %v4607_v1 = vadd.f32 %v2097_v44, %v4352_v5  ;;  %v2054_v58 = vsel %vm4581_vm2, %v2024_v21, 0.0  ;;  %v2055_v15 = vsel %vm4585_vm7, %v2032_v34, 0.0 }
 0x252   : > { %v2041_v39 = vsel %vm4585_vm7, %v2025_v50, 0.0  ;;  %v5265_v50 = vld [vmem:[#allocation35_spill] sm:$0xff] }
 0x254   : > { %2268 = vrot.lane.b32.xlu2 %v3538_v54, %s2655_s14 }
 0x255   : > { %2270 = vrot.lane.b32.xlu0 %v3566_v11, %s2655_s14  ;;  %2260 = vrot.lane.b32.xlu1 %v5260_v36, %s2655_s14  ;;  %v5263_v36 = vld [vmem:[#allocation68_spill] sm:$0xff] }
 0x256   : > { %v2086_v32 = vpop.permute.xlu2 %2085  ;;  %v2007_v51 = vpop.permute.xlu1 %2006 }
 0x257   : > { %v2005_v59 = vpop.permute.xlu0 %2004  ;;  %v2102_v47 = vmul.f32 %v2086_v32, %v2054_v58  ;;  %v2103_v5 = vmul.f32 %v2086_v32, %v2055_v15  ;;  %v2020_v38 = vsel %vm2016_vm4, %v4421_v10, %v2007_v51  ;;  %v2028_v22 = vsel %vm2016_vm4, %v2007_v51, %v4421_v10  ;;  %v5262_v10 = vld [vmem:[#allocation46_spill] sm:$0xff] }
 0x258   : > { %v2019_v54 = vsel %vm2016_vm4, %v1989_v48, %v2005_v59  ;;  %v2027_v11 = vsel %vm2016_vm4, %v2005_v59, %v1989_v48  ;;  %v5266_v59 = vld [vmem:[#allocation13_spill] sm:$0xff] }
 0x259   : > { %v2044_v53 = vsel %vm4581_vm2, %v2019_v54, 0.0  ;;  %v2045_v12 = vsel %vm4585_vm7, %v2027_v11, 0.0  ;;  %v4634_v57 = vadd.f32 %v2102_v47, %v4540_v4  ;;  %v4637_v27 = vadd.f32 %v2103_v5, %v4542_v31 }
 0x25a   : > { %v2092_v48 = vmul.f32 %v2066_v29, %v2044_v53  ;;  %v2093_v26 = vmul.f32 %v2066_v29, %v2045_v12  ;;  %v2046_v54 = vsel %vm4581_vm2, %v2020_v38, 0.0  ;;  %v2047_v11 = vsel %vm4585_vm7, %v2028_v22, 0.0  ;;  %v2614_v38 = vld [vmem:[%s5004_s3 + $0x30] sm:$0xff] }
 0x25c   : > { %2274 = vrot.lane.b32.xlu2 %v3608_v49, %s2655_s14  ;;  %v4642_v62 = vadd.f32 %v2092_v48, %v5261_v3  ;;  %v4645_v25 = vadd.f32 %v2093_v26, %v5262_v10  ;;  %v5267_v3 = vld [vmem:[#allocation53_spill] sm:$0xff] }
 0x25d   : > { %2276 = vrot.lane.b32.xlu0 %v3635_v46, %s2655_s14  ;;  %2266 = vrot.lane.b32.xlu1 %v3523_v2, %s2655_s14 }
 0x25e   : > { %v4651_v4 = vpop.permute.xlu2 %2124  ;;  %v2013_v7 = vpop.permute.xlu1 %2012 }
 0x25f   : > { %v2011_v31 = vpop.permute.xlu0 %2010  ;;  %v2023_v61 = vsel %vm2016_vm4, %v4460_v42, %v2013_v7  ;;  %v2031_v46 = vsel %vm2016_vm4, %v2013_v7, %v4460_v42  ;;  %v2042_v42 = vsel %vm4581_vm2, %v4554_v37, 0.0 }
 0x260   : > { %v2022_v29 = vsel %vm2016_vm4, %v1995_v14, %v2011_v31  ;;  %v2030_v49 = vsel %vm2016_vm4, %v2011_v31, %v1995_v14  ;;  %v5268_v31 = vld [vmem:[#allocation44_spill] sm:$0xff]  ;;  %v2052_v22 = vsel %vm4581_vm2, %v2023_v61, 0.0 }
 0x261   : > { %v2050_v5 = vsel %vm4581_vm2, %v2022_v29, 0.0  ;;  %v2051_v51 = vsel %vm4585_vm7, %v2030_v49, 0.0  ;;  %v2053_v29 = vsel %vm4585_vm7, %v2031_v46, 0.0 }
 0x264   : > { %2280 = vrot.lane.b32.xlu2 %v5188_v16, %s2655_s14  ;;  %v2043_v16 = vsel %vm4585_vm7, %v4558_v28, 0.0 }
 0x265   : > { %2282 = vrot.lane.b32.xlu0 %v5189_v56, %s2655_s14  ;;  %2272 = vrot.lane.b32.xlu1 %v3594_v33, %s2655_s14 }
 0x266   : > { %v4669_v2 = vpop.permute.xlu2 %2130  ;;  %v2062_v56 = vpop.permute.xlu1 %2061 }
 0x267   : > { %v2058_v14 = vpop.permute.xlu0 %2057  ;;  %v2090_v21 = vmul.f32 %v2062_v56, %v2042_v42  ;;  %v2091_v34 = vmul.f32 %v2062_v56, %v2043_v16 }
 0x268   : > { %v2088_v44 = vmul.f32 %v2058_v14, %v2040_v19  ;;  %v2089_v33 = vmul.f32 %v2058_v14, %v2041_v39 }
 0x269   : > { %v4688_v32 = vadd.f32 %v2090_v21, %v5265_v50  ;;  %v4691_v37 = vadd.f32 %v2091_v34, %v5266_v59  ;;  %v2615_v34 = vld [vmem:[%s5004_s3 + $0x38] sm:$0xff]  ;;  %v2304_v50 = vsel %vm2303_vm13, 1, %v5255_v9 }
 0x26a   : > { %v4682_v58 = vadd.f32 %v2088_v44, %v5263_v36  ;;  %v4685_v15 = vadd.f32 %v2089_v33, %v5264_v63  ;;  %v2169_v44 = vsel %vm2033_vm5, 1, %v5255_v9  ;;  %v2305_v59 = vperm.slane %v2304_v50, 0 }
 0x26b   : > { %v2170_v33 = vperm.slane %v2169_v44, 0  ;;  %v2171_v21 = vperm.slane %v2169_v44, 1 }
 0x26c   : > { %2326 = vperm.xlu2 %2603, %v4137_v43   ;;  %vm4881_vm15 = vcmp.eq.s32.totalorder %v2305_v59, 1 }
 0x26d   : > { %2330 = vperm.xlu0 %2604, %v4143_v24   ;;  %2278 = vrot.lane.b32.xlu1 %v3663_v20, %s2655_s14  ;;  %vm4759_vm9 = vcmp.eq.s32.totalorder %v2170_v33, 1  ;;  %vm4763_vm11 = vcmp.eq.s32.totalorder %v2171_v21, 1 }
 0x26e   : > { %v2137_v28 = vpop.permute.xlu2 %2136  ;;  %v2070_v43 = vpop.permute.xlu1 %2069 }
 0x26f   : > { %v2078_v47 = vpop.permute.xlu0 %2077  ;;  %v2094_v12 = vmul.f32 %v2070_v43, %v2046_v54  ;;  %v2095_v48 = vmul.f32 %v2070_v43, %v2047_v11 }
 0x270   : > { %v2098_v53 = vmul.f32 %v2078_v47, %v2050_v5  ;;  %v2099_v24 = vmul.f32 %v2078_v47, %v2051_v51 }
 0x271   : > { %v4712_v10 = vadd.f32 %v2094_v12, %v5267_v3  ;;  %v4715_v7 = vadd.f32 %v2095_v48, %v5268_v31 }
 0x272   : > { %v4706_v20 = vadd.f32 %v2098_v53, %v4430_v30  ;;  %v4709_v26 = vadd.f32 %v2099_v24, %v4442_v60 }
 0x274   : > { %2338 = vperm.xlu2 %2603, %v4204_v0  }
 0x275   : > { %2350 = vperm.xlu0 %2604, %v2614_v38   ;;  %2284 = vrot.lane.b32.xlu1 %v3729_v35, %s2655_s14 }
 0x276   : > { %v2143_v30 = vpop.permute.xlu2 %2142  ;;  %v2082_v49 = vpop.permute.xlu1 %2081 }
 0x277   : > { %v2121_v60 = vpop.permute.xlu0 %2120  ;;  %v2100_v35 = vmul.f32 %v2082_v49, %v2052_v22  ;;  %v2101_v19 = vmul.f32 %v2082_v49, %v2053_v29 }
 0x278   : > { %v4730_v0 = vsel %vm2152_vm8, %v2121_v60, %v2137_v28  ;;  %v4734_v14 = vsel %vm2152_vm8, %v2137_v28, %v2121_v60 }
 0x279   : > { %v2116_v39 = vadd.f32 %v2100_v35, %v4544_v8  ;;  %v2117_v42 = vadd.f32 %v2101_v19, %v4546_v6  ;;  %v2174_v44 = vsel %vm4759_vm9, %v4730_v0, 0.0  ;;  %v2175_v33 = vsel %vm4763_vm11, %v4734_v14, 0.0 }
 0x27c   : > { %2346 = vperm.xlu2 %2603, %v4198_v45  }
 0x27d   : > { %2334 = vperm.xlu1 %2605, %v4084_v40  }
 0x27e   : > { %v2149_v55 = vpop.permute.xlu2 %2148  ;;  %v2123_v61 = vpop.permute.xlu1 %2122 }
 0x27f   : > { %v2127_v18 = vpop.permute.xlu0 %2126 }
 0x280   : > { %v4742_v46 = vsel %vm2152_vm8, %v2127_v18, %v2143_v30  ;;  %v4746_v16 = vsel %vm2152_vm8, %v2143_v30, %v2127_v18 }
 0x285   : > { %2342 = vperm.xlu1 %2605, %v4127_v23  }
 0x286   : > { %v2196_v8 = vpop.permute.xlu2 %2195  ;;  %v2129_v6 = vpop.permute.xlu1 %2128 }
 0x287   : > { %v2133_v56 = vpop.permute.xlu0 %2132 }
 0x288   : > { %v2159_v45 = vsel %vm2152_vm8, %v2133_v56, %v2149_v55  ;;  %v2167_v40 = vsel %vm2152_vm8, %v2149_v55, %v2133_v56 }
 0x289   : > { %v2186_v24 = vsel %vm4759_vm9, %v2159_v45, 0.0  ;;  %v2187_v12 = vsel %vm4763_vm11, %v2167_v40, 0.0 }
 0x28d   : > { %2354 = vperm.xlu1 %2605, %v2615_v34  }
 0x28e   : > { %v2208_v23 = vpop.permute.xlu2 %2207 }
 0x28f   : > { %v2139_v36 = vpop.permute.xlu0 %2138  ;;  %v2135_v63 = vpop.permute.xlu1 %2134 }
 0x290   : > { %v2154_v28 = vsel %vm2152_vm8, %v2123_v61, %v2139_v36  ;;  %v2162_v47 = vsel %vm2152_vm8, %v2139_v36, %v2123_v61 }
 0x291   : > { %v2176_v5 = vsel %vm4759_vm9, %v2154_v28, 0.0  ;;  %v2177_v51 = vsel %vm4763_vm11, %v2162_v47, 0.0 }
 0x292   : > { %v2224_v54 = vmul.f32 %v2196_v8, %v2176_v5  ;;  %v2225_v11 = vmul.f32 %v2196_v8, %v2177_v51 }
 0x294   : > { %v4776_v43 = vadd.f32 %v2224_v54, %v4688_v32  ;;  %v4779_v53 = vadd.f32 %v2225_v11, %v4691_v37 }
 0x296   : > { %v2216_v48 = vpop.permute.xlu2 %2215 }
 0x297   : > { %v2145_v3 = vpop.permute.xlu0 %2144  ;;  %v2234_v31 = vmul.f32 %v2216_v48, %v2186_v24  ;;  %v2235_v38 = vmul.f32 %v2216_v48, %v2187_v12  ;;  %v2141_v30 = vpop.permute.xlu1 %2140 }
 0x298   : > { %v2157_v60 = vsel %vm2152_vm8, %v2129_v6, %v2145_v3  ;;  %v2165_v32 = vsel %vm2152_vm8, %v2145_v3, %v2129_v6  ;;  %v2155_v37 = vsel %vm2152_vm8, %v4651_v4, %v2141_v30  ;;  %v2163_v22 = vsel %vm2152_vm8, %v2141_v30, %v4651_v4 }
 0x299   : > { %v2182_v29 = vsel %vm4759_vm9, %v2157_v60, 0.0  ;;  %v2183_v49 = vsel %vm4763_vm11, %v2165_v32, 0.0  ;;  %v4799_v35 = vadd.f32 %v2234_v31, %v2116_v39  ;;  %v4801_v19 = vadd.f32 %v2235_v38, %v2117_v42 }
 0x29a   : > { %v2230_v55 = vmul.f32 %v2208_v23, %v2182_v29  ;;  %v2231_v18 = vmul.f32 %v2208_v23, %v2183_v49 }
 0x29c   : > { %v4804_v61 = vadd.f32 %v2230_v55, %v4604_v17  ;;  %v4807_v8 = vadd.f32 %v2231_v18, %v4607_v1  ;;  %v2178_v17 = vsel %vm4759_vm9, %v2155_v37, 0.0  ;;  %v2179_v1 = vsel %vm4763_vm11, %v2163_v22, 0.0 }
 0x29d   : > { %v2306_v18 = vperm.slane %v2304_v50, 1 }
 0x29e   : > { %v4809_v56 = vpop.permute.xlu2 %2256 }
 0x29f   : > { %v2151_v4 = vpop.permute.xlu0 %2150  ;;  %v2147_v6 = vpop.permute.xlu1 %2146  ;;  %vm4885_vm0 = vcmp.eq.s32.totalorder %v2306_v18, 1 }
 0x2a0   : > { %v2160_v45 = vsel %vm2152_vm8, %v2135_v63, %v2151_v4  ;;  %v2168_v39 = vsel %vm2152_vm8, %v2151_v4, %v2135_v63 }
 0x2a1   : > { %v2188_v14 = vsel %vm4759_vm9, %v2160_v45, 0.0  ;;  %v2189_v11 = vsel %vm4763_vm11, %v2168_v39, 0.0 }
 0x2a6   : > { %v4815_v42 = vpop.permute.xlu2 %2262 }
 0x2a7   : > { %v2200_v40 = vpop.permute.xlu0 %2199  ;;  %v2192_v21 = vpop.permute.xlu1 %2191 }
 0x2a8   : > { %v2226_v34 = vmul.f32 %v2200_v40, %v2178_v17  ;;  %v2227_v23 = vmul.f32 %v2200_v40, %v2179_v1  ;;  %v2222_v36 = vmul.f32 %v2192_v21, %v2174_v44  ;;  %v2223_v63 = vmul.f32 %v2192_v21, %v2175_v33 }
 0x2aa   : > { %v4828_v28 = vadd.f32 %v2226_v34, %v4642_v62  ;;  %v4831_v47 = vadd.f32 %v2227_v23, %v4645_v25  ;;  %v2238_v5 = vadd.f32 %v2222_v36, %v4682_v58  ;;  %v2239_v51 = vadd.f32 %v2223_v63, %v4685_v15 }
 0x2ab   : > { %v2180_v62 = vsel %vm4759_vm9, %v4742_v46, 0.0  ;;  %v2181_v25 = vsel %vm4763_vm11, %v4746_v16, 0.0  ;;  %v2158_v46 = vsel %vm2152_vm8, %v4669_v2, %v2147_v6  ;;  %v2166_v16 = vsel %vm2152_vm8, %v2147_v6, %v4669_v2 }
 0x2ae   : > { %v4835_v0 = vpop.permute.xlu2 %2268 }
 0x2af   : > { %v2220_v54 = vpop.permute.xlu0 %2219  ;;  %v2204_v58 = vpop.permute.xlu1 %2203 }
 0x2b0   : > { %v2236_v24 = vmul.f32 %v2220_v54, %v2188_v14  ;;  %v2237_v15 = vmul.f32 %v2220_v54, %v2189_v11  ;;  %v2228_v12 = vmul.f32 %v2204_v58, %v2180_v62  ;;  %v2229_v48 = vmul.f32 %v2204_v58, %v2181_v25 }
 0x2b2   : > { %v4848_v3 = vadd.f32 %v2236_v24, %v4634_v57  ;;  %v4851_v31 = vadd.f32 %v2237_v15, %v4637_v27  ;;  %v2244_v38 = vadd.f32 %v2228_v12, %v4712_v10  ;;  %v2245_v30 = vadd.f32 %v2229_v48, %v4715_v7 }
 0x2b3   : > { %v2184_v57 = vsel %vm4759_vm9, %v2158_v46, 0.0  ;;  %v2185_v27 = vsel %vm4763_vm11, %v2166_v16, 0.0 }
 0x2b6   : > { %v4861_v60 = vpop.permute.xlu2 %2274 }
 0x2b7   : > { %v4863_v32 = vpop.permute.xlu0 %2258  ;;  %v2212_v10 = vpop.permute.xlu1 %2211 }
 0x2b8   : > { %v2232_v7 = vmul.f32 %v2212_v10, %v2184_v57  ;;  %v2233_v37 = vmul.f32 %v2212_v10, %v2185_v27 }
 0x2ba   : > { %v2248_v22 = vadd.f32 %v2232_v7, %v4706_v20  ;;  %v2249_v29 = vadd.f32 %v2233_v37, %v4709_v26 }
 0x2be   : > { %v2281_v49 = vpop.permute.xlu2 %2280 }
 0x2bf   : > { %v2265_v2 = vpop.permute.xlu0 %2264  ;;  %v2255_v55 = vpop.permute.xlu1 %2254 }
 0x2c0   : > { %v2292_v14 = vsel %vm2286_vm14, %v2265_v2, %v2281_v49  ;;  %v2300_v11 = vsel %vm2286_vm14, %v2281_v49, %v2265_v2 }
 0x2c1   : > { %v2319_v58 = vsel %vm4881_vm15, %v2292_v14, 0.0  ;;  %v2320_v24 = vsel %vm4885_vm0, %v2300_v11, 0.0 }
 0x2c6   : > { %v2327_v4 = vpop.permute.xlu2 %2326 }
 0x2c7   : > { %v2271_v6 = vpop.permute.xlu0 %2270  ;;  %v2261_v20 = vpop.permute.xlu1 %2260 }
 0x2c8   : > { %v2287_v26 = vsel %vm2286_vm14, %v2255_v55, %v2271_v6  ;;  %v2295_v41 = vsel %vm2286_vm14, %v2271_v6, %v2255_v55 }
 0x2c9   : > { %v2309_v9 = vsel %vm4881_vm15, %v2287_v26, 0.0  ;;  %v2310_v39 = vsel %vm4885_vm0, %v2295_v41, 0.0  ;;  %v2289_v41 = vsel %vm2286_vm14, %v4863_v32, %v4861_v60 }
 0x2ca   : > { %v2357_v40 = vmul.f32 %v2327_v4, %v2309_v9  ;;  %v2358_v17 = vmul.f32 %v2327_v4, %v2310_v39  ;;  %v2297_v9 = vsel %vm2286_vm14, %v4861_v60, %v4863_v32  ;;  %v2313_v39 = vsel %vm4881_vm15, %v2289_v41, 0.0 }
 0x2cc   : > { %v2373_v1 = vadd.f32 %v2357_v40, %v2238_v5  ;;  %v2374_v44 = vadd.f32 %v2358_v17, %v2239_v51 }
 0x2ce   : > { %2389 = vst [vmem:[%s4898_s25] sm:$0xff] %v2373_v1  ;;  %v2339_v33 = vpop.permute.xlu2 %2338 }
 0x2cf   : > { %2390 = vst [vmem:[%s4898_s25 + $0x8] sm:$0xff] %v2374_v44  ;;  %v2277_v21 = vpop.permute.xlu0 %2276  ;;  %v2267_v34 = vpop.permute.xlu1 %2266 }
 0x2d0   : > { %v2290_v23 = vsel %vm2286_vm14, %v2261_v20, %v2277_v21  ;;  %v2298_v36 = vsel %vm2286_vm14, %v2277_v21, %v2261_v20 }
 0x2d1   : > { %v2315_v63 = vsel %vm4881_vm15, %v2290_v23, 0.0  ;;  %v2316_v5 = vsel %vm4885_vm0, %v2298_v36, 0.0 }
 0x2d2   : > { %v2363_v51 = vmul.f32 %v2339_v33, %v2315_v63  ;;  %v2364_v54 = vmul.f32 %v2339_v33, %v2316_v5 }
 0x2d4   : > { %v2379_v62 = vadd.f32 %v2363_v51, %v2244_v38  ;;  %v2380_v25 = vadd.f32 %v2364_v54, %v2245_v30 }
 0x2d6   : > { %2395 = vst [vmem:[%s4898_s25 + $0x30] sm:$0xff] %v2379_v62  ;;  %v2347_v15 = vpop.permute.xlu2 %2346 }
 0x2d7   : > { %2396 = vst [vmem:[%s4898_s25 + $0x38] sm:$0xff] %v2380_v25  ;;  %v2283_v12 = vpop.permute.xlu0 %2282  ;;  %v2367_v48 = vmul.f32 %v2347_v15, %v2319_v58  ;;  %v2368_v46 = vmul.f32 %v2347_v15, %v2320_v24  ;;  %v2273_v16 = vpop.permute.xlu1 %2272 }
 0x2d8   : > { %v2288_v38 = vsel %vm2286_vm14, %v4809_v56, %v2273_v16  ;;  %v2296_v30 = vsel %vm2286_vm14, %v2273_v16, %v4809_v56  ;;  %v2293_v50 = vsel %vm2286_vm14, %v2267_v34, %v2283_v12  ;;  %v2301_v56 = vsel %vm2286_vm14, %v2283_v12, %v2267_v34 }
 0x2d9   : > { %v2383_v57 = vadd.f32 %v2367_v48, %v2248_v22  ;;  %v2384_v27 = vadd.f32 %v2368_v46, %v2249_v29  ;;  %v2311_v7 = vsel %vm4881_vm15, %v2288_v38, 0.0  ;;  %v2312_v37 = vsel %vm4885_vm0, %v2296_v30, 0.0 }
 0x2da   : > { %v2321_v18 = vsel %vm4881_vm15, %v2293_v50, 0.0  ;;  %v2322_v4 = vsel %vm4885_vm0, %v2301_v56, 0.0 }
 0x2db   : > { %2399 = vst [vmem:[%s4898_s25 + $0x50] sm:$0xff] %v2383_v57 }
 0x2dc   : > { %2400 = vst [vmem:[%s4898_s25 + $0x58] sm:$0xff] %v2384_v27 }
 0x2df   : > { %v2331_v10 = vpop.permute.xlu0 %2330  ;;  %v2279_v22 = vpop.permute.xlu1 %2278 }
 0x2e0   : > { %v2359_v29 = vmul.f32 %v2331_v10, %v2311_v7  ;;  %v2360_v49 = vmul.f32 %v2331_v10, %v2312_v37  ;;  %v2291_v60 = vsel %vm2286_vm14, %v4815_v42, %v2279_v22  ;;  %v2299_v32 = vsel %vm2286_vm14, %v2279_v22, %v4815_v42 }
 0x2e1   : > { %v2317_v33 = vsel %vm4881_vm15, %v2291_v60, 0.0  ;;  %v2318_v21 = vsel %vm4885_vm0, %v2299_v32, 0.0 }
 0x2e2   : > { %v2375_v2 = vadd.f32 %v2359_v29, %v4776_v43  ;;  %v2376_v55 = vadd.f32 %v2360_v49, %v4779_v53 }
 0x2e4   : > { %2391 = vst [vmem:[%s4898_s25 + $0x10] sm:$0xff] %v2375_v2 }
 0x2e5   : > { %2392 = vst [vmem:[%s4898_s25 + $0x18] sm:$0xff] %v2376_v55 }
 0x2e7   : > { %v2351_v59 = vpop.permute.xlu0 %2350  ;;  %v2285_v43 = vpop.permute.xlu1 %2284 }
 0x2e8   : > { %v2369_v6 = vmul.f32 %v2351_v59, %v2321_v18  ;;  %v2370_v20 = vmul.f32 %v2351_v59, %v2322_v4  ;;  %v2294_v42 = vsel %vm2286_vm14, %v4835_v0, %v2285_v43  ;;  %v2302_v63 = vsel %vm2286_vm14, %v2285_v43, %v4835_v0 }
 0x2e9   : > { %v2323_v5 = vsel %vm4881_vm15, %v2294_v42, 0.0  ;;  %v2324_v51 = vsel %vm4885_vm0, %v2302_v63, 0.0 }
 0x2ea   : > { %v2385_v53 = vadd.f32 %v2369_v6, %v4799_v35  ;;  %v2386_v26 = vadd.f32 %v2370_v20, %v4801_v19  ;;  %v2314_v35 = vsel %vm4885_vm0, %v2297_v9, 0.0 }
 0x2ec   : > { %2401 = vst [vmem:[%s4898_s25 + $0x60] sm:$0xff] %v2385_v53 }
 0x2ed   : > { %2402 = vst [vmem:[%s4898_s25 + $0x68] sm:$0xff] %v2386_v26 }
 0x2ef   : > { %v2335_v40 = vpop.permute.xlu1 %2334 }
 0x2f0   : > { %v2361_v19 = vmul.f32 %v2335_v40, %v2313_v39  ;;  %v2362_v17 = vmul.f32 %v2335_v40, %v2314_v35 }
 0x2f2   : > { %v2377_v1 = vadd.f32 %v2361_v19, %v4828_v28  ;;  %v2378_v44 = vadd.f32 %v2362_v17, %v4831_v47 }
 0x2f4   : > { %2393 = vst [vmem:[%s4898_s25 + $0x20] sm:$0xff] %v2377_v1 }
 0x2f5   : > { %2394 = vst [vmem:[%s4898_s25 + $0x28] sm:$0xff] %v2378_v44 }
 0x2f7   : > { %v2343_v28 = vpop.permute.xlu1 %2342 }
 0x2f8   : > { %v2365_v34 = vmul.f32 %v2343_v28, %v2317_v33  ;;  %v2366_v47 = vmul.f32 %v2343_v28, %v2318_v21 }
 0x2fa   : > { %v2381_v23 = vadd.f32 %v2365_v34, %v4804_v61  ;;  %v2382_v36 = vadd.f32 %v2366_v47, %v4807_v8 }
 0x2fc   : > { %2397 = vst [vmem:[%s4898_s25 + $0x40] sm:$0xff] %v2381_v23 }
 0x2fd   : > { %2398 = vst [vmem:[%s4898_s25 + $0x48] sm:$0xff] %v2382_v36 }
 0x2ff   : > { %v2355_v54 = vpop.permute.xlu1 %2354 }
 0x300   : > { %v2371_v61 = vmul.f32 %v2355_v54, %v2323_v5  ;;  %v2372_v14 = vmul.f32 %v2355_v54, %v2324_v51 }
 0x302   : > { %v2387_v8 = vadd.f32 %v2371_v61, %v4848_v3  ;;  %v2388_v11 = vadd.f32 %v2372_v14, %v4851_v31 }
 0x304   : > { %2403 = vst [vmem:[%s4898_s25 + $0x70] sm:$0xff] %v2387_v8 }
 0x305   : > { %2404 = vst [vmem:[%s4898_s25 + $0x78] sm:$0xff] %v2388_v11 }
 0x306 PF: > { %s14_s17 = sadd.s32 1, %s2638_s17   ;;  %s5278_s15 = smov %s2634_s16 }
 0x307   : > { %p11_p5 = scmp.ge.s32.totalorder %s14_s17, 4   ;;  %s5279_s16 = smov %s5281_s18 }
 0x309   :  { %13 = sbr.rel (!%p11_p5) target bundleno = 2 (0x2), region = 73 }

// kernel: fwd_f32.4
= control target key start
LH: loop header
LB: loop body
LE: loop exit
PB: predicated region body
PF: predicated region fallthrough
CT: control target
= control target key end

     0   :  { %s4373_s15 = smov 0   ;;  %s4375_s16 = smov 0   ;;  %s9225_s0 = inlined_call_operand.vmem [shape: f32[2,64,256], index: 0, kind: input, shape index: {}]   ;;  %s9226_s1 = inlined_call_operand.vmem [shape: s32[2,256], index: 1, kind: input, shape index: {}]   ;;  %s9227_s2 = inlined_call_operand.vmem [shape: f32[128,64], index: 2, kind: input, shape index: {}]   ;;  %s9228_s3 = inlined_call_operand.vmem [shape: f32[128,9], index: 3, kind: input, shape index: {}]   ;;  %s9229_s4 = inlined_call_operand.vmem [shape: f32[2,128,256], index: 4, kind: output, shape index: {}]  }
   0x1   :  { %s4377_s17 = smov 0  }
   0x2 LB: > { %s26_s18 = sadd.s32 1, %s4325_s16  ;;  %p4176_p0 = scmp.ge.s32.totalorder %s4329_s17, 1  ;;  %s4329_s17 = sphi %s4377_s17, %s14_s17   ;;  %s4325_s16 = sphi %s4375_s16, %s10551_s16   ;;  %s4321_s15 = sphi %s4373_s15, %s10550_s15  }
   0x3   : > { %p28_p1 = scmp.ge.s32.totalorder %s26_s18, 2  ;;  %p198_p2 = scmp.lt.s32.totalorder %s4329_s17, 3 }
   0x5   : > { %s10553_s18 = smov (%p28_p1, %s26_s18), 0  ;;  %p199_p3 = pnand %p4176_p0, %p198_p2 }
   0x7   : > { %202 = sbr.rel (%p199_p3) target bundleno = 1301 (0x515), region = 36 }
   0xc   : > { %v4394_v0 = vld [vmem:[%s9228_s3 + $0x10] sm:$0xff]  ;;  %p239_p4 = scmp.lt.s32.totalorder %s4321_s15, 1  ;;  %v4399_v1 = vld [vmem:[%s9228_s3] sm:$0xff]  ;;  %vm299_vm0 = vcmask 523264   ;;  %v9230_v2 = vmov 0   ;;  %v4414_v5 = vld [vmem:[%s9228_s3 + $0x8] sm:$0xff] }
   0xd   : > { %4229 = vset.pattern.permute.xlu1 %v9230_v2  ;;  %4227 = vset.pattern.permute.xlu2 %v9230_v2  ;;  %v283_v3 = vld [vmem:[%s9227_s2] sm:$0xff]  ;;  %v284_v6 = vld [vmem:[%s9227_s2 + $0x8] sm:$0xff]  ;;  %v4437_v9 = vld [vmem:[%s9228_s3 + $0x18] sm:$0xff]  ;;  %s4336_s7 = smov 15   ;;  %s4337_s8 = smov 16  }
   0xe   : > { %1922 = vperm.xlu1 %4229, %v4394_v0   ;;  %s10555_s15 = smov (!%p239_p4, %s4321_s15), 1  ;;  %1912 = vperm.xlu2 %4227, %v4399_v1   ;;  %v301_v4 = vsel %vm299_vm0, %v283_v3, 0  ;;  %v4432_v8 = vld [vmem:[%s9228_s3 + $0x20] sm:$0xff]  ;;  %v304_v13 = vsel %vm299_vm0, %v284_v6, 0  ;;  %v4479_v30 = vld [vmem:[%s9228_s3 + $0x30] sm:$0xff]  ;;  %v4532_v49 = vld [vmem:[%s9228_s3 + $0x38] sm:$0xff] }
   0xf   : > { %4228 = vset.pattern.permute.xlu0 %v9230_v2  ;;  %s4184_s29 = sshll.u32 %s10555_s15, 7  ;;  %v4421_v7 = vand.u32 4294901760, %v301_v4  ;;  %v4507_v41 = vand.u32 4294901760, %v304_v13  ;;  %v285_v47 = vld [vmem:[%s9227_s2 + $0x10] sm:$0xff]  ;;  %s4338_s9 = smov 17  }
  0x10   : > { %1917 = vperm.xlu0 %4228, %v4414_v5   ;;  %s4427_s6 = scalar_lea.vmem %s9225_s0, %s4184_s29  ;;  %v307_v58 = vsel %vm299_vm0, %v285_v47, 0  ;;  %s4339_s10 = smov 1  }
  0x11   : > { %v281_v10 = vld [vmem:[%s4427_s6 + $0x70] sm:$0xff]  ;;  %v279_v11 = vld [vmem:[%s4427_s6 + $0x60] sm:$0xff]  ;;  %v4461_v25 = vsub.f32 %v301_v4, %v4421_v7  ;;  %v4544_v54 = vsub.f32 %v304_v13, %v4507_v41  ;;  %v4566_v3 = vand.u32 4294901760, %v307_v58  ;;  %s4340_s28 = smov 127   ;;  %s4342_s25 = smov 113  }
  0x12   : > { %v277_v12 = vld [vmem:[%s4427_s6 + $0x50] sm:$0xff]  ;;  %v4443_v14 = vand.u32 4294901760, %v281_v10  ;;  %v4445_v15 = vand.u32 4294901760, %v279_v11  ;;  %v275_v17 = vld [vmem:[%s4427_s6 + $0x40] sm:$0xff]  ;;  %s4344_s30 = smov 112  }
  0x13   : > { %v4447_v16 = vand.u32 4294901760, %v277_v12  ;;  %v273_v18 = vld [vmem:[%s4427_s6 + $0x30] sm:$0xff]  ;;  %v271_v19 = vld [vmem:[%s4427_s6 + $0x20] sm:$0xff]  ;;  %v4452_v20 = vand.u32 4294901760, %v275_v17  ;;  %9598 = vst [vmem:[#allocation2_spill] sm:$0xff] %v4461_v25  ;;  %v4502_v39 = vand.u32 4294901760, %v4461_v25 }
  0x14   : > { %v4454_v21 = vand.u32 4294901760, %v273_v18  ;;  %v4456_v22 = vand.u32 4294901760, %v271_v19  ;;  %v269_v23 = vld [vmem:[%s4427_s6 + $0x10] sm:$0xff]  ;;  %v267_v24 = vld [vmem:[%s4427_s6] sm:$0xff]  ;;  %357 = vmatpush.msra.mxu0 %v4443_v14  ;;  %v4465_v26 = vsub.f32 %v281_v10, %v4443_v14  ;;  %v4468_v27 = vsub.f32 %v279_v11, %v4445_v15  ;;  %744 = vmatpush.msra.mxu3 %v4443_v14  ;;  %9600 = vst [vmem:[#allocation4_spill] sm:$0xff] %v4544_v54  ;;  %v286_v10 = vld [vmem:[%s9227_s2 + $0x18] sm:$0xff] }
  0x15   : > { %v4472_v28 = vsub.f32 %v277_v12, %v4447_v16  ;;  %v4474_v29 = vand.u32 4294901760, %v269_v23  ;;  %v4483_v31 = vsub.f32 %v275_v17, %v4452_v20  ;;  %v4497_v37 = vand.u32 4294901760, %v267_v24  ;;  %9599 = vst [vmem:[#allocation3_spill] sm:$0xff] %v4502_v39  ;;  %v4581_v11 = vld [vmem:[%s9228_s3 + $0x50] sm:$0xff] }
  0x16   : > { %1932 = vperm.xlu1 %4229, %v4432_v8   ;;  %v4486_v32 = vsub.f32 %v273_v18, %v4454_v21  ;;  %v4489_v33 = vsub.f32 %v271_v19, %v4456_v22  ;;  %1927 = vperm.xlu2 %4227, %v4437_v9   ;;  %v511_v34 = vand.u32 4294901760, %v4465_v26  ;;  %v517_v35 = vand.u32 4294901760, %v4468_v27 }
  0x17   : > { %359 = vmatpush.msra.mxu0 %v4445_v15  ;;  %632 = vmatpush.msra.mxu2 %v4465_v26  ;;  %v523_v36 = vand.u32 4294901760, %v4472_v28  ;;  %v529_v38 = vand.u32 4294901760, %v4483_v31  ;;  %v4505_v40 = vsub.f32 %v269_v23, %v4474_v29  ;;  %v4538_v52 = vsub.f32 %v267_v24, %v4497_v37 }
  0x18   : > { %746 = vmatpush.msra.mxu3 %v4445_v15  ;;  %1942 = vperm.xlu0 %4228, %v4479_v30   ;;  %v512_v42 = vsub.f32 %v4465_v26, %v511_v34  ;;  %v518_v43 = vsub.f32 %v4468_v27, %v517_v35  ;;  %v535_v45 = vand.u32 4294901760, %v4486_v32  ;;  %v541_v46 = vand.u32 4294901760, %v4489_v33  ;;  %v287_v26 = vld [vmem:[%s9227_s2 + $0x20] sm:$0xff] }
  0x19   : > { %361 = vmatpush.msra.mxu0 %v4447_v16  ;;  %635 = vmatpush.msra.mxu2 %v4468_v27  ;;  %v524_v44 = vsub.f32 %v4472_v28, %v523_v36  ;;  %v530_v51 = vsub.f32 %v4483_v31, %v529_v38  ;;  %v375_v53 = vsub.f32 %v4461_v25, %v4502_v39  ;;  %v547_v57 = vand.u32 4294901760, %v4505_v40 }
  0x1a   : > { %748 = vmatpush.msra.mxu3 %v4447_v16  ;;  %v513_v48 = vand.u32 4294901760, %v512_v42  ;;  %v519_v50 = vand.u32 4294901760, %v518_v43  ;;  %v536_v56 = vsub.f32 %v4486_v32, %v535_v45  ;;  %v542_v60 = vsub.f32 %v4489_v33, %v541_v46  ;;  %v4601_v42 = vld [vmem:[%s9228_s3 + $0x28] sm:$0xff] }
  0x1b   : > { %363 = vmatpush.msra.mxu0 %v4452_v20  ;;  %638 = vmatpush.msra.mxu2 %v4472_v28  ;;  %v525_v55 = vand.u32 4294901760, %v524_v44  ;;  %v531_v59 = vand.u32 4294901760, %v530_v51  ;;  %v553_v61 = vand.u32 4294901760, %v4538_v52  ;;  %v4561_v62 = vand.u32 4294901760, %v375_v53 }
  0x1c   : > { %750 = vmatpush.msra.mxu3 %v4452_v20  ;;  %514 = vmatpush.msra.mxu1 %v513_v48  ;;  %v4564_v63 = vand.u32 4294901760, %v4544_v54  ;;  %v537_v4 = vand.u32 4294901760, %v536_v56  ;;  %v548_v6 = vsub.f32 %v4505_v40, %v547_v57  ;;  %v543_v12 = vand.u32 4294901760, %v542_v60  ;;  %v4616_v48 = vld [vmem:[%s9228_s3 + $0x48] sm:$0xff] }
  0x1d   : > { %365 = vmatpush.msra.mxu0 %v4454_v21  ;;  %641 = vmatpush.msra.mxu2 %v4483_v31  ;;  %v554_v13 = vsub.f32 %v4538_v52, %v553_v61  ;;  %v4591_v18 = vsub.f32 %v307_v58, %v4566_v3  ;;  %v310_v23 = vsel %vm299_vm0, %v286_v10, 0  ;;  %v313_v51 = vsel %vm299_vm0, %v287_v26, 0  ;;  %v4666_v58 = vld [vmem:[%s9228_s3 + $0x60] sm:$0xff] }
  0x1e   : > { %1947 = vperm.xlu1 %4229, %v4532_v49   ;;  %520 = vmatpush.msra.mxu1 %v519_v50  ;;  %9601 = vst [vmem:[#allocation5_spill] sm:$0xff] %v4564_v63  ;;  %v383_v17 = vsub.f32 %v4544_v54, %v4564_v63  ;;  %v549_v19 = vand.u32 4294901760, %v548_v6  ;;  %v4611_v47 = vand.u32 4294901760, %v310_v23  ;;  %v282_v50 = vld [vmem:[%s4427_s6 + $0x78] sm:$0xff]  ;;  %v4332_v60 = vmov 1  }
  0x1f   : > { %367 = vmatpush.msra.mxu0 %v4456_v22  ;;  %644 = vmatpush.msra.mxu2 %v4486_v32  ;;  %9602 = vst [vmem:[#allocation6_spill] sm:$0xff] %v4591_v18  ;;  %v555_v24 = vand.u32 4294901760, %v554_v13  ;;  %v4609_v44 = vand.u32 4294901760, %v4591_v18  ;;  %v4643_v53 = vand.u32 4294901760, %v282_v50 }
  0x20   : > { %752 = vmatpush.msra.mxu3 %v4454_v21  ;;  %526 = vmatpush.msra.mxu1 %v525_v55  ;;  %v4606_v43 = vand.u32 4294901760, %v383_v17  ;;  %v4650_v55 = vld [vmem:[%s9228_s3 + $0x40] sm:$0xff] }
  0x21   : > { %369 = vmatpush.msra.mxu0 %v4474_v29  ;;  %647 = vmatpush.msra.mxu2 %v4489_v33  ;;  %9603 = vst [vmem:[#allocation7_spill] sm:$0xff] %v4609_v44  ;;  %v391_v27 = vsub.f32 %v4591_v18, %v4609_v44  ;;  %v4713_v33 = vld [vmem:[%s9228_s3 + $0x78] sm:$0xff] }
  0x22   : > { %754 = vmatpush.msra.mxu3 %v4456_v22  ;;  %532 = vmatpush.msra.mxu1 %v531_v59  ;;  %v288_v59 = vld [vmem:[%s9227_s2 + $0x28] sm:$0xff] }
  0x23   : > { %371 = vmatpush.msra.mxu0 %v4497_v37  ;;  %650 = vmatpush.msra.mxu2 %v4505_v40  ;;  %v4656_v56 = vand.u32 4294901760, %v391_v27  ;;  %v316_v32 = vsel %vm299_vm0, %v288_v59, 0 }
  0x24   : > { %377 = vmatmul.f32.vlgmr.msra.gmra.mxu0 %v4561_v62  ;;  %538 = vmatpush.msra.mxu1 %v537_v4 }
  0x25   : > { %756 = vmatpush.msra.mxu3 %v4474_v29  ;;  %653 = vmatpush.msra.mxu2 %v4538_v52 }
  0x26   : > { %1962 = vperm.xlu1 %4229, %v4581_v11   ;;  %544 = vmatpush.msra.mxu1 %v543_v12 }
  0x27   : > { %656 = vmatmul.f32.vlgmr.msra.gmra.mxu2 %v4461_v25  ;;  %758 = vmatpush.msra.mxu3 %v4497_v37 }
  0x28   : > { %867 = vmatpush.msrb.mxu0 %v511_v34  ;;  %550 = vmatpush.msra.mxu1 %v549_v19  ;;  %v4628_v34 = vld [vmem:[%s9228_s3 + $0x68] sm:$0xff]  ;;  %v290_v19 = vld [vmem:[%s9227_s2 + $0x38] sm:$0xff] }
  0x29   : > { %762 = vmatmul.f32.vlgmr.msra.gmra.mxu3 %v4502_v39  ;;  %1937 = vperm.xlu2 %4227, %v4601_v42   ;;  %v322_v27 = vsel %vm299_vm0, %v290_v19, 0 }
  0x2a   : > { %871 = vmatpush.msrb.mxu0 %v517_v35  ;;  %556 = vmatpush.msra.mxu1 %v555_v24  ;;  %v4636_v35 = vsub.f32 %v310_v23, %v4611_v47 }
  0x2b   : > { %1957 = vperm.xlu0 %4228, %v4616_v48   ;;  %558 = vmatmul.f32.vlgmr.msra.gmra.mxu1 %v4421_v7 }
  0x2c   : > { %385 = vmatmul.f32.gmra.mxu0 %v4606_v43  ;;  %9604 = vst [vmem:[#allocation8_spill] sm:$0xff] %v4636_v35  ;;  %970 = vmatpush.msrb.mxu1 %v4443_v14  ;;  %v4654_v14 = vsub.f32 %v282_v50, %v4643_v53  ;;  %v4659_v28 = vand.u32 4294901760, %v4636_v35 }
  0x2d   : > { %875 = vmatpush.msrb.mxu0 %v523_v36  ;;  %v4661_v36 = vand.u32 4294901760, %v313_v51  ;;  %1059 = vmatpush.msrb.mxu2 %v4643_v53 }
  0x2e   : > { %1977 = vperm.xlu1 %4229, %v4628_v34   ;;  %972 = vmatpush.msrb.mxu1 %v4445_v15  ;;  %9605 = vst [vmem:[#allocation9_spill] sm:$0xff] %v4659_v28  ;;  %v9234_v15 = vand.u32 4294901760, %v4654_v14 }
  0x2f   : > { %661 = vmatmul.f32.gmra.mxu2 %v4544_v54  ;;  %879 = vmatpush.msrb.mxu0 %v529_v38  ;;  %v4690_v38 = vsub.f32 %v313_v51, %v4661_v36 }
  0x30   : > { %974 = vmatpush.msrb.mxu1 %v4447_v16  ;;  %v1214_v31 = vsub.f32 %v4654_v14, %v9234_v15  ;;  %v399_v16 = vsub.f32 %v4636_v35, %v4659_v28 }
  0x31   : > { %768 = vmatmul.f32.gmra.mxu3 %v4564_v63  ;;  %1952 = vperm.xlu2 %4227, %v4650_v55   ;;  %9606 = vst [vmem:[#allocation10_spill] sm:$0xff] %v4690_v38  ;;  %v4706_v6 = vand.u32 4294901760, %v4690_v38 }
  0x32   : > { %883 = vmatpush.msrb.mxu0 %v535_v45  ;;  %976 = vmatpush.msrb.mxu1 %v4452_v20  ;;  %v1215_v45 = vand.u32 4294901760, %v1214_v31  ;;  %v4701_v20 = vld [vmem:[%s9228_s3 + $0x58] sm:$0xff]  ;;  %v4703_v4 = vand.u32 4294901760, %v399_v16  ;;  %v4786_v31 = vand.u32 4294901760, %v322_v27  ;;  %v291_v16 = vld [vmem:[%s9227_s2 + $0x40] sm:$0xff] }
  0x33   : > { %1972 = vperm.xlu0 %4228, %v4666_v58   ;;  %562 = vmatmul.f32.gmra.mxu1 %v4507_v41  ;;  %9607 = vst [vmem:[#allocation11_spill] sm:$0xff] %v4706_v6 }
  0x34   : > { %393 = vmatmul.f32.gmra.mxu0 %v4656_v56  ;;  %978 = vmatpush.msrb.mxu1 %v4454_v21  ;;  %v4708_v21 = vand.u32 4294901760, %v316_v32  ;;  %9613 = vst [vmem:[#allocation17_spill] sm:$0xff] %v4786_v31 }
  0x35   : > { %887 = vmatpush.msrb.mxu0 %v541_v46  ;;  %1216 = vmatpush.msrb.mxu3 %v1215_v45  ;;  %v289_v46 = vld [vmem:[%s9227_s2 + $0x30] sm:$0xff]  ;;  %v4798_v45 = vsub.f32 %v322_v27, %v4786_v31  ;;  %v292_v27 = vld [vmem:[%s9227_s2 + $0x48] sm:$0xff] }
  0x36   : > { %4231 = vset.pattern.permute.xlu1 %v4332_v60  ;;  %980 = vmatpush.msrb.mxu1 %v4456_v22  ;;  %v407_v22 = vsub.f32 %v4690_v38, %v4706_v6  ;;  %v4732_v40 = vsub.f32 %v316_v32, %v4708_v21  ;;  %v319_v10 = vsel %vm299_vm0, %v289_v46, 0  ;;  %v278_v46 = vld [vmem:[%s4427_s6 + $0x58] sm:$0xff] }
  0x37   : > { %2193 = vperm.xlu1 %4231, %v4414_v5   ;;  %666 = vmatmul.f32.gmra.mxu2 %v4591_v18  ;;  %v4756_v13 = vand.u32 4294901760, %v319_v10  ;;  %9614 = vst [vmem:[#allocation18_spill] sm:$0xff] %v4798_v45  ;;  %v4813_v19 = vand.u32 4294901760, %v4798_v45 }
  0x38   : > { %891 = vmatpush.msrb.mxu0 %v547_v57  ;;  %982 = vmatpush.msrb.mxu1 %v4474_v29  ;;  %9608 = vst [vmem:[#allocation12_spill] sm:$0xff] %v4732_v40  ;;  %v280_v57 = vld [vmem:[%s4427_s6 + $0x68] sm:$0xff]  ;;  %v4746_v29 = vld [vmem:[%s9228_s3 + $0x70] sm:$0xff] }
  0x39   : > { %774 = vmatmul.f32.gmra.mxu3 %v4609_v44  ;;  %1967 = vperm.xlu2 %4227, %v4701_v20   ;;  %v4736_v12 = vand.u32 4294901760, %v280_v57  ;;  %9610 = vst [vmem:[#allocation14_spill] sm:$0xff] %v4756_v13  ;;  %v4775_v26 = vsub.f32 %v319_v10, %v4756_v13 }
  0x3a   : > { %895 = vmatpush.msrb.mxu0 %v553_v61  ;;  %984 = vmatpush.msrb.mxu1 %v4497_v37  ;;  %v4751_v61 = vand.u32 4294901760, %v407_v22  ;;  %v4754_v37 = vand.u32 4294901760, %v4732_v40  ;;  %v4803_v22 = vand.u32 4294901760, %v278_v46  ;;  %9616 = vst [vmem:[#allocation20_spill] sm:$0xff] %v4813_v19 }
  0x3b   : > { %1987 = vperm.xlu0 %4228, %v4713_v33   ;;  %566 = vmatmul.f32.gmra.mxu1 %v4566_v3  ;;  %v4749_v52 = vsub.f32 %v280_v57, %v4736_v12  ;;  %9611 = vst [vmem:[#allocation15_spill] sm:$0xff] %v4775_v26  ;;  %v4784_v59 = vand.u32 4294901760, %v4775_v26 }
  0x3c   : > { %401 = vmatmul.f32.gmra.mxu0 %v4703_v4  ;;  %1446 = vmatpush.msra.mxu1 %v4643_v53  ;;  %9609 = vst [vmem:[#allocation13_spill] sm:$0xff] %v4754_v37  ;;  %v415_v24 = vsub.f32 %v4732_v40, %v4754_v37  ;;  %v4808_v57 = vsub.f32 %v278_v46, %v4803_v22  ;;  %v328_v46 = vsel %vm299_vm0, %v292_v27, 0 }
  0x3d   : > { %1334 = vmatpush.msra.mxu0 %v4654_v14  ;;  %1061 = vmatpush.msrb.mxu2 %v4736_v12  ;;  %v9233_v17 = vand.u32 4294901760, %v4749_v52  ;;  %9612 = vst [vmem:[#allocation16_spill] sm:$0xff] %v4784_v59  ;;  %v423_v32 = vsub.f32 %v4775_v26, %v4784_v59  ;;  %v4845_v15 = vand.u32 4294901760, %v328_v46 }
  0x3e   : > { %1448 = vmatpush.msra.mxu1 %v4736_v12  ;;  %v4781_v51 = vand.u32 4294901760, %v415_v24  ;;  %v9232_v24 = vand.u32 4294901760, %v4808_v57 }
  0x3f   : > { %2201 = vperm.xlu1 %4231, %v4437_v9   ;;  %671 = vmatmul.f32.gmra.mxu2 %v4636_v35  ;;  %v1220_v23 = vsub.f32 %v4749_v52, %v9233_v17  ;;  %v4810_v10 = vand.u32 4294901760, %v423_v32  ;;  %9621 = vst [vmem:[#allocation25_spill] sm:$0xff] %v4845_v15 }
  0x40   : > { %1337 = vmatpush.msra.mxu0 %v4749_v52  ;;  %1063 = vmatpush.msrb.mxu2 %v4803_v22 }
  0x41   : > { %780 = vmatmul.f32.gmra.mxu3 %v4659_v28  ;;  %1982 = vperm.xlu2 %4227, %v4746_v29   ;;  %v1221_v50 = vand.u32 4294901760, %v1220_v23  ;;  %9615 = vst [vmem:[#allocation19_spill] sm:$0xff] %v4810_v10 }
  0x42   : > { %1450 = vmatpush.msra.mxu1 %v4803_v22  ;;  %1340 = vmatpush.msra.mxu0 %v4808_v57 }
  0x43   : > { %4230 = vset.pattern.permute.xlu0 %v4332_v60  ;;  %570 = vmatmul.f32.gmra.mxu1 %v4611_v47 }
  0x44   : > { %409 = vmatmul.f32.gmra.mxu0 %v4751_v61  ;;  %2189 = vperm.xlu0 %4230, %v4399_v1  }
  0x45   : > { %1222 = vmatpush.msrb.mxu3 %v1221_v50  ;;  %v1226_v50 = vsub.f32 %v4808_v57, %v9232_v24 }
  0x47   : > { %2213 = vperm.xlu1 %4231, %v4479_v30   ;;  %676 = vmatmul.f32.gmra.mxu2 %v4690_v38  ;;  %v1227_v2 = vand.u32 4294901760, %v1226_v50  ;;  %v4857_v50 = vsub.f32 %v328_v46, %v4845_v15  ;;  %v4333_v38 = vmov 2  }
  0x49   : > { %786 = vmatmul.f32.gmra.mxu3 %v4706_v6  ;;  %4232 = vset.pattern.permute.xlu2 %v4332_v60  ;;  %v325_v60 = vsel %vm299_vm0, %v291_v16, 0  ;;  %v431_v16 = vsub.f32 %v4798_v45, %v4813_v19  ;;  %9622 = vst [vmem:[#allocation26_spill] sm:$0xff] %v4857_v50  ;;  %v4872_v6 = vand.u32 4294901760, %v4857_v50 }
  0x4a   : > { %2197 = vperm.xlu2 %4232, %v4394_v0   ;;  %v4815_v23 = vand.u32 4294901760, %v325_v60  ;;  %1228 = vmatpush.msrb.mxu3 %v1227_v2 }
  0x4b   : > { %574 = vmatmul.f32.gmra.mxu1 %v4661_v36  ;;  %v4840_v24 = vand.u32 4294901760, %v431_v16  ;;  %v276_v16 = vld [vmem:[%s4427_s6 + $0x48] sm:$0xff]  ;;  %9624 = vst [vmem:[#allocation28_spill] sm:$0xff] %v4872_v6 }
  0x4c   : > { %417 = vmatmul.f32.gmra.mxu0 %v4781_v51  ;;  %2209 = vperm.xlu0 %4230, %v4601_v42   ;;  %9617 = vst [vmem:[#allocation21_spill] sm:$0xff] %v4815_v23  ;;  %v4834_v32 = vsub.f32 %v325_v60, %v4815_v23  ;;  %v293_v60 = vld [vmem:[%s9227_s2 + $0x50] sm:$0xff] }
  0x4d   : > { %9619 = vst [vmem:[#allocation23_spill] sm:$0xff] %v4840_v24  ;;  %v331_v2 = vsel %vm299_vm0, %v293_v60, 0 }
  0x4e   : > { %9618 = vst [vmem:[#allocation22_spill] sm:$0xff] %v4834_v32  ;;  %v4843_v17 = vand.u32 4294901760, %v4834_v32  ;;  %v4874_v46 = vand.u32 4294901760, %v331_v2 }
  0x4f   : > { %2225 = vperm.xlu1 %4231, %v4616_v48   ;;  %681 = vmatmul.f32.gmra.mxu2 %v4732_v40 }
  0x50   : > { %9620 = vst [vmem:[#allocation24_spill] sm:$0xff] %v4843_v17  ;;  %v439_v27 = vsub.f32 %v4834_v32, %v4843_v17 }
  0x51   : > { %792 = vmatmul.f32.gmra.mxu3 %v4754_v37  ;;  %9625 = vst [vmem:[#allocation29_spill] sm:$0xff] %v4874_v46 }
  0x52   : > { %2205 = vperm.xlu2 %4232, %v4432_v8  }
  0x53   : > { %578 = vmatmul.f32.gmra.mxu1 %v4708_v21 }
  0x54   : > { %425 = vmatmul.f32.gmra.mxu0 %v4810_v10  ;;  %2221 = vperm.xlu0 %4230, %v4650_v55  }
  0x57   : > { %2237 = vperm.xlu1 %4231, %v4666_v58   ;;  %686 = vmatmul.f32.gmra.mxu2 %v4775_v26  ;;  %v4869_v26 = vand.u32 4294901760, %v439_v27  ;;  %v294_v27 = vld [vmem:[%s9227_s2 + $0x58] sm:$0xff] }
  0x58   : > { %v334_v40 = vsel %vm299_vm0, %v294_v27, 0 }
  0x59   : > { %798 = vmatmul.f32.gmra.mxu3 %v4784_v59  ;;  %v4862_v59 = vand.u32 4294901760, %v276_v16  ;;  %9623 = vst [vmem:[#allocation27_spill] sm:$0xff] %v4869_v26  ;;  %v4904_v35 = vand.u32 4294901760, %v334_v40 }
  0x5a   : > { %2217 = vperm.xlu2 %4232, %v4532_v49  }
  0x5b   : > { %582 = vmatmul.f32.gmra.mxu1 %v4756_v13  ;;  %v4867_v37 = vsub.f32 %v276_v16, %v4862_v59  ;;  %1065 = vmatpush.msrb.mxu2 %v4862_v59  ;;  %v4916_v27 = vsub.f32 %v334_v40, %v4904_v35 }
  0x5c   : > { %433 = vmatmul.f32.gmra.mxu0 %v4840_v24  ;;  %2233 = vperm.xlu0 %4230, %v4701_v20  }
  0x5d   : > { %1452 = vmatpush.msra.mxu1 %v4862_v59  ;;  %v9244_v60 = vand.u32 4294901760, %v4867_v37  ;;  %1343 = vmatpush.msra.mxu0 %v4867_v37  ;;  %9629 = vst [vmem:[#allocation33_spill] sm:$0xff] %v4916_v27  ;;  %v4932_v40 = vand.u32 4294901760, %v4916_v27 }
  0x5f   : > { %2249 = vperm.xlu1 %4231, %v4713_v33   ;;  %691 = vmatmul.f32.gmra.mxu2 %v4798_v45  ;;  %v1232_v16 = vsub.f32 %v4867_v37, %v9244_v60  ;;  %v4893_v45 = vsub.f32 %v331_v2, %v4874_v46  ;;  %v295_v2 = vld [vmem:[%s9227_s2 + $0x60] sm:$0xff]  ;;  %9631 = vst [vmem:[#allocation35_spill] sm:$0xff] %v4932_v40 }
  0x61   : > { %804 = vmatmul.f32.gmra.mxu3 %v4813_v19  ;;  %v447_v19 = vsub.f32 %v4857_v50, %v4872_v6  ;;  %9626 = vst [vmem:[#allocation30_spill] sm:$0xff] %v4893_v45  ;;  %v1233_v28 = vand.u32 4294901760, %v1232_v16  ;;  %v4902_v44 = vand.u32 4294901760, %v4893_v45  ;;  %v274_v16 = vld [vmem:[%s4427_s6 + $0x38] sm:$0xff] }
  0x62   : > { %2229 = vperm.xlu2 %4232, %v4581_v11  }
  0x63   : > { %586 = vmatmul.f32.gmra.mxu1 %v4786_v31  ;;  %v4899_v60 = vand.u32 4294901760, %v447_v19  ;;  %9628 = vst [vmem:[#allocation32_spill] sm:$0xff] %v4902_v44  ;;  %1234 = vmatpush.msrb.mxu3 %v1233_v28  ;;  %v455_v19 = vsub.f32 %v4893_v45, %v4902_v44  ;;  %v337_v28 = vsel %vm299_vm0, %v295_v2, 0 }
  0x64   : > { %441 = vmatmul.f32.gmra.mxu0 %v4869_v26  ;;  %2245 = vperm.xlu0 %4230, %v4746_v29   ;;  %v4934_v18 = vand.u32 4294901760, %v337_v28 }
  0x65   : > { %9627 = vst [vmem:[#allocation31_spill] sm:$0xff] %v4899_v60  ;;  %v4929_v63 = vand.u32 4294901760, %v455_v19 }
  0x67   : > { %4233 = vset.pattern.permute.xlu1 %v4333_v38  ;;  %696 = vmatmul.f32.gmra.mxu2 %v4834_v32  ;;  %9630 = vst [vmem:[#allocation34_spill] sm:$0xff] %v4929_v63 }
  0x68   : > { %2453 = vperm.xlu1 %4233, %v4399_v1  }
  0x69   : > { %810 = vmatmul.f32.gmra.mxu3 %v4843_v17  ;;  %v4920_v17 = vand.u32 4294901760, %v274_v16 }
  0x6a   : > { %2241 = vperm.xlu2 %4232, %v4628_v34  }
  0x6b   : > { %590 = vmatmul.f32.gmra.mxu1 %v4815_v23  ;;  %v4925_v32 = vsub.f32 %v274_v16, %v4920_v17  ;;  %1067 = vmatpush.msrb.mxu2 %v4920_v17  ;;  %v296_v16 = vld [vmem:[%s9227_s2 + $0x68] sm:$0xff] }
  0x6c   : > { %449 = vmatmul.f32.gmra.mxu0 %v4899_v60  ;;  %4235 = vset.pattern.permute.xlu0 %v4333_v38  ;;  %v340_v39 = vsel %vm299_vm0, %v296_v16, 0  ;;  %v297_v16 = vld [vmem:[%s9227_s2 + $0x70] sm:$0xff] }
  0x6d   : > { %2461 = vperm.xlu0 %4235, %v4394_v0   ;;  %1454 = vmatpush.msra.mxu1 %v4920_v17  ;;  %v9254_v2 = vand.u32 4294901760, %v4925_v32 }
  0x6e   : > { %1346 = vmatpush.msra.mxu0 %v4925_v32 }
  0x6f   : > { %701 = vmatmul.f32.gmra.mxu2 %v4857_v50  ;;  %v1238_v19 = vsub.f32 %v4925_v32, %v9254_v2  ;;  %v4951_v50 = vsub.f32 %v337_v28, %v4934_v18  ;;  %v4963_v28 = vand.u32 4294901760, %v340_v39 }
  0x70   : > { %2465 = vperm.xlu1 %4233, %v4437_v9  }
  0x71   : > { %816 = vmatmul.f32.gmra.mxu3 %v4872_v6  ;;  %v463_v6 = vsub.f32 %v4916_v27, %v4932_v40  ;;  %v4961_v54 = vand.u32 4294901760, %v4951_v50 }
  0x72   : > { %4234 = vset.pattern.permute.xlu2 %v4333_v38  ;;  %v1239_v38 = vand.u32 4294901760, %v1238_v19  ;;  %v272_v19 = vld [vmem:[%s4427_s6 + $0x28] sm:$0xff] }
  0x73   : > { %594 = vmatmul.f32.gmra.mxu1 %v4845_v15  ;;  %2457 = vperm.xlu2 %4234, %v4414_v5   ;;  %v4958_v2 = vand.u32 4294901760, %v463_v6  ;;  %v4970_v25 = vand.u32 4294901760, %v272_v19  ;;  %v471_v6 = vsub.f32 %v4951_v50, %v4961_v54 }
  0x74   : > { %457 = vmatmul.f32.gmra.mxu0 %v4929_v63  ;;  %1240 = vmatpush.msrb.mxu3 %v1239_v38  ;;  %v4977_v38 = vsub.f32 %v340_v39, %v4963_v28 }
  0x75   : > { %2481 = vperm.xlu0 %4235, %v4532_v49   ;;  %9632 = vst [vmem:[#allocation36_spill] sm:$0xff] %v4958_v2  ;;  %1069 = vmatpush.msrb.mxu2 %v4970_v25  ;;  %v4984_v63 = vsub.f32 %v272_v19, %v4970_v25  ;;  %v5000_v19 = vand.u32 4294901760, %v471_v6  ;;  %v298_v6 = vld [vmem:[%s9227_s2 + $0x78] sm:$0xff] }
  0x76   : > { %1456 = vmatpush.msra.mxu1 %v4970_v25  ;;  %v5003_v15 = vand.u32 4294901760, %v4977_v38 }
  0x77   : > { %706 = vmatmul.f32.gmra.mxu2 %v4893_v45  ;;  %v270_v45 = vld [vmem:[%s4427_s6 + $0x18] sm:$0xff]  ;;  %v1243_v39 = vand.u32 4294901760, %v4984_v63  ;;  %1349 = vmatpush.msra.mxu0 %v4984_v63  ;;  %9633 = vst [vmem:[#allocation37_spill] sm:$0xff] %v5000_v19 }
  0x78   : > { %2473 = vperm.xlu1 %4233, %v4601_v42   ;;  %v4986_v60 = vand.u32 4294901760, %v270_v45 }
  0x79   : > { %822 = vmatmul.f32.gmra.mxu3 %v4902_v44  ;;  %v343_v44 = vsel %vm299_vm0, %v297_v16, 0 }
  0x7a   : > { %v4996_v16 = vsub.f32 %v270_v45, %v4986_v60  ;;  %v5005_v26 = vand.u32 4294901760, %v343_v44  ;;  %1071 = vmatpush.msrb.mxu2 %v4986_v60  ;;  %1458 = vmatpush.msra.mxu1 %v4986_v60 }
  0x7b   : > { %598 = vmatmul.f32.gmra.mxu1 %v4874_v46  ;;  %2469 = vperm.xlu2 %4234, %v4432_v8  }
  0x7c   : > { %465 = vmatmul.f32.gmra.mxu0 %v4958_v2  ;;  %v268_v2 = vld [vmem:[%s4427_s6 + $0x8] sm:$0xff]  ;;  %v1249_v45 = vand.u32 4294901760, %v4996_v16  ;;  %v5026_v10 = vsub.f32 %v343_v44, %v5005_v26 }
  0x7d   : > { %2493 = vperm.xlu0 %4235, %v4581_v11   ;;  %v4993_v46 = vand.u32 4294901760, %v268_v2  ;;  %1352 = vmatpush.msra.mxu0 %v4996_v16 }
  0x7e   : > { %v1250_v31 = vsub.f32 %v4996_v16, %v1249_v45 }
  0x7f   : > { %711 = vmatmul.f32.gmra.mxu2 %v4916_v27  ;;  %v1244_v27 = vsub.f32 %v4984_v63, %v1243_v39  ;;  %v1254_v23 = vsub.f32 %v268_v2, %v4993_v46  ;;  %v9634_v63 = vand.u32 4294901760, %v4654_v14  ;;  %v479_v2 = vsub.f32 %v4977_v38, %v5003_v15  ;;  %1460 = vmatpush.msra.mxu1 %v4993_v46 }
  0x80   : > { %2485 = vperm.xlu1 %4233, %v4650_v55   ;;  %1073 = vmatpush.msrb.mxu2 %v4993_v46  ;;  %v1251_v16 = vand.u32 4294901760, %v1250_v31  ;;  %v9635_v14 = vand.u32 4294901760, %v4749_v52  ;;  %v9638_v52 = vand.u32 4294901760, %v4867_v37  ;;  %v9639_v37 = vand.u32 4294901760, %v4925_v32 }
  0x81   : > { %828 = vmatmul.f32.gmra.mxu3 %v4932_v40  ;;  %v1245_v24 = vand.u32 4294901760, %v1244_v27  ;;  %v1255_v40 = vand.u32 4294901760, %v1254_v23  ;;  %1355 = vmatpush.msra.mxu0 %v1254_v23  ;;  %v346_v27 = vsel %vm299_vm0, %v298_v6, 0  ;;  %v5037_v44 = vand.u32 4294901760, %v479_v2 }
  0x82   : > { %1569 = vmatpush.msra.mxu2 %v9634_v63  ;;  %v5040_v6 = vand.u32 4294901760, %v5026_v10  ;;  %v5042_v31 = vand.u32 4294901760, %v346_v27 }
  0x83   : > { %602 = vmatmul.f32.gmra.mxu1 %v4904_v35  ;;  %2477 = vperm.xlu2 %4234, %v4479_v30   ;;  %v1256_v13 = vsub.f32 %v1254_v23, %v1255_v40  ;;  %v9637_v23 = vand.u32 4294901760, %v4808_v57 }
  0x84   : > { %473 = vmatmul.f32.gmra.mxu0 %v5000_v19  ;;  %1246 = vmatpush.msrb.mxu3 %v1245_v24  ;;  %v5034_v19 = vpop.permute.xlu2 %1912  ;;  %v5056_v57 = vsub.f32 %v346_v27, %v5042_v31  ;;  %v4334_v24 = vmov 3  }
  0x85   : > { %2505 = vperm.xlu0 %4235, %v4628_v34   ;;  %1573 = vmatpush.msra.mxu2 %v9635_v14  ;;  %v1257_v63 = vand.u32 4294901760, %v1256_v13  ;;  %9636 = vst [vmem:[#allocation38_spill] sm:$0xff] %v5034_v19  ;;  %v487_v13 = vsub.f32 %v5026_v10, %v5040_v6 }
  0x86   : > { %1252 = vmatpush.msrb.mxu3 %v1251_v16  ;;  %v5068_v2 = vand.u32 4294901760, %v5056_v57 }
  0x87   : > { %716 = vmatmul.f32.gmra.mxu2 %v4951_v50 }
  0x88   : > { %2497 = vperm.xlu1 %4233, %v4701_v20   ;;  %1577 = vmatpush.msra.mxu2 %v9637_v23 }
  0x89   : > { %834 = vmatmul.f32.gmra.mxu3 %v4961_v54 }
  0x8a   : > { %1258 = vmatpush.msrb.mxu3 %v1257_v63  ;;  %1581 = vmatpush.msra.mxu2 %v9638_v52 }
  0x8b   : > { %606 = vmatmul.f32.gmra.mxu1 %v4934_v18  ;;  %2489 = vperm.xlu2 %4234, %v4616_v48  }
  0x8c   : > { %1672 = vmatpush.msra.mxu3 %v4643_v53  ;;  %481 = vmatmul.f32.gmra.mxu0 %v5037_v44  ;;  %v5065_v53 = vand.u32 4294901760, %v487_v13 }
  0x8d   : > { %4237 = vset.pattern.permute.xlu0 %v4334_v24  ;;  %1585 = vmatpush.msra.mxu2 %v9639_v37 }
  0x8e   : > { %1674 = vmatpush.msra.mxu3 %v4736_v12  ;;  %2719 = vperm.xlu0 %4237, %v4414_v5   ;;  %v5072_v12 = vpop.permute.xlu2 %1927  ;;  %v495_v5 = vsub.f32 %v5056_v57, %v5068_v2 }
  0x8f   : > { %721 = vmatmul.f32.gmra.mxu2 %v4977_v38  ;;  %9640 = vst [vmem:[#allocation39_spill] sm:$0xff] %v5072_v12 }
  0x90   : > { %2509 = vperm.xlu1 %4233, %v4746_v29   ;;  %1676 = vmatpush.msra.mxu3 %v4803_v22  ;;  %v5083_v22 = vand.u32 4294901760, %v495_v5 }
  0x91   : > { %840 = vmatmul.f32.gmra.mxu3 %v5003_v15  ;;  %1589 = vmatpush.msra.mxu2 %v1243_v39 }
  0x92   : > { %1678 = vmatpush.msra.mxu3 %v4862_v59 }
  0x93   : > { %1593 = vmatpush.msra.mxu2 %v1249_v45  ;;  %610 = vmatmul.f32.gmra.mxu1 %v4963_v28 }
  0x94   : > { %489 = vmatmul.f32.gmra.mxu0 %v5065_v53  ;;  %2501 = vperm.xlu2 %4234, %v4666_v58  }
  0x95   : > { %1680 = vmatpush.msra.mxu3 %v4920_v17  ;;  %1597 = vmatpush.msra.mxu2 %v1255_v40  ;;  %v5108_v17 = vpop.permute.xlu1 %1922 }
  0x96   : > { %2739 = vperm.xlu0 %4237, %v4479_v30   ;;  %v5089_v59 = vpop.permute.xlu2 %1937  ;;  %9643 = vst [vmem:[#allocation42_spill] sm:$0xff] %v5108_v17 }
  0x97   : > { %726 = vmatmul.f32.gmra.mxu2 %v5026_v10  ;;  %1682 = vmatpush.msra.mxu3 %v4970_v25  ;;  %9641 = vst [vmem:[#allocation40_spill] sm:$0xff] %v5089_v59 }
  0x98   : > { %4238 = vset.pattern.permute.xlu1 %v4334_v24 }
  0x99   : > { %2723 = vperm.xlu1 %4238, %v4394_v0   ;;  %846 = vmatmul.f32.gmra.mxu3 %v5040_v6 }
  0x9a   : > { %1684 = vmatpush.msra.mxu3 %v4986_v60 }
  0x9b   : > { %614 = vmatmul.f32.gmra.mxu1 %v5005_v26 }
  0x9c   : > { %497 = vmatmul.f32.gmra.mxu0 %v5083_v22  ;;  %2513 = vperm.xlu2 %4234, %v4713_v33  }
  0x9d   : > { %1686 = vmatpush.msra.mxu3 %v4993_v46  ;;  %v5121_v27 = vpop.permute.xlu1 %1932 }
  0x9e   : > { %2751 = vperm.xlu0 %4237, %v4616_v48   ;;  %v5101_v30 = vpop.permute.xlu2 %1952  ;;  %9645 = vst [vmem:[#allocation44_spill] sm:$0xff] %v5121_v27 }
  0x9f   : > { %731 = vmatmul.f32.gmra.mxu2 %v5056_v57  ;;  %9642 = vst [vmem:[#allocation41_spill] sm:$0xff] %v5101_v30 }
  0xa1   : > { %2731 = vperm.xlu1 %4238, %v4432_v8   ;;  %v378_v25 = vpop.f32.mrf.mxu0  ;;  %852 = vmatmul.f32.gmra.mxu3 %v5068_v2 }
  0xa3   : > { %618 = vmatmul.f32.gmra.mxu1 %v5042_v31 }
  0xa4   : > { %897 = vmatmul.f32.vlgmr.msrb.gmra.mxu0 %v4421_v7  ;;  %4236 = vset.pattern.permute.xlu2 %v4334_v24 }
  0xa5   : > { %2715 = vperm.xlu2 %4236, %v4399_v1   ;;  %v5136_v24 = vpop.permute.xlu1 %1947 }
  0xa6   : > { %2763 = vperm.xlu0 %4237, %v4666_v58   ;;  %9647 = vst [vmem:[#allocation46_spill] sm:$0xff] %v5136_v24 }
  0xa7   : > { %1079 = vmatmul.f32.vlgmr.msrb.gmra.mxu2 %v4561_v62 }
  0xa8   : > { %v559_v8 = vpop.f32.mrf.mxu1 }
  0xa9   : > { %2743 = vperm.xlu1 %4238, %v4532_v49   ;;  %v386_v48 = vpop.f32.mrf.mxu0  ;;  %1260 = vmatmul.f32.vlgmr.msrb.gmra.mxu3 %v4421_v7  ;;  %v560_v32 = vadd.f32 %v559_v8, %v378_v25  ;;  %v5117_v49 = vpop.permute.xlu2 %1967  ;;  %v4254_v25 = vld [vmem:[%s9228_s3] sm:$0xff] }
  0xaa   : > { %v657_v46 = vpop.f32.mrf.mxu2  ;;  %9644 = vst [vmem:[#allocation43_spill] sm:$0xff] %v5117_v49 }
  0xab   : > { %v658_v60 = vadd.f32 %v657_v46, %v560_v32  ;;  %986 = vmatmul.f32.vlgmr.msrb.gmra.mxu1 %v4421_v7 }
  0xac   : > { %901 = vmatmul.f32.gmra.mxu0 %v4507_v41  ;;  %v763_v1 = vpop.f32.mrf.mxu3 }
  0xad   : > { %v5112_v40 = vadd.f32 %v763_v1, %v658_v60  ;;  %2727 = vperm.xlu2 %4236, %v4437_v9   ;;  %v5154_v46 = vpop.permute.xlu1 %1962 }
  0xae   : > { %2775 = vperm.xlu0 %4237, %v4713_v33   ;;  %9649 = vst [vmem:[#allocation48_spill] sm:$0xff] %v5154_v46 }
  0xaf   : > { %1087 = vmatmul.f32.gmra.mxu2 %v4606_v43 }
  0xb0   : > { %v563_v58 = vpop.f32.mrf.mxu1 }
  0xb1   : > { %2755 = vperm.xlu1 %4238, %v4581_v11   ;;  %v394_v62 = vpop.f32.mrf.mxu0  ;;  %1264 = vmatmul.f32.gmra.mxu3 %v4507_v41  ;;  %v564_v39 = vadd.f32 %v563_v58, %v386_v48  ;;  %v4335_v11 = vmov 4   ;;  %v5132_v63 = vpop.permute.xlu2 %1982 }
  0xb2   : > { %v662_v45 = vpop.f32.mrf.mxu2  ;;  %9646 = vst [vmem:[#allocation45_spill] sm:$0xff] %v5132_v63  ;;  %v9667_v63 = vld [vmem:[#allocation31_spill] sm:$0xff] }
  0xb3   : > { %v663_v16 = vadd.f32 %v662_v45, %v564_v39  ;;  %990 = vmatmul.f32.gmra.mxu1 %v4507_v41  ;;  %v4255_v39 = vld [vmem:[%s9228_s3 + $0x18] sm:$0xff] }
  0xb4   : > { %905 = vmatmul.f32.gmra.mxu0 %v4566_v3  ;;  %v769_v9 = vpop.f32.mrf.mxu3 }
  0xb5   : > { %v5125_v43 = vadd.f32 %v769_v9, %v663_v16  ;;  %2735 = vperm.xlu2 %4236, %v4601_v42  }
  0xb6   : > { %4241 = vset.pattern.permute.xlu0 %v4335_v11 }
  0xb7   : > { %1095 = vmatmul.f32.gmra.mxu2 %v4656_v56  ;;  %2851 = vperm.xlu0 %4241, %v4394_v0  }
  0xb8   : > { %v567_v14 = vpop.f32.mrf.mxu1 }
  0xb9   : > { %2767 = vperm.xlu1 %4238, %v4628_v34   ;;  %v402_v33 = vpop.f32.mrf.mxu0  ;;  %1268 = vmatmul.f32.gmra.mxu3 %v4566_v3  ;;  %v568_v23 = vadd.f32 %v567_v14, %v394_v62  ;;  %v5146_v8 = vpop.permute.xlu2 %2197 }
  0xba   : > { %v667_v52 = vpop.f32.mrf.mxu2  ;;  %9648 = vst [vmem:[#allocation47_spill] sm:$0xff] %v5146_v8  ;;  %v5169_v14 = vpop.permute.xlu1 %1977 }
  0xbb   : > { %v668_v13 = vadd.f32 %v667_v52, %v568_v23  ;;  %994 = vmatmul.f32.gmra.mxu1 %v4566_v3  ;;  %9651 = vst [vmem:[#allocation50_spill] sm:$0xff] %v5169_v14 }
  0xbc   : > { %909 = vmatmul.f32.gmra.mxu0 %v4611_v47  ;;  %v775_v56 = vpop.f32.mrf.mxu3 }
  0xbd   : > { %v5138_v37 = vadd.f32 %v775_v56, %v668_v13  ;;  %2747 = vperm.xlu2 %4236, %v4650_v55   ;;  %v9652_v56 = vld [vmem:[#allocation14_spill] sm:$0xff] }
  0xbf   : > { %1103 = vmatmul.f32.gmra.mxu2 %v4703_v4 }
  0xc0   : > { %v571_v34 = vpop.f32.mrf.mxu1 }
  0xc1   : > { %4239 = vset.pattern.permute.xlu1 %v4335_v11  ;;  %v410_v0 = vpop.f32.mrf.mxu0  ;;  %1272 = vmatmul.f32.gmra.mxu3 %v4611_v47  ;;  %v572_v5 = vadd.f32 %v571_v34, %v402_v33 }
  0xc2   : > { %2843 = vperm.xlu1 %4239, %v4254_v25   ;;  %v672_v48 = vpop.f32.mrf.mxu2 }
  0xc3   : > { %v673_v32 = vadd.f32 %v672_v48, %v572_v5  ;;  %998 = vmatmul.f32.gmra.mxu1 %v4611_v47  ;;  %v5183_v48 = vpop.permute.xlu0 %1917 }
  0xc4   : > { %913 = vmatmul.f32.gmra.mxu0 %v4661_v36  ;;  %v781_v55 = vpop.f32.mrf.mxu3 }
  0xc5   : > { %v5150_v4 = vadd.f32 %v781_v55, %v673_v32  ;;  %2759 = vperm.xlu2 %4236, %v4701_v20  }
  0xc7   : > { %1111 = vmatmul.f32.gmra.mxu2 %v4751_v61  ;;  %v5162_v61 = vpop.permute.xlu2 %2205 }
  0xc8   : > { %v575_v1 = vpop.f32.mrf.mxu1  ;;  %9650 = vst [vmem:[#allocation49_spill] sm:$0xff] %v5162_v61  ;;  %v9688_v61 = vld [vmem:[#allocation2_spill] sm:$0xff] }
  0xc9   : > { %v418_v60 = vpop.f32.mrf.mxu0  ;;  %1276 = vmatmul.f32.gmra.mxu3 %v4661_v36  ;;  %v576_v62 = vadd.f32 %v575_v1, %v410_v0  ;;  %v9657_v1 = vld [vmem:[#allocation17_spill] sm:$0xff] }
  0xca   : > { %v677_v58 = vpop.f32.mrf.mxu2  ;;  %2855 = vperm.xlu1 %4239, %v4255_v39   ;;  %v9658_v39 = vld [vmem:[#allocation23_spill] sm:$0xff] }
  0xcb   : > { %v678_v45 = vadd.f32 %v677_v58, %v576_v62  ;;  %1002 = vmatmul.f32.gmra.mxu1 %v4661_v36 }
  0xcc   : > { %917 = vmatmul.f32.gmra.mxu0 %v4708_v21  ;;  %v787_v20 = vpop.f32.mrf.mxu3 }
  0xcd   : > { %v5164_v16 = vadd.f32 %v787_v20, %v678_v45  ;;  %2771 = vperm.xlu2 %4236, %v4746_v29   ;;  %v9653_v29 = vld [vmem:[#allocation19_spill] sm:$0xff]  ;;  %v4257_v45 = vld [vmem:[%s9228_s3 + $0x20] sm:$0xff] }
  0xce   : > { %9655 = vst [vmem:[#allocation19_spill] sm:$0xff] %v5183_v48 }
  0xcf   : > { %1119 = vmatmul.f32.gmra.mxu2 %v4781_v51  ;;  %v4256_v51 = vld [vmem:[%s9228_s3 + $0x8] sm:$0xff]  ;;  %v5180_v5 = vpop.permute.xlu2 %2217 }
  0xd0   : > { %v579_v33 = vpop.f32.mrf.mxu1  ;;  %9654 = vst [vmem:[#allocation14_spill] sm:$0xff] %v5180_v5 }
  0xd1   : > { %v426_v9 = vpop.f32.mrf.mxu0  ;;  %1280 = vmatmul.f32.gmra.mxu3 %v4708_v21  ;;  %v580_v23 = vadd.f32 %v579_v33, %v418_v60  ;;  %v5185_v60 = vpop.permute.xlu1 %2193 }
  0xd2   : > { %v682_v52 = vpop.f32.mrf.mxu2  ;;  %2863 = vperm.xlu1 %4239, %v4601_v42   ;;  %9656 = vst [vmem:[#allocation51_spill] sm:$0xff] %v5185_v60 }
  0xd3   : > { %v683_v13 = vadd.f32 %v682_v52, %v580_v23  ;;  %1006 = vmatmul.f32.gmra.mxu1 %v4708_v21 }
  0xd4   : > { %921 = vmatmul.f32.gmra.mxu0 %v9652_v56  ;;  %v793_v0 = vpop.f32.mrf.mxu3 }
  0xd5   : > { %v5174_v34 = vadd.f32 %v793_v0, %v683_v13  ;;  %4240 = vset.pattern.permute.xlu2 %v4335_v11  ;;  %v5198_v13 = vpop.permute.xlu0 %1942 }
  0xd6   : > { %2847 = vperm.xlu2 %4240, %v4256_v51   ;;  %9660 = vst [vmem:[#allocation23_spill] sm:$0xff] %v5198_v13 }
  0xd7   : > { %1127 = vmatmul.f32.gmra.mxu2 %v9653_v29  ;;  %v5196_v33 = vpop.permute.xlu2 %2229  ;;  %v9661_v29 = vld [vmem:[#allocation21_spill] sm:$0xff] }
  0xd8   : > { %v583_v42 = vpop.f32.mrf.mxu1  ;;  %9659 = vst [vmem:[#allocation17_spill] sm:$0xff] %v5196_v33 }
  0xd9   : > { %v434_v25 = vpop.f32.mrf.mxu0  ;;  %1284 = vmatmul.f32.gmra.mxu3 %v9652_v56  ;;  %v584_v32 = vadd.f32 %v583_v42, %v426_v9  ;;  %v5202_v42 = vpop.permute.xlu1 %2201 }
  0xda   : > { %v687_v55 = vpop.f32.mrf.mxu2  ;;  %9662 = vst [vmem:[#allocation21_spill] sm:$0xff] %v5202_v42 }
  0xdb   : > { %v688_v11 = vadd.f32 %v687_v55, %v584_v32  ;;  %1010 = vmatmul.f32.gmra.mxu1 %v9652_v56  ;;  %v9663_v55 = vld [vmem:[#allocation27_spill] sm:$0xff] }
  0xdc   : > { %925 = vmatmul.f32.gmra.mxu0 %v9657_v1  ;;  %v799_v62 = vpop.f32.mrf.mxu3 }
  0xdd   : > { %v5189_v58 = vadd.f32 %v799_v62, %v688_v11  ;;  %v4258_v11 = vld [vmem:[%s9228_s3 + $0x30] sm:$0xff] }
  0xde   : > { %2859 = vperm.xlu2 %4240, %v4257_v45  }
  0xdf   : > { %1135 = vmatmul.f32.gmra.mxu2 %v9658_v39 }
  0xe0   : > { %v587_v9 = vpop.f32.mrf.mxu1 }
  0xe1   : > { %v442_v20 = vpop.f32.mrf.mxu0  ;;  %1288 = vmatmul.f32.gmra.mxu3 %v9657_v1  ;;  %v588_v23 = vadd.f32 %v587_v9, %v434_v25  ;;  %v5211_v9 = vpop.permute.xlu2 %2241 }
  0xe2   : > { %v692_v52 = vpop.f32.mrf.mxu2  ;;  %9664 = vst [vmem:[#allocation27_spill] sm:$0xff] %v5211_v9 }
  0xe3   : > { %v693_v0 = vadd.f32 %v692_v52, %v588_v23  ;;  %1014 = vmatmul.f32.gmra.mxu1 %v9657_v1  ;;  %v9665_v52 = vld [vmem:[#allocation25_spill] sm:$0xff] }
  0xe4   : > { %929 = vmatmul.f32.gmra.mxu0 %v9661_v29  ;;  %v805_v51 = vpop.f32.mrf.mxu3 }
  0xe5   : > { %v5204_v32 = vadd.f32 %v805_v51, %v693_v0  ;;  %v5215_v51 = vpop.permute.xlu0 %1957 }
  0xe6   : > { %2867 = vperm.xlu2 %4240, %v4258_v11   ;;  %9666 = vst [vmem:[#allocation25_spill] sm:$0xff] %v5215_v51  ;;  %v5220_v11 = vpop.permute.xlu1 %2213 }
  0xe7   : > { %1143 = vmatmul.f32.gmra.mxu2 %v9663_v55  ;;  %9668 = vst [vmem:[#allocation31_spill] sm:$0xff] %v5220_v11 }
  0xe8   : > { %v591_v62 = vpop.f32.mrf.mxu1 }
  0xe9   : > { %v450_v25 = vpop.f32.mrf.mxu0  ;;  %1292 = vmatmul.f32.gmra.mxu3 %v9661_v29  ;;  %v592_v39 = vadd.f32 %v591_v62, %v442_v20  ;;  %v5225_v33 = vpop.permute.xlu2 %2457 }
  0xea   : > { %v697_v45 = vpop.f32.mrf.mxu2 }
  0xeb   : > { %v698_v23 = vadd.f32 %v697_v45, %v592_v39  ;;  %1018 = vmatmul.f32.gmra.mxu1 %v9661_v29  ;;  %v9669_v45 = vld [vmem:[#allocation29_spill] sm:$0xff] }
  0xec   : > { %933 = vmatmul.f32.gmra.mxu0 %v9665_v52  ;;  %v811_v0 = vpop.f32.mrf.mxu3  ;;  %9670 = vst [vmem:[#allocation29_spill] sm:$0xff] %v5225_v33 }
  0xed   : > { %v5217_v55 = vadd.f32 %v811_v0, %v698_v23  ;;  %v9671_v0 = vld [vmem:[#allocation34_spill] sm:$0xff] }
  0xef   : > { %1151 = vmatmul.f32.gmra.mxu2 %v9667_v63  ;;  %v5230_v63 = vpop.permute.xlu0 %1972 }
  0xf0   : > { %v595_v14 = vpop.f32.mrf.mxu1  ;;  %9672 = vst [vmem:[#allocation34_spill] sm:$0xff] %v5230_v63 }
  0xf1   : > { %v458_v49 = vpop.f32.mrf.mxu0  ;;  %1296 = vmatmul.f32.gmra.mxu3 %v9665_v52  ;;  %v596_v20 = vadd.f32 %v595_v14, %v450_v25  ;;  %v5233_v14 = vpop.permute.xlu1 %2225 }
  0xf2   : > { %v702_v62 = vpop.f32.mrf.mxu2  ;;  %9673 = vst [vmem:[#allocation52_spill] sm:$0xff] %v5233_v14 }
  0xf3   : > { %v703_v39 = vadd.f32 %v702_v62, %v596_v20  ;;  %1022 = vmatmul.f32.gmra.mxu1 %v9665_v52 }
  0xf4   : > { %937 = vmatmul.f32.gmra.mxu0 %v9669_v45  ;;  %v817_v9 = vpop.f32.mrf.mxu3 }
  0xf5   : > { %v5227_v23 = vadd.f32 %v817_v9, %v703_v39  ;;  %v9674_v39 = vld [vmem:[#allocation36_spill] sm:$0xff] }
  0xf7   : > { %1159 = vmatmul.f32.gmra.mxu2 %v9671_v0  ;;  %v5240_v0 = vpop.permute.xlu2 %2469  ;;  %v5243_v63 = vpop.permute.xlu0 %1987 }
  0xf8   : > { %v599_v46 = vpop.f32.mrf.mxu1  ;;  %9675 = vst [vmem:[#allocation36_spill] sm:$0xff] %v5240_v0 }
  0xf9   : > { %v466_v30 = vpop.f32.mrf.mxu0  ;;  %1300 = vmatmul.f32.gmra.mxu3 %v9669_v45  ;;  %v600_v25 = vadd.f32 %v599_v46, %v458_v49  ;;  %9676 = vst [vmem:[#allocation53_spill] sm:$0xff] %v5243_v63 }
  0xfa   : > { %v707_v20 = vpop.f32.mrf.mxu2 }
  0xfb   : > { %v708_v62 = vadd.f32 %v707_v20, %v600_v25  ;;  %1026 = vmatmul.f32.gmra.mxu1 %v9669_v45  ;;  %v5245_v25 = vpop.permute.xlu1 %2237 }
  0xfc   : > { %941 = vmatmul.f32.gmra.mxu0 %v4904_v35  ;;  %v823_v5 = vpop.f32.mrf.mxu3  ;;  %9677 = vst [vmem:[#allocation54_spill] sm:$0xff] %v5245_v25 }
  0xfd   : > { %v5237_v9 = vadd.f32 %v823_v5, %v708_v62 }
  0xff   : > { %1167 = vmatmul.f32.gmra.mxu2 %v9674_v39  ;;  %v9678_v39 = vld [vmem:[#allocation37_spill] sm:$0xff]  ;;  %v5253_v0 = vpop.permute.xlu2 %2477  ;;  %v5255_v63 = vpop.permute.xlu0 %2189 }
 0x100   : > { %v603_v59 = vpop.f32.mrf.mxu1  ;;  %9679 = vst [vmem:[#allocation37_spill] sm:$0xff] %v5253_v0 }
 0x101   : > { %v474_v13 = vpop.f32.mrf.mxu0  ;;  %1304 = vmatmul.f32.gmra.mxu3 %v4904_v35  ;;  %v604_v49 = vadd.f32 %v603_v59, %v466_v30  ;;  %9680 = vst [vmem:[#allocation55_spill] sm:$0xff] %v5255_v63 }
 0x102   : > { %v712_v46 = vpop.f32.mrf.mxu2 }
 0x103   : > { %v713_v20 = vadd.f32 %v712_v46, %v604_v49  ;;  %1030 = vmatmul.f32.gmra.mxu1 %v4904_v35 }
 0x104   : > { %945 = vmatmul.f32.gmra.mxu0 %v4934_v18  ;;  %v829_v5 = vpop.f32.mrf.mxu3 }
 0x105   : > { %v5249_v62 = vadd.f32 %v829_v5, %v713_v20  ;;  %v5259_v20 = vpop.permute.xlu1 %2249 }
 0x106   : > { %9681 = vst [vmem:[#allocation56_spill] sm:$0xff] %v5259_v20 }
 0x107   : > { %1175 = vmatmul.f32.gmra.mxu2 %v9678_v39  ;;  %v5265_v0 = vpop.permute.xlu2 %2489  ;;  %v5269_v24 = vpop.permute.xlu0 %2209 }
 0x108   : > { %v607_v14 = vpop.f32.mrf.mxu1  ;;  %9682 = vst [vmem:[#allocation57_spill] sm:$0xff] %v5265_v0 }
 0x109   : > { %v482_v51 = vpop.f32.mrf.mxu0  ;;  %1308 = vmatmul.f32.gmra.mxu3 %v4934_v18  ;;  %v608_v59 = vadd.f32 %v607_v14, %v474_v13  ;;  %9683 = vst [vmem:[#allocation58_spill] sm:$0xff] %v5269_v24 }
 0x10a   : > { %v717_v30 = vpop.f32.mrf.mxu2 }
 0x10b   : > { %v718_v49 = vadd.f32 %v717_v30, %v608_v59  ;;  %1034 = vmatmul.f32.gmra.mxu1 %v4934_v18 }
 0x10c   : > { %949 = vmatmul.f32.gmra.mxu0 %v4963_v28  ;;  %v835_v46 = vpop.f32.mrf.mxu3 }
 0x10d   : > { %v5261_v5 = vadd.f32 %v835_v46, %v718_v49 }
 0x10f   : > { %1183 = vmatmul.f32.gmra.mxu2 %v5037_v44  ;;  %v5274_v44 = vpop.permute.xlu1 %2453  ;;  %v5279_v0 = vpop.permute.xlu2 %2501 }
 0x110   : > { %v611_v25 = vpop.f32.mrf.mxu1  ;;  %9684 = vst [vmem:[#allocation59_spill] sm:$0xff] %v5274_v44 }
 0x111   : > { %v490_v39 = vpop.f32.mrf.mxu0  ;;  %1312 = vmatmul.f32.gmra.mxu3 %v4963_v28  ;;  %v612_v13 = vadd.f32 %v611_v25, %v482_v51  ;;  %9685 = vst [vmem:[#allocation60_spill] sm:$0xff] %v5279_v0 }
 0x112   : > { %v722_v14 = vpop.f32.mrf.mxu2 }
 0x113   : > { %v723_v59 = vadd.f32 %v722_v14, %v612_v13  ;;  %1038 = vmatmul.f32.gmra.mxu1 %v4963_v28 }
 0x114   : > { %953 = vmatmul.f32.gmra.mxu0 %v5005_v26  ;;  %v841_v30 = vpop.f32.mrf.mxu3 }
 0x115   : > { %v5271_v49 = vadd.f32 %v841_v30, %v723_v59 }
 0x117   : > { %1191 = vmatmul.f32.gmra.mxu2 %v5065_v53  ;;  %v5284_v53 = vpop.permute.xlu0 %2221 }
 0x118   : > { %v615_v20 = vpop.f32.mrf.mxu1  ;;  %9686 = vst [vmem:[#allocation61_spill] sm:$0xff] %v5284_v53 }
 0x119   : > { %v498_v46 = vpop.f32.mrf.mxu0  ;;  %1316 = vmatmul.f32.gmra.mxu3 %v5005_v26  ;;  %v616_v51 = vadd.f32 %v615_v20, %v490_v39 }
 0x11a   : > { %v727_v25 = vpop.f32.mrf.mxu2 }
 0x11b   : > { %v728_v13 = vadd.f32 %v727_v25, %v616_v51  ;;  %1042 = vmatmul.f32.gmra.mxu1 %v5005_v26  ;;  %v5287_v51 = vpop.permute.xlu1 %2465 }
 0x11c   : > { %957 = vmatmul.f32.gmra.mxu0 %v5042_v31  ;;  %v847_v14 = vpop.f32.mrf.mxu3  ;;  %9687 = vst [vmem:[#allocation62_spill] sm:$0xff] %v5287_v51 }
 0x11d   : > { %v5281_v59 = vadd.f32 %v847_v14, %v728_v13 }
 0x11f   : > { %1199 = vmatmul.f32.gmra.mxu2 %v5083_v22  ;;  %v5294_v22 = vpop.permute.xlu2 %2513 }
 0x120   : > { %v619_v30 = vpop.f32.mrf.mxu1  ;;  %9689 = vst [vmem:[#allocation2_spill] sm:$0xff] %v5294_v22 }
 0x121   : > { %v898_v24 = vpop.f32.mrf.mxu0  ;;  %1320 = vmatmul.f32.gmra.mxu3 %v5042_v31  ;;  %v620_v20 = vadd.f32 %v619_v30, %v498_v46  ;;  %v5298_v46 = vpop.permute.xlu0 %2233 }
 0x122   : > { %v732_v39 = vpop.f32.mrf.mxu2  ;;  %v899_v14 = vadd.f32 %v898_v24, %v5112_v40  ;;  %9690 = vst [vmem:[#allocation63_spill] sm:$0xff] %v5298_v46 }
 0x123   : > { %v733_v25 = vadd.f32 %v732_v39, %v620_v20  ;;  %1046 = vmatmul.f32.gmra.mxu1 %v5042_v31  ;;  %v9692_v39 = vld [vmem:[#allocation4_spill] sm:$0xff] }
 0x124   : > { %1358 = vmatmul.f32.vlgmr.msra.gmra.mxu0 %v9688_v61  ;;  %v853_v0 = vpop.f32.mrf.mxu3  ;;  %v9693_v61 = vld [vmem:[#allocation3_spill] sm:$0xff] }
 0x125   : > { %v5291_v13 = vadd.f32 %v853_v0, %v733_v25  ;;  %v5304_v25 = vpop.permute.xlu1 %2473 }
 0x126   : > { %9694 = vst [vmem:[#allocation4_spill] sm:$0xff] %v5304_v25 }
 0x127   : > { %1599 = vmatmul.f32.vlgmr.msra.gmra.mxu2 %v4421_v7 }
 0x128   : > { %v987_v11 = vpop.f32.mrf.mxu1 }
 0x129   : > { %v902_v53 = vpop.f32.mrf.mxu0  ;;  %1688 = vmatmul.f32.vlgmr.msra.gmra.mxu3 %v4421_v7  ;;  %v5300_v30 = vadd.f32 %v987_v11, %v899_v14  ;;  %v5321_v46 = vpop.permute.xlu0 %2245 }
 0x12a   : > { %v1080_v20 = vpop.f32.mrf.mxu2  ;;  %v903_v40 = vadd.f32 %v902_v53, %v5125_v43  ;;  %9697 = vst [vmem:[#allocation66_spill] sm:$0xff] %v5321_v46  ;;  %v9702_v46 = vld [vmem:[#allocation8_spill] sm:$0xff] }
 0x12b   : > { %9691 = vst [vmem:[#allocation64_spill] sm:$0xff] %v5300_v30  ;;  %1464 = vmatmul.f32.vlgmr.msra.gmra.mxu1 %v9693_v61  ;;  %2316 = vrot.lane.b32.xlu2 %v5300_v30, %s4336_s7  ;;  %v5319_v61 = vpop.permute.xlu2 %2715 }
 0x12c   : > { %1363 = vmatmul.f32.gmra.mxu0 %v9692_v39  ;;  %v1261_v0 = vpop.f32.mrf.mxu3  ;;  %2054 = vrot.lane.b32.xlu1 %v5300_v30, %s4337_s8  ;;  %9696 = vst [vmem:[#allocation65_spill] sm:$0xff] %v5319_v61 }
 0x12d   : > { %v5310_v7 = vadd.f32 %v1261_v0, %v1080_v20  ;;  %1771 = vrot.lane.b32.xlu0 %v5300_v30, %s4338_s9  ;;  %v9698_v20 = vld [vmem:[#allocation6_spill] sm:$0xff]  ;;  %v9699_v0 = vld [vmem:[#allocation5_spill] sm:$0xff]  ;;  %v5333_v43 = vpop.permute.xlu1 %2485 }
 0x12e   : > { %9700 = vst [vmem:[#allocation6_spill] sm:$0xff] %v5333_v43  ;;  %v9708_v43 = vld [vmem:[#allocation10_spill] sm:$0xff] }
 0x12f   : > { %1603 = vmatmul.f32.gmra.mxu2 %v4507_v41 }
 0x130   : > { %v991_v11 = vpop.f32.mrf.mxu1 }
 0x131   : > { %v906_v24 = vpop.f32.mrf.mxu0  ;;  %1692 = vmatmul.f32.gmra.mxu3 %v4507_v41  ;;  %v5317_v14 = vadd.f32 %v991_v11, %v903_v40 }
 0x132   : > { %v1088_v39 = vpop.f32.mrf.mxu2  ;;  %v907_v53 = vadd.f32 %v906_v24, %v5138_v37 }
 0x133   : > { %9695 = vst [vmem:[#allocation3_spill] sm:$0xff] %v5317_v14  ;;  %1470 = vmatmul.f32.gmra.mxu1 %v9699_v0  ;;  %2056 = vrot.lane.b32.xlu2 %v5317_v14, %s4337_s8  ;;  %v5342_v51 = vpop.permute.xlu2 %2727 }
 0x134   : > { %1368 = vmatmul.f32.gmra.mxu0 %v9698_v20  ;;  %v1265_v22 = vpop.f32.mrf.mxu3  ;;  %2582 = vrot.lane.b32.xlu1 %v5317_v14, %s4339_s10  ;;  %9704 = vst [vmem:[#allocation8_spill] sm:$0xff] %v5342_v51 }
 0x135   : > { %v5329_v41 = vadd.f32 %v1265_v22, %v1088_v39  ;;  %2580 = vrot.lane.b32.xlu0 %v5300_v30, %s4339_s10  ;;  %v9703_v22 = vld [vmem:[#allocation7_spill] sm:$0xff]  ;;  %v5356_v24 = vpop.permute.xlu1 %2497 }
 0x136   : > { %9706 = vst [vmem:[#allocation67_spill] sm:$0xff] %v5356_v24 }
 0x137   : > { %1607 = vmatmul.f32.gmra.mxu2 %v4566_v3 }
 0x138   : > { %v995_v40 = vpop.f32.mrf.mxu1 }
 0x139   : > { %1696 = vmatmul.f32.gmra.mxu3 %v4566_v3  ;;  %v5338_v11 = vadd.f32 %v995_v40, %v907_v53  ;;  %v910_v0 = vpop.f32.mrf.mxu0  ;;  %v5350_v3 = vpop.permute.xlu0 %2461 }
 0x13a   : > { %v1096_v20 = vpop.f32.mrf.mxu2  ;;  %9705 = vst [vmem:[#allocation7_spill] sm:$0xff] %v5350_v3 }
 0x13b   : > { %9701 = vst [vmem:[#allocation5_spill] sm:$0xff] %v5338_v11  ;;  %1476 = vmatmul.f32.gmra.mxu1 %v9703_v22  ;;  %2584 = vrot.lane.b32.xlu2 %v5338_v11, %s4339_s10 }
 0x13c   : > { %1373 = vmatmul.f32.gmra.mxu0 %v9702_v46  ;;  %v1269_v39 = vpop.f32.mrf.mxu3  ;;  %1775 = vrot.lane.b32.xlu1 %v5338_v11, %s4338_s9  ;;  %v911_v46 = vadd.f32 %v910_v0, %v5150_v4 }
 0x13d   : > { %v5348_v37 = vadd.f32 %v1269_v39, %v1096_v20  ;;  %1773 = vrot.lane.b32.xlu0 %v5317_v14, %s4338_s9  ;;  %v9709_v20 = vld [vmem:[#allocation9_spill] sm:$0xff]  ;;  %v5380_v24 = vpop.permute.xlu1 %2509 }
 0x13e   : > { %9713 = vst [vmem:[#allocation70_spill] sm:$0xff] %v5380_v24 }
 0x13f   : > { %1611 = vmatmul.f32.gmra.mxu2 %v4611_v47 }
 0x140   : > { %v999_v53 = vpop.f32.mrf.mxu1 }
 0x141   : > { %1700 = vmatmul.f32.gmra.mxu3 %v4611_v47  ;;  %v5359_v40 = vadd.f32 %v999_v53, %v911_v46  ;;  %v914_v51 = vpop.f32.mrf.mxu0  ;;  %v5371_v47 = vpop.permute.xlu2 %2735 }
 0x142   : > { %v1104_v22 = vpop.f32.mrf.mxu2  ;;  %9710 = vst [vmem:[#allocation10_spill] sm:$0xff] %v5371_v47  ;;  %v915_v0 = vadd.f32 %v914_v51, %v5164_v16 }
 0x143   : > { %9707 = vst [vmem:[#allocation68_spill] sm:$0xff] %v5359_v40  ;;  %1482 = vmatmul.f32.gmra.mxu1 %v9709_v20  ;;  %2322 = vrot.lane.b32.xlu2 %v5359_v40, %s4336_s7 }
 0x144   : > { %1378 = vmatmul.f32.gmra.mxu0 %v9708_v43  ;;  %v1273_v39 = vpop.f32.mrf.mxu3  ;;  %2320 = vrot.lane.b32.xlu1 %v5338_v11, %s4336_s7  ;;  %v5374_v43 = vpop.permute.xlu0 %2481 }
 0x145   : > { %v5367_v4 = vadd.f32 %v1273_v39, %v1104_v22  ;;  %2318 = vrot.lane.b32.xlu0 %v5317_v14, %s4336_s7  ;;  %9711 = vst [vmem:[#allocation9_spill] sm:$0xff] %v5374_v43  ;;  %v9714_v22 = vld [vmem:[#allocation12_spill] sm:$0xff]  ;;  %v9715_v39 = vld [vmem:[#allocation11_spill] sm:$0xff]  ;;  %v5400_v24 = vpop.permute.xlu1 %2723 }
 0x147   : > { %1615 = vmatmul.f32.gmra.mxu2 %v4661_v36 }
 0x148   : > { %v1003_v46 = vpop.f32.mrf.mxu1 }
 0x149   : > { %1704 = vmatmul.f32.gmra.mxu3 %v4661_v36  ;;  %v5378_v53 = vadd.f32 %v1003_v46, %v915_v0  ;;  %v5393_v36 = vpop.permute.xlu2 %2747  ;;  %v9718_v46 = vld [vmem:[#allocation15_spill] sm:$0xff] }
 0x14a   : > { %v1112_v20 = vpop.f32.mrf.mxu2  ;;  %9716 = vst [vmem:[#allocation12_spill] sm:$0xff] %v5393_v36 }
 0x14b   : > { %9712 = vst [vmem:[#allocation69_spill] sm:$0xff] %v5378_v53  ;;  %1488 = vmatmul.f32.gmra.mxu1 %v9715_v39  ;;  %1779 = vrot.lane.b32.xlu2 %v5378_v53, %s4338_s9 }
 0x14c   : > { %1383 = vmatmul.f32.gmra.mxu0 %v9714_v22  ;;  %v1277_v25 = vpop.f32.mrf.mxu3  ;;  %1777 = vrot.lane.b32.xlu1 %v5359_v40, %s4338_s9  ;;  %v5396_v51 = vpop.permute.xlu0 %2493  ;;  %v9719_v22 = vld [vmem:[#allocation13_spill] sm:$0xff]  ;;  %9720 = vst [vmem:[#allocation15_spill] sm:$0xff] %v5400_v24 }
 0x14d   : > { %v5388_v16 = vadd.f32 %v1277_v25, %v1112_v20  ;;  %2058 = vrot.lane.b32.xlu0 %v5338_v11, %s4337_s8  ;;  %9717 = vst [vmem:[#allocation11_spill] sm:$0xff] %v5396_v51  ;;  %v918_v20 = vpop.f32.mrf.mxu0 }
 0x14f   : > { %1619 = vmatmul.f32.gmra.mxu2 %v4708_v21 }
 0x151   : > { %1708 = vmatmul.f32.gmra.mxu3 %v4708_v21  ;;  %v1007_v21 = vpop.f32.mrf.mxu1  ;;  %v5413_v51 = vpop.permute.xlu2 %2759 }
 0x152   : > { %v1120_v0 = vpop.f32.mrf.mxu2  ;;  %9721 = vst [vmem:[#allocation13_spill] sm:$0xff] %v5413_v51 }
 0x153   : > { %1494 = vmatmul.f32.gmra.mxu1 %v9719_v22  ;;  %2062 = vrot.lane.b32.xlu2 %v5378_v53, %s4337_s8 }
 0x154   : > { %1388 = vmatmul.f32.gmra.mxu0 %v9718_v46  ;;  %v1281_v39 = vpop.f32.mrf.mxu3  ;;  %2060 = vrot.lane.b32.xlu1 %v5359_v40, %s4337_s8  ;;  %v919_v46 = vadd.f32 %v918_v20, %v5174_v34  ;;  %v5417_v43 = vpop.permute.xlu0 %2505 }
 0x155   : > { %v5406_v25 = vadd.f32 %v1281_v39, %v1120_v0  ;;  %2586 = vrot.lane.b32.xlu0 %v5359_v40, %s4339_s10  ;;  %9723 = vst [vmem:[#allocation72_spill] sm:$0xff] %v5417_v43  ;;  %v9724_v0 = vld [vmem:[#allocation18_spill] sm:$0xff]  ;;  %v9725_v39 = vld [vmem:[#allocation16_spill] sm:$0xff]  ;;  %v922_v20 = vpop.f32.mrf.mxu0 }
 0x156   : > { %v5415_v36 = vadd.f32 %v1007_v21, %v919_v46 }
 0x157   : > { %1623 = vmatmul.f32.gmra.mxu2 %v9652_v56 }
 0x158   : > { %9722 = vst [vmem:[#allocation71_spill] sm:$0xff] %v5415_v36 }
 0x159   : > { %1712 = vmatmul.f32.gmra.mxu3 %v9652_v56  ;;  %v5429_v56 = vpop.permute.xlu1 %2731  ;;  %v1011_v21 = vpop.f32.mrf.mxu1 }
 0x15a   : > { %v1128_v22 = vpop.f32.mrf.mxu2  ;;  %9726 = vst [vmem:[#allocation18_spill] sm:$0xff] %v5429_v56  ;;  %v5435_v51 = vpop.permute.xlu2 %2771 }
 0x15b   : > { %1500 = vmatmul.f32.gmra.mxu1 %v9725_v39  ;;  %1781 = vrot.lane.b32.xlu2 %v5415_v36, %s4338_s9  ;;  %v9728_v39 = vld [vmem:[#allocation20_spill] sm:$0xff]  ;;  %9729 = vst [vmem:[#allocation16_spill] sm:$0xff] %v5435_v51 }
 0x15c   : > { %1393 = vmatmul.f32.gmra.mxu0 %v9724_v0  ;;  %v1285_v47 = vpop.f32.mrf.mxu3  ;;  %2588 = vrot.lane.b32.xlu1 %v5378_v53, %s4339_s10  ;;  %v9727_v0 = vld [vmem:[#allocation22_spill] sm:$0xff] }
 0x15d   : > { %v5425_v34 = vadd.f32 %v1285_v47, %v1128_v22  ;;  %2324 = vrot.lane.b32.xlu0 %v5378_v53, %s4336_s7  ;;  %v5443_v22 = vpop.permute.xlu0 %2719 }
 0x15e   : > { %9730 = vst [vmem:[#allocation22_spill] sm:$0xff] %v5443_v22 }
 0x15f   : > { %1627 = vmatmul.f32.gmra.mxu2 %v9657_v1 }
 0x161   : > { %1716 = vmatmul.f32.gmra.mxu3 %v9657_v1  ;;  %v5448_v1 = vpop.permute.xlu1 %2743  ;;  %v1015_v12 = vpop.f32.mrf.mxu1 }
 0x162   : > { %v1136_v46 = vpop.f32.mrf.mxu2  ;;  %9731 = vst [vmem:[#allocation20_spill] sm:$0xff] %v5448_v1 }
 0x163   : > { %1506 = vmatmul.f32.gmra.mxu1 %v9728_v39  ;;  %2590 = vrot.lane.b32.xlu2 %v5415_v36, %s4339_s10  ;;  %v926_v39 = vpop.f32.mrf.mxu0 }
 0x164   : > { %1398 = vmatmul.f32.gmra.mxu0 %v9727_v0  ;;  %v1289_v43 = vpop.f32.mrf.mxu3  ;;  %2326 = vrot.lane.b32.xlu1 %v5415_v36, %s4336_s7  ;;  %v923_v0 = vadd.f32 %v922_v20, %v5189_v58  ;;  %v5464_v58 = vpop.permute.xlu2 %2847  ;;  %v927_v20 = vadd.f32 %v926_v39, %v5204_v32 }
 0x165   : > { %v5441_v47 = vadd.f32 %v1289_v43, %v1136_v46  ;;  %2064 = vrot.lane.b32.xlu0 %v5415_v36, %s4337_s8  ;;  %v9733_v43 = vld [vmem:[#allocation26_spill] sm:$0xff]  ;;  %v9734_v46 = vld [vmem:[#allocation24_spill] sm:$0xff] }
 0x166   : > { %v5452_v24 = vadd.f32 %v1011_v21, %v923_v0 }
 0x167   : > { %1631 = vmatmul.f32.gmra.mxu2 %v9661_v29 }
 0x168   : > { %9732 = vst [vmem:[#allocation73_spill] sm:$0xff] %v5452_v24 }
 0x169   : > { %1720 = vmatmul.f32.gmra.mxu3 %v9661_v29  ;;  %v5467_v29 = vpop.permute.xlu0 %2739  ;;  %v5471_v0 = vpop.permute.xlu1 %2755 }
 0x16a   : > { %v1144_v51 = vpop.f32.mrf.mxu2  ;;  %9735 = vst [vmem:[#allocation26_spill] sm:$0xff] %v5467_v29 }
 0x16b   : > { %1512 = vmatmul.f32.gmra.mxu1 %v9734_v46  ;;  %2328 = vrot.lane.b32.xlu2 %v5452_v24, %s4336_s7  ;;  %9736 = vst [vmem:[#allocation24_spill] sm:$0xff] %v5471_v0  ;;  %v9739_v46 = vld [vmem:[#allocation28_spill] sm:$0xff]  ;;  %v9742_v0 = vld [vmem:[#allocation33_spill] sm:$0xff] }
 0x16c   : > { %1403 = vmatmul.f32.gmra.mxu0 %v9733_v43  ;;  %v1293_v56 = vpop.f32.mrf.mxu3  ;;  %2066 = vrot.lane.b32.xlu1 %v5452_v24, %s4337_s8  ;;  %v5473_v43 = vadd.f32 %v1015_v12, %v927_v20  ;;  %v5485_v12 = vpop.permute.xlu2 %2859 }
 0x16d   : > { %v5460_v1 = vadd.f32 %v1293_v56, %v1144_v51  ;;  %1783 = vrot.lane.b32.xlu0 %v5452_v24, %s4338_s9  ;;  %v930_v51 = vpop.f32.mrf.mxu0  ;;  %v9738_v56 = vld [vmem:[#allocation30_spill] sm:$0xff] }
 0x16e   : > { %9737 = vst [vmem:[#allocation74_spill] sm:$0xff] %v5473_v43  ;;  %v931_v39 = vadd.f32 %v930_v51, %v5217_v55 }
 0x16f   : > { %1635 = vmatmul.f32.gmra.mxu2 %v9665_v52 }
 0x171   : > { %1724 = vmatmul.f32.gmra.mxu3 %v9665_v52  ;;  %v1019_v52 = vpop.f32.mrf.mxu1  ;;  %v5490_v20 = vpop.permute.xlu0 %2751 }
 0x172   : > { %v1152_v21 = vpop.f32.mrf.mxu2  ;;  %9740 = vst [vmem:[#allocation30_spill] sm:$0xff] %v5490_v20  ;;  %v5496_v29 = vpop.permute.xlu1 %2767 }
 0x173   : > { %1518 = vmatmul.f32.gmra.mxu1 %v9739_v46  ;;  %2068 = vrot.lane.b32.xlu2 %v5473_v43, %s4337_s8  ;;  %v5492_v46 = vadd.f32 %v1019_v52, %v931_v39  ;;  %9744 = vst [vmem:[#allocation33_spill] sm:$0xff] %v5496_v29 }
 0x174   : > { %1408 = vmatmul.f32.gmra.mxu0 %v9738_v56  ;;  %v1297_v17 = vpop.f32.mrf.mxu3  ;;  %1785 = vrot.lane.b32.xlu1 %v5473_v43, %s4338_s9  ;;  %v5506_v51 = vpop.permute.xlu2 %2867 }
 0x175   : > { %v5481_v32 = vadd.f32 %v1297_v17, %v1152_v21  ;;  %2592 = vrot.lane.b32.xlu0 %v5452_v24, %s4339_s10  ;;  %9741 = vst [vmem:[#allocation28_spill] sm:$0xff] %v5492_v46  ;;  %v9743_v17 = vld [vmem:[#allocation32_spill] sm:$0xff] }
 0x177   : > { %1639 = vmatmul.f32.gmra.mxu2 %v9669_v45 }
 0x179   : > { %1728 = vmatmul.f32.gmra.mxu3 %v9669_v45  ;;  %v934_v45 = vpop.f32.mrf.mxu0  ;;  %v5510_v39 = vpop.permute.xlu0 %2763 }
 0x17a   : > { %v1160_v56 = vpop.f32.mrf.mxu2  ;;  %9745 = vst [vmem:[#allocation32_spill] sm:$0xff] %v5510_v39 }
 0x17b   : > { %1524 = vmatmul.f32.gmra.mxu1 %v9743_v17  ;;  %1787 = vrot.lane.b32.xlu2 %v5492_v46, %s4338_s9  ;;  %v9746_v17 = vld [vmem:[#allocation35_spill] sm:$0xff] }
 0x17c   : > { %1413 = vmatmul.f32.gmra.mxu0 %v9742_v0  ;;  %v1301_v21 = vpop.f32.mrf.mxu3  ;;  %2594 = vrot.lane.b32.xlu1 %v5473_v43, %s4339_s10  ;;  %v1023_v0 = vpop.f32.mrf.mxu1 }
 0x17d   : > { %v5502_v55 = vadd.f32 %v1301_v21, %v1160_v56  ;;  %2330 = vrot.lane.b32.xlu0 %v5473_v43, %s4336_s7 }
 0x17f   : > { %1643 = vmatmul.f32.gmra.mxu2 %v4904_v35 }
 0x181   : > { %1732 = vmatmul.f32.gmra.mxu3 %v4904_v35  ;;  %v5522_v35 = vpop.permute.xlu1 %2843 }
 0x182   : > { %v1168_v52 = vpop.f32.mrf.mxu2 }
 0x183   : > { %1530 = vmatmul.f32.gmra.mxu1 %v9746_v17  ;;  %2596 = vrot.lane.b32.xlu2 %v5492_v46, %s4339_s10  ;;  %v935_v17 = vadd.f32 %v934_v45, %v5227_v23  ;;  %v5539_v23 = vpop.permute.xlu0 %2775 }
 0x184   : > { %1418 = vmatmul.f32.gmra.mxu0 %v4951_v50  ;;  %v1305_v56 = vpop.f32.mrf.mxu3  ;;  %2332 = vrot.lane.b32.xlu1 %v5492_v46, %s4336_s7  ;;  %v938_v50 = vpop.f32.mrf.mxu0  ;;  %9749 = vst [vmem:[#allocation76_spill] sm:$0xff] %v5539_v23 }
 0x185   : > { %v5518_v21 = vadd.f32 %v1305_v56, %v1168_v52  ;;  %2070 = vrot.lane.b32.xlu0 %v5492_v46, %s4337_s8  ;;  %v5524_v29 = vpop.permute.xlu2 %2316  ;;  %v1027_v39 = vpop.f32.mrf.mxu1  ;;  %v5529_v8 = vadd.f32 %v1023_v0, %v935_v17 }
 0x186   : > { %9747 = vst [vmem:[#allocation35_spill] sm:$0xff] %v5524_v29 }
 0x187   : > { %1647 = vmatmul.f32.gmra.mxu2 %v4934_v18  ;;  %9748 = vst [vmem:[#allocation75_spill] sm:$0xff] %v5529_v8 }
 0x189   : > { %1736 = vmatmul.f32.gmra.mxu3 %v4934_v18  ;;  %v5543_v18 = vpop.permute.xlu1 %2855 }
 0x18a   : > { %v1176_v20 = vpop.f32.mrf.mxu2 }
 0x18b   : > { %1536 = vmatmul.f32.gmra.mxu1 %v4961_v54  ;;  %2334 = vrot.lane.b32.xlu2 %v5529_v8, %s4336_s7  ;;  %v939_v54 = vadd.f32 %v938_v50, %v5237_v9 }
 0x18c   : > { %1423 = vmatmul.f32.gmra.mxu0 %v4977_v38  ;;  %v1309_v52 = vpop.f32.mrf.mxu3  ;;  %2072 = vrot.lane.b32.xlu1 %v5529_v8, %s4337_s8  ;;  %v942_v38 = vpop.f32.mrf.mxu0 }
 0x18d   : > { %v5537_v56 = vadd.f32 %v1309_v52, %v1176_v20  ;;  %1789 = vrot.lane.b32.xlu0 %v5529_v8, %s4338_s9  ;;  %v5545_v45 = vpop.permute.xlu2 %2056  ;;  %v5550_v17 = vadd.f32 %v1027_v39, %v939_v54  ;;  %v1031_v20 = vpop.f32.mrf.mxu1 }
 0x18e   : > { %9750 = vst [vmem:[#allocation77_spill] sm:$0xff] %v5545_v45 }
 0x18f   : > { %1651 = vmatmul.f32.gmra.mxu2 %v4963_v28  ;;  %9751 = vst [vmem:[#allocation78_spill] sm:$0xff] %v5550_v17 }
 0x191   : > { %1740 = vmatmul.f32.gmra.mxu3 %v4963_v28  ;;  %v5562_v28 = vpop.permute.xlu1 %2863 }
 0x192   : > { %v1184_v0 = vpop.f32.mrf.mxu2 }
 0x193   : > { %1542 = vmatmul.f32.gmra.mxu1 %v5003_v15  ;;  %2074 = vrot.lane.b32.xlu2 %v5550_v17, %s4337_s8  ;;  %v943_v15 = vadd.f32 %v942_v38, %v5249_v62 }
 0x194   : > { %1428 = vmatmul.f32.gmra.mxu0 %v5026_v10  ;;  %v1313_v52 = vpop.f32.mrf.mxu3  ;;  %1791 = vrot.lane.b32.xlu1 %v5550_v17, %s4338_s9  ;;  %v5567_v10 = vpop.permute.xlu0 %2851 }
 0x195   : > { %v5558_v23 = vadd.f32 %v1313_v52, %v1184_v0  ;;  %2598 = vrot.lane.b32.xlu0 %v5529_v8, %s4339_s10  ;;  %v5564_v9 = vpop.permute.xlu2 %2584  ;;  %v5571_v50 = vadd.f32 %v1031_v20, %v943_v15  ;;  %v946_v54 = vpop.f32.mrf.mxu0 }
 0x196   : > { %9752 = vst [vmem:[#allocation79_spill] sm:$0xff] %v5564_v9  ;;  %v1035_v62 = vpop.f32.mrf.mxu1 }
 0x197   : > { %1655 = vmatmul.f32.gmra.mxu2 %v5005_v26  ;;  %9753 = vst [vmem:[#allocation80_spill] sm:$0xff] %v5571_v50 }
 0x199   : > { %1744 = vmatmul.f32.gmra.mxu3 %v5005_v26 }
 0x19a   : > { %v1192_v39 = vpop.f32.mrf.mxu2 }
 0x19b   : > { %1548 = vmatmul.f32.gmra.mxu1 %v5040_v6  ;;  %1793 = vrot.lane.b32.xlu2 %v5571_v50, %s4338_s9 }
 0x19c   : > { %1433 = vmatmul.f32.gmra.mxu0 %v5056_v57  ;;  %v1317_v0 = vpop.f32.mrf.mxu3  ;;  %2600 = vrot.lane.b32.xlu1 %v5550_v17, %s4339_s10 }
 0x19d   : > { %v5579_v52 = vadd.f32 %v1317_v0, %v1192_v39  ;;  %2336 = vrot.lane.b32.xlu0 %v5550_v17, %s4336_s7  ;;  %v5583_v26 = vpop.permute.xlu2 %2322  ;;  %v950_v39 = vpop.f32.mrf.mxu0 }
 0x19e   : > { %9754 = vst [vmem:[#allocation81_spill] sm:$0xff] %v5583_v26  ;;  %v5585_v38 = vpop.permute.xlu1 %2054 }
 0x19f   : > { %1659 = vmatmul.f32.gmra.mxu2 %v5042_v31  ;;  %v5588_v6 = vpop.permute.xlu0 %1771 }
 0x1a1   : > { %1748 = vmatmul.f32.gmra.mxu3 %v5042_v31  ;;  %v1039_v31 = vpop.f32.mrf.mxu1 }
 0x1a2   : > { %v1200_v57 = vpop.f32.mrf.mxu2 }
 0x1a3   : > { %1554 = vmatmul.f32.gmra.mxu1 %v5068_v2  ;;  %2602 = vrot.lane.b32.xlu2 %v5571_v50, %s4339_s10  ;;  %v947_v2 = vadd.f32 %v946_v54, %v5261_v5  ;;  %v951_v5 = vadd.f32 %v950_v39, %v5271_v49 }
 0x1a4   : > { %v1321_v20 = vpop.f32.mrf.mxu3  ;;  %2338 = vrot.lane.b32.xlu1 %v5571_v50, %s4336_s7 }
 0x1a5   : > { %v5596_v15 = vadd.f32 %v1321_v20, %v1200_v57  ;;  %2076 = vrot.lane.b32.xlu0 %v5571_v50, %s4337_s8  ;;  %v5600_v0 = vpop.permute.xlu2 %1779  ;;  %v5607_v27 = vadd.f32 %v1035_v62, %v947_v2  ;;  %v954_v33 = vpop.f32.mrf.mxu0  ;;  %v5622_v62 = vadd.f32 %v1039_v31, %v951_v5 }
 0x1a6   : > { %9755 = vst [vmem:[#allocation82_spill] sm:$0xff] %v5600_v0  ;;  %v5602_v26 = vpop.permute.xlu1 %2582  ;;  %v955_v49 = vadd.f32 %v954_v33, %v5281_v59 }
 0x1a7   : > { %9756 = vst [vmem:[#allocation83_spill] sm:$0xff] %v5602_v26  ;;  %v5604_v9 = vpop.permute.xlu0 %2580  ;;  %v6230_v26 = vld [vmem:[%s9228_s3 + $0x20] sm:$0xff] }
 0x1a8   : > { %9757 = vst [vmem:[#allocation84_spill] sm:$0xff] %v5604_v9 }
 0x1a9   : > { %v1043_v54 = vpop.f32.mrf.mxu1  ;;  %9761 = vst [vmem:[#allocation88_spill] sm:$0xff] %v5622_v62 }
 0x1aa   : > { %v5637_v31 = vadd.f32 %v1043_v54, %v955_v49  ;;  %v1600_v0 = vpop.f32.mrf.mxu2 }
 0x1ab   : > { %2340 = vrot.lane.b32.xlu2 %v5607_v27, %s4336_s7 }
 0x1ac   : > { %2078 = vrot.lane.b32.xlu1 %v5607_v27, %s4337_s8  ;;  %9765 = vst [vmem:[#allocation92_spill] sm:$0xff] %v5637_v31 }
 0x1ad   : > { %1795 = vrot.lane.b32.xlu0 %v5607_v27, %s4338_s9  ;;  %v5615_v57 = vpop.permute.xlu2 %2062  ;;  %v958_v39 = vpop.f32.mrf.mxu0 }
 0x1ae   : > { %9758 = vst [vmem:[#allocation85_spill] sm:$0xff] %v5615_v57  ;;  %v5617_v20 = vpop.permute.xlu1 %1775 }
 0x1af   : > { %9759 = vst [vmem:[#allocation86_spill] sm:$0xff] %v5617_v20  ;;  %v5619_v61 = vpop.permute.xlu0 %1773 }
 0x1b0   : > { %9760 = vst [vmem:[#allocation87_spill] sm:$0xff] %v5619_v61 }
 0x1b1   : > { %v1047_v5 = vpop.f32.mrf.mxu1 }
 0x1b3   : > { %2080 = vrot.lane.b32.xlu2 %v5622_v62, %s4337_s8 }
 0x1b4   : > { %1797 = vrot.lane.b32.xlu1 %v5622_v62, %s4338_s9 }
 0x1b5   : > { %2604 = vrot.lane.b32.xlu0 %v5607_v27, %s4339_s10  ;;  %v5630_v2 = vpop.permute.xlu2 %1781  ;;  %v1359_v33 = vpop.f32.mrf.mxu0 }
 0x1b6   : > { %9762 = vst [vmem:[#allocation89_spill] sm:$0xff] %v5630_v2  ;;  %v5632_v57 = vpop.permute.xlu1 %2320 }
 0x1b7   : > { %9763 = vst [vmem:[#allocation90_spill] sm:$0xff] %v5632_v57  ;;  %v5634_v20 = vpop.permute.xlu0 %2318  ;;  %v6211_v57 = vld [vmem:[%s9228_s3 + $0x10] sm:$0xff] }
 0x1b8   : > { %9764 = vst [vmem:[#allocation91_spill] sm:$0xff] %v5634_v20 }
 0x1b9   : > { %v1465_v59 = vpop.f32.mrf.mxu1 }
 0x1bb   : > { %1799 = vrot.lane.b32.xlu2 %v5637_v31, %s4338_s9 }
 0x1bc   : > { %2606 = vrot.lane.b32.xlu1 %v5622_v62, %s4339_s10 }
 0x1bd   : > { %2342 = vrot.lane.b32.xlu0 %v5622_v62, %s4336_s7  ;;  %v5645_v2 = vpop.permute.xlu2 %2590  ;;  %v1364_v9 = vpop.f32.mrf.mxu0 }
 0x1be   : > { %9766 = vst [vmem:[#allocation93_spill] sm:$0xff] %v5645_v2  ;;  %v5647_v42 = vpop.permute.xlu1 %1777 }
 0x1bf   : > { %9767 = vst [vmem:[#allocation94_spill] sm:$0xff] %v5647_v42  ;;  %v5649_v60 = vpop.permute.xlu0 %2058  ;;  %v959_v42 = vadd.f32 %v958_v39, %v5291_v13 }
 0x1c0   : > { %9768 = vst [vmem:[#allocation95_spill] sm:$0xff] %v5649_v60  ;;  %v1360_v60 = vadd.f32 %v1359_v33, %v5310_v7  ;;  %v1604_v33 = vpop.f32.mrf.mxu2 }
 0x1c1   : > { %v5665_v20 = vadd.f32 %v1047_v5, %v959_v42  ;;  %v1471_v7 = vpop.f32.mrf.mxu1 }
 0x1c2   : > { %v1466_v44 = vadd.f32 %v1465_v59, %v1360_v60  ;;  %v1365_v60 = vadd.f32 %v1364_v9, %v5329_v41 }
 0x1c3   : > { %2608 = vrot.lane.b32.xlu2 %v5637_v31, %s4339_s10  ;;  %9772 = vst [vmem:[#allocation99_spill] sm:$0xff] %v5665_v20 }
 0x1c4   : > { %2344 = vrot.lane.b32.xlu1 %v5637_v31, %s4336_s7  ;;  %v1472_v5 = vadd.f32 %v1471_v7, %v1365_v60 }
 0x1c5   : > { %2082 = vrot.lane.b32.xlu0 %v5637_v31, %s4337_s8  ;;  %v5657_v54 = vpop.permute.xlu2 %2328  ;;  %v1369_v9 = vpop.f32.mrf.mxu0 }
 0x1c6   : > { %9769 = vst [vmem:[#allocation96_spill] sm:$0xff] %v5657_v54  ;;  %v5659_v49 = vpop.permute.xlu1 %2060  ;;  %v1689_v54 = vpop.f32.mrf.mxu3 }
 0x1c7   : > { %9770 = vst [vmem:[#allocation97_spill] sm:$0xff] %v5659_v49  ;;  %v5661_v2 = vpop.permute.xlu0 %2586 }
 0x1c8   : > { %9771 = vst [vmem:[#allocation98_spill] sm:$0xff] %v5661_v2  ;;  %v1601_v2 = vadd.f32 %v1600_v0, %v1466_v44  ;;  %v1605_v44 = vadd.f32 %v1604_v33, %v1472_v5  ;;  %v1608_v5 = vpop.f32.mrf.mxu2 }
 0x1ca   : > { %v5680_v39 = vadd.f32 %v1689_v54, %v1601_v2  ;;  %v1477_v54 = vpop.f32.mrf.mxu1 }
 0x1cb   : > { %2346 = vrot.lane.b32.xlu2 %v5665_v20, %s4336_s7 }
 0x1cc   : > { %2084 = vrot.lane.b32.xlu1 %v5665_v20, %s4337_s8  ;;  %9776 = vst [vmem:[#allocation103_spill] sm:$0xff] %v5680_v39 }
 0x1cd   : > { %1801 = vrot.lane.b32.xlu0 %v5665_v20, %s4338_s9  ;;  %v5673_v49 = vpop.permute.xlu2 %2068 }
 0x1ce   : > { %9773 = vst [vmem:[#allocation100_spill] sm:$0xff] %v5673_v49  ;;  %v5675_v13 = vpop.permute.xlu1 %2588  ;;  %v1693_v49 = vpop.f32.mrf.mxu3 }
 0x1cf   : > { %9774 = vst [vmem:[#allocation101_spill] sm:$0xff] %v5675_v13  ;;  %v5677_v42 = vpop.permute.xlu0 %2324  ;;  %v5694_v2 = vadd.f32 %v1693_v49, %v1605_v44  ;;  %v1370_v49 = vadd.f32 %v1369_v9, %v5348_v37 }
 0x1d0   : > { %9775 = vst [vmem:[#allocation102_spill] sm:$0xff] %v5677_v42  ;;  %v1612_v9 = vpop.f32.mrf.mxu2 }
 0x1d1   : > { %9780 = vst [vmem:[#allocation107_spill] sm:$0xff] %v5694_v2  ;;  %v1478_v44 = vadd.f32 %v1477_v54, %v1370_v49 }
 0x1d2   : > { %v1483_v42 = vpop.f32.mrf.mxu1 }
 0x1d3   : > { %2086 = vrot.lane.b32.xlu2 %v5680_v39, %s4337_s8 }
 0x1d4   : > { %1803 = vrot.lane.b32.xlu1 %v5680_v39, %s4338_s9 }
 0x1d5   : > { %2610 = vrot.lane.b32.xlu0 %v5665_v20, %s4339_s10  ;;  %v5688_v0 = vpop.permute.xlu2 %1787 }
 0x1d6   : > { %9777 = vst [vmem:[#allocation104_spill] sm:$0xff] %v5688_v0  ;;  %v5690_v59 = vpop.permute.xlu1 %2326  ;;  %v1374_v0 = vpop.f32.mrf.mxu0 }
 0x1d7   : > { %9778 = vst [vmem:[#allocation105_spill] sm:$0xff] %v5690_v59  ;;  %v5692_v41 = vpop.permute.xlu0 %2064  ;;  %v1375_v37 = vadd.f32 %v1374_v0, %v5367_v4 }
 0x1d8   : > { %9779 = vst [vmem:[#allocation106_spill] sm:$0xff] %v5692_v41  ;;  %v1697_v41 = vpop.f32.mrf.mxu3 }
 0x1d9   : > { %v1484_v49 = vadd.f32 %v1483_v42, %v1375_v37  ;;  %v1616_v37 = vpop.f32.mrf.mxu2 }
 0x1da   : > { %v1489_v4 = vpop.f32.mrf.mxu1 }
 0x1db   : > { %1805 = vrot.lane.b32.xlu2 %v5694_v2, %s4338_s9 }
 0x1dc   : > { %2612 = vrot.lane.b32.xlu1 %v5680_v39, %s4339_s10 }
 0x1dd   : > { %2348 = vrot.lane.b32.xlu0 %v5680_v39, %s4336_s7  ;;  %v5702_v7 = vpop.permute.xlu2 %2596 }
 0x1de   : > { %9781 = vst [vmem:[#allocation108_spill] sm:$0xff] %v5702_v7  ;;  %v5704_v60 = vpop.permute.xlu1 %2066  ;;  %v1609_v7 = vadd.f32 %v1608_v5, %v1478_v44  ;;  %v1379_v13 = vpop.f32.mrf.mxu0  ;;  %v1613_v44 = vadd.f32 %v1612_v9, %v1484_v49 }
 0x1df   : > { %9782 = vst [vmem:[#allocation109_spill] sm:$0xff] %v5704_v60  ;;  %v5706_v33 = vpop.permute.xlu0 %1783  ;;  %v1380_v42 = vadd.f32 %v1379_v13, %v5388_v16 }
 0x1e0   : > { %9783 = vst [vmem:[#allocation110_spill] sm:$0xff] %v5706_v33  ;;  %v5722_v54 = vadd.f32 %v1697_v41, %v1609_v7  ;;  %v1701_v5 = vpop.f32.mrf.mxu3 }
 0x1e1   : > { %v5737_v41 = vadd.f32 %v1701_v5, %v1613_v44  ;;  %v1490_v7 = vadd.f32 %v1489_v4, %v1380_v42 }
 0x1e2   : > { %9787 = vst [vmem:[#allocation114_spill] sm:$0xff] %v5722_v54  ;;  %v1495_v44 = vpop.f32.mrf.mxu1 }
 0x1e3   : > { %2614 = vrot.lane.b32.xlu2 %v5694_v2, %s4339_s10  ;;  %9791 = vst [vmem:[#allocation118_spill] sm:$0xff] %v5737_v41  ;;  %v1617_v9 = vadd.f32 %v1616_v37, %v1490_v7  ;;  %v1620_v7 = vpop.f32.mrf.mxu2 }
 0x1e4   : > { %2350 = vrot.lane.b32.xlu1 %v5694_v2, %s4336_s7 }
 0x1e5   : > { %2088 = vrot.lane.b32.xlu0 %v5694_v2, %s4337_s8  ;;  %v5715_v60 = vpop.permute.xlu2 %2334 }
 0x1e6   : > { %9784 = vst [vmem:[#allocation111_spill] sm:$0xff] %v5715_v60  ;;  %v5717_v59 = vpop.permute.xlu1 %1785  ;;  %v1384_v13 = vpop.f32.mrf.mxu0 }
 0x1e7   : > { %9785 = vst [vmem:[#allocation112_spill] sm:$0xff] %v5717_v59  ;;  %v5719_v33 = vpop.permute.xlu0 %2592 }
 0x1e8   : > { %9786 = vst [vmem:[#allocation113_spill] sm:$0xff] %v5719_v33 }
 0x1eb   : > { %2352 = vrot.lane.b32.xlu2 %v5722_v54, %s4336_s7 }
 0x1ec   : > { %2090 = vrot.lane.b32.xlu1 %v5722_v54, %s4337_s8 }
 0x1ed   : > { %1807 = vrot.lane.b32.xlu0 %v5722_v54, %s4338_s9  ;;  %v5730_v60 = vpop.permute.xlu2 %2074 }
 0x1ee   : > { %9788 = vst [vmem:[#allocation115_spill] sm:$0xff] %v5730_v60  ;;  %v5732_v33 = vpop.permute.xlu1 %2594 }
 0x1ef   : > { %9789 = vst [vmem:[#allocation116_spill] sm:$0xff] %v5732_v33  ;;  %v5734_v0 = vpop.permute.xlu0 %2330 }
 0x1f0   : > { %9790 = vst [vmem:[#allocation117_spill] sm:$0xff] %v5734_v0  ;;  %v1705_v0 = vpop.f32.mrf.mxu3 }
 0x1f1   : > { %v5751_v5 = vadd.f32 %v1705_v0, %v1617_v9  ;;  %v1385_v0 = vadd.f32 %v1384_v13, %v5406_v25  ;;  %v1624_v13 = vpop.f32.mrf.mxu2 }
 0x1f3   : > { %2092 = vrot.lane.b32.xlu2 %v5737_v41, %s4337_s8  ;;  %9795 = vst [vmem:[#allocation122_spill] sm:$0xff] %v5751_v5  ;;  %v1496_v9 = vadd.f32 %v1495_v44, %v1385_v0 }
 0x1f4   : > { %1809 = vrot.lane.b32.xlu1 %v5737_v41, %s4338_s9 }
 0x1f5   : > { %2616 = vrot.lane.b32.xlu0 %v5722_v54, %s4339_s10  ;;  %v5745_v49 = vpop.permute.xlu2 %1793 }
 0x1f6   : > { %9792 = vst [vmem:[#allocation119_spill] sm:$0xff] %v5745_v49  ;;  %v5747_v60 = vpop.permute.xlu1 %2332  ;;  %v1389_v49 = vpop.f32.mrf.mxu0 }
 0x1f7   : > { %9793 = vst [vmem:[#allocation120_spill] sm:$0xff] %v5747_v60  ;;  %v5749_v16 = vpop.permute.xlu0 %2070  ;;  %v1501_v60 = vpop.f32.mrf.mxu1  ;;  %v1390_v25 = vadd.f32 %v1389_v49, %v5425_v34 }
 0x1f8   : > { %9794 = vst [vmem:[#allocation121_spill] sm:$0xff] %v5749_v16  ;;  %v1709_v16 = vpop.f32.mrf.mxu3 }
 0x1f9   : > { %v1502_v0 = vadd.f32 %v1501_v60, %v1390_v25  ;;  %v1628_v25 = vpop.f32.mrf.mxu2 }
 0x1fb   : > { %1811 = vrot.lane.b32.xlu2 %v5751_v5, %s4338_s9 }
 0x1fc   : > { %2618 = vrot.lane.b32.xlu1 %v5737_v41, %s4339_s10 }
 0x1fd   : > { %2354 = vrot.lane.b32.xlu0 %v5737_v41, %s4336_s7  ;;  %v5759_v4 = vpop.permute.xlu2 %2602 }
 0x1fe   : > { %9796 = vst [vmem:[#allocation123_spill] sm:$0xff] %v5759_v4  ;;  %v5761_v42 = vpop.permute.xlu1 %2072  ;;  %v1621_v4 = vadd.f32 %v1620_v7, %v1496_v9  ;;  %v1394_v59 = vpop.f32.mrf.mxu0  ;;  %v1625_v9 = vadd.f32 %v1624_v13, %v1502_v0 }
 0x1ff   : > { %9797 = vst [vmem:[#allocation124_spill] sm:$0xff] %v5761_v42  ;;  %v5763_v37 = vpop.permute.xlu0 %1789  ;;  %v1507_v34 = vpop.f32.mrf.mxu1  ;;  %v1395_v60 = vadd.f32 %v1394_v59, %v5441_v47 }
 0x200   : > { %9798 = vst [vmem:[#allocation125_spill] sm:$0xff] %v5763_v37  ;;  %v5779_v44 = vadd.f32 %v1709_v16, %v1621_v4  ;;  %v1713_v7 = vpop.f32.mrf.mxu3 }
 0x201   : > { %v5794_v16 = vadd.f32 %v1713_v7, %v1625_v9  ;;  %v1508_v4 = vadd.f32 %v1507_v34, %v1395_v60 }
 0x202   : > { %9802 = vst [vmem:[#allocation129_spill] sm:$0xff] %v5779_v44 }
 0x203   : > { %2620 = vrot.lane.b32.xlu2 %v5751_v5, %s4339_s10  ;;  %9806 = vst [vmem:[#allocation133_spill] sm:$0xff] %v5794_v16  ;;  %v1629_v13 = vadd.f32 %v1628_v25, %v1508_v4  ;;  %v1632_v4 = vpop.f32.mrf.mxu2 }
 0x204   : > { %2356 = vrot.lane.b32.xlu1 %v5751_v5, %s4336_s7 }
 0x205   : > { %2094 = vrot.lane.b32.xlu0 %v5751_v5, %s4337_s8  ;;  %v5772_v42 = vpop.permute.xlu2 %2340 }
 0x206   : > { %9799 = vst [vmem:[#allocation126_spill] sm:$0xff] %v5772_v42  ;;  %v5774_v33 = vpop.permute.xlu1 %1791  ;;  %v1399_v59 = vpop.f32.mrf.mxu0 }
 0x207   : > { %9800 = vst [vmem:[#allocation127_spill] sm:$0xff] %v5774_v33  ;;  %v5776_v37 = vpop.permute.xlu0 %2598  ;;  %v1513_v9 = vpop.f32.mrf.mxu1 }
 0x208   : > { %9801 = vst [vmem:[#allocation128_spill] sm:$0xff] %v5776_v37 }
 0x20b   : > { %2358 = vrot.lane.b32.xlu2 %v5779_v44, %s4336_s7 }
 0x20c   : > { %2096 = vrot.lane.b32.xlu1 %v5779_v44, %s4337_s8 }
 0x20d   : > { %1813 = vrot.lane.b32.xlu0 %v5779_v44, %s4338_s9  ;;  %v5787_v33 = vpop.permute.xlu2 %2080 }
 0x20e   : > { %9803 = vst [vmem:[#allocation130_spill] sm:$0xff] %v5787_v33  ;;  %v5789_v42 = vpop.permute.xlu1 %2600 }
 0x20f   : > { %9804 = vst [vmem:[#allocation131_spill] sm:$0xff] %v5789_v42  ;;  %v5791_v49 = vpop.permute.xlu0 %2336 }
 0x210   : > { %9805 = vst [vmem:[#allocation132_spill] sm:$0xff] %v5791_v49  ;;  %v1717_v49 = vpop.f32.mrf.mxu3 }
 0x211   : > { %v5808_v7 = vadd.f32 %v1717_v49, %v1629_v13  ;;  %v1400_v49 = vadd.f32 %v1399_v59, %v5460_v1  ;;  %v1636_v59 = vpop.f32.mrf.mxu2 }
 0x213   : > { %2098 = vrot.lane.b32.xlu2 %v5794_v16, %s4337_s8  ;;  %9810 = vst [vmem:[#allocation137_spill] sm:$0xff] %v5808_v7  ;;  %v1514_v13 = vadd.f32 %v1513_v9, %v1400_v49 }
 0x214   : > { %1815 = vrot.lane.b32.xlu1 %v5794_v16, %s4338_s9 }
 0x215   : > { %2622 = vrot.lane.b32.xlu0 %v5779_v44, %s4339_s10  ;;  %v5802_v0 = vpop.permute.xlu2 %1799 }
 0x216   : > { %9807 = vst [vmem:[#allocation134_spill] sm:$0xff] %v5802_v0  ;;  %v5804_v33 = vpop.permute.xlu1 %2338  ;;  %v1404_v0 = vpop.f32.mrf.mxu0 }
 0x217   : > { %9808 = vst [vmem:[#allocation135_spill] sm:$0xff] %v5804_v33  ;;  %v5806_v47 = vpop.permute.xlu0 %2076  ;;  %v1519_v33 = vpop.f32.mrf.mxu1  ;;  %v1405_v1 = vadd.f32 %v1404_v0, %v5481_v32 }
 0x218   : > { %9809 = vst [vmem:[#allocation136_spill] sm:$0xff] %v5806_v47  ;;  %v1721_v47 = vpop.f32.mrf.mxu3 }
 0x219   : > { %v1520_v49 = vadd.f32 %v1519_v33, %v1405_v1  ;;  %v1640_v1 = vpop.f32.mrf.mxu2 }
 0x21b   : > { %1817 = vrot.lane.b32.xlu2 %v5808_v7, %s4338_s9 }
 0x21c   : > { %2624 = vrot.lane.b32.xlu1 %v5794_v16, %s4339_s10 }
 0x21d   : > { %2360 = vrot.lane.b32.xlu0 %v5794_v16, %s4336_s7  ;;  %v5816_v34 = vpop.permute.xlu2 %2608 }
 0x21e   : > { %9811 = vst [vmem:[#allocation138_spill] sm:$0xff] %v5816_v34  ;;  %v5818_v60 = vpop.permute.xlu1 %2078  ;;  %v1633_v34 = vadd.f32 %v1632_v4, %v1514_v13  ;;  %v1637_v13 = vadd.f32 %v1636_v59, %v1520_v49 }
 0x21f   : > { %9812 = vst [vmem:[#allocation139_spill] sm:$0xff] %v5818_v60  ;;  %v5820_v25 = vpop.permute.xlu0 %1795  ;;  %v1409_v60 = vpop.f32.mrf.mxu0 }
 0x220   : > { %9813 = vst [vmem:[#allocation140_spill] sm:$0xff] %v5820_v25  ;;  %v5836_v9 = vadd.f32 %v1721_v47, %v1633_v34  ;;  %v1725_v4 = vpop.f32.mrf.mxu3  ;;  %v1525_v32 = vpop.f32.mrf.mxu1  ;;  %v1410_v33 = vadd.f32 %v1409_v60, %v5502_v55 }
 0x221   : > { %v5851_v47 = vadd.f32 %v1725_v4, %v1637_v13 }
 0x222   : > { %9817 = vst [vmem:[#allocation144_spill] sm:$0xff] %v5836_v9  ;;  %v1526_v34 = vadd.f32 %v1525_v32, %v1410_v33 }
 0x223   : > { %2626 = vrot.lane.b32.xlu2 %v5808_v7, %s4339_s10  ;;  %9820 = vst [vmem:[#allocation147_spill] sm:$0xff] %v5851_v47 }
 0x224   : > { %2362 = vrot.lane.b32.xlu1 %v5808_v7, %s4336_s7  ;;  %v1641_v59 = vadd.f32 %v1640_v1, %v1526_v34  ;;  %v1644_v34 = vpop.f32.mrf.mxu2 }
 0x225   : > { %2100 = vrot.lane.b32.xlu0 %v5808_v7, %s4337_s8  ;;  %v5831_v37 = vpop.permute.xlu2 %2346 }
 0x226   : > { %v5829_v42 = vpop.permute.xlu1 %1797  ;;  %9815 = vst [vmem:[#allocation142_spill] sm:$0xff] %v5831_v37 }
 0x227   : > { %9814 = vst [vmem:[#allocation141_spill] sm:$0xff] %v5829_v42  ;;  %v5833_v25 = vpop.permute.xlu0 %2604  ;;  %v1414_v60 = vpop.f32.mrf.mxu0 }
 0x228   : > { %9816 = vst [vmem:[#allocation143_spill] sm:$0xff] %v5833_v25  ;;  %v1531_v13 = vpop.f32.mrf.mxu1 }
 0x22b   : > { %2364 = vrot.lane.b32.xlu2 %v5836_v9, %s4336_s7 }
 0x22c   : > { %2102 = vrot.lane.b32.xlu1 %v5836_v9, %s4337_s8 }
 0x22d   : > { %1819 = vrot.lane.b32.xlu0 %v5836_v9, %s4338_s9  ;;  %v5846_v37 = vpop.permute.xlu2 %2086 }
 0x22e   : > { %v5844_v42 = vpop.permute.xlu1 %2606 }
 0x22f   : > { %9818 = vst [vmem:[#allocation145_spill] sm:$0xff] %v5844_v42  ;;  %v5848_v0 = vpop.permute.xlu0 %2342 }
 0x230   : > { %9819 = vst [vmem:[#allocation146_spill] sm:$0xff] %v5848_v0  ;;  %v1729_v0 = vpop.f32.mrf.mxu3  ;;  %v1537_v25 = vpop.f32.mrf.mxu1 }
 0x231   : > { %v5865_v4 = vadd.f32 %v1729_v0, %v1641_v59  ;;  %v1415_v0 = vadd.f32 %v1414_v60, %v5518_v21  ;;  %v1648_v60 = vpop.f32.mrf.mxu2 }
 0x233   : > { %2104 = vrot.lane.b32.xlu2 %v5851_v47, %s4337_s8  ;;  %9824 = vst [vmem:[#allocation151_spill] sm:$0xff] %v5865_v4  ;;  %v1532_v59 = vadd.f32 %v1531_v13, %v1415_v0 }
 0x234   : > { %1821 = vrot.lane.b32.xlu1 %v5851_v47, %s4338_s9 }
 0x235   : > { %2628 = vrot.lane.b32.xlu0 %v5836_v9, %s4339_s10  ;;  %v5861_v42 = vpop.permute.xlu2 %1805  ;;  %v1645_v3 = vadd.f32 %v1644_v34, %v1532_v59 }
 0x236   : > { %v5859_v49 = vpop.permute.xlu1 %2344  ;;  %9822 = vst [vmem:[#allocation149_spill] sm:$0xff] %v5861_v42 }
 0x237   : > { %9821 = vst [vmem:[#allocation148_spill] sm:$0xff] %v5859_v49  ;;  %v5863_v55 = vpop.permute.xlu0 %2082 }
 0x238   : > { %9823 = vst [vmem:[#allocation150_spill] sm:$0xff] %v5863_v55  ;;  %v1419_v55 = vpop.f32.mrf.mxu0  ;;  %v1733_v49 = vpop.f32.mrf.mxu3 }
 0x239   : > { %v1420_v21 = vadd.f32 %v1419_v55, %v5537_v56  ;;  %v5893_v13 = vadd.f32 %v1733_v49, %v1645_v3  ;;  %v1543_v56 = vpop.f32.mrf.mxu1 }
 0x23b   : > { %1823 = vrot.lane.b32.xlu2 %v5865_v4, %s4338_s9  ;;  %9831 = vst [vmem:[#allocation158_spill] sm:$0xff] %v5893_v13  ;;  %v1538_v0 = vadd.f32 %v1537_v25, %v1420_v21  ;;  %v1652_v21 = vpop.f32.mrf.mxu2 }
 0x23c   : > { %2630 = vrot.lane.b32.xlu1 %v5851_v47, %s4339_s10 }
 0x23d   : > { %2366 = vrot.lane.b32.xlu0 %v5851_v47, %s4336_s7  ;;  %v5873_v32 = vpop.permute.xlu2 %2614  ;;  %v1649_v59 = vadd.f32 %v1648_v60, %v1538_v0 }
 0x23e   : > { %9825 = vst [vmem:[#allocation152_spill] sm:$0xff] %v5873_v32  ;;  %v5875_v33 = vpop.permute.xlu1 %2084  ;;  %v6236_v32 = vld [vmem:[%s9228_s3 + $0x30] sm:$0xff] }
 0x23f   : > { %9826 = vst [vmem:[#allocation153_spill] sm:$0xff] %v5875_v33  ;;  %v5877_v1 = vpop.permute.xlu0 %1801 }
 0x240   : > { %9827 = vst [vmem:[#allocation154_spill] sm:$0xff] %v5877_v1  ;;  %v1424_v45 = vpop.f32.mrf.mxu0  ;;  %v1737_v34 = vpop.f32.mrf.mxu3 }
 0x241   : > { %v1425_v25 = vadd.f32 %v1424_v45, %v5558_v23  ;;  %v5908_v49 = vadd.f32 %v1737_v34, %v1649_v59  ;;  %v1549_v59 = vpop.f32.mrf.mxu1 }
 0x243   : > { %2632 = vrot.lane.b32.xlu2 %v5865_v4, %s4339_s10  ;;  %9835 = vst [vmem:[#allocation162_spill] sm:$0xff] %v5908_v49  ;;  %v1544_v55 = vadd.f32 %v1543_v56, %v1425_v25 }
 0x244   : > { %2368 = vrot.lane.b32.xlu1 %v5865_v4, %s4336_s7 }
 0x245   : > { %2106 = vrot.lane.b32.xlu0 %v5865_v4, %s4337_s8  ;;  %v5886_v33 = vpop.permute.xlu2 %2352  ;;  %v1653_v60 = vadd.f32 %v1652_v21, %v1544_v55  ;;  %v1656_v21 = vpop.f32.mrf.mxu2 }
 0x246   : > { %9828 = vst [vmem:[#allocation155_spill] sm:$0xff] %v5886_v33  ;;  %v5888_v22 = vpop.permute.xlu1 %1803 }
 0x247   : > { %9829 = vst [vmem:[#allocation156_spill] sm:$0xff] %v5888_v22  ;;  %v5890_v1 = vpop.permute.xlu0 %2610 }
 0x248   : > { %9830 = vst [vmem:[#allocation157_spill] sm:$0xff] %v5890_v1  ;;  %v1429_v34 = vpop.f32.mrf.mxu0 }
 0x24b   : > { %2370 = vrot.lane.b32.xlu2 %v5893_v13, %s4336_s7 }
 0x24c   : > { %2108 = vrot.lane.b32.xlu1 %v5893_v13, %s4337_s8 }
 0x24d   : > { %1825 = vrot.lane.b32.xlu0 %v5893_v13, %s4338_s9  ;;  %v5901_v48 = vpop.permute.xlu2 %2092 }
 0x24e   : > { %9832 = vst [vmem:[#allocation159_spill] sm:$0xff] %v5901_v48  ;;  %v5903_v1 = vpop.permute.xlu1 %2612  ;;  %v1741_v48 = vpop.f32.mrf.mxu3 }
 0x24f   : > { %9833 = vst [vmem:[#allocation160_spill] sm:$0xff] %v5903_v1  ;;  %v5905_v3 = vpop.permute.xlu0 %2348  ;;  %v5922_v45 = vadd.f32 %v1741_v48, %v1653_v60  ;;  %v1430_v48 = vadd.f32 %v1429_v34, %v5579_v52 }
 0x250   : > { %9834 = vst [vmem:[#allocation161_spill] sm:$0xff] %v5905_v3  ;;  %v1660_v3 = vpop.f32.mrf.mxu2 }
 0x251   : > { %9839 = vst [vmem:[#allocation166_spill] sm:$0xff] %v5922_v45  ;;  %v1550_v60 = vadd.f32 %v1549_v59, %v1430_v48 }
 0x253   : > { %2110 = vrot.lane.b32.xlu2 %v5908_v49, %s4337_s8 }
 0x254   : > { %1827 = vrot.lane.b32.xlu1 %v5908_v49, %s4338_s9 }
 0x255   : > { %2634 = vrot.lane.b32.xlu0 %v5893_v13, %s4339_s10  ;;  %v5916_v0 = vpop.permute.xlu2 %1811 }
 0x256   : > { %9836 = vst [vmem:[#allocation163_spill] sm:$0xff] %v5916_v0  ;;  %v5918_v1 = vpop.permute.xlu1 %2350  ;;  %v1434_v0 = vpop.f32.mrf.mxu0 }
 0x257   : > { %9837 = vst [vmem:[#allocation164_spill] sm:$0xff] %v5918_v1  ;;  %v5920_v23 = vpop.permute.xlu0 %2088  ;;  %v1745_v1 = vpop.f32.mrf.mxu3  ;;  %v1435_v34 = vadd.f32 %v1434_v0, %v5596_v15 }
 0x258   : > { %9838 = vst [vmem:[#allocation165_spill] sm:$0xff] %v5920_v23 }
 0x25b   : > { %1829 = vrot.lane.b32.xlu2 %v5922_v45, %s4338_s9 }
 0x25c   : > { %2636 = vrot.lane.b32.xlu1 %v5908_v49, %s4339_s10 }
 0x25d   : > { %2372 = vrot.lane.b32.xlu0 %v5908_v49, %s4336_s7  ;;  %v5930_v56 = vpop.permute.xlu2 %2620 }
 0x25e   : > { %9840 = vst [vmem:[#allocation167_spill] sm:$0xff] %v5930_v56  ;;  %v5932_v25 = vpop.permute.xlu1 %2090  ;;  %v1657_v56 = vadd.f32 %v1656_v21, %v1550_v60 }
 0x25f   : > { %9841 = vst [vmem:[#allocation168_spill] sm:$0xff] %v5932_v25  ;;  %v5934_v55 = vpop.permute.xlu0 %1807 }
 0x260   : > { %9842 = vst [vmem:[#allocation169_spill] sm:$0xff] %v5934_v55  ;;  %v1555_v55 = vpop.f32.mrf.mxu1  ;;  %v5950_v59 = vadd.f32 %v1745_v1, %v1657_v56 }
 0x261   : > { %v1556_v48 = vadd.f32 %v1555_v55, %v1435_v34  ;;  %v5981_v55 = vld [vmem:[%s9228_s3 + $0x48] sm:$0xff] }
 0x262   : > { %9846 = vst [vmem:[#allocation173_spill] sm:$0xff] %v5950_v59 }
 0x263   : > { %2638 = vrot.lane.b32.xlu2 %v5922_v45, %s4339_s10  ;;  %v1661_v21 = vadd.f32 %v1660_v3, %v1556_v48 }
 0x264   : > { %2374 = vrot.lane.b32.xlu1 %v5922_v45, %s4336_s7 }
 0x265   : > { %2112 = vrot.lane.b32.xlu0 %v5922_v45, %s4337_s8  ;;  %v5943_v23 = vpop.permute.xlu2 %2358 }
 0x266   : > { %9843 = vst [vmem:[#allocation170_spill] sm:$0xff] %v5943_v23  ;;  %v5945_v25 = vpop.permute.xlu1 %1809 }
 0x267   : > { %9844 = vst [vmem:[#allocation171_spill] sm:$0xff] %v5945_v25  ;;  %v5947_v52 = vpop.permute.xlu0 %2616  ;;  %v6053_v25 = vld [vmem:[%s9228_s3 + $0x68] sm:$0xff] }
 0x268   : > { %9845 = vst [vmem:[#allocation172_spill] sm:$0xff] %v5947_v52  ;;  %v1749_v52 = vpop.f32.mrf.mxu3 }
 0x269   : > { %v5964_v1 = vadd.f32 %v1749_v52, %v1661_v21  ;;  %v5997_v21 = vld [vmem:[%s9228_s3 + $0x60] sm:$0xff] }
 0x26b   : > { %2376 = vrot.lane.b32.xlu2 %v5950_v59, %s4336_s7  ;;  %9850 = vst [vmem:[#allocation177_spill] sm:$0xff] %v5964_v1 }
 0x26c   : > { %2114 = vrot.lane.b32.xlu1 %v5950_v59, %s4337_s8 }
 0x26d   : > { %1831 = vrot.lane.b32.xlu0 %v5950_v59, %s4338_s9  ;;  %v5958_v60 = vpop.permute.xlu2 %2098 }
 0x26e   : > { %9847 = vst [vmem:[#allocation174_spill] sm:$0xff] %v5958_v60  ;;  %v5960_v23 = vpop.permute.xlu1 %2618 }
 0x26f   : > { %9848 = vst [vmem:[#allocation175_spill] sm:$0xff] %v5960_v23  ;;  %v5962_v15 = vpop.permute.xlu0 %2354  ;;  %v6027_v23 = vld [vmem:[%s9228_s3 + $0x58] sm:$0xff] }
 0x270   : > { %9849 = vst [vmem:[#allocation176_spill] sm:$0xff] %v5962_v15  ;;  %v6047_v15 = vld [vmem:[%s9228_s3 + $0x70] sm:$0xff] }
 0x273   : > { %2116 = vrot.lane.b32.xlu2 %v5964_v1, %s4337_s8 }
 0x274   : > { %1833 = vrot.lane.b32.xlu1 %v5964_v1, %s4338_s9 }
 0x275   : > { %2640 = vrot.lane.b32.xlu0 %v5950_v59, %s4339_s10  ;;  %v5972_v0 = vpop.permute.xlu2 %1817 }
 0x276   : > { %9851 = vst [vmem:[#allocation178_spill] sm:$0xff] %v5972_v0  ;;  %v5974_v3 = vpop.permute.xlu1 %2356  ;;  %v6021_v0 = vld [vmem:[%s9228_s3 + $0x78] sm:$0xff] }
 0x277   : > { %9852 = vst [vmem:[#allocation179_spill] sm:$0xff] %v5974_v3  ;;  %v5976_v56 = vpop.permute.xlu0 %2094 }
 0x278   : > { %9853 = vst [vmem:[#allocation180_spill] sm:$0xff] %v5976_v56  ;;  %v6003_v56 = vld [vmem:[%s9228_s3 + $0x40] sm:$0xff] }
 0x27b   : > { %2879 = vperm.xlu2 %4240, %v5981_v55  }
 0x27c   : > { %2642 = vrot.lane.b32.xlu1 %v5964_v1, %s4339_s10  ;;  %s4346_s10 = smov 111  }
 0x27d   : > { %2378 = vrot.lane.b32.xlu0 %v5964_v1, %s4336_s7  ;;  %v5988_v52 = vpop.permute.xlu2 %2626 }
 0x27e   : > { %9854 = vst [vmem:[#allocation181_spill] sm:$0xff] %v5988_v52  ;;  %v5990_v34 = vpop.permute.xlu1 %2096 }
 0x27f   : > { %9855 = vst [vmem:[#allocation182_spill] sm:$0xff] %v5990_v34  ;;  %v5992_v48 = vpop.permute.xlu0 %1813  ;;  %v6009_v34 = vld [vmem:[%s9228_s3 + $0x38] sm:$0xff] }
 0x280   : > { %9856 = vst [vmem:[#allocation183_spill] sm:$0xff] %v5992_v48 }
 0x283   : > { %2891 = vperm.xlu2 %4240, %v5997_v21  }
 0x284   : > { %2875 = vperm.xlu1 %4239, %v6003_v56  }
 0x285   : > { %2871 = vperm.xlu0 %4241, %v6009_v34   ;;  %v6012_v48 = vpop.permute.xlu2 %2364 }
 0x286   : > { %9857 = vst [vmem:[#allocation184_spill] sm:$0xff] %v6012_v48  ;;  %v6014_v52 = vpop.permute.xlu1 %1815 }
 0x287   : > { %9858 = vst [vmem:[#allocation185_spill] sm:$0xff] %v6014_v52  ;;  %v6016_v3 = vpop.permute.xlu0 %2622  ;;  %v6033_v52 = vld [vmem:[%s9228_s3 + $0x50] sm:$0xff] }
 0x288   : > { %9859 = vst [vmem:[#allocation186_spill] sm:$0xff] %v6016_v3 }
 0x28b   : > { %2903 = vperm.xlu2 %4240, %v6021_v0  }
 0x28c   : > { %2887 = vperm.xlu1 %4239, %v6027_v23  }
 0x28d   : > { %2883 = vperm.xlu0 %4241, %v6033_v52   ;;  %v6036_v48 = vpop.permute.xlu2 %2104 }
 0x28e   : > { %9860 = vst [vmem:[#allocation187_spill] sm:$0xff] %v6036_v48  ;;  %v6038_v3 = vpop.permute.xlu1 %2624 }
 0x28f   : > { %9861 = vst [vmem:[#allocation188_spill] sm:$0xff] %v6038_v3  ;;  %v6040_v60 = vpop.permute.xlu0 %2360 }
 0x290   : > { %9862 = vst [vmem:[#allocation189_spill] sm:$0xff] %v6040_v60 }
 0x293   : > { %2974 = vrot.lane.b32.xlu2 %v5338_v11, %s4340_s28 }
 0x294   : > { %2899 = vperm.xlu1 %4239, %v6047_v15  }
 0x295   : > { %2895 = vperm.xlu0 %4241, %v6053_v25   ;;  %v6056_v3 = vpop.permute.xlu2 %1823 }
 0x296   : > { %9863 = vst [vmem:[#allocation190_spill] sm:$0xff] %v6056_v3  ;;  %v6058_v60 = vpop.permute.xlu1 %2362 }
 0x297   : > { %9864 = vst [vmem:[#allocation191_spill] sm:$0xff] %v6058_v60  ;;  %v6060_v48 = vpop.permute.xlu0 %2100 }
 0x298   : > { %9865 = vst [vmem:[#allocation192_spill] sm:$0xff] %v6060_v48 }
 0x29b   : > { %2980 = vrot.lane.b32.xlu2 %v5415_v36, %s4340_s28 }
 0x29c   : > { %2972 = vrot.lane.b32.xlu1 %v5317_v14, %s4340_s28 }
 0x29d   : > { %2970 = vrot.lane.b32.xlu0 %v5300_v30, %s4340_s28  ;;  %v6068_v29 = vpop.permute.xlu2 %2632 }
 0x29e   : > { %9866 = vst [vmem:[#allocation193_spill] sm:$0xff] %v6068_v29  ;;  %v6070_v19 = vpop.permute.xlu1 %2102 }
 0x29f   : > { %9867 = vst [vmem:[#allocation194_spill] sm:$0xff] %v6070_v19  ;;  %v6072_v63 = vpop.permute.xlu0 %1819 }
 0x2a0   : > { %9868 = vst [vmem:[#allocation195_spill] sm:$0xff] %v6072_v63 }
 0x2a3   : > { %2986 = vrot.lane.b32.xlu2 %v5492_v46, %s4340_s28 }
 0x2a4   : > { %2978 = vrot.lane.b32.xlu1 %v5378_v53, %s4340_s28 }
 0x2a5   : > { %2976 = vrot.lane.b32.xlu0 %v5359_v40, %s4340_s28  ;;  %v6080_v60 = vpop.permute.xlu2 %2370 }
 0x2a6   : > { %9869 = vst [vmem:[#allocation196_spill] sm:$0xff] %v6080_v60  ;;  %v6082_v3 = vpop.permute.xlu1 %1821 }
 0x2a7   : > { %9870 = vst [vmem:[#allocation197_spill] sm:$0xff] %v6082_v3  ;;  %v6084_v48 = vpop.permute.xlu0 %2628 }
 0x2a8   : > { %9871 = vst [vmem:[#allocation198_spill] sm:$0xff] %v6084_v48 }
 0x2ab   : > { %2992 = vrot.lane.b32.xlu2 %v5571_v50, %s4340_s28 }
 0x2ac   : > { %2984 = vrot.lane.b32.xlu1 %v5473_v43, %s4340_s28 }
 0x2ad   : > { %2982 = vrot.lane.b32.xlu0 %v5452_v24, %s4340_s28  ;;  %v6092_v29 = vpop.permute.xlu2 %2110 }
 0x2ae   : > { %9872 = vst [vmem:[#allocation199_spill] sm:$0xff] %v6092_v29  ;;  %v6094_v63 = vpop.permute.xlu1 %2630 }
 0x2af   : > { %9873 = vst [vmem:[#allocation200_spill] sm:$0xff] %v6094_v63  ;;  %v6096_v19 = vpop.permute.xlu0 %2366 }
 0x2b0   : > { %9874 = vst [vmem:[#allocation201_spill] sm:$0xff] %v6096_v19 }
 0x2b3   : > { %2998 = vrot.lane.b32.xlu2 %v5637_v31, %s4340_s28 }
 0x2b4   : > { %2990 = vrot.lane.b32.xlu1 %v5550_v17, %s4340_s28 }
 0x2b5   : > { %2988 = vrot.lane.b32.xlu0 %v5529_v8, %s4340_s28  ;;  %v6104_v60 = vpop.permute.xlu2 %1829 }
 0x2b6   : > { %9875 = vst [vmem:[#allocation202_spill] sm:$0xff] %v6104_v60  ;;  %v6106_v48 = vpop.permute.xlu1 %2368 }
 0x2b7   : > { %9876 = vst [vmem:[#allocation203_spill] sm:$0xff] %v6106_v48  ;;  %v6108_v3 = vpop.permute.xlu0 %2106 }
 0x2b8   : > { %9877 = vst [vmem:[#allocation204_spill] sm:$0xff] %v6108_v3  ;;  %v4341_v3 = vmov 5  }
 0x2b9   : > { %4242 = vset.pattern.permute.xlu2 %v4341_v3  ;;  %4244 = vset.pattern.permute.xlu1 %v4341_v3 }
 0x2ba   : > { %4243 = vset.pattern.permute.xlu0 %v4341_v3 }
 0x2bb   : > { %3004 = vrot.lane.b32.xlu2 %v5694_v2, %s4340_s28 }
 0x2bc   : > { %2996 = vrot.lane.b32.xlu1 %v5622_v62, %s4340_s28 }
 0x2bd   : > { %2994 = vrot.lane.b32.xlu0 %v5607_v27, %s4340_s28  ;;  %v6116_v63 = vpop.permute.xlu2 %2638 }
 0x2be   : > { %9878 = vst [vmem:[#allocation205_spill] sm:$0xff] %v6116_v63  ;;  %v6118_v29 = vpop.permute.xlu1 %2108 }
 0x2bf   : > { %9879 = vst [vmem:[#allocation206_spill] sm:$0xff] %v6118_v29  ;;  %v6120_v19 = vpop.permute.xlu0 %1825 }
 0x2c0   : > { %9880 = vst [vmem:[#allocation207_spill] sm:$0xff] %v6120_v19 }
 0x2c3   : > { %3010 = vrot.lane.b32.xlu2 %v5751_v5, %s4340_s28 }
 0x2c4   : > { %3002 = vrot.lane.b32.xlu1 %v5680_v39, %s4340_s28 }
 0x2c5   : > { %3000 = vrot.lane.b32.xlu0 %v5665_v20, %s4340_s28  ;;  %v6128_v48 = vpop.permute.xlu2 %2376 }
 0x2c6   : > { %9881 = vst [vmem:[#allocation208_spill] sm:$0xff] %v6128_v48  ;;  %v6130_v60 = vpop.permute.xlu1 %1827 }
 0x2c7   : > { %9882 = vst [vmem:[#allocation209_spill] sm:$0xff] %v6130_v60  ;;  %v6132_v63 = vpop.permute.xlu0 %2634 }
 0x2c8   : > { %9883 = vst [vmem:[#allocation210_spill] sm:$0xff] %v6132_v63 }
 0x2cb   : > { %3016 = vrot.lane.b32.xlu2 %v5808_v7, %s4340_s28 }
 0x2cc   : > { %3008 = vrot.lane.b32.xlu1 %v5737_v41, %s4340_s28 }
 0x2cd   : > { %3006 = vrot.lane.b32.xlu0 %v5722_v54, %s4340_s28  ;;  %v6140_v19 = vpop.permute.xlu2 %2116 }
 0x2ce   : > { %9884 = vst [vmem:[#allocation211_spill] sm:$0xff] %v6140_v19  ;;  %v6142_v48 = vpop.permute.xlu1 %2636 }
 0x2cf   : > { %9885 = vst [vmem:[#allocation212_spill] sm:$0xff] %v6142_v48  ;;  %v6144_v29 = vpop.permute.xlu0 %2372 }
 0x2d0   : > { %9886 = vst [vmem:[#allocation213_spill] sm:$0xff] %v6144_v29 }
 0x2d3   : > { %3022 = vrot.lane.b32.xlu2 %v5865_v4, %s4340_s28 }
 0x2d4   : > { %3014 = vrot.lane.b32.xlu1 %v5794_v16, %s4340_s28 }
 0x2d5   : > { %3012 = vrot.lane.b32.xlu0 %v5779_v44, %s4340_s28  ;;  %v6152_v3 = vpop.permute.xlu2 %2879 }
 0x2d6   : > { %9887 = vst [vmem:[#allocation214_spill] sm:$0xff] %v6152_v3  ;;  %v6154_v63 = vpop.permute.xlu1 %2374 }
 0x2d7   : > { %9888 = vst [vmem:[#allocation215_spill] sm:$0xff] %v6154_v63  ;;  %v6156_v60 = vpop.permute.xlu0 %2112  ;;  %v6173_v63 = vld [vmem:[%s9228_s3] sm:$0xff] }
 0x2d8   : > { %9889 = vst [vmem:[#allocation216_spill] sm:$0xff] %v6156_v60 }
 0x2db   : > { %3028 = vrot.lane.b32.xlu2 %v5922_v45, %s4340_s28 }
 0x2dc   : > { %3020 = vrot.lane.b32.xlu1 %v5851_v47, %s4340_s28 }
 0x2dd   : > { %3018 = vrot.lane.b32.xlu0 %v5836_v9, %s4340_s28  ;;  %v6164_v48 = vpop.permute.xlu2 %2891 }
 0x2de   : > { %9890 = vst [vmem:[#allocation217_spill] sm:$0xff] %v6164_v48  ;;  %v6166_v19 = vpop.permute.xlu1 %2114 }
 0x2df   : > { %9891 = vst [vmem:[#allocation218_spill] sm:$0xff] %v6166_v19  ;;  %v6168_v29 = vpop.permute.xlu0 %1831 }
 0x2e0   : > { %9892 = vst [vmem:[#allocation219_spill] sm:$0xff] %v6168_v29  ;;  %v6189_v29 = vld [vmem:[%s9228_s3 + $0x18] sm:$0xff] }
 0x2e3   : > { %3105 = vperm.xlu2 %4242, %v6173_v63  }
 0x2e4   : > { %3026 = vrot.lane.b32.xlu1 %v5908_v49, %s4340_s28 }
 0x2e5   : > { %3024 = vrot.lane.b32.xlu0 %v5893_v13, %s4340_s28  ;;  %v6180_v60 = vpop.permute.xlu2 %2903 }
 0x2e6   : > { %9893 = vst [vmem:[#allocation220_spill] sm:$0xff] %v6180_v60  ;;  %v6182_v48 = vpop.permute.xlu1 %1833 }
 0x2e7   : > { %9894 = vst [vmem:[#allocation221_spill] sm:$0xff] %v6182_v48  ;;  %v6184_v19 = vpop.permute.xlu0 %2640 }
 0x2e8   : > { %9895 = vst [vmem:[#allocation222_spill] sm:$0xff] %v6184_v19  ;;  %v6205_v19 = vld [vmem:[%s9228_s3 + $0x28] sm:$0xff] }
 0x2eb   : > { %3117 = vperm.xlu2 %4242, %v6189_v29  }
 0x2ec   : > { %3032 = vrot.lane.b32.xlu1 %v5964_v1, %s4340_s28 }
 0x2ed   : > { %3030 = vrot.lane.b32.xlu0 %v5950_v59, %s4340_s28  ;;  %v6196_v3 = vpop.permute.xlu2 %2974 }
 0x2ee   : > { %9896 = vst [vmem:[#allocation223_spill] sm:$0xff] %v6196_v3  ;;  %v6198_v60 = vpop.permute.xlu1 %2642  ;;  %v6217_v3 = vld [vmem:[%s9228_s3 + $0x8] sm:$0xff] }
 0x2ef   : > { %9897 = vst [vmem:[#allocation224_spill] sm:$0xff] %v6198_v60  ;;  %v6200_v48 = vpop.permute.xlu0 %2378 }
 0x2f0   : > { %9898 = vst [vmem:[#allocation225_spill] sm:$0xff] %v6200_v48 }
 0x2f3   : > { %3125 = vperm.xlu2 %4242, %v6205_v19  }
 0x2f4   : > { %3113 = vperm.xlu1 %4244, %v6211_v57  }
 0x2f5   : > { %3109 = vperm.xlu0 %4243, %v6217_v3   ;;  %v6220_v60 = vpop.permute.xlu2 %2980 }
 0x2f6   : > { %9899 = vst [vmem:[#allocation226_spill] sm:$0xff] %v6220_v60  ;;  %v6222_v48 = vpop.permute.xlu1 %2875 }
 0x2f7   : > { %9900 = vst [vmem:[#allocation227_spill] sm:$0xff] %v6222_v48  ;;  %v6224_v33 = vpop.permute.xlu0 %2871 }
 0x2f8   : > { %9901 = vst [vmem:[#allocation228_spill] sm:$0xff] %v6224_v33 }
 0x2fb   : > { %3137 = vperm.xlu2 %4242, %v6003_v56  }
 0x2fc   : > { %3121 = vperm.xlu1 %4244, %v6230_v26  }
 0x2fd   : > { %3129 = vperm.xlu0 %4243, %v6236_v32   ;;  %v6239_v60 = vpop.permute.xlu2 %2986 }
 0x2fe   : > { %9902 = vst [vmem:[#allocation229_spill] sm:$0xff] %v6239_v60  ;;  %v6241_v48 = vpop.permute.xlu1 %2887 }
 0x2ff   : > { %9903 = vst [vmem:[#allocation230_spill] sm:$0xff] %v6241_v48  ;;  %v6243_v33 = vpop.permute.xlu0 %2883 }
 0x300   : > { %9904 = vst [vmem:[#allocation231_spill] sm:$0xff] %v6243_v33 }
 0x303   : > { %3149 = vperm.xlu2 %4242, %v6027_v23  }
 0x304   : > { %3133 = vperm.xlu1 %4244, %v6009_v34  }
 0x305   : > { %3141 = vperm.xlu0 %4243, %v5981_v55   ;;  %v6248_v61 = vpop.permute.xlu2 %2992 }
 0x306   : > { %9905 = vst [vmem:[#allocation232_spill] sm:$0xff] %v6248_v61  ;;  %v6250_v42 = vpop.permute.xlu1 %2899 }
 0x307   : > { %9906 = vst [vmem:[#allocation233_spill] sm:$0xff] %v6250_v42  ;;  %v6252_v22 = vpop.permute.xlu0 %2895 }
 0x308   : > { %9907 = vst [vmem:[#allocation234_spill] sm:$0xff] %v6252_v22 }
 0x30b   : > { %3161 = vperm.xlu2 %4242, %v6047_v15  }
 0x30c   : > { %3145 = vperm.xlu1 %4244, %v6033_v52  }
 0x30d   : > { %3153 = vperm.xlu0 %4243, %v5997_v21   ;;  %v6257_v48 = vpop.permute.xlu2 %2998 }
 0x30e   : > { %9908 = vst [vmem:[#allocation235_spill] sm:$0xff] %v6257_v48  ;;  %v6259_v60 = vpop.permute.xlu1 %2972 }
 0x30f   : > { %9909 = vst [vmem:[#allocation236_spill] sm:$0xff] %v6259_v60  ;;  %v6261_v33 = vpop.permute.xlu0 %2970 }
 0x310   : > { %9910 = vst [vmem:[#allocation237_spill] sm:$0xff] %v6261_v33 }
 0x313   : > { %3234 = vrot.lane.b32.xlu2 %v5317_v14, %s4342_s25 }
 0x314   : > { %3157 = vperm.xlu1 %4244, %v6053_v25  }
 0x315   : > { %3165 = vperm.xlu0 %4243, %v6021_v0   ;;  %v6267_v42 = vpop.permute.xlu2 %3004 }
 0x316   : > { %9911 = vst [vmem:[#allocation238_spill] sm:$0xff] %v6267_v42  ;;  %v6269_v61 = vpop.permute.xlu1 %2978 }
 0x317   : > { %9912 = vst [vmem:[#allocation239_spill] sm:$0xff] %v6269_v61  ;;  %v6271_v22 = vpop.permute.xlu0 %2976 }
 0x318   : > { %9913 = vst [vmem:[#allocation240_spill] sm:$0xff] %v6271_v22 }
 0x31b   : > { %3240 = vrot.lane.b32.xlu2 %v5378_v53, %s4342_s25 }
 0x31c   : > { %3232 = vrot.lane.b32.xlu1 %v5300_v30, %s4342_s25 }
 0x31d   : > { %3236 = vrot.lane.b32.xlu0 %v5338_v11, %s4342_s25  ;;  %v6279_v48 = vpop.permute.xlu2 %3010 }
 0x31e   : > { %9914 = vst [vmem:[#allocation241_spill] sm:$0xff] %v6279_v48  ;;  %v6281_v33 = vpop.permute.xlu1 %2984 }
 0x31f   : > { %9915 = vst [vmem:[#allocation242_spill] sm:$0xff] %v6281_v33  ;;  %v6283_v60 = vpop.permute.xlu0 %2982 }
 0x320   : > { %9916 = vst [vmem:[#allocation243_spill] sm:$0xff] %v6283_v60 }
 0x323   : > { %3246 = vrot.lane.b32.xlu2 %v5473_v43, %s4342_s25 }
 0x324   : > { %3238 = vrot.lane.b32.xlu1 %v5359_v40, %s4342_s25 }
 0x325   : > { %3242 = vrot.lane.b32.xlu0 %v5415_v36, %s4342_s25  ;;  %v6291_v22 = vpop.permute.xlu2 %3016 }
 0x326   : > { %9917 = vst [vmem:[#allocation244_spill] sm:$0xff] %v6291_v22  ;;  %v6293_v61 = vpop.permute.xlu1 %2990 }
 0x327   : > { %9918 = vst [vmem:[#allocation245_spill] sm:$0xff] %v6293_v61  ;;  %v6295_v42 = vpop.permute.xlu0 %2988 }
 0x328   : > { %9919 = vst [vmem:[#allocation246_spill] sm:$0xff] %v6295_v42 }
 0x32b   : > { %3252 = vrot.lane.b32.xlu2 %v5550_v17, %s4342_s25 }
 0x32c   : > { %3244 = vrot.lane.b32.xlu1 %v5452_v24, %s4342_s25 }
 0x32d   : > { %3248 = vrot.lane.b32.xlu0 %v5492_v46, %s4342_s25  ;;  %v6303_v33 = vpop.permute.xlu2 %3022 }
 0x32e   : > { %9920 = vst [vmem:[#allocation247_spill] sm:$0xff] %v6303_v33  ;;  %v6305_v60 = vpop.permute.xlu1 %2996 }
 0x32f   : > { %9921 = vst [vmem:[#allocation248_spill] sm:$0xff] %v6305_v60  ;;  %v6307_v48 = vpop.permute.xlu0 %2994 }
 0x330   : > { %9922 = vst [vmem:[#allocation249_spill] sm:$0xff] %v6307_v48 }
 0x333   : > { %3258 = vrot.lane.b32.xlu2 %v5622_v62, %s4342_s25 }
 0x334   : > { %3250 = vrot.lane.b32.xlu1 %v5529_v8, %s4342_s25 }
 0x335   : > { %3254 = vrot.lane.b32.xlu0 %v5571_v50, %s4342_s25  ;;  %v6315_v61 = vpop.permute.xlu2 %3028 }
 0x336   : > { %9923 = vst [vmem:[#allocation250_spill] sm:$0xff] %v6315_v61  ;;  %v6317_v22 = vpop.permute.xlu1 %3002 }
 0x337   : > { %9924 = vst [vmem:[#allocation251_spill] sm:$0xff] %v6317_v22  ;;  %v6319_v42 = vpop.permute.xlu0 %3000 }
 0x338   : > { %9925 = vst [vmem:[#allocation252_spill] sm:$0xff] %v6319_v42 }
 0x33b   : > { %3264 = vrot.lane.b32.xlu2 %v5680_v39, %s4342_s25 }
 0x33c   : > { %3256 = vrot.lane.b32.xlu1 %v5607_v27, %s4342_s25 }
 0x33d   : > { %3260 = vrot.lane.b32.xlu0 %v5637_v31, %s4342_s25  ;;  %v6327_v60 = vpop.permute.xlu2 %3105 }
 0x33e   : > { %9926 = vst [vmem:[#allocation253_spill] sm:$0xff] %v6327_v60  ;;  %v6329_v33 = vpop.permute.xlu1 %3008  ;;  %v4343_v60 = vmov 6  }
 0x33f   : > { %9927 = vst [vmem:[#allocation254_spill] sm:$0xff] %v6329_v33  ;;  %v6331_v48 = vpop.permute.xlu0 %3006  ;;  %4247 = vset.pattern.permute.xlu2 %v4343_v60  ;;  %4245 = vset.pattern.permute.xlu0 %v4343_v60 }
 0x340   : > { %9928 = vst [vmem:[#allocation255_spill] sm:$0xff] %v6331_v48  ;;  %4246 = vset.pattern.permute.xlu1 %v4343_v60 }
 0x343   : > { %3270 = vrot.lane.b32.xlu2 %v5737_v41, %s4342_s25 }
 0x344   : > { %3262 = vrot.lane.b32.xlu1 %v5665_v20, %s4342_s25 }
 0x345   : > { %3266 = vrot.lane.b32.xlu0 %v5694_v2, %s4342_s25  ;;  %v6339_v61 = vpop.permute.xlu2 %3117 }
 0x346   : > { %9929 = vst [vmem:[#allocation256_spill] sm:$0xff] %v6339_v61  ;;  %v6341_v22 = vpop.permute.xlu1 %3014 }
 0x347   : > { %9930 = vst [vmem:[#allocation257_spill] sm:$0xff] %v6341_v22  ;;  %v6343_v42 = vpop.permute.xlu0 %3012 }
 0x348   : > { %9931 = vst [vmem:[#allocation258_spill] sm:$0xff] %v6343_v42 }
 0x34b   : > { %3276 = vrot.lane.b32.xlu2 %v5794_v16, %s4342_s25 }
 0x34c   : > { %3268 = vrot.lane.b32.xlu1 %v5722_v54, %s4342_s25 }
 0x34d   : > { %3272 = vrot.lane.b32.xlu0 %v5751_v5, %s4342_s25  ;;  %v6351_v33 = vpop.permute.xlu2 %3125 }
 0x34e   : > { %9932 = vst [vmem:[#allocation259_spill] sm:$0xff] %v6351_v33  ;;  %v6353_v61 = vpop.permute.xlu1 %3020 }
 0x34f   : > { %9933 = vst [vmem:[#allocation260_spill] sm:$0xff] %v6353_v61  ;;  %v6355_v48 = vpop.permute.xlu0 %3018 }
 0x350   : > { %9934 = vst [vmem:[#allocation261_spill] sm:$0xff] %v6355_v48 }
 0x353   : > { %3282 = vrot.lane.b32.xlu2 %v5851_v47, %s4342_s25 }
 0x354   : > { %3274 = vrot.lane.b32.xlu1 %v5779_v44, %s4342_s25 }
 0x355   : > { %3278 = vrot.lane.b32.xlu0 %v5808_v7, %s4342_s25  ;;  %v6363_v42 = vpop.permute.xlu2 %3137  ;;  %v9999_v7 = vld [vmem:[#allocation155_spill] sm:$0xff] }
 0x356   : > { %9935 = vst [vmem:[#allocation262_spill] sm:$0xff] %v6363_v42  ;;  %v6365_v22 = vpop.permute.xlu1 %3026 }
 0x357   : > { %9936 = vst [vmem:[#allocation263_spill] sm:$0xff] %v6365_v22  ;;  %v6367_v60 = vpop.permute.xlu0 %3024 }
 0x358   : > { %9937 = vst [vmem:[#allocation264_spill] sm:$0xff] %v6367_v60 }
 0x35b   : > { %3288 = vrot.lane.b32.xlu2 %v5908_v49, %s4342_s25 }
 0x35c   : > { %3280 = vrot.lane.b32.xlu1 %v5836_v9, %s4342_s25 }
 0x35d   : > { %3284 = vrot.lane.b32.xlu0 %v5865_v4, %s4342_s25  ;;  %v6375_v48 = vpop.permute.xlu2 %3149 }
 0x35e   : > { %9938 = vst [vmem:[#allocation265_spill] sm:$0xff] %v6375_v48  ;;  %v6377_v33 = vpop.permute.xlu1 %3032 }
 0x35f   : > { %9939 = vst [vmem:[#allocation266_spill] sm:$0xff] %v6377_v33  ;;  %v6379_v61 = vpop.permute.xlu0 %3030 }
 0x360   : > { %9940 = vst [vmem:[#allocation267_spill] sm:$0xff] %v6379_v61 }
 0x363   : > { %3294 = vrot.lane.b32.xlu2 %v5964_v1, %s4342_s25 }
 0x364   : > { %3286 = vrot.lane.b32.xlu1 %v5893_v13, %s4342_s25  ;;  %v10000_v13 = vld [vmem:[#allocation90_spill] sm:$0xff] }
 0x365   : > { %3290 = vrot.lane.b32.xlu0 %v5922_v45, %s4342_s25  ;;  %v6387_v60 = vpop.permute.xlu2 %3161  ;;  %v6496_v45 = vmul.f32 %v5562_v28, %v5415_v36 }
 0x366   : > { %9941 = vst [vmem:[#allocation268_spill] sm:$0xff] %v6387_v60  ;;  %v6389_v42 = vpop.permute.xlu1 %3113 }
 0x367   : > { %9942 = vst [vmem:[#allocation269_spill] sm:$0xff] %v6389_v42  ;;  %v6391_v22 = vpop.permute.xlu0 %3109 }
 0x368   : > { %9943 = vst [vmem:[#allocation270_spill] sm:$0xff] %v6391_v22 }
 0x369   : > { %9964 = vst [vmem:[#allocation290_spill] sm:$0xff] %v6496_v45  ;;  %v6513_v45 = vmul.f32 %v5543_v18, %v5737_v41 }
 0x36b   : > { %3377 = vperm.xlu2 %4247, %v6211_v57   ;;  %9966 = vst [vmem:[#allocation292_spill] sm:$0xff] %v6513_v45  ;;  %v10001_v45 = vld [vmem:[#allocation55_spill] sm:$0xff] }
 0x36c   : > { %3292 = vrot.lane.b32.xlu1 %v5950_v59, %s4342_s25 }
 0x36d   : > { %3369 = vperm.xlu0 %4245, %v6173_v63   ;;  %v6397_v61 = vpop.permute.xlu2 %3234 }
 0x36e   : > { %9944 = vst [vmem:[#allocation271_spill] sm:$0xff] %v6397_v61  ;;  %v6399_v48 = vpop.permute.xlu1 %3121 }
 0x36f   : > { %9945 = vst [vmem:[#allocation272_spill] sm:$0xff] %v6399_v48  ;;  %v6401_v33 = vpop.permute.xlu0 %3129  ;;  %v6467_v48 = vmul.f32 %v5522_v35, %v5300_v30 }
 0x370   : > { %9946 = vst [vmem:[#allocation273_spill] sm:$0xff] %v6401_v33 }
 0x373   : > { %3385 = vperm.xlu2 %4247, %v6230_v26  }
 0x374   : > { %3373 = vperm.xlu1 %4246, %v6217_v3  }
 0x375   : > { %3389 = vperm.xlu0 %4245, %v6205_v19   ;;  %v6406_v60 = vpop.permute.xlu2 %3240 }
 0x376   : > { %v6408_v57 = vpop.permute.xlu1 %3133 }
 0x377   : > { %9947 = vst [vmem:[#allocation274_spill] sm:$0xff] %v6408_v57  ;;  %v6410_v42 = vpop.permute.xlu0 %3141 }
 0x378   : > { %9948 = vst [vmem:[#allocation275_spill] sm:$0xff] %v6410_v42  ;;  %v6492_v42 = vmul.f32 %v5485_v12, %v5378_v53 }
 0x37a   : > { %9963 = vst [vmem:[#allocation289_spill] sm:$0xff] %v6492_v42  ;;  %v6508_v42 = vmul.f32 %v5522_v35, %v5680_v39  ;;  %v6525_v35 = vmul.f32 %v5562_v28, %v5779_v44 }
 0x37b   : > { %3397 = vperm.xlu2 %4247, %v6009_v34  }
 0x37c   : > { %3381 = vperm.xlu1 %4246, %v6189_v29   ;;  %v1835_v29 = vlaneseq  ;;  %9968 = vst [vmem:[#allocation294_spill] sm:$0xff] %v6525_v35 }
 0x37d   : > { %3401 = vperm.xlu0 %4245, %v6003_v56   ;;  %v6415_v63 = vpop.permute.xlu2 %3246  ;;  %v6436_v56 = vld [vmem:[%s9226_s1 + $0x1] ss:$2 sm:$0x3] }
 0x37e   : > { %9949 = vst [vmem:[#allocation276_spill] sm:$0xff] %v6415_v63  ;;  %v6417_v33 = vpop.permute.xlu1 %3145  ;;  %vm1871_vm1 = vcmp.ge.s32.totalorder %v6436_v56, 1  ;;  %vm9570_vm4 = vcmp.le.s32.totalorder %v6436_v56, 14 }
 0x37f   : > { %9950 = vst [vmem:[#allocation277_spill] sm:$0xff] %v6417_v33  ;;  %v6419_v26 = vpop.permute.xlu0 %3153 }
 0x380   : > { %9951 = vst [vmem:[#allocation278_spill] sm:$0xff] %v6419_v26  ;;  %v6484_v26 = vmul.f32 %v5567_v10, %v5338_v11 }
 0x381   : > { %9955 = vst [vmem:[#allocation282_spill] sm:$0xff] %v6436_v56 }
 0x382   : > { %9961 = vst [vmem:[#allocation287_spill] sm:$0xff] %v6484_v26 }
 0x383   : > { %3409 = vperm.xlu2 %4247, %v6033_v52  }
 0x384   : > { %3393 = vperm.xlu1 %4246, %v6236_v32  }
 0x385   : > { %3413 = vperm.xlu0 %4245, %v6027_v23   ;;  %v6424_v19 = vpop.permute.xlu2 %3252 }
 0x386   : > { %9952 = vst [vmem:[#allocation279_spill] sm:$0xff] %v6424_v19  ;;  %v6426_v3 = vpop.permute.xlu1 %3157 }
 0x387   : > { %9953 = vst [vmem:[#allocation280_spill] sm:$0xff] %v6426_v3  ;;  %v6428_v34 = vpop.permute.xlu0 %3165  ;;  %v6445_v3 = vld [vmem:[%s9226_s1] ss:$2 sm:$0x3] }
 0x388   : > { %9954 = vst [vmem:[#allocation281_spill] sm:$0xff] %v6428_v34  ;;  %vm1870_vm2 = vcmp.ge.s32.totalorder %v6445_v3, 1 }
 0x389   : > { %9957 = vst [vmem:[#allocation284_spill] sm:$0xff] %v6445_v3  ;;  %vm1872_vm3 = vmand %vm1870_vm2, %vm1871_vm1 }
 0x38a   : > { %vm2414_vm6 = vmand %vm1870_vm2, %vm9570_vm4 }
 0x38b   : > { %3421 = vperm.xlu2 %4247, %v6053_v25   ;;  %v6448_v25 = vand.u32 127, %v1835_v29 }
 0x38c   : > { %3405 = vperm.xlu1 %4246, %v5981_v55   ;;  %v9958_v55 = vmov 0  }
 0x38d   : > { %3425 = vperm.xlu0 %4245, %v6047_v15   ;;  %v6438_v32 = vpop.permute.xlu2 %3258  ;;  %vm3296_vm5 = vcmp.lt.s32.totalorder %v6448_v25, 113  ;;  %v6462_v15 = vmul.f32 %v5464_v58, %v5317_v14  ;;  %v2151_v29 = vsel %vm1870_vm2, 1, %v9958_v55  ;;  %v1873_v22 = vsel %vm1872_vm3, 1, %v9958_v55 }
 0x38e   : > { %9956 = vst [vmem:[#allocation283_spill] sm:$0xff] %v6438_v32  ;;  %v3233_v23 = vpop.permute.xlu1 %3232  ;;  %v2153_v1 = vperm.slane %v2151_v29, 1  ;;  %v2677_v4 = vsel %vm1871_vm1, 1, %v9958_v55  ;;  %v1874_v59 = vperm.slane %v1873_v22, 0  ;;  %v1875_v32 = vperm.slane %v1873_v22, 1 }
 0x38f   : > { %v6440_v52 = vpop.permute.xlu0 %3236  ;;  %v2415_v61 = vsel %vm2414_vm6, 1, %v9958_v55  ;;  %vm9585_vm7 = vcmp.lt.s32.totalorder %v6448_v25, 16  ;;  %v2678_v22 = vperm.slane %v2677_v4, 0  ;;  %vm1837_vm10 = vcmp.lt.s32.totalorder %v6448_v25, 17 }
 0x390   : > { %vm6538_vm9 = vcmp.eq.s32.totalorder %v2153_v1, 1  ;;  %v2416_v28 = vperm.slane %v2415_v61, 0  ;;  %vm6553_vm11 = vcmp.eq.s32.totalorder %v1874_v59, 1  ;;  %vm6557_vm12 = vcmp.eq.s32.totalorder %v1875_v32, 1 }
 0x391   : > { %v9976_v1 = vmov 0  ;;  %vm9593_vm13 = vcmp.lt.s32.totalorder %v6448_v25, 1  ;;  %vm6572_vm14 = vcmp.eq.s32.totalorder %v2678_v22, 1  ;;  %v9982_v59 = vmov 0 }
 0x392   : > { %v9977_v1 = vsel %vm6557_vm12, 4294967295, %v9976_v1  ;;  %v9983_v59 = vsel %vm6572_vm14, 4294967295, %v9982_v59  ;;  %v9985_v32 = vmov 0  ;;  %vm2380_vm0 = vcmp.lt.s32.totalorder %v6448_v25, 15 }
 0x393   : > { %3496 = vrot.lane.b32.xlu2 %v5300_v30, %s4344_s30  ;;  %v6488_v30 = vmul.f32 %v5543_v18, %v5359_v40  ;;  %9978 = vst [vmem:[#allocation296_spill] sm:$0xff] %v9977_v1  ;;  %vm6589_vm2 = vcmp.eq.s32.totalorder %v2416_v28, 1  ;;  %v9995_v28 = vld [vmem:[#allocation83_spill] sm:$0xff]  ;;  %v2383_v19 = vsel %vm2380_vm0, %v10000_v13, %v9999_v7  ;;  %vm9584_vm6 = vcmp.le.s32.totalorder %v6445_v3, 14  ;;  %v10055_v3 = vld [vmem:[#allocation176_spill] sm:$0xff] }
 0x394   : > { %3417 = vperm.xlu1 %4246, %v5997_v21   ;;  %9984 = vst [vmem:[#allocation300_spill] sm:$0xff] %v9983_v59  ;;  %vm6877_vm4 = vmand %vm9584_vm6, %vm1871_vm1  ;;  %v10324_v1 = vld [vmem:[#allocation27_spill] sm:$0xff] }
 0x395   : > { %3498 = vrot.lane.b32.xlu0 %v5317_v14, %s4344_s30  ;;  %v3265_v33 = vpop.permute.xlu2 %3264  ;;  %9962 = vst [vmem:[#allocation288_spill] sm:$0xff] %v6488_v30 }
 0x396   : > { %v3239_v57 = vpop.permute.xlu1 %3238  ;;  %v6474_v21 = vsel %vm3296_vm5, %v3233_v23, %v3265_v33  ;;  %v6478_v14 = vsel %vm3296_vm5, %v3265_v33, %v3233_v23  ;;  %v6500_v33 = vmul.f32 %v5506_v51, %v5452_v24  ;;  %v2152_v23 = vperm.slane %v2151_v29, 0 }
 0x397   : > { %9959 = vst [vmem:[#allocation285_spill] sm:$0xff] %v6474_v21  ;;  %v6480_v34 = vpop.permute.xlu0 %3242  ;;  %v6517_v29 = vmul.f32 %v5567_v10, %v5722_v54  ;;  %v6529_v21 = vmul.f32 %v5485_v12, %v5751_v5  ;;  %v2119_v12 = vsel %vm9585_vm7, %v5585_v38, %v5846_v37  ;;  %v2135_v10 = vsel %vm9585_vm7, %v5846_v37, %v5585_v38 }
 0x398   : > { %9960 = vst [vmem:[#allocation286_spill] sm:$0xff] %v6478_v14  ;;  %v2679_v14 = vperm.slane %v2677_v4, 1  ;;  %vm6534_vm8 = vcmp.eq.s32.totalorder %v2152_v23, 1  ;;  %v2157_v22 = vsel %vm6538_vm9, %v2119_v12, 0.0  ;;  %v9994_v12 = vld [vmem:[#allocation152_spill] sm:$0xff] }
 0x399   : > { %9965 = vst [vmem:[#allocation291_spill] sm:$0xff] %v6500_v33  ;;  %v6521_v33 = vmul.f32 %v5464_v58, %v5694_v2  ;;  %v2646_v49 = vsel %vm9593_vm13, %v9995_v28, %v9994_v12 }
 0x39a   : > { %9967 = vst [vmem:[#allocation293_spill] sm:$0xff] %v6517_v29  ;;  %vm6576_vm15 = vcmp.eq.s32.totalorder %v2679_v14, 1 }
 0x39b   : > { %9969 = vst [vmem:[#allocation295_spill] sm:$0xff] %v6529_v21  ;;  %3502 = vrot.lane.b32.xlu2 %v5359_v40, %s4344_s30  ;;  %v9986_v32 = vsel %vm6576_vm15, 4294967295, %v9985_v32  ;;  %v9992_v40 = vld [vmem:[#allocation149_spill] sm:$0xff] }
 0x39c   : > { %3429 = vperm.xlu1 %4246, %v6021_v0   ;;  %9987 = vst [vmem:[#allocation301_spill] sm:$0xff] %v9986_v32  ;;  %v4347_v32 = vmov 8  }
 0x39d   : > { %3504 = vrot.lane.b32.xlu0 %v5378_v53, %s4344_s30  ;;  %v3271_v0 = vpop.permute.xlu2 %3270  ;;  %v2417_v53 = vperm.slane %v2415_v61, 1  ;;  %v9988_v61 = vld [vmem:[#allocation156_spill] sm:$0xff] }
 0x39e   : > { %v3245_v23 = vpop.permute.xlu1 %3244  ;;  %v6564_v35 = vsel %vm3296_vm5, %v3239_v57, %v3271_v0  ;;  %v6568_v38 = vsel %vm3296_vm5, %v3271_v0, %v3239_v57  ;;  %v1854_v21 = vsel %vm1837_vm10, %v9988_v61, %v5588_v6  ;;  %v2156_v57 = vsel %vm6534_vm8, %v2135_v10, 0.0 }
 0x39f   : > { %9979 = vst [vmem:[#allocation297_spill] sm:$0xff] %v6564_v35  ;;  %v6570_v37 = vpop.permute.xlu0 %3248  ;;  %v9989_v0 = vmov 0  ;;  %v1838_v14 = vsel %vm1837_vm10, %v5588_v6, %v9988_v61  ;;  %v2662_v6 = vsel %vm9593_vm13, %v9994_v12, %v9995_v28  ;;  %vm6613_vm3 = vcmp.eq.s32.totalorder %v2417_v53, 1 }
 0x3a0   : > { %9980 = vst [vmem:[#allocation298_spill] sm:$0xff] %v6568_v38  ;;  %v9990_v0 = vsel %vm6589_vm2, 4294967295, %v9989_v0  ;;  %v9993_v38 = vld [vmem:[#allocation87_spill] sm:$0xff]  ;;  %v9996_v61 = vmov 0  ;;  %v2252_v30 = vmul.f32 %v10001_v45, %v2156_v57  ;;  %v2253_v53 = vmul.f32 %v10001_v45, %v2157_v22  ;;  %v10003_v22 = vld [vmem:[#allocation38_spill] sm:$0xff] }
 0x3a1   : > { %9981 = vst [vmem:[#allocation299_spill] sm:$0xff] %v6570_v37  ;;  %v1839_v35 = vsel %vm1837_vm10, %v9993_v38, %v9992_v40  ;;  %v1855_v10 = vsel %vm1837_vm10, %v9992_v40, %v9993_v38  ;;  %v9997_v61 = vsel %vm6613_vm3, 4294967295, %v9996_v61  ;;  %v2399_v40 = vsel %vm2380_vm0, %v9999_v7, %v10000_v13 }
 0x3a2   : > { %9991 = vst [vmem:[#allocation156_spill] sm:$0xff] %v9990_v0  ;;  %v1878_v38 = vsel %vm6553_vm11, %v1854_v21, 0.0  ;;  %v1879_v12 = vsel %vm6557_vm12, %v1838_v14, 0.0  ;;  %v6633_v28 = vmul.f32 %v5506_v51, %v5794_v16  ;;  %v1880_v7 = vsel %vm6553_vm11, %v1855_v10, 0.0  ;;  %v10004_v10 = vld [vmem:[#allocation35_spill] sm:$0xff] }
 0x3a3   : > { %9998 = vst [vmem:[#allocation149_spill] sm:$0xff] %v9997_v61  ;;  %3508 = vrot.lane.b32.xlu2 %v5452_v24, %s4344_s30  ;;  %v1881_v13 = vsel %vm6557_vm12, %v1839_v35, 0.0  ;;  %v2684_v45 = vsel %vm6572_vm14, %v2662_v6, 0.0  ;;  %v2685_v21 = vsel %vm6576_vm15, %v2646_v49, 0.0  ;;  %v2424_v51 = vsel %vm6589_vm2, %v2399_v40, 0.0 }
 0x3a4   : > { %10002 = vst [vmem:[#allocation87_spill] sm:$0xff] %v6633_v28  ;;  %3500 = vrot.lane.b32.xlu1 %v5338_v11, %s4344_s30  ;;  %v2425_v57 = vsel %vm6613_vm3, %v2383_v19, 0.0  ;;  %v1990_v14 = vmul.f32 %v10003_v22, %v1878_v38  ;;  %v10005_v28 = vld [vmem:[#allocation161_spill] sm:$0xff]  ;;  %v1991_v49 = vmul.f32 %v10003_v22, %v1879_v12  ;;  %v10009_v11 = vld [vmem:[#allocation19_spill] sm:$0xff] }
 0x3a5   : > { %3510 = vrot.lane.b32.xlu0 %v5473_v43, %s4344_s30  ;;  %v2397_v35 = vsel %vm2380_vm0, %v10005_v28, %v10004_v10  ;;  %v3277_v6 = vpop.permute.xlu2 %3276  ;;  %v2381_v43 = vsel %vm2380_vm0, %v10004_v10, %v10005_v28  ;;  %v1992_v47 = vmul.f32 %v10009_v11, %v1880_v7  ;;  %v1993_v5 = vmul.f32 %v10009_v11, %v1881_v13  ;;  %v10010_v12 = vld [vmem:[#allocation165_spill] sm:$0xff]  ;;  %v10012_v10 = vld [vmem:[#allocation22_spill] sm:$0xff] }
 0x3a6   : > { %v3251_v24 = vpop.permute.xlu1 %3250  ;;  %v6665_v40 = vsel %vm3296_vm5, %v3245_v23, %v3277_v6  ;;  %v6669_v19 = vsel %vm3296_vm5, %v3277_v6, %v3245_v23  ;;  %v10011_v22 = vld [vmem:[#allocation77_spill] sm:$0xff]  ;;  %v6687_v23 = vmul.f32 %v10012_v10, %v2685_v21  ;;  %v10013_v6 = vld [vmem:[#allocation7_spill] sm:$0xff]  ;;  %v2420_v11 = vsel %vm6589_vm2, %v2397_v35, 0.0 }
 0x3a7   : > { %10006 = vst [vmem:[#allocation152_spill] sm:$0xff] %v6665_v40  ;;  %v6671_v38 = vpop.permute.xlu0 %3254  ;;  %v2120_v9 = vsel %vm9585_vm7, %v10011_v22, %v10010_v12  ;;  %v2136_v28 = vsel %vm9585_vm7, %v10010_v12, %v10011_v22  ;;  %v6684_v40 = vmul.f32 %v10012_v10, %v2684_v45  ;;  %v6690_v7 = vmul.f32 %v10013_v6, %v2424_v51  ;;  %v10016_v10 = vld [vmem:[#allocation160_spill] sm:$0xff] }
 0x3a8   : > { %10007 = vst [vmem:[#allocation83_spill] sm:$0xff] %v6669_v19  ;;  %v6695_v13 = vmul.f32 %v10013_v6, %v2425_v57  ;;  %v10014_v19 = vld [vmem:[#allocation159_spill] sm:$0xff]  ;;  %v2421_v21 = vsel %vm6613_vm3, %v2381_v43, 0.0  ;;  %v2284_v51 = vadd.f32 %v2252_v30, %v1990_v14  ;;  %v2285_v22 = vadd.f32 %v2253_v53, %v1991_v49  ;;  %v10017_v6 = vld [vmem:[#allocation84_spill] sm:$0xff] }
 0x3a9   : > { %10008 = vst [vmem:[#allocation155_spill] sm:$0xff] %v6671_v38  ;;  %v10015_v38 = vld [vmem:[#allocation97_spill] sm:$0xff]  ;;  %v2158_v35 = vsel %vm6534_vm8, %v2136_v28, 0.0  ;;  %v2159_v57 = vsel %vm6538_vm9, %v2120_v9, 0.0  ;;  %v2645_v63 = vsel %vm9593_vm13, %v10017_v6, %v10016_v10  ;;  %v10019_v14 = vld [vmem:[#allocation91_spill] sm:$0xff]  ;;  %v10020_v49 = vld [vmem:[#allocation164_spill] sm:$0xff] }
 0x3aa   : > { %v2122_v12 = vsel %vm9585_vm7, %v10015_v38, %v10014_v19  ;;  %v2138_v45 = vsel %vm9585_vm7, %v10014_v19, %v10015_v38  ;;  %v2661_v19 = vsel %vm9593_vm13, %v10016_v10, %v10017_v6  ;;  %v10018_v38 = vld [vmem:[#allocation59_spill] sm:$0xff]  ;;  %v2398_v28 = vsel %vm2380_vm0, %v10020_v49, %v10019_v14 }
 0x3ab   : > { %v2516_v43 = vmul.f32 %v10018_v38, %v2420_v11  ;;  %3514 = vrot.lane.b32.xlu2 %v5529_v8, %s4344_s30  ;;  %v2162_v30 = vsel %vm6534_vm8, %v2138_v45, 0.0  ;;  %v2163_v9 = vsel %vm6538_vm9, %v2122_v12, 0.0  ;;  %v2517_v53 = vmul.f32 %v10018_v38, %v2421_v21  ;;  %v10021_v11 = vld [vmem:[#allocation82_spill] sm:$0xff]  ;;  %v10022_v10 = vld [vmem:[#allocation163_spill] sm:$0xff] }
 0x3ac   : > { %3506 = vrot.lane.b32.xlu1 %v5415_v36, %s4344_s30  ;;  %v1858_v6 = vsel %vm1837_vm10, %v10022_v10, %v10021_v11  ;;  %v2382_v12 = vsel %vm2380_vm0, %v10019_v14, %v10020_v49  ;;  %v10023_v45 = vld [vmem:[#allocation51_spill] sm:$0xff]  ;;  %v2682_v29 = vsel %vm6572_vm14, %v2661_v19, 0.0 }
 0x3ad   : > { %3516 = vrot.lane.b32.xlu0 %v5550_v17, %s4344_s30  ;;  %v2254_v21 = vmul.f32 %v10023_v45, %v2158_v35  ;;  %v2255_v38 = vmul.f32 %v10023_v45, %v2159_v57  ;;  %v3283_v36 = vpop.permute.xlu2 %3282  ;;  %v2683_v17 = vsel %vm6576_vm15, %v2645_v63, 0.0  ;;  %v10027_v35 = vld [vmem:[#allocation21_spill] sm:$0xff]  ;;  %v2548_v19 = vadd.f32 %v2516_v43, %v2284_v51  ;;  %v10030_v43 = vld [vmem:[#allocation86_spill] sm:$0xff] }
 0x3ae   : > { %v3257_v8 = vpop.permute.xlu1 %3256  ;;  %v6751_v26 = vsel %vm3296_vm5, %v3251_v24, %v3283_v36  ;;  %v6755_v37 = vsel %vm3296_vm5, %v3283_v36, %v3251_v24  ;;  %v6760_v57 = vmul.f32 %v10027_v35, %v2162_v30  ;;  %v6763_v49 = vmul.f32 %v10027_v35, %v2163_v9  ;;  %v10028_v9 = vld [vmem:[#allocation95_spill] sm:$0xff]  ;;  %v10029_v35 = vld [vmem:[#allocation168_spill] sm:$0xff] }
 0x3af   : > { %10024 = vst [vmem:[#allocation90_spill] sm:$0xff] %v6751_v26  ;;  %v6757_v14 = vpop.permute.xlu0 %3260  ;;  %v2422_v63 = vsel %vm6589_vm2, %v2398_v28, 0.0  ;;  %v2549_v45 = vadd.f32 %v2517_v53, %v2285_v22  ;;  %v1842_v26 = vsel %vm1837_vm10, %v10021_v11, %v10022_v10  ;;  %v1886_v24 = vsel %vm6553_vm11, %v1858_v6, 0.0  ;;  %v10031_v22 = vld [vmem:[#allocation169_spill] sm:$0xff] }
 0x3b0   : > { %10025 = vst [vmem:[#allocation55_spill] sm:$0xff] %v6755_v37  ;;  %v2423_v36 = vsel %vm6613_vm3, %v2382_v12, 0.0  ;;  %v2286_v30 = vadd.f32 %v2254_v21, %v1992_v47  ;;  %v2287_v37 = vadd.f32 %v2255_v38, %v1993_v5  ;;  %v2137_v51 = vsel %vm9585_vm7, %v10029_v35, %v10028_v9  ;;  %v10032_v28 = vld [vmem:[#allocation65_spill] sm:$0xff]  ;;  %v10035_v38 = vld [vmem:[#allocation167_spill] sm:$0xff] }
 0x3b1   : > { %10026 = vst [vmem:[#allocation38_spill] sm:$0xff] %v6757_v14  ;;  %v1856_v53 = vsel %vm1837_vm10, %v10031_v22, %v10030_v43  ;;  %v2778_v11 = vmul.f32 %v10032_v28, %v2682_v29  ;;  %v2779_v10 = vmul.f32 %v10032_v28, %v2683_v17  ;;  %v10033_v6 = vld [vmem:[#allocation29_spill] sm:$0xff]  ;;  %v2121_v5 = vsel %vm9585_vm7, %v10028_v9, %v10029_v35  ;;  %v10036_v29 = vld [vmem:[#allocation44_spill] sm:$0xff] }
 0x3b2   : > { %v2518_v14 = vmul.f32 %v10033_v6, %v2422_v63  ;;  %v1887_v47 = vsel %vm6557_vm12, %v1842_v26, 0.0  ;;  %v2519_v12 = vmul.f32 %v10033_v6, %v2423_v36  ;;  %v10034_v21 = vld [vmem:[#allocation101_spill] sm:$0xff]  ;;  %v1840_v17 = vsel %vm1837_vm10, %v10030_v43, %v10031_v22 }
 0x3b3   : > { %v2665_v16 = vsel %vm9593_vm13, %v10035_v38, %v10034_v21  ;;  %3520 = vrot.lane.b32.xlu2 %v5607_v27, %s4344_s30  ;;  %v6806_v26 = vmul.f32 %v10036_v29, %v1886_v24  ;;  %v2160_v63 = vsel %vm6534_vm8, %v2137_v51, 0.0  ;;  %v1882_v36 = vsel %vm6553_vm11, %v1856_v53, 0.0  ;;  %v10038_v53 = vld [vmem:[#allocation42_spill] sm:$0xff] }
 0x3b4   : > { %3512 = vrot.lane.b32.xlu1 %v5492_v46, %s4344_s30  ;;  %v2810_v9 = vadd.f32 %v2778_v11, %v2548_v19  ;;  %v2550_v35 = vadd.f32 %v2518_v14, %v2286_v30  ;;  %v2551_v43 = vadd.f32 %v2519_v12, %v2287_v37  ;;  %v2161_v22 = vsel %vm6538_vm9, %v2121_v5, 0.0  ;;  %v10037_v30 = vld [vmem:[#allocation47_spill] sm:$0xff] }
 0x3b5   : > { %3522 = vrot.lane.b32.xlu0 %v5622_v62, %s4344_s30  ;;  %v2811_v28 = vadd.f32 %v2779_v10, %v2549_v45  ;;  %v3289_v6 = vpop.permute.xlu2 %3288  ;;  %v2690_v24 = vsel %vm6572_vm14, %v2665_v16, 0.0  ;;  %v1883_v51 = vsel %vm6557_vm12, %v1840_v17, 0.0  ;;  %v2256_v45 = vmul.f32 %v10037_v30, %v2160_v63  ;;  %v10039_v10 = vld [vmem:[#allocation94_spill] sm:$0xff]  ;;  %v10040_v5 = vld [vmem:[#allocation171_spill] sm:$0xff]  ;;  %v10042_v62 = vld [vmem:[#allocation172_spill] sm:$0xff] }
 0x3b6   : > { %v3263_v46 = vpop.permute.xlu1 %3262  ;;  %v6822_v19 = vsel %vm3296_vm5, %v3257_v8, %v3289_v6  ;;  %v6826_v14 = vsel %vm3296_vm5, %v3289_v6, %v3257_v8  ;;  %v1994_v11 = vmul.f32 %v10038_v53, %v1882_v36  ;;  %v1857_v16 = vsel %vm1837_vm10, %v10040_v5, %v10039_v10 }
 0x3b7   : > { %v6828_v37 = vpop.permute.xlu0 %3266  ;;  %v6838_v12 = vmul.f32 %v10036_v29, %v1887_v47  ;;  %v2649_v8 = vsel %vm9593_vm13, %v10034_v21, %v10035_v38  ;;  %v2257_v17 = vmul.f32 %v10037_v30, %v2161_v22  ;;  %v6846_v63 = vadd.f32 %v6467_v48, %v2810_v9  ;;  %v10043_v47 = vld [vmem:[#allocation79_spill] sm:$0xff]  ;;  %v10044_v38 = vld [vmem:[#allocation18_spill] sm:$0xff]  ;;  %v10045_v9 = vld [vmem:[#allocation105_spill] sm:$0xff] }
 0x3b8   : > { %v1995_v36 = vmul.f32 %v10038_v53, %v1883_v51  ;;  %v1841_v6 = vsel %vm1837_vm10, %v10039_v10, %v10040_v5  ;;  %v2647_v29 = vsel %vm9593_vm13, %v10043_v47, %v10042_v62  ;;  %v2663_v21 = vsel %vm9593_vm13, %v10042_v62, %v10043_v47  ;;  %v10046_v22 = vld [vmem:[#allocation170_spill] sm:$0xff] }
 0x3b9   : > { %10041 = vst [vmem:[#allocation35_spill] sm:$0xff] %v6846_v63  ;;  %v6862_v48 = vmul.f32 %v10044_v38, %v2690_v24  ;;  %v2402_v51 = vsel %vm2380_vm0, %v10046_v22, %v10045_v9  ;;  %v1884_v30 = vsel %vm6553_vm11, %v1857_v16, 0.0  ;;  %v6871_v53 = vadd.f32 %v6508_v42, %v2811_v28 }
 0x3ba   : > { %v2691_v24 = vsel %vm6576_vm15, %v2649_v8, 0.0  ;;  %v2288_v10 = vadd.f32 %v2256_v45, %v1994_v11  ;;  %v2812_v5 = vadd.f32 %v6684_v40, %v2550_v35  ;;  %v2813_v47 = vadd.f32 %v6687_v23, %v2551_v43  ;;  %v10050_v43 = vld [vmem:[#allocation39_spill] sm:$0xff] }
 0x3bb   : > { %10047 = vst [vmem:[#allocation161_spill] sm:$0xff] %v6871_v53  ;;  %3526 = vrot.lane.b32.xlu2 %v5665_v20, %s4344_s30  ;;  %v2386_v42 = vsel %vm2380_vm0, %v10045_v9, %v10046_v22  ;;  %v1885_v28 = vsel %vm6557_vm12, %v1841_v6, 0.0  ;;  %v2686_v45 = vsel %vm6572_vm14, %v2663_v21, 0.0  ;;  %v2687_v40 = vsel %vm6576_vm15, %v2647_v29, 0.0 }
 0x3bc   : > { %3518 = vrot.lane.b32.xlu1 %v5571_v50, %s4344_s30  ;;  %v2289_v23 = vadd.f32 %v2257_v17, %v1995_v36  ;;  %v2430_v35 = vsel %vm6589_vm2, %v2402_v51, 0.0  ;;  %v1996_v11 = vmul.f32 %v10050_v43, %v1884_v30  ;;  %v3331_v6 = vsel %vm6877_vm4, 1, %v9958_v55  ;;  %v10053_v30 = vld [vmem:[#allocation15_spill] sm:$0xff] }
 0x3bd   : > { %3528 = vrot.lane.b32.xlu0 %v5680_v39, %s4344_s30  ;;  %v3295_v16 = vpop.permute.xlu2 %3294  ;;  %v2431_v22 = vsel %vm6613_vm3, %v2386_v42, 0.0  ;;  %v1997_v51 = vmul.f32 %v10050_v43, %v1885_v28  ;;  %v2782_v62 = vmul.f32 %v10053_v30, %v2686_v45  ;;  %v2783_v53 = vmul.f32 %v10053_v30, %v2687_v40  ;;  %v10056_v42 = vld [vmem:[#allocation81_spill] sm:$0xff] }
 0x3be   : > { %v3269_v8 = vpop.permute.xlu1 %3268  ;;  %v6909_v21 = vsel %vm3296_vm5, %v3263_v46, %v3295_v16  ;;  %v6913_v29 = vsel %vm3296_vm5, %v3295_v16, %v3263_v46  ;;  %v6927_v46 = vmul.f32 %v10044_v38, %v2691_v24  ;;  %v6930_v16 = vadd.f32 %v6462_v15, %v2812_v5  ;;  %v10057_v24 = vld [vmem:[#allocation4_spill] sm:$0xff] }
 0x3bf   : > { %10051 = vst [vmem:[#allocation19_spill] sm:$0xff] %v6909_v21  ;;  %v3299_v17 = vsel %vm3296_vm5, %v6440_v52, %v3269_v8  ;;  %v3315_v36 = vsel %vm3296_vm5, %v3269_v8, %v6440_v52  ;;  %v3273_v9 = vpop.permute.xlu0 %3272  ;;  %v3332_v63 = vperm.slane %v3331_v6, 0  ;;  %v3333_v39 = vperm.slane %v3331_v6, 1  ;;  %v10150_v21 = vld [vmem:[#allocation126_spill] sm:$0xff] }
 0x3c0   : > { %10052 = vst [vmem:[#allocation165_spill] sm:$0xff] %v6913_v29  ;;  %v2552_v52 = vadd.f32 %v6690_v7, %v2288_v10  ;;  %v2553_v8 = vadd.f32 %v6695_v13, %v2289_v23  ;;  %v2384_v28 = vsel %vm2380_vm0, %v10056_v42, %v10055_v3  ;;  %v2400_v38 = vsel %vm2380_vm0, %v10055_v3, %v10056_v42  ;;  %v10071_v42 = vld [vmem:[#allocation62_spill] sm:$0xff] }
 0x3c1   : > { %10054 = vst [vmem:[#allocation77_spill] sm:$0xff] %v6930_v16  ;;  %v6943_v45 = vmul.f32 %v10057_v24, %v2430_v35  ;;  %v6946_v15 = vmul.f32 %v10057_v24, %v2431_v22  ;;  %v2290_v7 = vadd.f32 %v6760_v57, %v1996_v11  ;;  %v6950_v13 = vadd.f32 %v6521_v33, %v2813_v47  ;;  %v10066_v47 = vld [vmem:[#allocation109_spill] sm:$0xff] }
 0x3c2   : > { %v2291_v10 = vadd.f32 %v6763_v49, %v1997_v51  ;;  %v6953_v5 = vadd.f32 %v2782_v62, %v2552_v52  ;;  %v6955_v40 = vadd.f32 %v2783_v53, %v2553_v8  ;;  %v2426_v3 = vsel %vm6589_vm2, %v2400_v38, 0.0  ;;  %v10065_v53 = vld [vmem:[#allocation174_spill] sm:$0xff] }
 0x3c3   : > { %10058 = vst [vmem:[#allocation22_spill] sm:$0xff] %v6943_v45  ;;  %3532 = vrot.lane.b32.xlu2 %v5722_v54, %s4344_s30  ;;  %v2427_v57 = vsel %vm6613_vm3, %v2384_v28, 0.0  ;;  %vm6967_vm1 = vcmp.eq.s32.totalorder %v3332_v63, 1  ;;  %vm6971_vm4 = vcmp.eq.s32.totalorder %v3333_v39, 1  ;;  %v2125_v23 = vsel %vm9585_vm7, %v10066_v47, %v10065_v53  ;;  %v10070_v52 = vld [vmem:[#allocation98_spill] sm:$0xff] }
 0x3c4   : > { %10059 = vst [vmem:[#allocation7_spill] sm:$0xff] %v6946_v15  ;;  %3524 = vrot.lane.b32.xlu1 %v5637_v31, %s4344_s30  ;;  %v2141_v35 = vsel %vm9585_vm7, %v10065_v53, %v10066_v47  ;;  %v3340_v63 = vsel %vm6967_vm1, %v3299_v17, 0.0  ;;  %v3341_v39 = vsel %vm6971_vm4, %v3315_v36, 0.0  ;;  %v10069_v17 = vld [vmem:[#allocation175_spill] sm:$0xff]  ;;  %v2522_v28 = vmul.f32 %v10071_v42, %v2426_v3  ;;  %v10072_v53 = vld [vmem:[#allocation178_spill] sm:$0xff]  ;;  %v10073_v47 = vld [vmem:[#allocation112_spill] sm:$0xff] }
 0x3c5   : > { %10060 = vst [vmem:[#allocation159_spill] sm:$0xff] %v6950_v13  ;;  %3534 = vrot.lane.b32.xlu0 %v5737_v41, %s4344_s30  ;;  %v3378_v43 = vpop.permute.xlu2 %3377  ;;  %v2648_v36 = vsel %vm9593_vm13, %v10070_v52, %v10069_v17  ;;  %v2664_v8 = vsel %vm9593_vm13, %v10069_v17, %v10070_v52  ;;  %v2523_v38 = vmul.f32 %v10071_v42, %v2427_v57  ;;  %v2168_v24 = vsel %vm6534_vm8, %v2141_v35, 0.0  ;;  %v10075_v3 = vld [vmem:[#allocation102_spill] sm:$0xff]  ;;  %v10077_v35 = vld [vmem:[#allocation85_spill] sm:$0xff] }
 0x3c6   : > { %v3275_v11 = vpop.permute.xlu1 %3274  ;;  %v6987_v6 = vmul.f32 %v3378_v43, %v3340_v63  ;;  %v6989_v22 = vmul.f32 %v3378_v43, %v3341_v39  ;;  %v1845_v43 = vsel %vm1837_vm10, %v10073_v47, %v10072_v53  ;;  %v1861_v63 = vsel %vm1837_vm10, %v10072_v53, %v10073_v47  ;;  %v10074_v39 = vld [vmem:[#allocation179_spill] sm:$0xff]  ;;  %v10126_v31 = vld [vmem:[#allocation201_spill] sm:$0xff] }
 0x3c7   : > { %v6994_v51 = vsel %vm3296_vm5, %v6480_v34, %v3275_v11  ;;  %v6999_v30 = vsel %vm3296_vm5, %v3275_v11, %v6480_v34  ;;  %v3279_v62 = vpop.permute.xlu0 %3278  ;;  %v2169_v34 = vsel %vm6538_vm9, %v2125_v23, 0.0  ;;  %v2385_v57 = vsel %vm2380_vm0, %v10075_v3, %v10074_v39  ;;  %v10076_v11 = vld [vmem:[#allocation180_spill] sm:$0xff] }
 0x3c8   : > { %10067 = vst [vmem:[#allocation97_spill] sm:$0xff] %v6987_v6  ;;  %v2123_v23 = vsel %vm9585_vm7, %v10077_v35, %v10076_v11  ;;  %v2139_v17 = vsel %vm9585_vm7, %v10076_v11, %v10077_v35  ;;  %v2688_v52 = vsel %vm6572_vm14, %v2664_v8, 0.0  ;;  %v2401_v42 = vsel %vm2380_vm0, %v10074_v39, %v10075_v3  ;;  %v10078_v11 = vld [vmem:[#allocation31_spill] sm:$0xff]  ;;  %v10357_v61 = vld [vmem:[#allocation77_spill] sm:$0xff] }
 0x3c9   : > { %10068 = vst [vmem:[#allocation160_spill] sm:$0xff] %v6989_v22  ;;  %v3301_v53 = vsel %vm3296_vm5, %v6406_v60, %v3273_v9  ;;  %v3317_v47 = vsel %vm3296_vm5, %v3273_v9, %v6406_v60  ;;  %v4345_v22 = vmov 7   ;;  %v7048_v35 = vmul.f32 %v10078_v11, %v2168_v24 }
 0x3ca   : > { %4249 = vset.pattern.permute.xlu2 %v4345_v22  ;;  %4250 = vset.pattern.permute.xlu0 %v4345_v22  ;;  %v2689_v8 = vsel %vm6576_vm15, %v2648_v36, 0.0  ;;  %v2554_v6 = vadd.f32 %v2522_v28, %v2290_v7  ;;  %v2555_v41 = vadd.f32 %v2523_v38, %v2291_v10  ;;  %v1892_v60 = vsel %vm6553_vm11, %v1861_v63, 0.0  ;;  %v10080_v7 = vld [vmem:[#allocation133_spill] sm:$0xff] }
 0x3cb   : > { %10079 = vst [vmem:[#allocation84_spill] sm:$0xff] %v7048_v35  ;;  %3538 = vrot.lane.b32.xlu2 %v5779_v44, %s4344_s30  ;;  %v1893_v9 = vsel %vm6557_vm12, %v1845_v43, 0.0  ;;  %v2164_v24 = vsel %vm6534_vm8, %v2139_v17, 0.0  ;;  %v2165_v36 = vsel %vm6538_vm9, %v2123_v23, 0.0  ;;  %4248 = vset.pattern.permute.xlu1 %v4345_v22  ;;  %v2428_v10 = vsel %vm6589_vm2, %v2401_v42, 0.0  ;;  %v10083_v17 = vld [vmem:[#allocation299_spill] sm:$0xff] }
 0x3cc   : > { %3530 = vrot.lane.b32.xlu1 %v5694_v2, %s4344_s30  ;;  %v2429_v28 = vsel %vm6613_vm3, %v2385_v57, 0.0  ;;  %v3344_v43 = vsel %vm6967_vm1, %v3301_v53, 0.0  ;;  %v3345_v63 = vsel %vm6971_vm4, %v3317_v47, 0.0  ;;  %v7089_v53 = vmul.f32 %v10078_v11, %v2169_v34  ;;  %v10085_v47 = vld [vmem:[#allocation8_spill] sm:$0xff]  ;;  %v10089_v2 = vld [vmem:[#allocation287_spill] sm:$0xff] }
 0x3cd   : > { %3540 = vrot.lane.b32.xlu0 %v10080_v7, %s4344_s30  ;;  %v3386_v38 = vpop.permute.xlu2 %3385  ;;  %v2784_v7 = vmul.f32 %v10085_v47, %v2688_v52  ;;  %v7100_v13 = vadd.f32 %v10089_v2, %v6953_v5  ;;  %v10094_v52 = vld [vmem:[#allocation36_spill] sm:$0xff] }
 0x3ce   : > { %v3281_v39 = vpop.permute.xlu1 %3280  ;;  %v7074_v3 = vmul.f32 %v3386_v38, %v3344_v43  ;;  %v7076_v23 = vmul.f32 %v3386_v38, %v3345_v63  ;;  %10084 = vst [vmem:[#allocation164_spill] sm:$0xff] %v7089_v53  ;;  %v10086_v43 = vld [vmem:[#allocation49_spill] sm:$0xff]  ;;  %v2785_v63 = vmul.f32 %v10085_v47, %v2689_v8  ;;  %v2524_v11 = vmul.f32 %v10094_v52, %v2428_v10  ;;  %v10097_v2 = vld [vmem:[#allocation276_spill] sm:$0xff]  ;;  %v10134_v53 = vld [vmem:[#allocation139_spill] sm:$0xff] }
 0x3cf   : > { %v7081_v22 = vsel %vm3296_vm5, %v10083_v17, %v3281_v39  ;;  %v7086_v57 = vsel %vm3296_vm5, %v3281_v39, %v10083_v17  ;;  %v3285_v42 = vpop.permute.xlu0 %3284  ;;  %v2261_v38 = vmul.f32 %v10086_v43, %v2165_v36  ;;  %10090 = vst [vmem:[#allocation163_spill] sm:$0xff] %v7100_v13  ;;  %v10091_v39 = vld [vmem:[#allocation293_spill] sm:$0xff]  ;;  %v10095_v36 = vld [vmem:[#allocation116_spill] sm:$0xff]  ;;  %v2816_v47 = vadd.f32 %v2784_v7, %v2554_v6 }
 0x3d0   : > { %10081 = vst [vmem:[#allocation59_spill] sm:$0xff] %v7074_v3  ;;  %v2260_v3 = vmul.f32 %v10086_v43, %v2164_v24  ;;  %v7104_v17 = vadd.f32 %v10091_v39, %v6955_v40  ;;  %v2525_v24 = vmul.f32 %v10094_v52, %v2429_v28  ;;  %v10096_v8 = vld [vmem:[#allocation181_spill] sm:$0xff]  ;;  %v2817_v43 = vadd.f32 %v2785_v63, %v2555_v41  ;;  %v10098_v28 = vld [vmem:[#allocation182_spill] sm:$0xff]  ;;  %v10100_v6 = vld [vmem:[#allocation144_spill] sm:$0xff] }
 0x3d1   : > { %10082 = vst [vmem:[#allocation91_spill] sm:$0xff] %v7076_v23  ;;  %v10087_v23 = vld [vmem:[#allocation46_spill] sm:$0xff]  ;;  %v3304_v5 = vsel %vm3296_vm5, %v10097_v2, %v3279_v62  ;;  %v3320_v40 = vsel %vm3296_vm5, %v3279_v62, %v10097_v2  ;;  %v2293_v10 = vadd.f32 %v2261_v38, %v6838_v12  ;;  %v10102_v12 = vld [vmem:[#allocation187_spill] sm:$0xff]  ;;  %v10103_v62 = vld [vmem:[#allocation124_spill] sm:$0xff] }
 0x3d2   : > { %v7096_v44 = vmul.f32 %v10087_v23, %v1892_v60  ;;  %10092 = vst [vmem:[#allocation51_spill] sm:$0xff] %v7104_v17  ;;  %v7107_v34 = vmul.f32 %v10087_v23, %v1893_v9  ;;  %v2668_v60 = vsel %vm9593_vm13, %v10096_v8, %v10095_v36  ;;  %v2292_v9 = vadd.f32 %v2260_v3, %v6806_v26  ;;  %v10099_v23 = vld [vmem:[#allocation106_spill] sm:$0xff]  ;;  %v10104_v63 = vld [vmem:[#allocation147_spill] sm:$0xff]  ;;  %v10105_v52 = vld [vmem:[#allocation197_spill] sm:$0xff] }
 0x3d3   : > { %v2124_v39 = vsel %vm9585_vm7, %v10099_v23, %v10098_v28  ;;  %3544 = vrot.lane.b32.xlu2 %v10100_v6, %s4344_s30  ;;  %v10101_v41 = vld [vmem:[#allocation122_spill] sm:$0xff]  ;;  %v2696_v7 = vsel %vm6572_vm14, %v2668_v60, 0.0  ;;  %v2140_v26 = vsel %vm9585_vm7, %v10098_v28, %v10099_v23  ;;  %v2128_v3 = vsel %vm9585_vm7, %v10103_v62, %v10102_v12  ;;  %v10106_v60 = vld [vmem:[#allocation125_spill] sm:$0xff] }
 0x3d4   : > { %10088 = vst [vmem:[#allocation82_spill] sm:$0xff] %v7096_v44  ;;  %3536 = vrot.lane.b32.xlu1 %v10101_v41, %s4344_s30  ;;  %v2144_v38 = vsel %vm9585_vm7, %v10102_v12, %v10103_v62  ;;  %v1847_v2 = vsel %vm1837_vm10, %v10106_v60, %v10105_v52  ;;  %v1863_v28 = vsel %vm1837_vm10, %v10105_v52, %v10106_v60  ;;  %v3350_v17 = vsel %vm6967_vm1, %v3304_v5, 0.0  ;;  %v10109_v41 = vld [vmem:[#allocation155_spill] sm:$0xff] }
 0x3d5   : > { %10093 = vst [vmem:[#allocation21_spill] sm:$0xff] %v7107_v34  ;;  %3546 = vrot.lane.b32.xlu0 %v10104_v63, %s4344_s30  ;;  %v3398_v23 = vpop.permute.xlu2 %3397  ;;  %v3351_v12 = vsel %vm6971_vm4, %v3320_v40, 0.0  ;;  %v2166_v5 = vsel %vm6534_vm8, %v2140_v26, 0.0  ;;  %v10110_v40 = vld [vmem:[#allocation288_spill] sm:$0xff]  ;;  %v7185_v54 = vadd.f32 %v2525_v24, %v2293_v10  ;;  %v2174_v26 = vsel %vm6534_vm8, %v2144_v38, 0.0  ;;  %v10120_v38 = vld [vmem:[#allocation89_spill] sm:$0xff] }
 0x3d6   : > { %v3287_v62 = vpop.permute.xlu1 %3286  ;;  %v7159_v13 = vmul.f32 %v3398_v23, %v3350_v17  ;;  %v7161_v6 = vmul.f32 %v3398_v23, %v3351_v12  ;;  %v2167_v17 = vsel %vm6538_vm9, %v2124_v39, 0.0  ;;  %v7178_v23 = vadd.f32 %v10110_v40, %v2816_v47  ;;  %v10112_v12 = vld [vmem:[#allocation292_spill] sm:$0xff]  ;;  %v10122_v40 = vld [vmem:[#allocation158_spill] sm:$0xff] }
 0x3d7   : > { %v7166_v16 = vsel %vm3296_vm5, %v10109_v41, %v3287_v62  ;;  %v7171_v52 = vsel %vm3296_vm5, %v3287_v62, %v10109_v41  ;;  %v3291_v60 = vpop.permute.xlu0 %3290  ;;  %v7191_v41 = vsel %vm9593_vm13, %v10095_v36, %v10096_v8  ;;  %v10114_v39 = vld [vmem:[#allocation20_spill] sm:$0xff]  ;;  %v2175_v47 = vsel %vm6538_vm9, %v2128_v3, 0.0  ;;  %v10118_v8 = vld [vmem:[#allocation279_spill] sm:$0xff]  ;;  %v10132_v34 = vld [vmem:[#allocation38_spill] sm:$0xff] }
 0x3d8   : > { %10107 = vst [vmem:[#allocation95_spill] sm:$0xff] %v7159_v13  ;;  %v7183_v13 = vadd.f32 %v2524_v11, %v2292_v9  ;;  %v7196_v62 = vmul.f32 %v10114_v39, %v2696_v7  ;;  %v1896_v11 = vsel %vm6553_vm11, %v1863_v28, 0.0  ;;  %v1897_v24 = vsel %vm6557_vm12, %v1847_v2, 0.0  ;;  %v10119_v3 = vld [vmem:[#allocation183_spill] sm:$0xff] }
 0x3d9   : > { %10108 = vst [vmem:[#allocation168_spill] sm:$0xff] %v7161_v6  ;;  %v7181_v6 = vadd.f32 %v10112_v12, %v2817_v43  ;;  %v10116_v43 = vld [vmem:[#allocation58_spill] sm:$0xff]  ;;  %v3307_v10 = vsel %vm3296_vm5, %v10118_v8, %v3285_v42  ;;  %v3323_v7 = vsel %vm3296_vm5, %v3285_v42, %v10118_v8  ;;  %v7220_v28 = vsel %vm1837_vm10, %v10120_v38, %v10119_v3  ;;  %v10123_v12 = vld [vmem:[#allocation137_spill] sm:$0xff] }
 0x3da   : > { %10111 = vst [vmem:[#allocation86_spill] sm:$0xff] %v7178_v23  ;;  %v7205_v9 = vmul.f32 %v10116_v43, %v2166_v5  ;;  %v7208_v36 = vmul.f32 %v10116_v43, %v2167_v17  ;;  %v7226_v2 = vsel %vm1837_vm10, %v10119_v3, %v10120_v38  ;;  %v10121_v5 = vld [vmem:[#allocation52_spill] sm:$0xff]  ;;  %v10124_v43 = vld [vmem:[#allocation25_spill] sm:$0xff]  ;;  %v10125_v23 = vld [vmem:[#allocation111_spill] sm:$0xff] }
 0x3db   : > { %10113 = vst [vmem:[#allocation169_spill] sm:$0xff] %v7181_v6  ;;  %v2270_v17 = vmul.f32 %v10121_v5, %v2174_v26  ;;  %3550 = vrot.lane.b32.xlu2 %v10122_v40, %s4344_s30  ;;  %v2271_v42 = vmul.f32 %v10121_v5, %v2175_v47  ;;  %v2008_v8 = vmul.f32 %v10124_v43, %v1896_v11  ;;  %v10127_v38 = vld [vmem:[#allocation162_spill] sm:$0xff]  ;;  %v3356_v40 = vsel %vm6967_vm1, %v3307_v10, 0.0  ;;  %v10128_v5 = vld [vmem:[#allocation285_spill] sm:$0xff] }
 0x3dc   : > { %10115 = vst [vmem:[#allocation65_spill] sm:$0xff] %v7196_v62  ;;  %3542 = vrot.lane.b32.xlu1 %v10123_v12, %s4344_s30  ;;  %v2009_v6 = vmul.f32 %v10124_v43, %v1897_v24  ;;  %v2406_v3 = vsel %vm2380_vm0, %v10126_v31, %v10125_v23  ;;  %v3357_v12 = vsel %vm6971_vm4, %v3323_v7, 0.0  ;;  %v3336_v11 = vsel %vm6967_vm1, %v10128_v5, 0.0  ;;  %v10129_v24 = vld [vmem:[#allocation286_spill] sm:$0xff]  ;;  %v10133_v5 = vld [vmem:[#allocation199_spill] sm:$0xff] }
 0x3dd   : > { %10117 = vst [vmem:[#allocation29_spill] sm:$0xff] %v7208_v36  ;;  %3552 = vrot.lane.b32.xlu0 %v10127_v38, %s4344_s30  ;;  %v3410_v26 = vpop.permute.xlu2 %3409  ;;  %v3337_v43 = vsel %vm6971_vm4, %v10129_v24, 0.0  ;;  %v2131_v24 = vsel %vm9585_vm7, %v10134_v53, %v10133_v5  ;;  %v2390_v35 = vsel %vm2380_vm0, %v10125_v23, %v10126_v31  ;;  %v10140_v23 = vld [vmem:[#allocation283_spill] sm:$0xff] }
 0x3de   : > { %v3293_v47 = vpop.permute.xlu1 %3292  ;;  %v7252_v50 = vmul.f32 %v3410_v26, %v3356_v40  ;;  %v7254_v62 = vmul.f32 %v3410_v26, %v3357_v12  ;;  %v2147_v40 = vsel %vm9585_vm7, %v10133_v5, %v10134_v53  ;;  %v2438_v53 = vsel %vm6589_vm2, %v2406_v3, 0.0  ;;  %v10141_v3 = vld [vmem:[#allocation57_spill] sm:$0xff] }
 0x3df   : > { %v7259_v10 = vsel %vm3296_vm5, %v10132_v34, %v3293_v47  ;;  %v7264_v7 = vsel %vm3296_vm5, %v3293_v47, %v10132_v34  ;;  %v3370_v44 = vpop.permute.xlu0 %3369  ;;  %v2181_v31 = vsel %vm6538_vm9, %v2131_v24, 0.0  ;;  %v10142_v24 = vld [vmem:[#allocation173_spill] sm:$0xff] }
 0x3e0   : > { %10130 = vst [vmem:[#allocation101_spill] sm:$0xff] %v7252_v50  ;;  %v7274_v12 = vmul.f32 %v3370_v44, %v3336_v11  ;;  %v7276_v26 = vmul.f32 %v3370_v44, %v3337_v43  ;;  %v10138_v50 = vld [vmem:[#allocation128_spill] sm:$0xff]  ;;  %v2302_v44 = vadd.f32 %v2270_v17, %v2008_v8  ;;  %v2303_v11 = vadd.f32 %v2271_v42, %v2009_v6  ;;  %v10139_v43 = vld [vmem:[#allocation271_spill] sm:$0xff] }
 0x3e1   : > { %10131 = vst [vmem:[#allocation167_spill] sm:$0xff] %v7254_v62  ;;  %v10137_v62 = vld [vmem:[#allocation200_spill] sm:$0xff]  ;;  %v3298_v5 = vsel %vm3296_vm5, %v10139_v43, %v6828_v37  ;;  %v3310_v6 = vsel %vm3296_vm5, %v10140_v23, %v3291_v60  ;;  %v3326_v17 = vsel %vm3296_vm5, %v3291_v60, %v10140_v23  ;;  %v2439_v8 = vsel %vm6613_vm3, %v2390_v35, 0.0  ;;  %v10146_v35 = vld [vmem:[#allocation177_spill] sm:$0xff] }
 0x3e2   : > { %10135 = vst [vmem:[#allocation44_spill] sm:$0xff] %v7274_v12  ;;  %v2654_v34 = vsel %vm9593_vm13, %v10138_v50, %v10137_v62  ;;  %v2670_v47 = vsel %vm9593_vm13, %v10137_v62, %v10138_v50  ;;  %v3314_v50 = vsel %vm3296_vm5, %v6828_v37, %v10139_v43  ;;  %v2180_v62 = vsel %vm6534_vm8, %v2147_v40, 0.0  ;;  %v10143_v43 = vld [vmem:[#allocation151_spill] sm:$0xff]  ;;  %v10145_v12 = vld [vmem:[#allocation140_spill] sm:$0xff] }
 0x3e3   : > { %10136 = vst [vmem:[#allocation47_spill] sm:$0xff] %v7276_v26  ;;  %v2700_v42 = vsel %vm6572_vm14, %v2670_v47, 0.0  ;;  %v2701_v37 = vsel %vm6576_vm15, %v2654_v34, 0.0  ;;  %v2534_v40 = vmul.f32 %v10141_v3, %v2438_v53  ;;  %3556 = vrot.lane.b32.xlu2 %v10142_v24, %s4344_s30  ;;  %v10144_v26 = vld [vmem:[#allocation209_spill] sm:$0xff]  ;;  %v3338_v47 = vsel %vm6967_vm1, %v3298_v5, 0.0 }
 0x3e4   : > { %3548 = vrot.lane.b32.xlu1 %v10143_v43, %s4344_s30  ;;  %v1850_v60 = vsel %vm1837_vm10, %v10145_v12, %v10144_v26  ;;  %v1866_v34 = vsel %vm1837_vm10, %v10144_v26, %v10145_v12  ;;  %v3339_v53 = vsel %vm6971_vm4, %v3314_v50, 0.0  ;;  %v3362_v24 = vsel %vm6967_vm1, %v3310_v6, 0.0 }
 0x3e5   : > { %3558 = vrot.lane.b32.xlu0 %v10146_v35, %s4344_s30  ;;  %v3422_v23 = vpop.permute.xlu2 %3421  ;;  %v3363_v43 = vsel %vm6971_vm4, %v3326_v17, 0.0  ;;  %v3346_v12 = vsel %vm6967_vm1, %v6994_v51, 0.0  ;;  %v3347_v26 = vsel %vm6971_vm4, %v6999_v30, 0.0  ;;  %v2535_v17 = vmul.f32 %v10141_v3, %v2439_v8  ;;  %v10151_v35 = vld [vmem:[#allocation213_spill] sm:$0xff]  ;;  %v10154_v30 = vld [vmem:[#allocation54_spill] sm:$0xff] }
 0x3e6   : > { %v3374_v15 = vpop.permute.xlu1 %3373  ;;  %v7345_v5 = vmul.f32 %v3422_v23, %v3362_v24  ;;  %v7347_v45 = vmul.f32 %v3422_v23, %v3363_v43  ;;  %v2409_v51 = vsel %vm2380_vm0, %v10151_v35, %v10150_v21  ;;  %v2276_v24 = vmul.f32 %v10154_v30, %v2180_v62  ;;  %v10155_v8 = vld [vmem:[#allocation30_spill] sm:$0xff]  ;;  %v10157_v23 = vld [vmem:[#allocation153_spill] sm:$0xff] }
 0x3e7   : > { %v7349_v50 = vmul.f32 %v3374_v15, %v3338_v47  ;;  %v7351_v29 = vmul.f32 %v3374_v15, %v3339_v53  ;;  %v3390_v6 = vpop.permute.xlu0 %3389  ;;  %v2277_v43 = vmul.f32 %v10154_v30, %v2181_v31  ;;  %v1902_v15 = vsel %vm6553_vm11, %v1866_v34, 0.0  ;;  %v10156_v53 = vld [vmem:[#allocation211_spill] sm:$0xff] }
 0x3e8   : > { %10147 = vst [vmem:[#allocation42_spill] sm:$0xff] %v7345_v5  ;;  %v7358_v20 = vmul.f32 %v3390_v6, %v3346_v12  ;;  %v7360_v36 = vmul.f32 %v3390_v6, %v3347_v26  ;;  %v1903_v47 = vsel %vm6557_vm12, %v1850_v60, 0.0  ;;  %v2796_v3 = vmul.f32 %v10155_v8, %v2700_v42  ;;  %v10158_v26 = vld [vmem:[#allocation143_spill] sm:$0xff]  ;;  %v10159_v42 = vld [vmem:[#allocation212_spill] sm:$0xff] }
 0x3e9   : > { %10148 = vst [vmem:[#allocation94_spill] sm:$0xff] %v7347_v45  ;;  %v2134_v12 = vsel %vm9585_vm7, %v10157_v23, %v10156_v53  ;;  %v2150_v62 = vsel %vm9585_vm7, %v10156_v53, %v10157_v23  ;;  %v2393_v31 = vsel %vm2380_vm0, %v10150_v21, %v10151_v35  ;;  %v2797_v34 = vmul.f32 %v10155_v8, %v2701_v37  ;;  %v10160_v45 = vld [vmem:[#allocation34_spill] sm:$0xff]  ;;  %v10163_v8 = vld [vmem:[#allocation297_spill] sm:$0xff] }
 0x3ea   : > { %10149 = vst [vmem:[#allocation171_spill] sm:$0xff] %v7351_v29  ;;  %v2566_v60 = vadd.f32 %v2534_v40, %v2302_v44  ;;  %v2673_v6 = vsel %vm9593_vm13, %v10159_v42, %v10158_v26  ;;  %v2444_v30 = vsel %vm6589_vm2, %v2409_v51, 0.0  ;;  %v1888_v53 = vsel %vm6553_vm11, %v7226_v2, 0.0  ;;  %v4275_v44 = vld [vmem:[%s9228_s3 + $0x8] sm:$0xff]  ;;  %v10161_v37 = vld [vmem:[#allocation166_spill] sm:$0xff]  ;;  %v10162_v51 = vld [vmem:[#allocation60_spill] sm:$0xff] }
 0x3eb   : > { %10152 = vst [vmem:[#allocation172_spill] sm:$0xff] %v7358_v20  ;;  %v2567_v23 = vadd.f32 %v2535_v17, %v2303_v11  ;;  %v2014_v5 = vmul.f32 %v10160_v45, %v1902_v15  ;;  %v2015_v21 = vmul.f32 %v10160_v45, %v1903_v47  ;;  %3635 = vperm.xlu2 %4249, %v4275_v44   ;;  %v2186_v40 = vsel %vm6534_vm8, %v2150_v62, 0.0  ;;  %v4276_v11 = vld [vmem:[%s9228_s3 + $0x10] sm:$0xff]  ;;  %v10164_v62 = vld [vmem:[#allocation298_spill] sm:$0xff] }
 0x3ec   : > { %10153 = vst [vmem:[#allocation79_spill] sm:$0xff] %v7360_v36  ;;  %3554 = vrot.lane.b32.xlu1 %v10161_v37, %s4344_s30  ;;  %v2187_v35 = vsel %vm6538_vm9, %v2134_v12, 0.0  ;;  %v2657_v2 = vsel %vm9593_vm13, %v10158_v26, %v10159_v42  ;;  %v2445_v45 = vsel %vm6613_vm3, %v2393_v31, 0.0  ;;  %v2706_v17 = vsel %vm6572_vm14, %v2673_v6, 0.0  ;;  %v10172_v29 = vld [vmem:[#allocation154_spill] sm:$0xff]  ;;  %s4185_s30 = sshll.u32 %s10555_s15, 8 }
 0x3ed   : > { %3639 = vperm.xlu0 %4250, %v4276_v11   ;;  %v2540_v15 = vmul.f32 %v10162_v51, %v2444_v30  ;;  %v7414_v47 = vpop.permute.xlu2 %3496  ;;  %v3342_v12 = vsel %vm6967_vm1, %v10163_v8, 0.0  ;;  %v3343_v31 = vsel %vm6971_vm4, %v10164_v62, 0.0  ;;  %v3352_v6 = vsel %vm6967_vm1, %v7081_v22, 0.0  ;;  %s9008_s7 = scalar_lea.vmem %s9229_s4, %s4185_s30 }
 0x3ee   : > { %v3382_v26 = vpop.permute.xlu1 %3381  ;;  %v3353_v30 = vsel %vm6971_vm4, %v7086_v57, 0.0  ;;  %v2707_v8 = vsel %vm6576_vm15, %v2657_v2, 0.0  ;;  %v2541_v36 = vmul.f32 %v10162_v51, %v2445_v45  ;;  %v2308_v20 = vadd.f32 %v2276_v24, %v2014_v5  ;;  %v10173_v45 = vld [vmem:[#allocation221_spill] sm:$0xff] }
 0x3ef   : > { %v7422_v42 = vmul.f32 %v3382_v26, %v3342_v12  ;;  %v7424_v44 = vmul.f32 %v3382_v26, %v3343_v31  ;;  %v3402_v11 = vpop.permute.xlu0 %3401  ;;  %v10169_v31 = vld [vmem:[#allocation40_spill] sm:$0xff]  ;;  %vm10170_vm5 = vcmp.le.s32.totalorder %v6436_v56, 14  ;;  %v2309_v57 = vadd.f32 %v2277_v43, %v2015_v21  ;;  %v10176_v43 = vld [vmem:[#allocation214_spill] sm:$0xff]  ;;  %v10189_v56 = vld [vmem:[#allocation225_spill] sm:$0xff] }
 0x3f0   : > { %v7435_v62 = vmul.f32 %v3402_v11, %v3352_v6  ;;  %v7437_v12 = vmul.f32 %v3402_v11, %v3353_v30  ;;  %v7440_v26 = vmul.f32 %v10169_v31, %v1888_v53  ;;  %v3067_v22 = vsel %vm10170_vm5, 1, %v9958_v55  ;;  %v10174_v53 = vld [vmem:[#allocation32_spill] sm:$0xff]  ;;  %v10175_v30 = vld [vmem:[#allocation75_spill] sm:$0xff] }
 0x3f1   : > { %10165 = vst [vmem:[#allocation18_spill] sm:$0xff] %v7422_v42  ;;  %v10171_v42 = vld [vmem:[#allocation56_spill] sm:$0xff]  ;;  %v2829_v2 = vadd.f32 %v2797_v34, %v2567_v23  ;;  %v1869_v51 = vsel %vm1837_vm10, %v10173_v45, %v10172_v29  ;;  %v2802_v5 = vmul.f32 %v10174_v53, %v2706_v17  ;;  %v2803_v24 = vmul.f32 %v10174_v53, %v2707_v8  ;;  %v4277_v34 = vld [vmem:[%s9228_s3 + $0x20] sm:$0xff]  ;;  %v4279_v17 = vld [vmem:[%s9228_s3 + $0x38] sm:$0xff] }
 0x3f2   : > { %10166 = vst [vmem:[#allocation105_spill] sm:$0xff] %v7424_v44  ;;  %v2828_v44 = vadd.f32 %v2796_v3, %v2566_v60  ;;  %v7446_v37 = vmul.f32 %v10171_v42, %v2186_v40  ;;  %v7453_v6 = vmul.f32 %v10171_v42, %v2187_v35  ;;  %v2572_v3 = vadd.f32 %v2540_v15, %v2308_v20  ;;  %v4278_v23 = vld [vmem:[%s9228_s3] sm:$0xff]  ;;  %v10177_v15 = vld [vmem:[#allocation260_spill] sm:$0xff] }
 0x3f3   : > { %10167 = vst [vmem:[#allocation170_spill] sm:$0xff] %v7435_v62  ;;  %v2573_v60 = vadd.f32 %v2541_v36, %v2309_v57  ;;  %v2924_v21 = vmul.f32 %v10176_v43, %v10175_v30  ;;  %v3068_v40 = vperm.slane %v3067_v22, 0  ;;  %v3069_v11 = vperm.slane %v3067_v22, 1  ;;  %3647 = vperm.xlu2 %4249, %v4277_v34   ;;  %v10178_v42 = vld [vmem:[#allocation246_spill] sm:$0xff]  ;;  %v10179_v57 = vld [vmem:[#allocation152_spill] sm:$0xff] }
 0x3f4   : > { %10168 = vst [vmem:[#allocation39_spill] sm:$0xff] %v7437_v12  ;;  %3631 = vperm.xlu1 %4248, %v4278_v23   ;;  %v2925_v35 = vmul.f32 %v10176_v43, %v10104_v63  ;;  %v1853_v20 = vsel %vm1837_vm10, %v10172_v29, %v10173_v45  ;;  %v1908_v36 = vsel %vm6553_vm11, %v1869_v51, 0.0  ;;  %vm9589_vm5 = vcmp.lt.s32.totalorder %v6448_v25, 127  ;;  %v10180_v51 = vld [vmem:[#allocation83_spill] sm:$0xff]  ;;  %v10190_v12 = vld [vmem:[#allocation142_spill] sm:$0xff]  ;;  %v10193_v63 = vld [vmem:[#allocation224_spill] sm:$0xff] }
 0x3f5   : > { %3659 = vperm.xlu0 %4250, %v4279_v17   ;;  %v3044_v8 = vsel %vm9589_vm5, %v10178_v42, %v10177_v15  ;;  %v3060_v29 = vsel %vm9589_vm5, %v10177_v15, %v10178_v42  ;;  %v7485_v22 = vpop.permute.xlu2 %3502  ;;  %v3348_v45 = vsel %vm6967_vm1, %v10179_v57, 0.0  ;;  %v3349_v53 = vsel %vm6971_vm4, %v10180_v51, 0.0  ;;  %v4303_v57 = vld [vmem:[%s9228_s3 + $0x38] sm:$0xff] }
 0x3f6   : > { %v3394_v43 = vpop.permute.xlu1 %3393  ;;  %v3358_v17 = vsel %vm6967_vm1, %v7166_v16, 0.0  ;;  %v3359_v15 = vsel %vm6971_vm4, %v7171_v52, 0.0  ;;  %vm7503_vm6 = vcmp.eq.s32.totalorder %v3068_v40, 1  ;;  %vm7507_vm7 = vcmp.eq.s32.totalorder %v3069_v11, 1 }
 0x3f7   : > { %v7493_v34 = vmul.f32 %v3394_v43, %v3348_v45  ;;  %v7495_v23 = vmul.f32 %v3394_v43, %v3349_v53  ;;  %v3414_v42 = vpop.permute.xlu0 %3413  ;;  %v2956_v43 = vadd.f32 %v2924_v21, %v2828_v44  ;;  %v1909_v16 = vsel %vm6557_vm12, %v1853_v20, 0.0  ;;  %v10191_v44 = vld [vmem:[#allocation275_spill] sm:$0xff] }
 0x3f8   : > { %v7511_v45 = vmul.f32 %v3414_v42, %v3358_v17  ;;  %v7513_v53 = vmul.f32 %v3414_v42, %v3359_v15  ;;  %v3090_v52 = vsel %vm7503_vm6, %v3044_v8, 0.0  ;;  %v3091_v40 = vsel %vm7507_vm7, %v3060_v29, 0.0 }
 0x3f9   : > { %10181 = vst [vmem:[#allocation15_spill] sm:$0xff] %v7493_v34  ;;  %v2396_v11 = vsel %vm2380_vm0, %v10190_v12, %v10189_v56  ;;  %v2412_v17 = vsel %vm2380_vm0, %v10189_v56, %v10190_v12  ;;  %v3186_v21 = vmul.f32 %v10191_v44, %v3090_v52  ;;  %v3187_v20 = vmul.f32 %v10191_v44, %v3091_v40  ;;  %v10197_v52 = vld [vmem:[#allocation90_spill] sm:$0xff] }
 0x3fa   : > { %10182 = vst [vmem:[#allocation176_spill] sm:$0xff] %v7495_v23  ;;  %v2957_v15 = vadd.f32 %v2925_v35, %v2829_v2  ;;  %v2834_v42 = vadd.f32 %v2802_v5, %v2572_v3  ;;  %v2835_v8 = vadd.f32 %v2803_v24, %v2573_v60  ;;  %v1889_v29 = vsel %vm6557_vm12, %v7220_v28, 0.0  ;;  %v10194_v23 = vld [vmem:[#allocation157_spill] sm:$0xff]  ;;  %v4280_v2 = vld [vmem:[%s9228_s3 + $0x30] sm:$0xff]  ;;  %v10195_v3 = vld [vmem:[#allocation263_spill] sm:$0xff] }
 0x3fb   : > { %10187 = vst [vmem:[#allocation81_spill] sm:$0xff] %v7511_v45  ;;  %v2660_v56 = vsel %vm9593_vm13, %v10194_v23, %v10193_v63  ;;  %v2676_v12 = vsel %vm9593_vm13, %v10193_v63, %v10194_v23  ;;  %3655 = vperm.xlu2 %4249, %v4280_v2   ;;  %v4281_v28 = vld [vmem:[%s9228_s3 + $0x18] sm:$0xff]  ;;  %v2450_v5 = vsel %vm6589_vm2, %v2412_v17, 0.0  ;;  %v2451_v24 = vsel %vm6613_vm3, %v2396_v11, 0.0  ;;  %v10198_v11 = vld [vmem:[#allocation55_spill] sm:$0xff] }
 0x3fc   : > { %10188 = vst [vmem:[#allocation4_spill] sm:$0xff] %v7513_v53  ;;  %v10192_v53 = vld [vmem:[#allocation53_spill] sm:$0xff]  ;;  %3643 = vperm.xlu1 %4248, %v4281_v28   ;;  %v3218_v23 = vadd.f32 %v3186_v21, %v2956_v43  ;;  %v3354_v40 = vsel %vm6967_vm1, %v10197_v52, 0.0  ;;  %v3355_v17 = vsel %vm6971_vm4, %v10198_v11, 0.0  ;;  %v3365_v43 = vsel %vm6971_vm4, %v7264_v7, 0.0 }
 0x3fd   : > { %v2020_v45 = vmul.f32 %v10192_v53, %v1908_v36  ;;  %v2021_v62 = vmul.f32 %v10192_v53, %v1909_v16  ;;  %v10196_v60 = vld [vmem:[#allocation249_spill] sm:$0xff]  ;;  %v4282_v36 = vld [vmem:[%s9228_s3 + $0x50] sm:$0xff]  ;;  %v3219_v53 = vadd.f32 %v3187_v20, %v2957_v15  ;;  %v7565_v16 = vpop.permute.xlu2 %3508  ;;  %v2712_v7 = vsel %vm6572_vm14, %v2676_v12, 0.0 }
 0x3fe   : > { %v3047_v63 = vsel %vm9589_vm5, %v10196_v60, %v10195_v3  ;;  %v3063_v35 = vsel %vm9589_vm5, %v10195_v3, %v10196_v60  ;;  %3671 = vperm.xlu0 %4250, %v4282_v36   ;;  %v3406_v44 = vpop.permute.xlu1 %3405  ;;  %v3364_v3 = vsel %vm6967_vm1, %v7259_v10, 0.0  ;;  %v10199_v20 = vld [vmem:[#allocation217_spill] sm:$0xff]  ;;  %v2713_v34 = vsel %vm6576_vm15, %v2660_v56, 0.0 }
 0x3ff   : > { %v3450_v2 = vmul.f32 %v3406_v44, %v3354_v40  ;;  %v3451_v28 = vmul.f32 %v3406_v44, %v3355_v17  ;;  %v3426_v21 = vpop.permute.xlu0 %3425  ;;  %v2930_v15 = vmul.f32 %v10199_v20, %v5607_v27  ;;  %v2931_v60 = vmul.f32 %v10199_v20, %v10127_v38  ;;  %v10202_v40 = vld [vmem:[#allocation2_spill] sm:$0xff] }
 0x400   : > { %v7583_v36 = vmul.f32 %v3426_v21, %v3364_v3  ;;  %v7585_v52 = vmul.f32 %v3426_v21, %v3365_v43  ;;  %v2546_v11 = vmul.f32 %v10202_v40, %v2450_v5  ;;  %v2547_v17 = vmul.f32 %v10202_v40, %v2451_v24 }
 0x401   : > { %v7589_v10 = vadd.f32 %v3450_v2, %v3218_v23  ;;  %v7591_v44 = vadd.f32 %v3451_v28, %v3219_v53  ;;  %v3096_v3 = vsel %vm7503_vm6, %v3047_v63, 0.0  ;;  %v3097_v43 = vsel %vm7507_vm7, %v3063_v35, 0.0  ;;  %v10205_v23 = vld [vmem:[#allocation278_spill] sm:$0xff]  ;;  %v4283_v63 = vld [vmem:[%s9228_s3 + $0x48] sm:$0xff] }
 0x402   : > { %10200 = vst [vmem:[#allocation174_spill] sm:$0xff] %v7583_v36  ;;  %v2314_v5 = vadd.f32 %v7446_v37, %v2020_v45  ;;  %v2315_v24 = vadd.f32 %v7453_v6, %v2021_v62  ;;  %v3192_v2 = vmul.f32 %v10205_v23, %v3096_v3  ;;  %v3193_v53 = vmul.f32 %v10205_v23, %v3097_v43  ;;  %v4284_v37 = vld [vmem:[%s9228_s3 + $0x28] sm:$0xff]  ;;  %v10206_v62 = vld [vmem:[#allocation76_spill] sm:$0xff] }
 0x403   : > { %10201 = vst [vmem:[#allocation109_spill] sm:$0xff] %v7585_v52  ;;  %v2697_v12 = vsel %vm6576_vm15, %v7191_v41, 0.0  ;;  %v2001_v56 = vmul.f32 %v10169_v31, %v1889_v29  ;;  %v2962_v28 = vadd.f32 %v2930_v15, %v2834_v42  ;;  %v2963_v21 = vadd.f32 %v2931_v60, %v2835_v8  ;;  %3667 = vperm.xlu2 %4249, %v4283_v63   ;;  %v4285_v31 = vld [vmem:[%s9228_s3 + $0x68] sm:$0xff]  ;;  %v10207_v42 = vld [vmem:[#allocation266_spill] sm:$0xff]  ;;  %v10208_v8 = vld [vmem:[#allocation252_spill] sm:$0xff] }
 0x404   : > { %10203 = vst [vmem:[#allocation175_spill] sm:$0xff] %v7589_v10  ;;  %3651 = vperm.xlu1 %4248, %v4284_v37   ;;  %v2808_v6 = vmul.f32 %v10206_v62, %v2712_v7  ;;  %v2809_v45 = vmul.f32 %v10206_v62, %v2713_v34  ;;  %v2578_v35 = vadd.f32 %v2546_v11, %v2314_v5  ;;  %v3360_v34 = vsel %vm6967_vm1, %v6822_v19, 0.0  ;;  %v10213_v63 = vld [vmem:[#allocation186_spill] sm:$0xff]  ;;  %v10216_v37 = vld [vmem:[#allocation177_spill] sm:$0xff]  ;;  %v10260_v36 = vld [vmem:[#allocation104_spill] sm:$0xff] }
 0x405   : > { %10204 = vst [vmem:[#allocation98_spill] sm:$0xff] %v7591_v44  ;;  %v2579_v41 = vadd.f32 %v2547_v17, %v2315_v24  ;;  %v3050_v29 = vsel %vm9589_vm5, %v10208_v8, %v10207_v42  ;;  %v3066_v20 = vsel %vm9589_vm5, %v10207_v42, %v10208_v8  ;;  %v7628_v15 = vpop.permute.xlu2 %3514  ;;  %v3361_v60 = vsel %vm6971_vm4, %v6826_v14, 0.0  ;;  %v10220_v42 = vld [vmem:[#allocation185_spill] sm:$0xff]  ;;  %v10221_v8 = vld [vmem:[#allocation110_spill] sm:$0xff] }
 0x406   : > { %3683 = vperm.xlu0 %4250, %v4285_v31   ;;  %v3418_v40 = vpop.permute.xlu1 %3417  ;;  %v3224_v11 = vadd.f32 %v3192_v2, %v2962_v28  ;;  %v3225_v17 = vadd.f32 %v3193_v53, %v2963_v21  ;;  %v7639_v5 = vmul.f32 %v10114_v39, %v2697_v12  ;;  %v2294_v24 = vadd.f32 %v7205_v9, %v7440_v26  ;;  %v10211_v21 = vld [vmem:[#allocation29_spill] sm:$0xff]  ;;  %v10247_v52 = vld [vmem:[#allocation190_spill] sm:$0xff] }
 0x407   : > { %v3456_v7 = vmul.f32 %v3418_v40, %v3360_v34  ;;  %v3457_v3 = vmul.f32 %v3418_v40, %v3361_v60  ;;  %v7636_v43 = vpop.permute.xlu0 %3498  ;;  %v7645_v19 = vadd.f32 %v6862_v48, %v7183_v13  ;;  %v7649_v14 = vadd.f32 %v6927_v46, %v7185_v54  ;;  %v10212_v12 = vld [vmem:[#allocation93_spill] sm:$0xff]  ;;  %v10214_v46 = vld [vmem:[#allocation99_spill] sm:$0xff]  ;;  %v10215_v13 = vld [vmem:[#allocation220_spill] sm:$0xff] }
 0x408   : > { %v2840_v23 = vadd.f32 %v2808_v6, %v2578_v35  ;;  %v2841_v2 = vadd.f32 %v2809_v45, %v2579_v41  ;;  %v2295_v39 = vadd.f32 %v10211_v21, %v2001_v56  ;;  %v2666_v9 = vsel %vm9593_vm13, %v10213_v63, %v10212_v12  ;;  %v10217_v6 = vld [vmem:[#allocation281_spill] sm:$0xff]  ;;  %v10218_v35 = vld [vmem:[#allocation120_spill] sm:$0xff]  ;;  %v4286_v34 = vld [vmem:[%s9228_s3 + $0x60] sm:$0xff] }
 0x409   : > { %v7651_v53 = vadd.f32 %v3456_v7, %v3224_v11  ;;  %v7653_v28 = vadd.f32 %v3457_v3, %v3225_v17  ;;  %v3102_v48 = vsel %vm7503_vm6, %v3050_v29, 0.0  ;;  %v3103_v54 = vsel %vm7507_vm7, %v3066_v20, 0.0  ;;  %v10219_v41 = vld [vmem:[#allocation184_spill] sm:$0xff]  ;;  %v4287_v60 = vld [vmem:[%s9228_s3 + $0x40] sm:$0xff]  ;;  %v10223_v21 = vld [vmem:[#allocation189_spill] sm:$0xff] }
 0x40a   : > { %v2936_v26 = vmul.f32 %v10215_v13, %v10214_v46  ;;  %v2937_v62 = vmul.f32 %v10215_v13, %v10216_v37  ;;  %v3198_v45 = vmul.f32 %v10217_v6, %v3102_v48  ;;  %v3199_v56 = vmul.f32 %v10217_v6, %v3103_v54  ;;  %v10222_v3 = vld [vmem:[#allocation64_spill] sm:$0xff]  ;;  %v10267_v37 = vld [vmem:[#allocation131_spill] sm:$0xff] }
 0x40b   : > { %10209 = vst [vmem:[#allocation62_spill] sm:$0xff] %v7651_v53  ;;  %v2405_v31 = vsel %vm2380_vm0, %v10219_v41, %v10218_v35  ;;  %v1844_v29 = vsel %vm1837_vm10, %v10221_v8, %v10220_v42  ;;  %v1860_v20 = vsel %vm1837_vm10, %v10220_v42, %v10221_v8  ;;  %3679 = vperm.xlu2 %4249, %v4286_v34   ;;  %v2692_v11 = vsel %vm6572_vm14, %v2666_v9, 0.0  ;;  %v10224_v48 = vld [vmem:[#allocation96_spill] sm:$0xff] }
 0x40c   : > { %10210 = vst [vmem:[#allocation178_spill] sm:$0xff] %v7653_v28  ;;  %3663 = vperm.xlu1 %4248, %v4287_v60   ;;  %v2650_v40 = vsel %vm9593_vm13, %v10212_v12, %v10213_v63  ;;  %v2968_v17 = vadd.f32 %v2936_v26, %v2840_v23  ;;  %v2969_v7 = vadd.f32 %v2937_v62, %v2841_v2  ;;  %v10225_v63 = vld [vmem:[#allocation19_spill] sm:$0xff]  ;;  %v10226_v2 = vld [vmem:[#allocation165_spill] sm:$0xff]  ;;  %v1890_v60 = vsel %vm6553_vm11, %v1860_v20, 0.0  ;;  %v10271_v28 = vld [vmem:[#allocation198_spill] sm:$0xff] }
 0x40d   : > { %v2387_v54 = vsel %vm2380_vm0, %v10224_v48, %v10223_v21  ;;  %v2403_v13 = vsel %vm2380_vm0, %v10223_v21, %v10224_v48  ;;  %v7704_v12 = vpop.permute.xlu2 %3520  ;;  %v3366_v23 = vsel %vm6967_vm1, %v10225_v63, 0.0  ;;  %v3367_v9 = vsel %vm6971_vm4, %v10226_v2, 0.0  ;;  %v10227_v21 = vld [vmem:[#allocation10_spill] sm:$0xff]  ;;  %v10272_v53 = vld [vmem:[#allocation108_spill] sm:$0xff] }
 0x40e   : > { %3758 = vrot.lane.b32.xlu0 %v10222_v3, %s4346_s10  ;;  %v3430_v26 = vpop.permute.xlu1 %3429  ;;  %v3230_v62 = vadd.f32 %v3198_v45, %v2968_v17  ;;  %v3231_v6 = vadd.f32 %v3199_v56, %v2969_v7  ;;  %v1891_v3 = vsel %vm6557_vm12, %v1844_v29, 0.0  ;;  %v2693_v33 = vsel %vm6576_vm15, %v2650_v40, 0.0  ;;  %v10228_v45 = vld [vmem:[#allocation113_spill] sm:$0xff]  ;;  %v10229_v56 = vld [vmem:[#allocation188_spill] sm:$0xff]  ;;  %v10232_v29 = vld [vmem:[#allocation22_spill] sm:$0xff] }
 0x40f   : > { %v3462_v42 = vmul.f32 %v3430_v26, %v3366_v23  ;;  %v3463_v8 = vmul.f32 %v3430_v26, %v3367_v9  ;;  %v7712_v34 = vpop.permute.xlu0 %3504  ;;  %v2788_v48 = vmul.f32 %v10227_v21, %v2692_v11  ;;  %v2389_v49 = vsel %vm2380_vm0, %v10218_v35, %v10219_v41  ;;  %v10233_v23 = vld [vmem:[#allocation23_spill] sm:$0xff]  ;;  %4252 = vset.pattern.permute.xlu0 %v4347_v32 }
 0x410   : > { %v2667_v17 = vsel %vm9593_vm13, %v10229_v56, %v10228_v45  ;;  %v2558_v63 = vadd.f32 %v10232_v29, %v2294_v24  ;;  %v2651_v40 = vsel %vm9593_vm13, %v10228_v45, %v10229_v56  ;;  %v2432_v11 = vsel %vm6589_vm2, %v2403_v13, 0.0  ;;  %v10240_v45 = vld [vmem:[#allocation6_spill] sm:$0xff]  ;;  %v10242_v29 = vld [vmem:[#allocation289_spill] sm:$0xff] }
 0x411   : > { %v7729_v7 = vadd.f32 %v3462_v42, %v3230_v62  ;;  %v7731_v20 = vadd.f32 %v3463_v8, %v3231_v6  ;;  %v2433_v35 = vsel %vm6613_vm3, %v2387_v54, 0.0  ;;  %v2436_v41 = vsel %vm6589_vm2, %v2405_v31, 0.0  ;;  %v10234_v62 = vld [vmem:[#allocation7_spill] sm:$0xff]  ;;  %v4288_v54 = vld [vmem:[%s9228_s3 + $0x78] sm:$0xff] }
 0x412   : > { %v2002_v2 = vmul.f32 %v10233_v23, %v1890_v60  ;;  %v2003_v9 = vmul.f32 %v10233_v23, %v1891_v3  ;;  %v2789_v24 = vmul.f32 %v10227_v21, %v2693_v33  ;;  %v2437_v26 = vsel %vm6613_vm3, %v2389_v49, 0.0  ;;  %v4289_v31 = vld [vmem:[%s9228_s3 + $0x58] sm:$0xff]  ;;  %v10236_v33 = vld [vmem:[#allocation100_spill] sm:$0xff] }
 0x413   : > { %10230 = vst [vmem:[#allocation112_spill] sm:$0xff] %v7729_v7  ;;  %v2559_v6 = vadd.f32 %v10234_v62, %v2295_v39  ;;  %v2820_v42 = vadd.f32 %v2788_v48, %v2558_v63  ;;  %v2694_v13 = vsel %vm6572_vm14, %v2667_v17, 0.0  ;;  %3691 = vperm.xlu2 %4249, %v4288_v54   ;;  %v2695_v8 = vsel %vm6576_vm15, %v2651_v40, 0.0  ;;  %v10235_v60 = vld [vmem:[#allocation37_spill] sm:$0xff]  ;;  %v10237_v21 = vld [vmem:[#allocation192_spill] sm:$0xff]  ;;  %v10243_v40 = vld [vmem:[#allocation295_spill] sm:$0xff] }
 0x414   : > { %10231 = vst [vmem:[#allocation179_spill] sm:$0xff] %v7731_v20  ;;  %3675 = vperm.xlu1 %4248, %v4289_v31   ;;  %v2528_v3 = vmul.f32 %v10235_v60, %v2432_v11  ;;  %v2529_v39 = vmul.f32 %v10235_v60, %v2433_v35  ;;  %vm10238_vm1 = vcmp.lt.s32.totalorder %v6448_v25, 16  ;;  %v10239_v49 = vld [vmem:[#allocation68_spill] sm:$0xff]  ;;  %v7769_v56 = vmul.f32 %v10240_v45, %v2436_v41  ;;  %v10268_v20 = vld [vmem:[#allocation9_spill] sm:$0xff] }
 0x415   : > { %v2142_v48 = vsel %vm10238_vm1, %v10237_v21, %v10236_v33  ;;  %vm10241_vm4 = vmmov %vm10238_vm1  ;;  %v7777_v63 = vadd.f32 %v10242_v29, %v7645_v19  ;;  %v7781_v11 = vadd.f32 %v10243_v40, %v7649_v14  ;;  %v7783_v35 = vpop.permute.xlu2 %3526  ;;  %v10244_v62 = vld [vmem:[#allocation84_spill] sm:$0xff]  ;;  %v2821_v60 = vadd.f32 %v2789_v24, %v2559_v6  ;;  %v10248_v14 = vld [vmem:[#allocation26_spill] sm:$0xff] }
 0x416   : > { %3764 = vrot.lane.b32.xlu0 %v10239_v49, %s4346_s10  ;;  %v2126_v17 = vsel %vm10241_vm4, %v10236_v33, %v10237_v21  ;;  %v3501_v23 = vpop.permute.xlu1 %3500  ;;  %v2296_v54 = vadd.f32 %v10244_v62, %v2002_v2  ;;  %v10245_v41 = vld [vmem:[#allocation164_spill] sm:$0xff]  ;;  %v10246_v49 = vld [vmem:[#allocation127_spill] sm:$0xff]  ;;  %v7794_v19 = vmul.f32 %v10240_v45, %v2437_v26  ;;  %v2790_v29 = vmul.f32 %v10248_v14, %v2694_v13  ;;  %v10249_v6 = vld [vmem:[#allocation290_spill] sm:$0xff] }
 0x417   : > { %v2297_v31 = vadd.f32 %v10245_v41, %v2003_v9  ;;  %v1864_v33 = vsel %vm1837_vm10, %v10247_v52, %v10246_v49  ;;  %v7791_v21 = vpop.permute.xlu0 %3510  ;;  %v2791_v40 = vmul.f32 %v10248_v14, %v2695_v8  ;;  %v2170_v2 = vsel %vm6534_vm8, %v2142_v48, 0.0  ;;  %v10251_v8 = vld [vmem:[#allocation191_spill] sm:$0xff]  ;;  %v10252_v45 = vld [vmem:[#allocation117_spill] sm:$0xff]  ;;  %vm10256_vm4 = vmmov %vm10238_vm1 }
 0x418   : > { %v2560_v62 = vadd.f32 %v2528_v3, %v2296_v54  ;;  %v2171_v24 = vsel %vm6538_vm9, %v2126_v17, 0.0  ;;  %v7803_v41 = vadd.f32 %v10249_v6, %v2820_v42  ;;  %v1848_v26 = vsel %vm1837_vm10, %v10246_v49, %v10247_v52  ;;  %v10253_v42 = vld [vmem:[#allocation14_spill] sm:$0xff]  ;;  %v10255_v54 = vld [vmem:[#allocation121_spill] sm:$0xff]  ;;  %v10259_v6 = vld [vmem:[#allocation195_spill] sm:$0xff] }
 0x419   : > { %v2561_v9 = vadd.f32 %v2529_v39, %v2297_v31  ;;  %v1898_v13 = vsel %vm6553_vm11, %v1864_v33, 0.0  ;;  %v2388_v3 = vsel %vm2380_vm0, %v10252_v45, %v10251_v8  ;;  %v2404_v39 = vsel %vm2380_vm0, %v10251_v8, %v10252_v45  ;;  %v10254_v17 = vld [vmem:[#allocation194_spill] sm:$0xff]  ;;  %v10261_v45 = vld [vmem:[#allocation5_spill] sm:$0xff]  ;;  %vm10282_vm5 = vmmov %vm10256_vm4 }
 0x41a   : > { %10250 = vst [vmem:[#allocation102_spill] sm:$0xff] %v7803_v41  ;;  %v2266_v48 = vmul.f32 %v10253_v42, %v2170_v2  ;;  %v2127_v52 = vsel %vm10238_vm1, %v10255_v54, %v10254_v17  ;;  %v2143_v31 = vsel %vm10256_vm4, %v10254_v17, %v10255_v54  ;;  %v10257_v49 = vld [vmem:[#allocation294_spill] sm:$0xff]  ;;  %v2267_v14 = vmul.f32 %v10253_v42, %v2171_v24  ;;  %v10262_v42 = vld [vmem:[#allocation48_spill] sm:$0xff] }
 0x41b   : > { %v7829_v33 = vadd.f32 %v10257_v49, %v2821_v60  ;;  %v1846_v2 = vsel %vm1837_vm10, %v10260_v36, %v10259_v6  ;;  %v1862_v8 = vsel %vm1837_vm10, %v10259_v6, %v10260_v36  ;;  %3762 = vrot.lane.b32.xlu2 %v10261_v45, %s4346_s10  ;;  %v4290_v60 = vld [vmem:[%s9228_s3 + $0x70] sm:$0xff]  ;;  %vm3560_vm1 = vcmp.lt.s32.totalorder %v6448_v25, 112  ;;  %v10263_v49 = vld [vmem:[#allocation73_spill] sm:$0xff] }
 0x41c   : > { %3687 = vperm.xlu1 %4248, %v4290_v60   ;;  %v1899_v24 = vsel %vm6557_vm12, %v1848_v26, 0.0  ;;  %v7849_v17 = vmul.f32 %v10262_v42, %v1898_v13  ;;  %v2434_v54 = vsel %vm6589_vm2, %v2404_v39, 0.0  ;;  %v2435_v36 = vsel %vm6613_vm3, %v2388_v3, 0.0  ;;  %4251 = vset.pattern.permute.xlu2 %v4347_v32 }
 0x41d   : > { %10258 = vst [vmem:[#allocation180_spill] sm:$0xff] %v7829_v33  ;;  %v2172_v6 = vsel %vm6534_vm8, %v2143_v31, 0.0  ;;  %v2173_v45 = vsel %vm6538_vm9, %v2127_v52, 0.0  ;;  %v2822_v60 = vadd.f32 %v2790_v29, %v2560_v62  ;;  %v2823_v26 = vadd.f32 %v2791_v40, %v2561_v9  ;;  %v3533_v33 = vpop.permute.xlu2 %3532  ;;  %v10264_v29 = vld [vmem:[#allocation82_spill] sm:$0xff]  ;;  %v10265_v62 = vld [vmem:[#allocation21_spill] sm:$0xff] }
 0x41e   : > { %3770 = vrot.lane.b32.xlu0 %v10263_v49, %s4346_s10  ;;  %v3507_v13 = vpop.permute.xlu1 %3506  ;;  %v1894_v41 = vsel %vm6553_vm11, %v1862_v8, 0.0  ;;  %v1895_v39 = vsel %vm6557_vm12, %v1846_v2, 0.0  ;;  %v7867_v3 = vsel %vm3560_vm1, %v3501_v23, %v3533_v33  ;;  %v7871_v31 = vsel %vm3560_vm1, %v3533_v33, %v3501_v23  ;;  %v10266_v52 = vld [vmem:[#allocation193_spill] sm:$0xff] }
 0x41f   : > { %v7873_v49 = vpop.permute.xlu0 %3516  ;;  %v2298_v40 = vadd.f32 %v2266_v48, %v10264_v29  ;;  %v2299_v9 = vadd.f32 %v2267_v14, %v10265_v62  ;;  %v2655_v8 = vsel %vm9593_vm13, %v10267_v37, %v10266_v52  ;;  %v2671_v2 = vsel %vm9593_vm13, %v10266_v52, %v10267_v37  ;;  %v10269_v33 = vld [vmem:[#allocation61_spill] sm:$0xff]  ;;  %v10274_v52 = vld [vmem:[#allocation87_spill] sm:$0xff] }
 0x420   : > { %v2530_v7 = vmul.f32 %v10268_v20, %v2434_v54  ;;  %v2531_v23 = vmul.f32 %v10268_v20, %v2435_v36  ;;  %v2268_v38 = vmul.f32 %v10269_v33, %v2172_v6  ;;  %v2269_v48 = vmul.f32 %v10269_v33, %v2173_v45  ;;  %v10270_v29 = vld [vmem:[#allocation41_spill] sm:$0xff]  ;;  %v10273_v36 = vld [vmem:[#allocation291_spill] sm:$0xff] }
 0x421   : > { %v2006_v14 = vmul.f32 %v10270_v29, %v1894_v41  ;;  %v2007_v62 = vmul.f32 %v10270_v29, %v1895_v39  ;;  %v2653_v44 = vsel %vm9593_vm13, %v10272_v53, %v10271_v28  ;;  %v2669_v37 = vsel %vm9593_vm13, %v10271_v28, %v10272_v53  ;;  %v10275_v29 = vld [vmem:[#allocation71_spill] sm:$0xff]  ;;  %v10277_v28 = vld [vmem:[#allocation196_spill] sm:$0xff] }
 0x422   : > { %v7900_v20 = vmul.f32 %v10262_v42, %v1899_v24  ;;  %v2702_v54 = vsel %vm6572_vm14, %v2671_v2, 0.0  ;;  %v2703_v41 = vsel %vm6576_vm15, %v2655_v8, 0.0  ;;  %v7907_v6 = vadd.f32 %v10273_v36, %v2822_v60  ;;  %v10276_v53 = vld [vmem:[#allocation3_spill] sm:$0xff] }
 0x423   : > { %v2562_v45 = vadd.f32 %v2530_v7, %v2298_v40  ;;  %v2563_v39 = vadd.f32 %v2531_v23, %v2299_v9  ;;  %v7910_v33 = vadd.f32 %v10274_v52, %v2823_v26  ;;  %3768 = vrot.lane.b32.xlu2 %v10275_v29, %s4346_s10  ;;  %v10278_v24 = vld [vmem:[#allocation135_spill] sm:$0xff]  ;;  %v2698_v60 = vsel %vm6572_vm14, %v2669_v37, 0.0  ;;  %v10279_v40 = vld [vmem:[#allocation24_spill] sm:$0xff] }
 0x424   : > { %3760 = vrot.lane.b32.xlu1 %v10276_v53, %s4346_s10  ;;  %v2392_v42 = vsel %vm2380_vm0, %v10278_v24, %v10277_v28  ;;  %v2408_v7 = vsel %vm2380_vm0, %v10277_v28, %v10278_v24  ;;  %v2699_v26 = vsel %vm6576_vm15, %v2653_v44, 0.0  ;;  %v7931_v9 = vmul.f32 %v10279_v40, %v2702_v54  ;;  %v10280_v29 = vld [vmem:[#allocation204_spill] sm:$0xff]  ;;  %v10281_v53 = vld [vmem:[#allocation115_spill] sm:$0xff]  ;;  %v10286_v24 = vld [vmem:[#allocation202_spill] sm:$0xff] }
 0x425   : > { %v7934_v8 = vmul.f32 %v10279_v40, %v2703_v41  ;;  %v2300_v2 = vadd.f32 %v2268_v38, %v2006_v14  ;;  %v2301_v23 = vadd.f32 %v2269_v48, %v2007_v62  ;;  %v3539_v36 = vpop.permute.xlu2 %3538  ;;  %v2129_v37 = vsel %vm10256_vm4, %v10281_v53, %v10280_v29  ;;  %v10285_v54 = vld [vmem:[#allocation12_spill] sm:$0xff]  ;;  %v10287_v40 = vld [vmem:[#allocation141_spill] sm:$0xff]  ;;  %4253 = vset.pattern.permute.xlu1 %v4347_v32 }
 0x426   : > { %3776 = vrot.lane.b32.xlu0 %v10175_v30, %s4346_s10  ;;  %v3513_v52 = vpop.permute.xlu1 %3512  ;;  %v2145_v30 = vsel %vm10282_vm5, %v10280_v29, %v10281_v53  ;;  %v7946_v44 = vsel %vm3560_vm1, %v3507_v13, %v3539_v36  ;;  %v7950_v38 = vsel %vm3560_vm1, %v3539_v36, %v3507_v13  ;;  %v2442_v14 = vsel %vm6589_vm2, %v2408_v7, 0.0  ;;  %v10288_v36 = vld [vmem:[#allocation65_spill] sm:$0xff]  ;;  %vm10299_vm5 = vmmov %vm10256_vm4 }
 0x427   : > { %10283 = vst [vmem:[#allocation85_spill] sm:$0xff] %v7946_v44  ;;  %v7952_v48 = vpop.permute.xlu0 %3522  ;;  %v2443_v62 = vsel %vm6613_vm3, %v2392_v42, 0.0  ;;  %v2794_v41 = vmul.f32 %v10285_v54, %v2698_v60  ;;  %v2795_v28 = vmul.f32 %v10285_v54, %v2699_v26  ;;  %v1851_v29 = vsel %vm1837_vm10, %v10287_v40, %v10286_v24 }
 0x428   : > { %10284 = vst [vmem:[#allocation31_spill] sm:$0xff] %v7950_v38  ;;  %v1867_v13 = vsel %vm1837_vm10, %v10286_v24, %v10287_v40  ;;  %v7969_v53 = vadd.f32 %v10288_v36, %v2562_v45  ;;  %v7972_v7 = vadd.f32 %v7639_v5, %v2563_v39  ;;  %v2176_v42 = vsel %vm6534_vm8, %v2145_v30, 0.0  ;;  %v10289_v38 = vld [vmem:[#allocation67_spill] sm:$0xff]  ;;  %v10291_v40 = vld [vmem:[#allocation132_spill] sm:$0xff]  ;;  %v10295_v30 = vld [vmem:[#allocation69_spill] sm:$0xff] }
 0x429   : > { %v2177_v60 = vsel %vm6538_vm9, %v2129_v37, 0.0  ;;  %v2564_v26 = vadd.f32 %v7769_v56, %v2300_v2  ;;  %v2565_v54 = vadd.f32 %v7794_v19, %v2301_v23  ;;  %v7981_v44 = vmul.f32 %v10289_v38, %v2442_v14  ;;  %v10290_v45 = vld [vmem:[#allocation203_spill] sm:$0xff]  ;;  %v10294_v37 = vld [vmem:[#allocation28_spill] sm:$0xff]  ;;  %v10297_v36 = vld [vmem:[#allocation206_spill] sm:$0xff] }
 0x42a   : > { %v7984_v24 = vmul.f32 %v10289_v38, %v2443_v62  ;;  %v2391_v5 = vsel %vm2380_vm0, %v10291_v40, %v10290_v45  ;;  %v2407_v39 = vsel %vm2380_vm0, %v10290_v45, %v10291_v40  ;;  %v1904_v56 = vsel %vm6553_vm11, %v1867_v13, 0.0  ;;  %v10296_v38 = vld [vmem:[#allocation17_spill] sm:$0xff]  ;;  %v10298_v45 = vld [vmem:[#allocation136_spill] sm:$0xff] }
 0x42b   : > { %v1905_v19 = vsel %vm6557_vm12, %v1851_v29, 0.0  ;;  %v7998_v2 = vadd.f32 %v2794_v41, %v2564_v26  ;;  %v8000_v23 = vadd.f32 %v2795_v28, %v2565_v54  ;;  %3774 = vrot.lane.b32.xlu2 %v10294_v37, %s4346_s10  ;;  %v2272_v14 = vmul.f32 %v10296_v38, %v2176_v42  ;;  %v10300_v42 = vld [vmem:[#allocation207_spill] sm:$0xff] }
 0x42c   : > { %3766 = vrot.lane.b32.xlu1 %v10295_v30, %s4346_s10  ;;  %v2273_v62 = vmul.f32 %v10296_v38, %v2177_v60  ;;  %v2130_v13 = vsel %vm10299_vm5, %v10298_v45, %v10297_v36  ;;  %v2146_v41 = vsel %vm10256_vm4, %v10297_v36, %v10298_v45  ;;  %v2440_v28 = vsel %vm6589_vm2, %v2407_v39, 0.0  ;;  %v10301_v60 = vld [vmem:[#allocation119_spill] sm:$0xff]  ;;  %v10302_v38 = vld [vmem:[#allocation205_spill] sm:$0xff]  ;;  %vm10313_vm5 = vmmov %vm10256_vm4 }
 0x42d   : > { %10292 = vst [vmem:[#allocation299_spill] sm:$0xff] %v7998_v2  ;;  %v2441_v29 = vsel %vm6613_vm3, %v2391_v5, 0.0  ;;  %v1849_v26 = vsel %vm1837_vm10, %v10301_v60, %v10300_v42  ;;  %v1865_v54 = vsel %vm1837_vm10, %v10300_v42, %v10301_v60  ;;  %v3545_v40 = vpop.permute.xlu2 %3544  ;;  %v2178_v60 = vsel %vm6534_vm8, %v2146_v41, 0.0 }
 0x42e   : > { %10293 = vst [vmem:[#allocation8_spill] sm:$0xff] %v8000_v23  ;;  %3782 = vrot.lane.b32.xlu0 %v5607_v27, %s4346_s10  ;;  %v3519_v30 = vpop.permute.xlu1 %3518  ;;  %v10303_v27 = vld [vmem:[#allocation145_spill] sm:$0xff]  ;;  %v8040_v36 = vsel %vm3560_vm1, %v3513_v52, %v3545_v40  ;;  %v8044_v45 = vsel %vm3560_vm1, %v3545_v40, %v3513_v52  ;;  %v2179_v23 = vsel %vm6538_vm9, %v2130_v13, 0.0  ;;  %v2304_v52 = vadd.f32 %v2272_v14, %v7849_v17  ;;  %v10310_v14 = vld [vmem:[#allocation63_spill] sm:$0xff] }
 0x42f   : > { %v2658_v39 = vsel %vm9593_vm13, %v10303_v27, %v10302_v38  ;;  %v2674_v5 = vsel %vm9593_vm13, %v10302_v38, %v10303_v27  ;;  %10304 = vst [vmem:[#allocation49_spill] sm:$0xff] %v8040_v36  ;;  %v3529_v42 = vpop.permute.xlu0 %3528  ;;  %v2305_v40 = vadd.f32 %v2273_v62, %v7900_v20  ;;  %v1900_v41 = vsel %vm6553_vm11, %v1865_v54, 0.0  ;;  %v10308_v27 = vld [vmem:[#allocation50_spill] sm:$0xff]  ;;  %v10309_v36 = vld [vmem:[#allocation11_spill] sm:$0xff] }
 0x430   : > { %10305 = vst [vmem:[#allocation46_spill] sm:$0xff] %v8044_v45  ;;  %v8053_v2 = vsel %vm3560_vm1, %v7414_v47, %v3529_v42  ;;  %v8058_v38 = vsel %vm3560_vm1, %v3529_v42, %v7414_v47  ;;  %v1901_v13 = vsel %vm6557_vm12, %v1849_v26, 0.0  ;;  %v2016_v45 = vmul.f32 %v10308_v27, %v1904_v56  ;;  %v10311_v54 = vld [vmem:[#allocation130_spill] sm:$0xff]  ;;  %v10312_v42 = vld [vmem:[#allocation216_spill] sm:$0xff]  ;;  %v10314_v56 = vld [vmem:[#allocation43_spill] sm:$0xff] }
 0x431   : > { %10306 = vst [vmem:[#allocation287_spill] sm:$0xff] %v8053_v2  ;;  %v2536_v37 = vmul.f32 %v10309_v36, %v2440_v28  ;;  %v2537_v2 = vmul.f32 %v10309_v36, %v2441_v29  ;;  %v2708_v47 = vsel %vm6572_vm14, %v2674_v5, 0.0  ;;  %v2709_v17 = vsel %vm6576_vm15, %v2658_v39, 0.0  ;;  %v10315_v39 = vld [vmem:[#allocation80_spill] sm:$0xff]  ;;  %v10316_v5 = vld [vmem:[#allocation74_spill] sm:$0xff]  ;;  %v10317_v36 = vld [vmem:[#allocation33_spill] sm:$0xff] }
 0x432   : > { %10307 = vst [vmem:[#allocation293_spill] sm:$0xff] %v8058_v38  ;;  %v2274_v20 = vmul.f32 %v10310_v14, %v2178_v60  ;;  %v2275_v62 = vmul.f32 %v10310_v14, %v2179_v23  ;;  %v2148_v26 = vsel %vm10313_vm5, %v10312_v42, %v10311_v54  ;;  %v2012_v38 = vmul.f32 %v10314_v56, %v1900_v41 }
 0x433   : > { %v2013_v28 = vmul.f32 %v10314_v56, %v1901_v13  ;;  %v2132_v29 = vsel %vm10256_vm4, %v10311_v54, %v10312_v42  ;;  %3780 = vrot.lane.b32.xlu2 %v10315_v39, %s4346_s10  ;;  %v2017_v23 = vmul.f32 %v10308_v27, %v1905_v19  ;;  %v8091_v60 = vmul.f32 %v10317_v36, %v2708_v47  ;;  %v10318_v54 = vld [vmem:[#allocation210_spill] sm:$0xff]  ;;  %v10319_v42 = vld [vmem:[#allocation123_spill] sm:$0xff] }
 0x434   : > { %3772 = vrot.lane.b32.xlu1 %v10316_v5, %s4346_s10  ;;  %v2568_v14 = vadd.f32 %v2536_v37, %v2304_v52  ;;  %v2569_v41 = vadd.f32 %v2537_v2, %v2305_v40  ;;  %v8096_v13 = vmul.f32 %v10317_v36, %v2709_v17  ;;  %v2656_v56 = vsel %vm9593_vm13, %v10319_v42, %v10318_v54  ;;  %v10320_v40 = vld [vmem:[#allocation146_spill] sm:$0xff] }
 0x435   : > { %v2672_v19 = vsel %vm9593_vm13, %v10318_v54, %v10319_v42  ;;  %v2182_v37 = vsel %vm6534_vm8, %v2148_v26, 0.0  ;;  %v3551_v2 = vpop.permute.xlu2 %3550  ;;  %v2183_v47 = vsel %vm6538_vm9, %v2132_v29, 0.0  ;;  %v2306_v26 = vadd.f32 %v2274_v20, %v2012_v38 }
 0x436   : > { %3788 = vrot.lane.b32.xlu0 %v10214_v46, %s4346_s10  ;;  %v3525_v52 = vpop.permute.xlu1 %3524  ;;  %v10321_v46 = vld [vmem:[#allocation215_spill] sm:$0xff]  ;;  %v8116_v17 = vsel %vm3560_vm1, %v3519_v30, %v3551_v2  ;;  %v8120_v36 = vsel %vm3560_vm1, %v3551_v2, %v3519_v30  ;;  %v2307_v42 = vadd.f32 %v2275_v62, %v2013_v28  ;;  %v2278_v10 = vmul.f32 %v10324_v1, %v2182_v37  ;;  %v10326_v37 = vld [vmem:[#allocation148_spill] sm:$0xff]  ;;  %v10333_v2 = vld [vmem:[#allocation13_spill] sm:$0xff] }
 0x437   : > { %v2410_v27 = vsel %vm2380_vm0, %v10321_v46, %v10320_v40  ;;  %10322 = vst [vmem:[#allocation36_spill] sm:$0xff] %v8116_v17  ;;  %v3535_v54 = vpop.permute.xlu0 %3534  ;;  %v2704_v17 = vsel %vm6572_vm14, %v2672_v19, 0.0  ;;  %v8136_v30 = vadd.f32 %v7931_v9, %v2568_v14  ;;  %v8139_v38 = vadd.f32 %v7934_v8, %v2569_v41  ;;  %v10325_v19 = vld [vmem:[#allocation208_spill] sm:$0xff]  ;;  %v10329_v14 = vld [vmem:[#allocation238_spill] sm:$0xff] }
 0x438   : > { %10323 = vst [vmem:[#allocation116_spill] sm:$0xff] %v8120_v36  ;;  %v8125_v39 = vsel %vm3560_vm1, %v7485_v22, %v3535_v54  ;;  %v8130_v29 = vsel %vm3560_vm1, %v3535_v54, %v7485_v22  ;;  %v2705_v20 = vsel %vm6576_vm15, %v2656_v56, 0.0  ;;  %v2394_v22 = vsel %vm2380_vm0, %v10320_v40, %v10321_v46  ;;  %v10330_v41 = vld [vmem:[#allocation236_spill] sm:$0xff]  ;;  %v10338_v54 = vld [vmem:[#allocation78_spill] sm:$0xff] }
 0x439   : > { %v2446_v62 = vsel %vm6589_vm2, %v2410_v27, 0.0  ;;  %v2279_v28 = vmul.f32 %v10324_v1, %v2183_v47  ;;  %v8154_v9 = vsel %vm2380_vm0, %v10326_v37, %v10325_v19  ;;  %v8160_v8 = vsel %vm2380_vm0, %v10325_v19, %v10326_v37  ;;  %v10337_v47 = vld [vmem:[#allocation92_spill] sm:$0xff] }
 0x43a   : > { %10327 = vst [vmem:[#allocation181_spill] sm:$0xff] %v8154_v9  ;;  %vm10331_vm5 = vcmp.lt.s32.totalorder %v6448_v25, 127  ;;  %v8171_v40 = vmul.f32 %v10333_v2, %v2704_v17  ;;  %v8174_v46 = vadd.f32 %v7981_v44, %v2306_v26  ;;  %v8177_v27 = vadd.f32 %v7984_v24, %v2307_v42  ;;  %v10340_v17 = vld [vmem:[#allocation72_spill] sm:$0xff]  ;;  %v10341_v44 = vld [vmem:[#allocation114_spill] sm:$0xff] }
 0x43b   : > { %10328 = vst [vmem:[#allocation276_spill] sm:$0xff] %v8160_v8  ;;  %v3036_v56 = vsel %vm10331_vm5, %v10330_v41, %v10329_v14  ;;  %vm10332_vm4 = vmmov %vm10331_vm5  ;;  %3786 = vrot.lane.b32.xlu2 %v10337_v47, %s4346_s10  ;;  %v8184_v19 = vmul.f32 %v10333_v2, %v2705_v20  ;;  %v2447_v37 = vsel %vm6613_vm3, %v2394_v22, 0.0  ;;  %v2311_v24 = vadd.f32 %v2279_v28, %v2017_v23  ;;  %v10342_v20 = vld [vmem:[#allocation284_spill] sm:$0xff]  ;;  %v10346_v28 = vld [vmem:[#allocation270_spill] sm:$0xff] }
 0x43c   : > { %v3052_v1 = vsel %vm10332_vm4, %v10329_v14, %v10330_v41  ;;  %10334 = vst [vmem:[#allocation182_spill] sm:$0xff] %v8171_v40  ;;  %3778 = vrot.lane.b32.xlu1 %v10338_v54, %s4346_s10  ;;  %v2542_v14 = vmul.f32 %v10340_v17, %v2446_v62  ;;  %v2310_v41 = vadd.f32 %v2278_v10, %v2016_v45  ;;  %v3074_v26 = vsel %vm7503_vm6, %v3036_v56, 0.0 }
 0x43d   : > { %10335 = vst [vmem:[#allocation106_spill] sm:$0xff] %v8174_v46  ;;  %v3075_v42 = vsel %vm7507_vm7, %v3052_v1, 0.0  ;;  %v3557_v36 = vpop.permute.xlu2 %3556  ;;  %vm10343_vm0 = vcmp.le.s32.totalorder %v10342_v20, 14  ;;  %v3170_v56 = vmul.f32 %v10346_v28, %v3074_v26  ;;  %v10348_v20 = vld [vmem:[#allocation218_spill] sm:$0xff]  ;;  %vm10349_vm5 = vcmp.lt.s32.totalorder %v6448_v25, 16 }
 0x43e   : > { %10336 = vst [vmem:[#allocation187_spill] sm:$0xff] %v8177_v27  ;;  %3794 = vrot.lane.b32.xlu0 %v10341_v44, %s4346_s10  ;;  %v3531_v47 = vpop.permute.xlu1 %3530  ;;  %v3593_v2 = vsel %vm10343_vm0, 1, %v9958_v55  ;;  %v8200_v22 = vsel %vm3560_vm1, %v3525_v52, %v3557_v36  ;;  %v8204_v10 = vsel %vm3560_vm1, %v3557_v36, %v3525_v52  ;;  %v3171_v1 = vmul.f32 %v10346_v28, %v3075_v42  ;;  %v10347_v55 = vld [vmem:[#allocation150_spill] sm:$0xff]  ;;  %vm10350_vm4 = vmmov %vm10349_vm5  ;;  %v10351_v28 = vld [vmem:[#allocation241_spill] sm:$0xff] }
 0x43f   : > { %10339 = vst [vmem:[#allocation124_spill] sm:$0xff] %v8184_v19  ;;  %v3562_v45 = vsel %vm3560_vm1, %v7636_v43, %v3531_v47  ;;  %v3578_v23 = vsel %vm3560_vm1, %v3531_v47, %v7636_v43  ;;  %v3541_v62 = vpop.permute.xlu0 %3540  ;;  %v2543_v36 = vmul.f32 %v10340_v17, %v2447_v37  ;;  %v2149_v43 = vsel %vm10349_vm5, %v10348_v20, %v10347_v55  ;;  %v10355_v17 = vld [vmem:[#allocation228_spill] sm:$0xff]  ;;  %v10358_v19 = vld [vmem:[#allocation159_spill] sm:$0xff] }
 0x440   : > { %10344 = vst [vmem:[#allocation197_spill] sm:$0xff] %v8200_v22  ;;  %v8217_v44 = vsel %vm3560_vm1, %v7565_v16, %v3541_v62  ;;  %v8222_v52 = vsel %vm3560_vm1, %v3541_v62, %v7565_v16  ;;  %v3594_v47 = vperm.slane %v3593_v2, 0  ;;  %v3595_v26 = vperm.slane %v3593_v2, 1 }
 0x441   : > { %10345 = vst [vmem:[#allocation125_spill] sm:$0xff] %v8204_v10  ;;  %v8233_v42 = vsel %vm10350_vm4, %v10347_v55, %v10348_v20  ;;  %v10352_v10 = vld [vmem:[#allocation239_spill] sm:$0xff]  ;;  %vm10353_vm0 = vcmp.lt.s32.totalorder %v6448_v25, 127  ;;  %v2920_v62 = vmul.f32 %v10355_v17, %v10316_v5  ;;  %v2574_v2 = vadd.f32 %v2542_v14, %v2310_v41  ;;  %v10356_v20 = vld [vmem:[#allocation137_spill] sm:$0xff]  ;;  %v10360_v5 = vld [vmem:[#allocation88_spill] sm:$0xff] }
 0x442   : > { %v3039_v16 = vsel %vm10353_vm0, %v10352_v10, %v10351_v28  ;;  %vm10354_vm13 = vmmov %vm10353_vm0  ;;  %v2575_v22 = vadd.f32 %v2543_v36, %v2311_v24  ;;  %v2184_v55 = vsel %vm6534_vm8, %v2149_v43, 0.0  ;;  %v2921_v59 = vmul.f32 %v10355_v17, %v10356_v20  ;;  %v10361_v41 = vld [vmem:[#allocation129_spill] sm:$0xff]  ;;  %v4304_v24 = vld [vmem:[%s9228_s3 + $0x70] sm:$0xff] }
 0x443   : > { %v3055_v37 = vsel %vm10354_vm13, %v10351_v28, %v10352_v10  ;;  %v3202_v9 = vadd.f32 %v3170_v56, %v10357_v61  ;;  %v3203_v27 = vadd.f32 %v3171_v1, %v10358_v19  ;;  %v10359_v10 = vld [vmem:[#allocation107_spill] sm:$0xff]  ;;  %v3080_v14 = vsel %vm7503_vm6, %v3039_v16, 0.0  ;;  %vm10376_vm5 = vmmov %vm10353_vm0  ;;  %v4305_v61 = vld [vmem:[%s9228_s3 + $0x50] sm:$0xff] }
 0x444   : > { %3792 = vrot.lane.b32.xlu2 %v10359_v10, %s4346_s10  ;;  %3784 = vrot.lane.b32.xlu1 %v10360_v5, %s4346_s10  ;;  %v3081_v18 = vsel %vm7507_vm7, %v3055_v37, 0.0  ;;  %vm8261_vm8 = vcmp.eq.s32.totalorder %v3594_v47, 1  ;;  %vm8265_vm13 = vcmp.eq.s32.totalorder %v3595_v26, 1  ;;  %v10366_v56 = vld [vmem:[#allocation171_spill] sm:$0xff]  ;;  %vm10377_vm4 = vmmov %vm10353_vm0 }
 0x445   : > { %v3466_v19 = vadd.f32 %v7349_v50, %v3202_v9  ;;  %v3467_v1 = vadd.f32 %v10366_v56, %v3203_v27  ;;  %v3636_v36 = vpop.permute.xlu2 %3635  ;;  %v3600_v43 = vsel %vm8261_vm8, %v3562_v45, 0.0  ;;  %v3601_v28 = vsel %vm8265_vm13, %v3578_v23, 0.0  ;;  %v10367_v9 = vld [vmem:[#allocation272_spill] sm:$0xff] }
 0x446   : > { %3800 = vrot.lane.b32.xlu0 %v10361_v41, %s4346_s10  ;;  %v3537_v47 = vpop.permute.xlu1 %3536  ;;  %v3696_v16 = vmul.f32 %v3636_v36, %v3600_v43  ;;  %v3697_v37 = vmul.f32 %v3636_v36, %v3601_v28  ;;  %v3176_v27 = vmul.f32 %v10367_v9, %v3080_v14  ;;  %v3177_v17 = vmul.f32 %v10367_v9, %v3081_v18  ;;  %v10369_v41 = vld [vmem:[#allocation219_spill] sm:$0xff]  ;;  %v10372_v36 = vld [vmem:[#allocation66_spill] sm:$0xff]  ;;  %v10374_v28 = vld [vmem:[#allocation257_spill] sm:$0xff] }
 0x447   : > { %v3565_v26 = vsel %vm3560_vm1, %v7712_v34, %v3537_v47  ;;  %v3581_v32 = vsel %vm3560_vm1, %v3537_v47, %v7712_v34  ;;  %v3547_v50 = vpop.permute.xlu0 %3546  ;;  %v10368_v34 = vld [vmem:[#allocation134_spill] sm:$0xff]  ;;  %v8307_v43 = vmul.f32 %v10372_v36, %v2184_v55  ;;  %v10375_v47 = vld [vmem:[#allocation243_spill] sm:$0xff]  ;;  %v8327_v55 = vadd.f32 %v2921_v59, %v7972_v7 }
 0x448   : > { %v8286_v45 = vsel %vm3560_vm1, %v7628_v15, %v3547_v50  ;;  %v8291_v23 = vsel %vm3560_vm1, %v3547_v50, %v7628_v15  ;;  %v8300_v14 = vsel %vm1837_vm10, %v10369_v41, %v10368_v34  ;;  %v8302_v18 = vadd.f32 %v3696_v16, %v3466_v19  ;;  %v10379_v59 = vld [vmem:[#allocation122_spill] sm:$0xff]  ;;  %v10380_v7 = vld [vmem:[#allocation103_spill] sm:$0xff] }
 0x449   : > { %v8304_v56 = vadd.f32 %v3697_v37, %v3467_v1  ;;  %10373 = vst [vmem:[#allocation292_spill] sm:$0xff] %v8307_v43  ;;  %v8313_v15 = vsel %vm1837_vm10, %v10368_v34, %v10369_v41  ;;  %v3041_v50 = vsel %vm10376_vm5, %v10375_v47, %v10374_v28  ;;  %v3057_v19 = vsel %vm10377_vm4, %v10374_v28, %v10375_v47  ;;  %v10378_v34 = vld [vmem:[#allocation231_spill] sm:$0xff]  ;;  %vm10384_vm10 = vmmov %vm10353_vm0  ;;  %v10395_v43 = vld [vmem:[#allocation166_spill] sm:$0xff] }
 0x44a   : > { %10370 = vst [vmem:[#allocation155_spill] sm:$0xff] %v8302_v18  ;;  %v8324_v1 = vadd.f32 %v2920_v62, %v7969_v53  ;;  %v8330_v16 = vadd.f32 %v8091_v60, %v2574_v2  ;;  %v8333_v37 = vadd.f32 %v8096_v13, %v2575_v22  ;;  %v2926_v41 = vmul.f32 %v10378_v34, %v10338_v54  ;;  %v10381_v60 = vld [vmem:[#allocation151_spill] sm:$0xff]  ;;  %v10382_v22 = vld [vmem:[#allocation244_spill] sm:$0xff]  ;;  %v10383_v62 = vld [vmem:[#allocation242_spill] sm:$0xff] }
 0x44b   : > { %10371 = vst [vmem:[#allocation288_spill] sm:$0xff] %v8304_v56  ;;  %v3208_v28 = vadd.f32 %v3176_v27, %v7777_v63  ;;  %v3209_v53 = vadd.f32 %v3177_v17, %v7781_v11  ;;  %v2927_v13 = vmul.f32 %v10378_v34, %v10381_v60  ;;  %v8352_v2 = vsel %vm10384_vm10, %v10383_v62, %v10382_v22  ;;  %v10385_v54 = vld [vmem:[#allocation144_spill] sm:$0xff]  ;;  %v10386_v27 = vld [vmem:[#allocation59_spill] sm:$0xff]  ;;  %vm10391_vm5 = vmmov %vm10353_vm0 }
 0x44c   : > { %3798 = vrot.lane.b32.xlu2 %v10379_v59, %s4346_s10  ;;  %3790 = vrot.lane.b32.xlu1 %v10380_v7, %s4346_s10  ;;  %v3084_v63 = vsel %vm7503_vm6, %v3041_v50, 0.0  ;;  %v3085_v11 = vsel %vm7507_vm7, %v3057_v19, 0.0  ;;  %v10387_v47 = vld [vmem:[#allocation91_spill] sm:$0xff]  ;;  %v3606_v7 = vsel %vm8261_vm8, %v3565_v26, 0.0  ;;  %v3607_v9 = vsel %vm8265_vm13, %v3581_v32, 0.0  ;;  %vm10396_vm4 = vmmov %vm10353_vm0 }
 0x44d   : > { %v3472_v17 = vadd.f32 %v10386_v27, %v3208_v28  ;;  %v3473_v59 = vadd.f32 %v10387_v47, %v3209_v53  ;;  %v3648_v34 = vpop.permute.xlu2 %3647  ;;  %v10388_v27 = vld [vmem:[#allocation273_spill] sm:$0xff]  ;;  %vm10399_vm10 = vmmov %vm10353_vm0 }
 0x44e   : > { %3806 = vrot.lane.b32.xlu0 %v10385_v54, %s4346_s10  ;;  %v3543_v10 = vpop.permute.xlu1 %3542  ;;  %v3702_v56 = vmul.f32 %v3648_v34, %v3606_v7  ;;  %v3703_v50 = vmul.f32 %v3648_v34, %v3607_v9  ;;  %v3180_v47 = vmul.f32 %v10388_v27, %v3084_v63  ;;  %v3181_v26 = vmul.f32 %v10388_v27, %v3085_v11  ;;  %v10389_v34 = vld [vmem:[#allocation255_spill] sm:$0xff] }
 0x44f   : > { %v8369_v19 = vsel %vm3560_vm1, %v7791_v21, %v3543_v10  ;;  %v8374_v28 = vsel %vm3560_vm1, %v3543_v10, %v7791_v21  ;;  %v3553_v53 = vpop.permute.xlu0 %3552  ;;  %v10390_v7 = vld [vmem:[#allocation223_spill] sm:$0xff]  ;;  %v8401_v27 = vadd.f32 %v2926_v41, %v8136_v30 }
 0x450   : > { %v8381_v32 = vsel %vm3560_vm1, %v7704_v12, %v3553_v53  ;;  %v8386_v9 = vsel %vm3560_vm1, %v3553_v53, %v7704_v12  ;;  %v3037_v21 = vsel %vm10353_vm0, %v10390_v7, %v10389_v34  ;;  %v3053_v10 = vsel %vm10391_vm5, %v10389_v34, %v10390_v7  ;;  %v10394_v53 = vld [vmem:[#allocation234_spill] sm:$0xff]  ;;  %v10401_v34 = vld [vmem:[#allocation251_spill] sm:$0xff]  ;;  %v10402_v7 = vld [vmem:[#allocation237_spill] sm:$0xff] }
 0x451   : > { %v8396_v63 = vadd.f32 %v3702_v56, %v3472_v17  ;;  %v8398_v11 = vadd.f32 %v3703_v50, %v3473_v59  ;;  %v8404_v12 = vadd.f32 %v2927_v13, %v8139_v38  ;;  %v8408_v18 = vmul.f32 %v10394_v53, %v10360_v5  ;;  %v10397_v17 = vld [vmem:[#allocation247_spill] sm:$0xff]  ;;  %v10398_v59 = vld [vmem:[#allocation245_spill] sm:$0xff]  ;;  %v10400_v50 = vld [vmem:[#allocation118_spill] sm:$0xff] }
 0x452   : > { %v8412_v40 = vmul.f32 %v10394_v53, %v10395_v43  ;;  %v3058_v56 = vsel %vm10396_vm4, %v10382_v22, %v10383_v62  ;;  %v8422_v30 = vsel %vm10399_vm10, %v10398_v59, %v10397_v17  ;;  %v8428_v38 = vsel %vm10353_vm0, %v10397_v17, %v10398_v59  ;;  %vm10403_vm5 = vmmov %vm10353_vm0  ;;  %v10408_v53 = vld [vmem:[#allocation176_spill] sm:$0xff] }
 0x453   : > { %10392 = vst [vmem:[#allocation20_spill] sm:$0xff] %v8396_v63  ;;  %v3086_v5 = vsel %vm7503_vm6, %v8352_v2, 0.0  ;;  %v3076_v41 = vsel %vm7503_vm6, %v3037_v21, 0.0  ;;  %v3077_v13 = vsel %vm7507_vm7, %v3053_v10, 0.0  ;;  %v3212_v22 = vadd.f32 %v3180_v47, %v7907_v6  ;;  %vm10404_vm4 = vmmov %vm10353_vm0  ;;  %v10405_v10 = vld [vmem:[#allocation269_spill] sm:$0xff]  ;;  %v10406_v47 = vld [vmem:[#allocation158_spill] sm:$0xff] }
 0x454   : > { %10393 = vst [vmem:[#allocation58_spill] sm:$0xff] %v8398_v11  ;;  %v3213_v62 = vadd.f32 %v3181_v26, %v7910_v33  ;;  %3804 = vrot.lane.b32.xlu2 %v10356_v20, %s4346_s10  ;;  %3796 = vrot.lane.b32.xlu1 %v10400_v50, %s4346_s10  ;;  %v3035_v2 = vsel %vm10403_vm5, %v10402_v7, %v10401_v34  ;;  %v10407_v20 = vld [vmem:[#allocation15_spill] sm:$0xff]  ;;  %v3610_v50 = vsel %vm8261_vm8, %v8217_v44, 0.0  ;;  %vm10411_vm10 = vmmov %vm10353_vm0 }
 0x455   : > { %v3051_v21 = vsel %vm10404_vm4, %v10401_v34, %v10402_v7  ;;  %v3172_v6 = vmul.f32 %v10405_v10, %v3076_v41  ;;  %v3173_v33 = vmul.f32 %v10405_v10, %v3077_v13  ;;  %v3476_v26 = vadd.f32 %v10407_v20, %v3212_v22  ;;  %v3656_v59 = vpop.permute.xlu2 %3655  ;;  %v10409_v20 = vld [vmem:[#allocation254_spill] sm:$0xff]  ;;  %vm10416_vm5 = vmmov %vm10353_vm0 }
 0x456   : > { %3812 = vrot.lane.b32.xlu0 %v10406_v47, %s4346_s10  ;;  %v3477_v17 = vadd.f32 %v10408_v53, %v3213_v62  ;;  %v3611_v34 = vsel %vm8265_vm13, %v8222_v52, 0.0  ;;  %v3549_v7 = vpop.permute.xlu1 %3548  ;;  %v3706_v41 = vmul.f32 %v3656_v59, %v3610_v50  ;;  %v10410_v53 = vld [vmem:[#allocation240_spill] sm:$0xff]  ;;  %v3087_v50 = vsel %vm7507_vm7, %v3058_v56, 0.0  ;;  %vm10420_vm4 = vmmov %vm10353_vm0 }
 0x457   : > { %v3707_v11 = vmul.f32 %v3656_v59, %v3611_v34  ;;  %v8466_v13 = vsel %vm3560_vm1, %v7873_v49, %v3549_v7  ;;  %v8471_v22 = vsel %vm3560_vm1, %v3549_v7, %v7873_v49  ;;  %v3559_v62 = vpop.permute.xlu0 %3558  ;;  %v3038_v59 = vsel %vm10411_vm10, %v10410_v53, %v10409_v20  ;;  %v10414_v7 = vld [vmem:[#allocation250_spill] sm:$0xff]  ;;  %vm10438_vm10 = vmmov %vm10353_vm0 }
 0x458   : > { %v8476_v44 = vsel %vm3560_vm1, %v7783_v35, %v3559_v62  ;;  %v8481_v52 = vsel %vm3560_vm1, %v3559_v62, %v7783_v35  ;;  %v8495_v34 = vadd.f32 %v3706_v41, %v3476_v26  ;;  %v10415_v62 = vld [vmem:[#allocation248_spill] sm:$0xff]  ;;  %v3092_v56 = vsel %vm7503_vm6, %v8422_v30, 0.0  ;;  %v10417_v41 = vld [vmem:[#allocation163_spill] sm:$0xff] }
 0x459   : > { %v8497_v35 = vadd.f32 %v3707_v11, %v3477_v17  ;;  %v8503_v10 = vsel %vm10353_vm0, %v10415_v62, %v10414_v7  ;;  %v8509_v49 = vsel %vm10416_vm5, %v10414_v7, %v10415_v62  ;;  %v3093_v11 = vsel %vm7507_vm7, %v8428_v38, 0.0  ;;  %v10419_v7 = vld [vmem:[#allocation253_spill] sm:$0xff]  ;;  %vm10455_vm5 = vmmov %vm10353_vm0 }
 0x45a   : > { %10412 = vst [vmem:[#allocation279_spill] sm:$0xff] %v8495_v34  ;;  %v3072_v26 = vsel %vm7503_vm6, %v3035_v2, 0.0  ;;  %v3073_v17 = vsel %vm7507_vm7, %v3051_v21, 0.0  ;;  %v3204_v63 = vadd.f32 %v3172_v6, %v10417_v41  ;;  %v3054_v30 = vsel %vm10420_vm4, %v10409_v20, %v10410_v53  ;;  %v10421_v2 = vld [vmem:[#allocation133_spill] sm:$0xff]  ;;  %v10422_v21 = vld [vmem:[#allocation274_spill] sm:$0xff] }
 0x45b   : > { %10413 = vst [vmem:[#allocation183_spill] sm:$0xff] %v8497_v35  ;;  %v10418_v35 = vld [vmem:[#allocation51_spill] sm:$0xff]  ;;  %v3168_v62 = vmul.f32 %v10419_v7, %v3072_v26  ;;  %v3169_v47 = vmul.f32 %v10419_v7, %v3073_v17  ;;  %v3078_v38 = vsel %vm7503_vm6, %v3038_v59, 0.0  ;;  %v3182_v6 = vmul.f32 %v10422_v21, %v3086_v5  ;;  %v10424_v17 = vld [vmem:[#allocation160_spill] sm:$0xff]  ;;  %v10425_v7 = vld [vmem:[#allocation173_spill] sm:$0xff] }
 0x45c   : > { %v3205_v34 = vadd.f32 %v3173_v33, %v10418_v35  ;;  %3810 = vrot.lane.b32.xlu2 %v10381_v60, %s4346_s10  ;;  %3802 = vrot.lane.b32.xlu1 %v10421_v2, %s4346_s10  ;;  %v3183_v33 = vmul.f32 %v10422_v21, %v3087_v50  ;;  %v10423_v35 = vld [vmem:[#allocation97_spill] sm:$0xff]  ;;  %v3616_v53 = vsel %vm8261_vm8, %v8286_v45, 0.0  ;;  %v3617_v60 = vsel %vm8265_vm13, %v8291_v23, 0.0 }
 0x45d   : > { %v3468_v26 = vadd.f32 %v10423_v35, %v3204_v63  ;;  %v3668_v20 = vpop.permute.xlu2 %3667  ;;  %v3602_v5 = vsel %vm8261_vm8, %v7867_v3, 0.0  ;;  %v3603_v63 = vsel %vm8265_vm13, %v7871_v31, 0.0  ;;  %v2965_v4 = vadd.f32 %v8412_v40, %v8333_v37 }
 0x45e   : > { %v3469_v41 = vadd.f32 %v10424_v17, %v3205_v34  ;;  %3818 = vrot.lane.b32.xlu0 %v10425_v7, %s4346_s10  ;;  %v3555_v59 = vpop.permute.xlu1 %3554  ;;  %v3712_v50 = vmul.f32 %v3668_v20, %v3616_v53  ;;  %v3713_v34 = vmul.f32 %v3668_v20, %v3617_v60  ;;  %v10426_v17 = vld [vmem:[#allocation35_spill] sm:$0xff]  ;;  %v3079_v53 = vsel %vm7507_vm7, %v3054_v30, 0.0 }
 0x45f   : > { %v8556_v2 = vsel %vm3560_vm1, %v7952_v48, %v3555_v59  ;;  %v8561_v45 = vsel %vm3560_vm1, %v3555_v59, %v7952_v48  ;;  %v3640_v23 = vpop.permute.xlu0 %3639  ;;  %v3200_v20 = vadd.f32 %v3168_v62, %v10426_v17  ;;  %v10427_v60 = vld [vmem:[#allocation175_spill] sm:$0xff]  ;;  %v10429_v48 = vld [vmem:[#allocation98_spill] sm:$0xff]  ;;  %vm10437_vm1 = vmmov %vm10353_vm0 }
 0x460   : > { %v3698_v21 = vmul.f32 %v3640_v23, %v3602_v5  ;;  %v3699_v35 = vmul.f32 %v3640_v23, %v3603_v63  ;;  %v8573_v7 = vadd.f32 %v3712_v50, %v10427_v60  ;;  %v8576_v59 = vadd.f32 %v3713_v34, %v10429_v48  ;;  %v10431_v5 = vld [vmem:[#allocation161_spill] sm:$0xff]  ;;  %v10432_v23 = vld [vmem:[#allocation256_spill] sm:$0xff]  ;;  %v10435_v62 = vld [vmem:[#allocation258_spill] sm:$0xff] }
 0x461   : > { %v3201_v63 = vadd.f32 %v3169_v47, %v10431_v5  ;;  %v3174_v46 = vmul.f32 %v10432_v23, %v3078_v38  ;;  %v3175_v31 = vmul.f32 %v10432_v23, %v3079_v53  ;;  %v10436_v17 = vld [vmem:[#allocation226_spill] sm:$0xff]  ;;  %v3214_v47 = vadd.f32 %v3182_v6, %v8324_v1  ;;  %v10440_v34 = vld [vmem:[#allocation277_spill] sm:$0xff]  ;;  %v10441_v53 = vld [vmem:[#allocation147_spill] sm:$0xff] }
 0x462   : > { %10428 = vst [vmem:[#allocation89_spill] sm:$0xff] %v8573_v7  ;;  %v8580_v3 = vadd.f32 %v3698_v21, %v3468_v26  ;;  %v8582_v0 = vadd.f32 %v3699_v35, %v3469_v41  ;;  %v3040_v30 = vsel %vm10437_vm1, %v10436_v17, %v10435_v62  ;;  %v3056_v50 = vsel %vm10438_vm10, %v10435_v62, %v10436_v17  ;;  %v10442_v60 = vld [vmem:[#allocation44_spill] sm:$0xff]  ;;  %v10443_v5 = vld [vmem:[#allocation47_spill] sm:$0xff]  ;;  %v10449_v7 = vld [vmem:[#allocation178_spill] sm:$0xff] }
 0x463   : > { %10430 = vst [vmem:[#allocation52_spill] sm:$0xff] %v8576_v59  ;;  %v3215_v41 = vadd.f32 %v3183_v33, %v8327_v55  ;;  %v3188_v21 = vmul.f32 %v10440_v34, %v3092_v56  ;;  %v3189_v35 = vmul.f32 %v10440_v34, %v3093_v11  ;;  %v3464_v48 = vadd.f32 %v10442_v60, %v3200_v20  ;;  %v4291_v6 = vld [vmem:[%s9228_s3 + $0x8] sm:$0xff]  ;;  %v10445_v11 = vld [vmem:[#allocation293_spill] sm:$0xff] }
 0x464   : > { %10433 = vst [vmem:[#allocation25_spill] sm:$0xff] %v8580_v3  ;;  %3816 = vrot.lane.b32.xlu2 %v10395_v43, %s4346_s10  ;;  %3808 = vrot.lane.b32.xlu1 %v10441_v53, %s4346_s10  ;;  %v3465_v1 = vadd.f32 %v10443_v5, %v3201_v63  ;;  %v10444_v55 = vld [vmem:[#allocation287_spill] sm:$0xff]  ;;  %v3599_v43 = vsel %vm8265_vm13, %v10445_v11, 0.0  ;;  %v3622_v20 = vsel %vm8261_vm8, %v8381_v32, 0.0  ;;  %v3623_v63 = vsel %vm8265_vm13, %v8386_v9, 0.0  ;;  %v10447_v11 = vld [vmem:[#allocation168_spill] sm:$0xff] }
 0x465   : > { %10434 = vst [vmem:[#allocation111_spill] sm:$0xff] %v8582_v0  ;;  %v3598_v56 = vsel %vm8261_vm8, %v10444_v55, 0.0  ;;  %v3680_v33 = vpop.permute.xlu2 %3679  ;;  %v3612_v62 = vsel %vm8261_vm8, %v8369_v19, 0.0  ;;  %v3613_v17 = vsel %vm8265_vm13, %v8374_v28, 0.0  ;;  %v10446_v55 = vld [vmem:[#allocation95_spill] sm:$0xff]  ;;  %v3479_v26 = vadd.f32 %v10447_v11, %v3215_v41  ;;  %v10448_v3 = vld [vmem:[#allocation62_spill] sm:$0xff] }
 0x466   : > { %3898 = vperm.xlu0 %4252, %v4291_v6   ;;  %v3632_v23 = vpop.permute.xlu1 %3631  ;;  %v3718_v34 = vmul.f32 %v3680_v33, %v3622_v20  ;;  %v3719_v53 = vmul.f32 %v3680_v33, %v3623_v63  ;;  %v3478_v32 = vadd.f32 %v10446_v55, %v3214_v47  ;;  %v3098_v47 = vsel %vm7503_vm6, %v8503_v10, 0.0  ;;  %v10451_v20 = vld [vmem:[#allocation169_spill] sm:$0xff] }
 0x467   : > { %v3694_v60 = vmul.f32 %v3632_v23, %v3598_v56  ;;  %v3695_v5 = vmul.f32 %v3632_v23, %v3599_v43  ;;  %v3660_v6 = vpop.permute.xlu0 %3659  ;;  %v3082_v56 = vsel %vm7503_vm6, %v3040_v30, 0.0  ;;  %v10453_v30 = vld [vmem:[#allocation261_spill] sm:$0xff]  ;;  %v3628_v55 = vsel %vm8261_vm8, %v8476_v44, 0.0 }
 0x468   : > { %v3708_v0 = vmul.f32 %v3660_v6, %v3612_v62  ;;  %v3709_v9 = vmul.f32 %v3660_v6, %v3613_v17  ;;  %v8630_v59 = vadd.f32 %v3718_v34, %v10448_v3  ;;  %v8633_v19 = vadd.f32 %v3719_v53, %v10449_v7  ;;  %v10450_v3 = vld [vmem:[#allocation86_spill] sm:$0xff]  ;;  %v10454_v62 = vld [vmem:[#allocation229_spill] sm:$0xff] }
 0x469   : > { %v8635_v8 = vadd.f32 %v3694_v60, %v3464_v48  ;;  %v8637_v28 = vadd.f32 %v3695_v5, %v3465_v1  ;;  %v3206_v33 = vadd.f32 %v3174_v46, %v10450_v3  ;;  %v3207_v7 = vadd.f32 %v3175_v31, %v10451_v20  ;;  %v10452_v1 = vld [vmem:[#allocation259_spill] sm:$0xff]  ;;  %v4292_v31 = vld [vmem:[%s9228_s3] sm:$0xff]  ;;  %v10458_v60 = vld [vmem:[#allocation105_spill] sm:$0xff] }
 0x46a   : > { %v8644_v41 = vadd.f32 %v3708_v0, %v3478_v32  ;;  %v8646_v43 = vadd.f32 %v3709_v9, %v3479_v26  ;;  %v3083_v48 = vsel %vm7507_vm7, %v3056_v50, 0.0  ;;  %v3178_v63 = vmul.f32 %v10452_v1, %v3082_v56  ;;  %v10456_v50 = vld [vmem:[#allocation162_spill] sm:$0xff]  ;;  %v10460_v20 = vld [vmem:[#allocation167_spill] sm:$0xff] }
 0x46b   : > { %v3179_v23 = vmul.f32 %v10452_v1, %v3083_v48  ;;  %v8658_v10 = vsel %vm10353_vm0, %v10454_v62, %v10453_v30  ;;  %v8664_v0 = vsel %vm10455_vm5, %v10453_v30, %v10454_v62  ;;  %v3099_v46 = vsel %vm7507_vm7, %v8509_v49, 0.0  ;;  %v10457_v34 = vld [vmem:[#allocation18_spill] sm:$0xff]  ;;  %v4293_v49 = vld [vmem:[%s9228_s3 + $0x30] sm:$0xff]  ;;  %v10464_v62 = vld [vmem:[#allocation179_spill] sm:$0xff] }
 0x46c   : > { %3894 = vperm.xlu2 %4251, %v4292_v31   ;;  %3814 = vrot.lane.b32.xlu1 %v10456_v50, %s4346_s10  ;;  %v3220_v26 = vadd.f32 %v3188_v21, %v8401_v27  ;;  %v3221_v17 = vadd.f32 %v3189_v35, %v8404_v12  ;;  %v3470_v53 = vadd.f32 %v10457_v34, %v3206_v33  ;;  %v3629_v27 = vsel %vm8265_vm13, %v8481_v52, 0.0  ;;  %v10459_v33 = vld [vmem:[#allocation101_spill] sm:$0xff] }
 0x46d   : > { %v3471_v5 = vadd.f32 %v10458_v60, %v3207_v7  ;;  %v3692_v6 = vpop.permute.xlu2 %3691  ;;  %v3604_v12 = vsel %vm8261_vm8, %v8125_v39, 0.0  ;;  %v3605_v35 = vsel %vm8265_vm13, %v8130_v29, 0.0  ;;  %v10461_v52 = vsel %vm8261_vm8, %v8466_v13, 0.0  ;;  %v10463_v29 = vld [vmem:[#allocation112_spill] sm:$0xff] }
 0x46e   : > { %3918 = vperm.xlu0 %4252, %v4293_v49   ;;  %v3644_v21 = vpop.permute.xlu1 %3643  ;;  %v3724_v32 = vmul.f32 %v3692_v6, %v3628_v55  ;;  %v3725_v11 = vmul.f32 %v3692_v6, %v3629_v27  ;;  %v3484_v44 = vadd.f32 %v10459_v33, %v3220_v26  ;;  %v3485_v7 = vadd.f32 %v10460_v20, %v3221_v17  ;;  %v10465_v17 = vld [vmem:[#allocation280_spill] sm:$0xff]  ;;  %v10478_v33 = vld [vmem:[#allocation79_spill] sm:$0xff] }
 0x46f   : > { %v3700_v9 = vmul.f32 %v3644_v21, %v3604_v12  ;;  %v3701_v56 = vmul.f32 %v3644_v21, %v3605_v35  ;;  %v10462_v39 = vsel %vm8265_vm13, %v8471_v22, 0.0  ;;  %v3194_v34 = vmul.f32 %v10465_v17, %v3098_v47  ;;  %v10470_v27 = vld [vmem:[#allocation28_spill] sm:$0xff]  ;;  %v10471_v21 = vld [vmem:[#allocation227_spill] sm:$0xff] }
 0x470   : > { %v3672_v3 = vpop.permute.xlu0 %3671  ;;  %v8704_v30 = vadd.f32 %v3724_v32, %v10463_v29  ;;  %v8707_v31 = vadd.f32 %v3725_v11, %v10464_v62  ;;  %v3195_v13 = vmul.f32 %v10465_v17, %v3099_v46  ;;  %v10466_v22 = vsel %vm6538_vm9, %v8233_v42, 0.0  ;;  %v10474_v35 = vld [vmem:[#allocation180_spill] sm:$0xff] }
 0x471   : > { %v3714_v48 = vmul.f32 %v3672_v3, %v10461_v52  ;;  %v3715_v1 = vmul.f32 %v3672_v3, %v10462_v39  ;;  %v8709_v50 = vadd.f32 %v3700_v9, %v3470_v53  ;;  %v8711_v26 = vadd.f32 %v3701_v56, %v3471_v5  ;;  %v10468_v5 = vld [vmem:[#allocation45_spill] sm:$0xff]  ;;  %v10476_v9 = vld [vmem:[#allocation31_spill] sm:$0xff]  ;;  %v10477_v3 = vld [vmem:[#allocation172_spill] sm:$0xff] }
 0x472   : > { %v2281_v6 = vmul.f32 %v10372_v36, %v10466_v22  ;;  %v10467_v53 = vsel %vm6553_vm11, %v8300_v14, 0.0  ;;  %v10469_v47 = vsel %vm6557_vm12, %v8313_v15, 0.0  ;;  %v2922_v12 = vmul.f32 %v10471_v21, %v10470_v27  ;;  %v4294_v14 = vld [vmem:[%s9228_s3 + $0x18] sm:$0xff]  ;;  %v10473_v15 = vld [vmem:[#allocation102_spill] sm:$0xff]  ;;  %vm10501_vm12 = vmmov %vm10353_vm0 }
 0x473   : > { %v8715_v60 = vadd.f32 %v3714_v48, %v3484_v44  ;;  %v8717_v49 = vadd.f32 %v3715_v1, %v3485_v7  ;;  %v2018_v55 = vmul.f32 %v10468_v5, %v10467_v53  ;;  %v2019_v46 = vmul.f32 %v10468_v5, %v10469_v47  ;;  %v10472_v36 = vld [vmem:[#allocation177_spill] sm:$0xff]  ;;  %v10479_v48 = vld [vmem:[#allocation42_spill] sm:$0xff] }
 0x474   : > { %v2923_v58 = vmul.f32 %v10471_v21, %v10385_v54  ;;  %v2964_v42 = vadd.f32 %v8408_v18, %v8330_v16  ;;  %3906 = vperm.xlu2 %4251, %v4294_v14   ;;  %3820 = vrot.lane.b32.xlu1 %v10472_v36, %s4346_s10  ;;  %v3210_v38 = vadd.f32 %v3178_v63, %v10473_v15  ;;  %v3088_v54 = vsel %vm7503_vm6, %v8658_v10, 0.0  ;;  %v4295_v18 = vld [vmem:[%s9228_s3 + $0x48] sm:$0xff]  ;;  %v10475_v63 = vld [vmem:[#allocation85_spill] sm:$0xff]  ;;  %v10480_v1 = vld [vmem:[#allocation94_spill] sm:$0xff] }
 0x475   : > { %v3211_v32 = vadd.f32 %v3179_v23, %v10474_v35  ;;  %v3089_v40 = vsel %vm7507_vm7, %v8664_v0, 0.0  ;;  %v3227_v37 = vadd.f32 %v3195_v13, %v2965_v4  ;;  %v8758_v11 = vpop.permute.xlu2 %3762  ;;  %v3608_v23 = vsel %vm8261_vm8, %v10475_v63, 0.0  ;;  %v10483_v22 = vld [vmem:[#allocation262_spill] sm:$0xff]  ;;  %v10484_v21 = vld [vmem:[#allocation276_spill] sm:$0xff] }
 0x476   : > { %3930 = vperm.xlu0 %4252, %v4295_v18   ;;  %v3226_v16 = vadd.f32 %v3194_v34, %v2964_v42  ;;  %v3609_v10 = vsel %vm8265_vm13, %v10476_v9, 0.0  ;;  %v3652_v56 = vpop.permute.xlu1 %3651  ;;  %v3474_v0 = vadd.f32 %v10477_v3, %v3210_v38  ;;  %v10481_v62 = vsel %vm8261_vm8, %v8556_v2, 0.0  ;;  %v10486_v14 = vld [vmem:[#allocation106_spill] sm:$0xff] }
 0x477   : > { %v3475_v44 = vadd.f32 %v10478_v33, %v3211_v32  ;;  %v3704_v20 = vmul.f32 %v3652_v56, %v3608_v23  ;;  %v3705_v7 = vmul.f32 %v3652_v56, %v3609_v10  ;;  %v3491_v29 = vadd.f32 %v10480_v1, %v3227_v37  ;;  %v10487_v2 = vld [vmem:[#allocation182_spill] sm:$0xff]  ;;  %v10489_v32 = vld [vmem:[#allocation299_spill] sm:$0xff]  ;;  %v10492_v37 = vld [vmem:[#allocation124_spill] sm:$0xff] }
 0x478   : > { %v3684_v52 = vpop.permute.xlu0 %3683  ;;  %v3490_v39 = vadd.f32 %v10479_v48, %v3226_v16  ;;  %v10482_v34 = vsel %vm8265_vm13, %v8561_v45, 0.0  ;;  %v3184_v53 = vmul.f32 %v10483_v22, %v3088_v54  ;;  %v3185_v5 = vmul.f32 %v10483_v22, %v3089_v40  ;;  %v10488_v45 = vld [vmem:[#allocation292_spill] sm:$0xff]  ;;  %v10491_v16 = vld [vmem:[#allocation187_spill] sm:$0xff]  ;;  %v10493_v23 = vld [vmem:[#allocation181_spill] sm:$0xff] }
 0x479   : > { %v3720_v17 = vmul.f32 %v3684_v52, %v10481_v62  ;;  %v3721_v13 = vmul.f32 %v3684_v52, %v10482_v34  ;;  %v8780_v47 = vadd.f32 %v3704_v20, %v3474_v0  ;;  %v8782_v27 = vadd.f32 %v3705_v7, %v3475_v44  ;;  %v10490_v40 = vld [vmem:[#allocation8_spill] sm:$0xff]  ;;  %v10495_v3 = vld [vmem:[#allocation222_spill] sm:$0xff] }
 0x47a   : > { %v2448_v4 = vsel %vm6589_vm2, %v10484_v21, 0.0  ;;  %v2832_v36 = vadd.f32 %v10487_v2, %v10486_v14  ;;  %v2312_v35 = vadd.f32 %v10488_v45, %v2018_v55  ;;  %v2954_v54 = vadd.f32 %v2922_v12, %v10489_v32  ;;  %v10496_v0 = vld [vmem:[#allocation138_spill] sm:$0xff]  ;;  %v4296_v12 = vld [vmem:[%s9228_s3 + $0x28] sm:$0xff]  ;;  %v10499_v44 = vld [vmem:[#allocation264_spill] sm:$0xff] }
 0x47b   : > { %v8789_v15 = vadd.f32 %v3720_v17, %v3490_v39  ;;  %v8791_v38 = vadd.f32 %v3721_v13, %v3491_v29  ;;  %v2955_v18 = vadd.f32 %v2923_v58, %v10490_v40  ;;  %v2833_v63 = vadd.f32 %v10492_v37, %v10491_v16  ;;  %v4297_v58 = vld [vmem:[%s9228_s3 + $0x10] sm:$0xff]  ;;  %vm10502_vm2 = vmmov %vm10353_vm0  ;;  %v4298_v48 = vld [vmem:[%s9228_s3 + $0x60] sm:$0xff] }
 0x47c   : > { %v2449_v10 = vsel %vm6613_vm3, %v10493_v23, 0.0  ;;  %v2313_v56 = vadd.f32 %v2281_v6, %v2019_v46  ;;  %vm10497_vm9 = vcmp.lt.s32.totalorder %v6448_v25, 1  ;;  %3914 = vperm.xlu2 %4251, %v4296_v12   ;;  %3902 = vperm.xlu1 %4253, %v4297_v58   ;;  %v3216_v6 = vadd.f32 %v3184_v53, %v2954_v54  ;;  %v10500_v20 = vld [vmem:[#allocation232_spill] sm:$0xff]  ;;  %v10504_v1 = vld [vmem:[#allocation230_spill] sm:$0xff]  ;;  %v10506_v13 = vld [vmem:[#allocation49_spill] sm:$0xff] }
 0x47d   : > { %v2659_v33 = vsel %vm10497_vm9, %v10496_v0, %v10495_v3  ;;  %vm10498_vm11 = vmmov %vm10497_vm9  ;;  %v3217_v46 = vadd.f32 %v3185_v5, %v2955_v18  ;;  %v3046_v7 = vsel %vm10501_vm12, %v10500_v20, %v10499_v44  ;;  %v3062_v52 = vsel %vm10502_vm2, %v10499_v44, %v10500_v20  ;;  %v10503_v39 = vld [vmem:[#allocation80_spill] sm:$0xff]  ;;  %v10505_v62 = vld [vmem:[#allocation158_spill] sm:$0xff]  ;;  %v8830_v34 = vpop.permute.xlu2 %3768 }
 0x47e   : > { %v2675_v55 = vsel %vm10498_vm11, %v10495_v3, %v10496_v0  ;;  %3942 = vperm.xlu0 %4252, %v4298_v48   ;;  %v2928_v29 = vmul.f32 %v10504_v1, %v10503_v39  ;;  %v2929_v17 = vmul.f32 %v10504_v1, %v10505_v62  ;;  %v3614_v22 = vsel %vm8261_vm8, %v10506_v13, 0.0  ;;  %v10507_v53 = vld [vmem:[#allocation46_spill] sm:$0xff]  ;;  %v3664_v21 = vpop.permute.xlu1 %3663  ;;  %v10509_v2 = vld [vmem:[#allocation39_spill] sm:$0xff]  ;;  %v10512_v0 = vld [vmem:[#allocation265_spill] sm:$0xff] }
 0x47f   : > { %v3615_v5 = vsel %vm8265_vm13, %v10507_v53, 0.0  ;;  %v10508_v42 = vld [vmem:[#allocation170_spill] sm:$0xff]  ;;  %v3481_v45 = vadd.f32 %v10509_v2, %v3217_v46  ;;  %v3710_v32 = vmul.f32 %v3664_v21, %v3614_v22  ;;  %v2710_v16 = vsel %vm6572_vm14, %v2675_v55, 0.0  ;;  %v10514_v48 = vld [vmem:[#allocation16_spill] sm:$0xff]  ;;  %v10515_v53 = vld [vmem:[#allocation267_spill] sm:$0xff] }
 0x480   : > { %v3480_v14 = vadd.f32 %v10508_v42, %v3216_v6  ;;  %v3711_v54 = vmul.f32 %v3664_v21, %v3615_v5  ;;  %v8840_v40 = vpop.permute.xlu0 %3758  ;;  %v2711_v23 = vsel %vm6576_vm15, %v2659_v33, 0.0  ;;  %v3094_v9 = vsel %vm7503_vm6, %v3046_v7, 0.0  ;;  %v10513_v44 = vld [vmem:[#allocation70_spill] sm:$0xff]  ;;  %v10516_v5 = vld [vmem:[#allocation235_spill] sm:$0xff]  ;;  %vm10517_vm14 = vmmov %vm10353_vm0 }
 0x481   : > { %v3095_v3 = vsel %vm7507_vm7, %v3062_v52, 0.0  ;;  %v3190_v12 = vmul.f32 %v10512_v0, %v3094_v9  ;;  %v2544_v20 = vmul.f32 %v10513_v44, %v2448_v4  ;;  %v2545_v55 = vmul.f32 %v10513_v44, %v2449_v10  ;;  %v4299_v13 = vld [vmem:[%s9228_s3 + $0x40] sm:$0xff]  ;;  %vm10518_vm15 = vmmov %vm10353_vm0  ;;  %v10521_v21 = vld [vmem:[#allocation173_spill] sm:$0xff] }
 0x482   : > { %v3191_v58 = vmul.f32 %v10512_v0, %v3095_v3  ;;  %v8852_v6 = vadd.f32 %v3710_v32, %v3480_v14  ;;  %v8854_v46 = vadd.f32 %v3711_v54, %v3481_v45  ;;  %v2806_v33 = vmul.f32 %v10514_v48, %v2710_v16  ;;  %v4300_v22 = vld [vmem:[%s9228_s3 + $0x20] sm:$0xff]  ;;  %v10522_v2 = vld [vmem:[#allocation36_spill] sm:$0xff]  ;;  %v10524_v16 = vld [vmem:[#allocation81_spill] sm:$0xff] }
 0x483   : > { %v2960_v39 = vadd.f32 %v2928_v29, %v2832_v36  ;;  %v2961_v1 = vadd.f32 %v2929_v17, %v2833_v63  ;;  %v2807_v7 = vmul.f32 %v10514_v48, %v2711_v23  ;;  %v2576_v62 = vadd.f32 %v2544_v20, %v2312_v35  ;;  %v4301_v63 = vld [vmem:[%s9228_s3 + $0x78] sm:$0xff]  ;;  %v10523_v32 = vld [vmem:[#allocation116_spill] sm:$0xff] }
 0x484   : > { %v2577_v52 = vadd.f32 %v2545_v55, %v2313_v56  ;;  %3926 = vperm.xlu2 %4251, %v4299_v13   ;;  %3910 = vperm.xlu1 %4253, %v4300_v22   ;;  %v3049_v36 = vsel %vm10517_vm14, %v10516_v5, %v10515_v53  ;;  %v3065_v35 = vsel %vm10518_vm15, %v10515_v53, %v10516_v5  ;;  %v10519_v56 = vld [vmem:[#allocation92_spill] sm:$0xff]  ;;  %v10520_v29 = vld [vmem:[#allocation233_spill] sm:$0xff]  ;;  %v3620_v45 = vsel %vm8261_vm8, %v10522_v2, 0.0 }
 0x485   : > { %v3222_v4 = vadd.f32 %v3190_v12, %v2960_v39  ;;  %v3223_v10 = vadd.f32 %v3191_v58, %v2961_v1  ;;  %v2934_v17 = vmul.f32 %v10520_v29, %v10519_v56  ;;  %v2935_v42 = vmul.f32 %v10520_v29, %v10521_v21  ;;  %v8881_v14 = vpop.permute.xlu2 %3774  ;;  %v10525_v23 = vld [vmem:[#allocation4_spill] sm:$0xff]  ;;  %v10528_v5 = vld [vmem:[#allocation125_spill] sm:$0xff] }
 0x486   : > { %3954 = vperm.xlu0 %4252, %v4301_v63   ;;  %v3621_v54 = vsel %vm8265_vm13, %v10523_v32, 0.0  ;;  %v3676_v18 = vpop.permute.xlu1 %3675  ;;  %v2838_v58 = vadd.f32 %v2806_v33, %v2576_v62  ;;  %v2839_v44 = vadd.f32 %v2807_v7, %v2577_v52  ;;  %v3100_v20 = vsel %vm7503_vm6, %v3049_v36, 0.0  ;;  %v10526_v48 = vld [vmem:[#allocation268_spill] sm:$0xff]  ;;  %v4302_v33 = vld [vmem:[%s9228_s3 + $0x58] sm:$0xff]  ;;  %v10529_v63 = vld [vmem:[#allocation174_spill] sm:$0xff] }
 0x487   : > { %v3486_v37 = vadd.f32 %v10524_v16, %v3222_v4  ;;  %v3487_v9 = vadd.f32 %v10525_v23, %v3223_v10  ;;  %v3716_v3 = vmul.f32 %v3676_v18, %v3620_v45  ;;  %v3717_v0 = vmul.f32 %v3676_v18, %v3621_v54  ;;  %v10527_v52 = vld [vmem:[#allocation197_spill] sm:$0xff] }
 0x488   : > { %v8891_v12 = vpop.permute.xlu0 %3764  ;;  %v3101_v55 = vsel %vm7507_vm7, %v3065_v35, 0.0  ;;  %v3196_v39 = vmul.f32 %v10526_v48, %v3100_v20  ;;  %v2966_v4 = vadd.f32 %v2934_v17, %v2838_v58  ;;  %v2967_v10 = vadd.f32 %v2935_v42, %v2839_v44  ;;  %v10530_v29 = vld [vmem:[#allocation109_spill] sm:$0xff] }
 0x489   : > { %v3197_v1 = vmul.f32 %v10526_v48, %v3101_v55  ;;  %v8899_v13 = vadd.f32 %v3716_v3, %v3486_v37  ;;  %v8901_v22 = vadd.f32 %v3717_v0, %v3487_v9  ;;  %v3626_v53 = vsel %vm8261_vm8, %v10527_v52, 0.0  ;;  %v4306_v37 = vld [vmem:[%s9228_s3 + $0x68] sm:$0xff] }
 0x48a   : > { %v3228_v51 = vadd.f32 %v3196_v39, %v2966_v4  ;;  %v3627_v36 = vsel %vm8265_vm13, %v10528_v5, 0.0  ;;  %vm3822_vm7 = vcmp.lt.s32.totalorder %v6448_v25, 111  ;;  %v10533_v5 = vld [vmem:[#allocation284_spill] sm:$0xff] }
 0x48b   : > { %v3229_v7 = vadd.f32 %v3197_v1, %v2967_v10  ;;  %vm10534_vm6 = vcmp.le.s32.totalorder %v10533_v5, 14 }
 0x48c   : > { %3938 = vperm.xlu2 %4251, %v4302_v33   ;;  %3922 = vperm.xlu1 %4253, %v4303_v57   ;;  %v3492_v56 = vadd.f32 %v10529_v63, %v3228_v51  ;;  %v10535_v63 = vmov 0  }
 0x48d   : > { %v8909_v62 = vpop.permute.xlu2 %3780  ;;  %v3493_v17 = vadd.f32 %v10530_v29, %v3229_v7 }
 0x48e   : > { %v3688_v35 = vpop.permute.xlu1 %3687 }
 0x48f   : > { %v3722_v21 = vmul.f32 %v3688_v35, %v3626_v53  ;;  %v3723_v42 = vmul.f32 %v3688_v35, %v3627_v36  ;;  %v10531_v53 = vld [vmem:[#allocation282_spill] sm:$0xff] }
 0x490   : > { %v8919_v2 = vpop.permute.xlu0 %3770  ;;  %vm10532_vm3 = vcmp.le.s32.totalorder %v10531_v53, 14 }
 0x491   : > { %v8921_v45 = vadd.f32 %v3722_v21, %v3492_v56  ;;  %v8923_v32 = vadd.f32 %v3723_v42, %v3493_v17  ;;  %vm3855_vm8 = vmand %vm10534_vm6, %vm10532_vm3 }
 0x492   : > { %v3856_v56 = vsel %vm3855_vm8, 1, %v10535_v63 }
 0x493   : > { %v3857_v42 = vperm.slane %v3856_v56, 0 }
 0x494   : > { %3950 = vperm.xlu2 %4251, %v4304_v24   ;;  %3934 = vperm.xlu1 %4253, %v4305_v61   ;;  %v3858_v24 = vperm.slane %v3856_v56, 1 }
 0x495   : > { %v8931_v54 = vpop.permute.xlu2 %3786  ;;  %vm8991_vm13 = vcmp.eq.s32.totalorder %v3857_v42, 1 }
 0x496   : > { %v8933_v18 = vpop.permute.xlu1 %3760  ;;  %vm8995_vm4 = vcmp.eq.s32.totalorder %v3858_v24, 1 }
 0x498   : > { %v8935_v16 = vpop.permute.xlu0 %3776 }
 0x49c   : > { %3946 = vperm.xlu1 %4253, %v4306_v37  }
 0x49e   : > { %v3793_v23 = vpop.permute.xlu2 %3792  ;;  %v3767_v9 = vpop.permute.xlu1 %3766 }
 0x4a0   : > { %v8940_v3 = vpop.permute.xlu0 %3782 }
 0x4a6   : > { %v3799_v0 = vpop.permute.xlu2 %3798  ;;  %v3773_v58 = vpop.permute.xlu1 %3772 }
 0x4a7   : > { %v8945_v44 = vsel %vm3822_vm7, %v3767_v9, %v3799_v0  ;;  %v8949_v20 = vsel %vm3822_vm7, %v3799_v0, %v3767_v9 }
 0x4a8   : > { %v8951_v55 = vpop.permute.xlu0 %3788 }
 0x4ae   : > { %v3805_v48 = vpop.permute.xlu2 %3804  ;;  %v3779_v39 = vpop.permute.xlu1 %3778 }
 0x4af   : > { %v8955_v1 = vsel %vm3822_vm7, %v3773_v58, %v3805_v48  ;;  %v8959_v4 = vsel %vm3822_vm7, %v3805_v48, %v3773_v58 }
 0x4b0   : > { %v8961_v10 = vpop.permute.xlu0 %3794 }
 0x4b6   : > { %v3811_v33 = vpop.permute.xlu2 %3810  ;;  %v3785_v57 = vpop.permute.xlu1 %3784 }
 0x4b7   : > { %v8965_v51 = vsel %vm3822_vm7, %v3779_v39, %v3811_v33  ;;  %v8969_v7 = vsel %vm3822_vm7, %v3811_v33, %v3779_v39 }
 0x4b8   : > { %v3801_v52 = vpop.permute.xlu0 %3800 }
 0x4be   : > { %v3817_v36 = vpop.permute.xlu2 %3816  ;;  %v3791_v35 = vpop.permute.xlu1 %3790 }
 0x4bf   : > { %v8978_v29 = vsel %vm3822_vm7, %v3785_v57, %v3817_v36  ;;  %v8982_v17 = vsel %vm3822_vm7, %v3817_v36, %v3785_v57  ;;  %v3823_v61 = vsel %vm3822_vm7, %v8840_v40, %v3791_v35  ;;  %v3839_v37 = vsel %vm3822_vm7, %v3791_v35, %v8840_v40 }
 0x4c0   : > { %v3807_v21 = vpop.permute.xlu0 %3806  ;;  %v3861_v48 = vsel %vm8991_vm13, %v3823_v61, 0.0  ;;  %v3862_v39 = vsel %vm8995_vm4, %v3839_v37, 0.0 }
 0x4c6   : > { %v3895_v58 = vpop.permute.xlu2 %3894  ;;  %v3797_v33 = vpop.permute.xlu1 %3796 }
 0x4c7   : > { %v3957_v57 = vmul.f32 %v3895_v58, %v3861_v48  ;;  %v3958_v53 = vmul.f32 %v3895_v58, %v3862_v39  ;;  %v3826_v35 = vsel %vm3822_vm7, %v8891_v12, %v3797_v33  ;;  %v3842_v63 = vsel %vm3822_vm7, %v3797_v33, %v8891_v12 }
 0x4c8   : > { %v9003_v40 = vpop.permute.xlu0 %3812  ;;  %v3867_v42 = vsel %vm8991_vm13, %v3826_v35, 0.0  ;;  %v3828_v12 = vsel %vm3822_vm7, %v8830_v34, %v3801_v52  ;;  %v3844_v39 = vsel %vm3822_vm7, %v3801_v52, %v8830_v34  ;;  %v3824_v33 = vsel %vm3822_vm7, %v8933_v18, %v3793_v23 }
 0x4c9   : > { %v3989_v5 = vadd.f32 %v3957_v57, %v8635_v8  ;;  %v3990_v36 = vadd.f32 %v3958_v53, %v8637_v28  ;;  %v3868_v8 = vsel %vm8995_vm4, %v3842_v63, 0.0  ;;  %v3840_v57 = vsel %vm3822_vm7, %v3793_v23, %v8933_v18 }
 0x4ca   : > { %v3872_v53 = vsel %vm8995_vm4, %v3844_v39, 0.0  ;;  %v3864_v18 = vsel %vm8995_vm4, %v3840_v57, 0.0 }
 0x4cb   : > { %4021 = vst [vmem:[%s9008_s7] sm:$0xff] %v3989_v5 }
 0x4cc   : > { %4022 = vst [vmem:[%s9008_s7 + $0x8] sm:$0xff] %v3990_v36  ;;  %v3863_v36 = vsel %vm8991_vm13, %v3824_v33, 0.0 }
 0x4ce   : > { %v3907_v56 = vpop.permute.xlu2 %3906  ;;  %v3803_v28 = vpop.permute.xlu1 %3802 }
 0x4cf   : > { %v3963_v24 = vmul.f32 %v3907_v56, %v3867_v42  ;;  %v3964_v61 = vmul.f32 %v3907_v56, %v3868_v8  ;;  %v10540_v8 = vld [vmem:[#allocation155_spill] sm:$0xff]  ;;  %v3829_v39 = vsel %vm3822_vm7, %v8919_v2, %v3803_v28 }
 0x4d0   : > { %v9024_v37 = vpop.permute.xlu0 %3818 }
 0x4d1   : > { %v3995_v58 = vadd.f32 %v3963_v24, %v8709_v50  ;;  %v3996_v48 = vadd.f32 %v3964_v61, %v8711_v26  ;;  %v3871_v26 = vsel %vm8991_vm13, %v3828_v12, 0.0  ;;  %v10541_v61 = vld [vmem:[#allocation288_spill] sm:$0xff]  ;;  %v3847_v12 = vsel %vm3822_vm7, %v3807_v21, %v8881_v14 }
 0x4d3   : > { %4027 = vst [vmem:[%s9008_s7 + $0x30] sm:$0xff] %v3995_v58 }
 0x4d4   : > { %4028 = vst [vmem:[%s9008_s7 + $0x38] sm:$0xff] %v3996_v48  ;;  %v3831_v48 = vsel %vm3822_vm7, %v8881_v14, %v3807_v21  ;;  %v3878_v14 = vsel %vm8995_vm4, %v3847_v12, 0.0 }
 0x4d5   : > { %v3877_v33 = vsel %vm8991_vm13, %v3831_v48, 0.0 }
 0x4d6   : > { %v3915_v50 = vpop.permute.xlu2 %3914  ;;  %v3809_v5 = vpop.permute.xlu1 %3808 }
 0x4d7   : > { %v3967_v34 = vmul.f32 %v3915_v50, %v3871_v26  ;;  %v3968_v52 = vmul.f32 %v3915_v50, %v3872_v53  ;;  %v3873_v26 = vsel %vm8991_vm13, %v3829_v39, 0.0 }
 0x4d8   : > { %v3899_v23 = vpop.permute.xlu0 %3898 }
 0x4d9   : > { %v3959_v35 = vmul.f32 %v3899_v23, %v3863_v36  ;;  %v3960_v63 = vmul.f32 %v3899_v23, %v3864_v18  ;;  %v3999_v56 = vadd.f32 %v3967_v34, %v8780_v47  ;;  %v4000_v42 = vadd.f32 %v3968_v52, %v8782_v27  ;;  %v10542_v18 = vld [vmem:[#allocation279_spill] sm:$0xff] }
 0x4da   : > { %v3845_v47 = vsel %vm3822_vm7, %v3803_v28, %v8919_v2 }
 0x4db   : > { %v3991_v24 = vadd.f32 %v3959_v35, %v10540_v8  ;;  %v3992_v58 = vadd.f32 %v3960_v63, %v10541_v61  ;;  %4031 = vst [vmem:[%s9008_s7 + $0x50] sm:$0xff] %v3999_v56  ;;  %v3874_v2 = vsel %vm8995_vm4, %v3845_v47, 0.0  ;;  %v10543_v35 = vld [vmem:[#allocation183_spill] sm:$0xff]  ;;  %v3834_v56 = vsel %vm3822_vm7, %v8909_v62, %v9003_v40 }
 0x4dc   : > { %4032 = vst [vmem:[%s9008_s7 + $0x58] sm:$0xff] %v4000_v42  ;;  %v3850_v42 = vsel %vm3822_vm7, %v9003_v40, %v8909_v62 }
 0x4dd   : > { %4023 = vst [vmem:[%s9008_s7 + $0x10] sm:$0xff] %v3991_v24  ;;  %v3883_v24 = vsel %vm8991_vm13, %v3834_v56, 0.0  ;;  %v3884_v61 = vsel %vm8995_vm4, %v3850_v42, 0.0 }
 0x4de   : > { %4024 = vst [vmem:[%s9008_s7 + $0x18] sm:$0xff] %v3992_v58  ;;  %v3927_v27 = vpop.permute.xlu2 %3926  ;;  %v3815_v21 = vpop.permute.xlu1 %3814 }
 0x4df   : > { %v3973_v57 = vmul.f32 %v3927_v27, %v3877_v33  ;;  %v3974_v50 = vmul.f32 %v3927_v27, %v3878_v14  ;;  %v3825_v33 = vsel %vm3822_vm7, %v8758_v11, %v8961_v10  ;;  %v3841_v14 = vsel %vm3822_vm7, %v8961_v10, %v8758_v11 }
 0x4e0   : > { %v3919_v28 = vpop.permute.xlu0 %3918  ;;  %v3851_v11 = vsel %vm3822_vm7, %v3815_v21, %v8940_v3  ;;  %v3865_v10 = vsel %vm8991_vm13, %v3825_v33, 0.0 }
 0x4e1   : > { %v3969_v53 = vmul.f32 %v3919_v28, %v3873_v26  ;;  %v3970_v34 = vmul.f32 %v3919_v28, %v3874_v2  ;;  %v4005_v52 = vadd.f32 %v3973_v57, %v8852_v6  ;;  %v4006_v36 = vadd.f32 %v3974_v50, %v8854_v46  ;;  %v10544_v57 = vld [vmem:[#allocation89_spill] sm:$0xff]  ;;  %v10545_v26 = vld [vmem:[#allocation52_spill] sm:$0xff] }
 0x4e2   : > { %v3832_v6 = vsel %vm3822_vm7, %v8935_v16, %v3809_v5  ;;  %v3848_v46 = vsel %vm3822_vm7, %v3809_v5, %v8935_v16  ;;  %v3835_v28 = vsel %vm3822_vm7, %v8940_v3, %v3815_v21  ;;  %v3886_v21 = vsel %vm8995_vm4, %v3851_v11, 0.0 }
 0x4e3   : > { %v4001_v23 = vadd.f32 %v3969_v53, %v10542_v18  ;;  %v4002_v63 = vadd.f32 %v3970_v34, %v10543_v35  ;;  %4037 = vst [vmem:[%s9008_s7 + $0x80] sm:$0xff] %v4005_v52  ;;  %v3879_v48 = vsel %vm8991_vm13, %v3832_v6, 0.0  ;;  %v3880_v16 = vsel %vm8995_vm4, %v3848_v46, 0.0 }
 0x4e4   : > { %4038 = vst [vmem:[%s9008_s7 + $0x88] sm:$0xff] %v4006_v36  ;;  %v3866_v53 = vsel %vm8995_vm4, %v3841_v14, 0.0  ;;  %v3885_v3 = vsel %vm8991_vm13, %v3835_v28, 0.0  ;;  %v3881_v28 = vsel %vm8991_vm13, %v8965_v51, 0.0  ;;  %v3888_v51 = vsel %vm8995_vm4, %v8982_v17, 0.0 }
 0x4e5   : > { %4033 = vst [vmem:[%s9008_s7 + $0x60] sm:$0xff] %v4001_v23 }
 0x4e6   : > { %4034 = vst [vmem:[%s9008_s7 + $0x68] sm:$0xff] %v4002_v63  ;;  %v3939_v8 = vpop.permute.xlu2 %3938  ;;  %v3821_v62 = vpop.permute.xlu1 %3820 }
 0x4e7   : > { %v3979_v40 = vmul.f32 %v3939_v8, %v3883_v24  ;;  %v3980_v58 = vmul.f32 %v3939_v8, %v3884_v61  ;;  %v10546_v8 = vld [vmem:[#allocation25_spill] sm:$0xff]  ;;  %v10547_v61 = vld [vmem:[#allocation111_spill] sm:$0xff] }
 0x4e8   : > { %v3931_v5 = vpop.permute.xlu0 %3930 }
 0x4e9   : > { %v3975_v12 = vmul.f32 %v3931_v5, %v3879_v48  ;;  %v3976_v39 = vmul.f32 %v3931_v5, %v3880_v16  ;;  %v4011_v47 = vadd.f32 %v3979_v40, %v8899_v13  ;;  %v4012_v27 = vadd.f32 %v3980_v58, %v8901_v22 }
 0x4ea   : > { %v3837_v13 = vsel %vm3822_vm7, %v8931_v54, %v9024_v37  ;;  %v3853_v22 = vsel %vm3822_vm7, %v9024_v37, %v8931_v54  ;;  %v3838_v16 = vsel %vm3822_vm7, %v8951_v55, %v3821_v62 }
 0x4eb   : > { %v4007_v50 = vadd.f32 %v3975_v12, %v10544_v57  ;;  %v4008_v2 = vadd.f32 %v3976_v39, %v10545_v26  ;;  %4043 = vst [vmem:[%s9008_s7 + $0xb0] sm:$0xff] %v4011_v47  ;;  %v3889_v54 = vsel %vm8991_vm13, %v3837_v13, 0.0  ;;  %v3890_v37 = vsel %vm8995_vm4, %v3853_v22, 0.0  ;;  %v10548_v47 = vld [vmem:[#allocation20_spill] sm:$0xff] }
 0x4ec   : > { %4044 = vst [vmem:[%s9008_s7 + $0xb8] sm:$0xff] %v4012_v27  ;;  %v10549_v27 = vld [vmem:[#allocation58_spill] sm:$0xff]  ;;  %v3876_v26 = vsel %vm8995_vm4, %v8959_v4, 0.0 }
 0x4ed   : > { %4039 = vst [vmem:[%s9008_s7 + $0x90] sm:$0xff] %v4007_v50  ;;  %v3875_v50 = vsel %vm8991_vm13, %v8955_v1, 0.0  ;;  %v3882_v1 = vsel %vm8995_vm4, %v8969_v7, 0.0 }
 0x4ee   : > { %4040 = vst [vmem:[%s9008_s7 + $0x98] sm:$0xff] %v4008_v2  ;;  %v3951_v34 = vpop.permute.xlu2 %3950  ;;  %v3903_v52 = vpop.permute.xlu1 %3902 }
 0x4ef   : > { %v3985_v36 = vmul.f32 %v3951_v34, %v3889_v54  ;;  %v3986_v18 = vmul.f32 %v3951_v34, %v3890_v37  ;;  %v3961_v23 = vmul.f32 %v3903_v52, %v3865_v10  ;;  %v3962_v35 = vmul.f32 %v3903_v52, %v3866_v53 }
 0x4f0   : > { %v3943_v63 = vpop.permute.xlu0 %3942 }
 0x4f1   : > { %v3981_v56 = vmul.f32 %v3943_v63, %v3885_v3  ;;  %v3982_v42 = vmul.f32 %v3943_v63, %v3886_v21  ;;  %v4017_v6 = vadd.f32 %v3985_v36, %v8921_v45  ;;  %v4018_v46 = vadd.f32 %v3986_v18, %v8923_v32 }
 0x4f2   : > { %v3993_v24 = vadd.f32 %v3961_v23, %v10546_v8  ;;  %v3994_v40 = vadd.f32 %v3962_v35, %v10547_v61  ;;  %v3854_v45 = vsel %vm3822_vm7, %v3821_v62, %v8951_v55  ;;  %v3869_v32 = vsel %vm8991_vm13, %v8945_v44, 0.0 }
 0x4f3   : > { %v4013_v58 = vadd.f32 %v3981_v56, %v8630_v59  ;;  %v4014_v48 = vadd.f32 %v3982_v42, %v8633_v19  ;;  %4049 = vst [vmem:[%s9008_s7 + $0xe0] sm:$0xff] %v4017_v6  ;;  %v3870_v59 = vsel %vm8995_vm4, %v8949_v20, 0.0  ;;  %v3891_v55 = vsel %vm8991_vm13, %v3838_v16, 0.0 }
 0x4f4   : > { %4050 = vst [vmem:[%s9008_s7 + $0xe8] sm:$0xff] %v4018_v46  ;;  %v3892_v62 = vsel %vm8995_vm4, %v3854_v45, 0.0 }
 0x4f5   : > { %4025 = vst [vmem:[%s9008_s7 + $0x20] sm:$0xff] %v3993_v24 }
 0x4f6   : > { %4026 = vst [vmem:[%s9008_s7 + $0x28] sm:$0xff] %v3994_v40  ;;  %v3911_v19 = vpop.permute.xlu1 %3910 }
 0x4f7   : > { %4045 = vst [vmem:[%s9008_s7 + $0xc0] sm:$0xff] %v4013_v58  ;;  %v3965_v5 = vmul.f32 %v3911_v19, %v3869_v32  ;;  %v3966_v25 = vmul.f32 %v3911_v19, %v3870_v59 }
 0x4f8   : > { %v3955_v12 = vpop.permute.xlu0 %3954  ;;  %4046 = vst [vmem:[%s9008_s7 + $0xc8] sm:$0xff] %v4014_v48 }
 0x4f9   : > { %v3987_v44 = vmul.f32 %v3955_v12, %v3891_v55  ;;  %v3988_v39 = vmul.f32 %v3955_v12, %v3892_v62  ;;  %v3997_v20 = vadd.f32 %v3965_v5, %v10548_v47  ;;  %v3998_v33 = vadd.f32 %v3966_v25, %v10549_v27 }
 0x4fb   : > { %v4019_v14 = vadd.f32 %v3987_v44, %v8704_v30  ;;  %v4020_v57 = vadd.f32 %v3988_v39, %v8707_v31  ;;  %4029 = vst [vmem:[%s9008_s7 + $0x40] sm:$0xff] %v3997_v20 }
 0x4fc   : > { %4030 = vst [vmem:[%s9008_s7 + $0x48] sm:$0xff] %v3998_v33 }
 0x4fd   : > { %4051 = vst [vmem:[%s9008_s7 + $0xf0] sm:$0xff] %v4019_v14 }
 0x4fe   : > { %4052 = vst [vmem:[%s9008_s7 + $0xf8] sm:$0xff] %v4020_v57  ;;  %v3923_v2 = vpop.permute.xlu1 %3922 }
 0x4ff   : > { %v3971_v13 = vmul.f32 %v3923_v2, %v3875_v50  ;;  %v3972_v22 = vmul.f32 %v3923_v2, %v3876_v26 }
 0x501   : > { %v4003_v30 = vadd.f32 %v3971_v13, %v8644_v41  ;;  %v4004_v31 = vadd.f32 %v3972_v22, %v8646_v43  ;;  %v3887_v43 = vsel %vm8991_vm13, %v8978_v29, 0.0 }
 0x503   : > { %4035 = vst [vmem:[%s9008_s7 + $0x70] sm:$0xff] %v4003_v30 }
 0x504   : > { %4036 = vst [vmem:[%s9008_s7 + $0x78] sm:$0xff] %v4004_v31 }
 0x506   : > { %v3935_v4 = vpop.permute.xlu1 %3934 }
 0x507   : > { %v3977_v11 = vmul.f32 %v3935_v4, %v3881_v28  ;;  %v3978_v10 = vmul.f32 %v3935_v4, %v3882_v1 }
 0x509   : > { %v4009_v53 = vadd.f32 %v3977_v11, %v8715_v60  ;;  %v4010_v41 = vadd.f32 %v3978_v10, %v8717_v49 }
 0x50b   : > { %4041 = vst [vmem:[%s9008_s7 + $0xa0] sm:$0xff] %v4009_v53 }
 0x50c   : > { %4042 = vst [vmem:[%s9008_s7 + $0xa8] sm:$0xff] %v4010_v41 }
 0x50e   : > { %v3947_v34 = vpop.permute.xlu1 %3946 }
 0x50f   : > { %v3983_v7 = vmul.f32 %v3947_v34, %v3887_v43  ;;  %v3984_v54 = vmul.f32 %v3947_v34, %v3888_v51 }
 0x511   : > { %v4015_v37 = vadd.f32 %v3983_v7, %v8789_v15  ;;  %v4016_v52 = vadd.f32 %v3984_v54, %v8791_v38 }
 0x513   : > { %4047 = vst [vmem:[%s9008_s7 + $0xd0] sm:$0xff] %v4015_v37 }
 0x514   : > { %4048 = vst [vmem:[%s9008_s7 + $0xd8] sm:$0xff] %v4016_v52 }
 0x515 PF: > { %s14_s17 = sadd.s32 1, %s4329_s17   ;;  %s10550_s15 = smov %s4325_s16 }
 0x516   : > { %p11_p5 = scmp.ge.s32.totalorder %s14_s17, 4   ;;  %s10551_s16 = smov %s10553_s18 }
 0x518   :  { %13 = sbr.rel (!%p11_p5) target bundleno = 2 (0x2), region = 73 }

</bundles_post_ra>
